<compile_context>
chip_gen: v7x
topology: tpu7x:2x2x1
jax: 0.10.0
libtpu: 0.0.40
codegen_flags: <defaults>
</compile_context>

<pallas_src>
import functools

import jax
import jax.numpy as jnp
import numpy as np
from jax.experimental import pallas as pl
from jax.experimental.pallas import tpu as pltpu

VAR_SIZE = {
    'dsads': {'in_size': 45, 'ker_size': 9, 'fc_size': 32 * 25},
    'pamap': {'in_size': 27, 'ker_size': 9, 'fc_size': 32 * 122},
    'uschad': {'in_size': 6, 'ker_size': 6, 'fc_size': 64 * 58},
}

C1, C2 = 16, 32  # conv1 / conv2 output channels (fixed by the module)


def _act_kernel(x_ref, w1_ref, sh1_ref, w2_ref, sh2_ref, out_ref,
                y1_scr, p1_scr, y2_scr, *, K, TB, Wp):
    """One block of TB batch elements per grid step.

    x_ref   : (TB*Wp, Cin)   bf16  time-major input rows (Wp rows per element)
    w{1,2}  : (K, Cin, Cout) bf16  conv weights with BN scale folded in
    sh{1,2} : (1, Cout)      f32   folded conv-bias / BN shift
    out_ref : (TB*Q, C2)     f32   pooled conv2 rows, Q = Wp//4 rows per element
    """
    Hp = Wp // 2                     # rows / element after pool1 (padded)
    Q = Wp // 4                      # rows / element after pool2 (padded)
    M1 = TB * Wp - (K - 1)
    M2 = TB * Hp - (K - 1)

    # ---- conv1: K shifted matmuls, LHS sliced straight from the input ref ----
    acc1 = jnp.dot(x_ref[pl.ds(0, M1), :], w1_ref[0],
                   preferred_element_type=jnp.float32)
    for k in range(1, K):
        acc1 = acc1 + jnp.dot(x_ref[pl.ds(k, M1), :], w1_ref[k],
                              preferred_element_type=jnp.float32)
    # folded BN shift + ReLU; stage in VMEM so pooling can use strided loads
    y1_scr[pl.ds(0, M1), :] = jnp.maximum(acc1 + sh1_ref[...], 0.0)
    y1_scr[pl.ds(M1, K - 1), :] = jnp.zeros((K - 1, y1_scr.shape[1]),
                                            jnp.float32)
    # MaxPool2d((1,2), stride=2) along time via stride-2 VMEM reads
    p1_scr[...] = jnp.maximum(y1_scr[pl.ds(0, TB * Hp, stride=2), :],
                              y1_scr[pl.ds(1, TB * Hp, stride=2), :])

    # ---- conv2 ----
    acc2 = jnp.dot(p1_scr[pl.ds(0, M2), :], w2_ref[0],
                   preferred_element_type=jnp.float32)
    for k in range(1, K):
        acc2 = acc2 + jnp.dot(p1_scr[pl.ds(k, M2), :], w2_ref[k],
                              preferred_element_type=jnp.float32)
    y2_scr[pl.ds(0, M2), :] = jnp.maximum(acc2 + sh2_ref[...], 0.0)
    y2_scr[pl.ds(M2, K - 1), :] = jnp.zeros((K - 1, y2_scr.shape[1]),
                                            jnp.float32)
    out_ref[...] = jnp.maximum(y2_scr[pl.ds(0, TB * Q, stride=2), :],
                               y2_scr[pl.ds(1, TB * Q, stride=2), :])


def act_network_forward(x_nchw, params, taskname, block_batch=8):
    """Eval-mode ActNetwork forward; returns (B, fc_size) like torch's view."""
    cfg = VAR_SIZE[taskname]
    Cin, K = cfg['in_size'], cfg['ker_size']
    B, C, H, W = x_nchw.shape
    assert C == Cin and H == 1

    L1 = W - K + 1                   # conv1 output length
    P1 = (L1 - 2) // 2 + 1           # after pool1
    L2 = P1 - K + 1                  # conv2 output length
    P2 = (L2 - 2) // 2 + 1           # after pool2

    Wp = ((W + 7) // 8) * 8          # padded time length (multiple of 8)
    Hp, Q = Wp // 2, Wp // 4
    TB = max(1, min(block_batch, B))
    Bp = ((B + TB - 1) // TB) * TB   # padded batch (multiple of TB)

    eps = 1e-5
    # Fold BatchNorm(eval) scale into the conv weights and bias into a shift.
    s1 = params['bn1_gamma'] / jnp.sqrt(params['bn1_var'] + eps)
    sh1 = (params['conv1_b'] - params['bn1_mean']) * s1 + params['bn1_beta']
    s2 = params['bn2_gamma'] / jnp.sqrt(params['bn2_var'] + eps)
    sh2 = (params['conv2_b'] - params['bn2_mean']) * s2 + params['bn2_beta']

    # (Cout, Cin, 1, K) -> (K, Cin, Cout), BN scale folded, bf16 for the MXU.
    w1t = (jnp.transpose(params['conv1_w'][:, :, 0, :], (2, 1, 0))
           * s1[None, None, :]).astype(jnp.bfloat16)
    w2t = (jnp.transpose(params['conv2_w'][:, :, 0, :], (2, 1, 0))
           * s2[None, None, :]).astype(jnp.bfloat16)

    # NCHW -> (B, W, Cin), pad batch/time, flatten to a 2-D time-major slab.
    xt = jnp.transpose(x_nchw[:, :, 0, :], (0, 2, 1))
    xt = jnp.pad(xt, ((0, Bp - B), (0, Wp - W), (0, 0)))
    x2d = xt.reshape(Bp * Wp, Cin).astype(jnp.bfloat16)

    kern = functools.partial(_act_kernel, K=K, TB=TB, Wp=Wp)
    out2d = pl.pallas_call(
        kern,
        out_shape=jax.ShapeDtypeStruct((Bp * Q, C2), jnp.float32),
        grid_spec=pltpu.PrefetchScalarGridSpec(
            num_scalar_prefetch=0,
            grid=(Bp // TB,),
            in_specs=[
                pl.BlockSpec((TB * Wp, Cin), lambda b: (b, 0)),
                pl.BlockSpec((K, Cin, C1), lambda b: (0, 0, 0)),
                pl.BlockSpec((1, C1), lambda b: (0, 0)),
                pl.BlockSpec((K, C1, C2), lambda b: (0, 0, 0)),
                pl.BlockSpec((1, C2), lambda b: (0, 0)),
            ],
            out_specs=pl.BlockSpec((TB * Q, C2), lambda b: (b, 0)),
            scratch_shapes=[
                pltpu.VMEM((TB * Wp, C1), jnp.float32),   # conv1 pre-pool
                pltpu.VMEM((TB * Hp, C1), jnp.float32),   # pool1 output
                pltpu.VMEM((TB * Hp, C2), jnp.float32),   # conv2 pre-pool
            ],
        ),
        compiler_params=pltpu.CompilerParams(
            dimension_semantics=("parallel",)),
    )(x2d, w1t, sh1.reshape(1, C1).astype(jnp.float32),
      w2t, sh2.reshape(1, C2).astype(jnp.float32))

    # Drop time/batch padding, go channel-major, flatten like torch view(-1, fc).
    out = out2d.reshape(Bp, Q, C2)[:B, :P2, :]        # (B, P2, C2)
    out = jnp.transpose(out, (0, 2, 1))               # (B, C2, P2)
    return out.reshape(-1, cfg['fc_size'])


def _reference_forward(x_nchw, params, taskname):
    """Pure-JAX (XLA, f32) reference with identical math for validation."""
    cfg = VAR_SIZE[taskname]
    K = cfg['ker_size']
    eps = 1e-5

    def block(x, w, b, g, beta, mean, var):
        L = x.shape[-1] - K + 1
        y = jnp.zeros((x.shape[0], w.shape[0], L), jnp.float32)
        for k in range(K):
            y = y + jnp.einsum('bcw,oc->bow', x[:, :, k:k + L], w[:, :, k])
        y = y + b[None, :, None]
        y = ((y - mean[None, :, None]) / jnp.sqrt(var[None, :, None] + eps)
             * g[None, :, None] + beta[None, :, None])
        y = jnp.maximum(y, 0.0)
        P = (L - 2) // 2 + 1
        return jnp.maximum(y[:, :, 0:2 * P:2], y[:, :, 1:2 * P:2])

    x = x_nchw[:, :, 0, :]
    y = block(x, params['conv1_w'][:, :, 0, :], params['conv1_b'],
              params['bn1_gamma'], params['bn1_beta'],
              params['bn1_mean'], params['bn1_var'])
    y = block(y, params['conv2_w'][:, :, 0, :], params['conv2_b'],
              params['bn2_gamma'], params['bn2_beta'],
              params['bn2_mean'], params['bn2_var'])
    return y.reshape(-1, cfg['fc_size'])


if __name__ == "__main__":
    taskname = 'dsads'
    cfg = VAR_SIZE[taskname]
    B, Cin, K = 8, cfg['in_size'], cfg['ker_size']
    W = 125  # time length that yields fc_size = 32 * 25 for 'dsads'

    ks = jax.random.split(jax.random.PRNGKey(0), 13)
    params = {
        'conv1_w': 0.05 * jax.random.normal(ks[0], (C1, Cin, 1, K), jnp.float32),
        'conv1_b': 0.05 * jax.random.normal(ks[1], (C1,), jnp.float32),
        'bn1_gamma': 1.0 + 0.1 * jax.random.normal(ks[2], (C1,), jnp.float32),
        'bn1_beta': 0.1 * jax.random.normal(ks[3], (C1,), jnp.float32),
        'bn1_mean': 0.1 * jax.random.normal(ks[4], (C1,), jnp.float32),
        'bn1_var': 1.0 + 0.1 * jax.random.uniform(ks[5], (C1,), jnp.float32),
        'conv2_w': 0.08 * jax.random.normal(ks[6], (C2, C1, 1, K), jnp.float32),
        'conv2_b': 0.05 * jax.random.normal(ks[7], (C2,), jnp.float32),
        'bn2_gamma': 1.0 + 0.1 * jax.random.normal(ks[8], (C2,), jnp.float32),
        'bn2_beta': 0.1 * jax.random.normal(ks[9], (C2,), jnp.float32),
        'bn2_mean': 0.1 * jax.random.normal(ks[10], (C2,), jnp.float32),
        'bn2_var': 1.0 + 0.1 * jax.random.uniform(ks[11], (C2,), jnp.float32),
    }
    x = jax.random.normal(ks[12], (B, Cin, 1, W), jnp.float32)

    out = act_network_forward(x, params, taskname, block_batch=4)
    out = jax.block_until_ready(out)

    ref = _reference_forward(x, params, taskname)
    assert out.shape == (B, cfg['fc_size'])
    np.testing.assert_allclose(np.asarray(out), np.asarray(ref),
                               rtol=3e-2, atol=3e-2)
    print("KERNEL_OK")
</pallas_src>

<mosaic_0001>
module attributes {stable_mosaic.version = 11 : i64} {
  func.func @_act_kernel(%arg0: i32, %arg1: memref<512x45xbf16, #tpu.memory_space<vmem>>, %arg2: memref<9x45x16xbf16, #tpu.memory_space<vmem>>, %arg3: memref<1x16xf32, #tpu.memory_space<vmem>>, %arg4: memref<9x16x32xbf16, #tpu.memory_space<vmem>>, %arg5: memref<1x32xf32, #tpu.memory_space<vmem>>, %arg6: memref<128x32xf32, #tpu.memory_space<vmem>>, %arg7: memref<512x16xf32, #tpu.memory_space<vmem>>, %arg8: memref<256x16xf32, #tpu.memory_space<vmem>>, %arg9: memref<256x32xf32, #tpu.memory_space<vmem>>) attributes {dimension_semantics = [#tpu.dimension_semantics<parallel>], iteration_bounds = array<i64: 2>, scalar_prefetch = 0 : i64, scratch_operands = 3 : i64, tpu.core_type = #tpu.core_type<tc>, window_params = [{transform_indices = @transform_0, window_bounds = array<i64: 512, 45>}, {pipeline_mode = #tpu.pipeline_mode<synchronous>, transform_indices = @transform_1, window_bounds = array<i64: 9, 45, 16>}, {pipeline_mode = #tpu.pipeline_mode<synchronous>, transform_indices = @transform_2, window_bounds = array<i64: 1, 16>}, {pipeline_mode = #tpu.pipeline_mode<synchronous>, transform_indices = @transform_3, window_bounds = array<i64: 9, 16, 32>}, {pipeline_mode = #tpu.pipeline_mode<synchronous>, transform_indices = @transform_4, window_bounds = array<i64: 1, 32>}, {transform_indices = @transform_5, window_bounds = array<i64: 128, 32>}]} {
    %c0 = arith.constant 0 : index
    %c0_0 = arith.constant 0 : index
    %0 = vector.load %arg1[%c0, %c0_0] : memref<512x45xbf16, #tpu.memory_space<vmem>>, vector<504x45xbf16>
    %c0_1 = arith.constant 0 : index
    %c0_2 = arith.constant 0 : index
    %c0_3 = arith.constant 0 : index
    %1 = vector.load %arg2[%c0_1, %c0_2, %c0_3] : memref<9x45x16xbf16, #tpu.memory_space<vmem>>, vector<1x45x16xbf16>
    %2 = vector.shape_cast %1 : vector<1x45x16xbf16> to vector<45x16xbf16>
    %cst = arith.constant dense<0.000000e+00> : vector<504x16xf32>
    %3 = tpu.matmul %0, %2, %cst {dimension_numbers = #tpu.dot_dimension_numbers<[1], [0], [0], [1], [0, 0, 1, 1], [], []>} : vector<504x45xbf16>, vector<45x16xbf16>, vector<504x16xf32> -> vector<504x16xf32>
    %c1 = arith.constant 1 : index
    %c0_4 = arith.constant 0 : index
    %4 = vector.load %arg1[%c1, %c0_4] : memref<512x45xbf16, #tpu.memory_space<vmem>>, vector<504x45xbf16>
    %c1_5 = arith.constant 1 : index
    %c0_6 = arith.constant 0 : index
    %c0_7 = arith.constant 0 : index
    %5 = vector.load %arg2[%c1_5, %c0_6, %c0_7] : memref<9x45x16xbf16, #tpu.memory_space<vmem>>, vector<1x45x16xbf16>
    %6 = vector.shape_cast %5 : vector<1x45x16xbf16> to vector<45x16xbf16>
    %cst_8 = arith.constant dense<0.000000e+00> : vector<504x16xf32>
    %7 = tpu.matmul %4, %6, %cst_8 {dimension_numbers = #tpu.dot_dimension_numbers<[1], [0], [0], [1], [0, 0, 1, 1], [], []>} : vector<504x45xbf16>, vector<45x16xbf16>, vector<504x16xf32> -> vector<504x16xf32>
    %8 = arith.addf %3, %7 : vector<504x16xf32>
    %c2 = arith.constant 2 : index
    %c0_9 = arith.constant 0 : index
    %9 = vector.load %arg1[%c2, %c0_9] : memref<512x45xbf16, #tpu.memory_space<vmem>>, vector<504x45xbf16>
    %c2_10 = arith.constant 2 : index
    %c0_11 = arith.constant 0 : index
    %c0_12 = arith.constant 0 : index
    %10 = vector.load %arg2[%c2_10, %c0_11, %c0_12] : memref<9x45x16xbf16, #tpu.memory_space<vmem>>, vector<1x45x16xbf16>
    %11 = vector.shape_cast %10 : vector<1x45x16xbf16> to vector<45x16xbf16>
    %cst_13 = arith.constant dense<0.000000e+00> : vector<504x16xf32>
    %12 = tpu.matmul %9, %11, %cst_13 {dimension_numbers = #tpu.dot_dimension_numbers<[1], [0], [0], [1], [0, 0, 1, 1], [], []>} : vector<504x45xbf16>, vector<45x16xbf16>, vector<504x16xf32> -> vector<504x16xf32>
    %13 = arith.addf %8, %12 : vector<504x16xf32>
    %c3 = arith.constant 3 : index
    %c0_14 = arith.constant 0 : index
    %14 = vector.load %arg1[%c3, %c0_14] : memref<512x45xbf16, #tpu.memory_space<vmem>>, vector<504x45xbf16>
    %c3_15 = arith.constant 3 : index
    %c0_16 = arith.constant 0 : index
    %c0_17 = arith.constant 0 : index
    %15 = vector.load %arg2[%c3_15, %c0_16, %c0_17] : memref<9x45x16xbf16, #tpu.memory_space<vmem>>, vector<1x45x16xbf16>
    %16 = vector.shape_cast %15 : vector<1x45x16xbf16> to vector<45x16xbf16>
    %cst_18 = arith.constant dense<0.000000e+00> : vector<504x16xf32>
    %17 = tpu.matmul %14, %16, %cst_18 {dimension_numbers = #tpu.dot_dimension_numbers<[1], [0], [0], [1], [0, 0, 1, 1], [], []>} : vector<504x45xbf16>, vector<45x16xbf16>, vector<504x16xf32> -> vector<504x16xf32>
    %18 = arith.addf %13, %17 : vector<504x16xf32>
    %c4 = arith.constant 4 : index
    %c0_19 = arith.constant 0 : index
    %19 = vector.load %arg1[%c4, %c0_19] : memref<512x45xbf16, #tpu.memory_space<vmem>>, vector<504x45xbf16>
    %c4_20 = arith.constant 4 : index
    %c0_21 = arith.constant 0 : index
    %c0_22 = arith.constant 0 : index
    %20 = vector.load %arg2[%c4_20, %c0_21, %c0_22] : memref<9x45x16xbf16, #tpu.memory_space<vmem>>, vector<1x45x16xbf16>
    %21 = vector.shape_cast %20 : vector<1x45x16xbf16> to vector<45x16xbf16>
    %cst_23 = arith.constant dense<0.000000e+00> : vector<504x16xf32>
    %22 = tpu.matmul %19, %21, %cst_23 {dimension_numbers = #tpu.dot_dimension_numbers<[1], [0], [0], [1], [0, 0, 1, 1], [], []>} : vector<504x45xbf16>, vector<45x16xbf16>, vector<504x16xf32> -> vector<504x16xf32>
    %23 = arith.addf %18, %22 : vector<504x16xf32>
    %c5 = arith.constant 5 : index
    %c0_24 = arith.constant 0 : index
    %24 = vector.load %arg1[%c5, %c0_24] : memref<512x45xbf16, #tpu.memory_space<vmem>>, vector<504x45xbf16>
    %c5_25 = arith.constant 5 : index
    %c0_26 = arith.constant 0 : index
    %c0_27 = arith.constant 0 : index
    %25 = vector.load %arg2[%c5_25, %c0_26, %c0_27] : memref<9x45x16xbf16, #tpu.memory_space<vmem>>, vector<1x45x16xbf16>
    %26 = vector.shape_cast %25 : vector<1x45x16xbf16> to vector<45x16xbf16>
    %cst_28 = arith.constant dense<0.000000e+00> : vector<504x16xf32>
    %27 = tpu.matmul %24, %26, %cst_28 {dimension_numbers = #tpu.dot_dimension_numbers<[1], [0], [0], [1], [0, 0, 1, 1], [], []>} : vector<504x45xbf16>, vector<45x16xbf16>, vector<504x16xf32> -> vector<504x16xf32>
    %28 = arith.addf %23, %27 : vector<504x16xf32>
    %c6 = arith.constant 6 : index
    %c0_29 = arith.constant 0 : index
    %29 = vector.load %arg1[%c6, %c0_29] : memref<512x45xbf16, #tpu.memory_space<vmem>>, vector<504x45xbf16>
    %c6_30 = arith.constant 6 : index
    %c0_31 = arith.constant 0 : index
    %c0_32 = arith.constant 0 : index
    %30 = vector.load %arg2[%c6_30, %c0_31, %c0_32] : memref<9x45x16xbf16, #tpu.memory_space<vmem>>, vector<1x45x16xbf16>
    %31 = vector.shape_cast %30 : vector<1x45x16xbf16> to vector<45x16xbf16>
    %cst_33 = arith.constant dense<0.000000e+00> : vector<504x16xf32>
    %32 = tpu.matmul %29, %31, %cst_33 {dimension_numbers = #tpu.dot_dimension_numbers<[1], [0], [0], [1], [0, 0, 1, 1], [], []>} : vector<504x45xbf16>, vector<45x16xbf16>, vector<504x16xf32> -> vector<504x16xf32>
    %33 = arith.addf %28, %32 : vector<504x16xf32>
    %c7 = arith.constant 7 : index
    %c0_34 = arith.constant 0 : index
    %34 = vector.load %arg1[%c7, %c0_34] : memref<512x45xbf16, #tpu.memory_space<vmem>>, vector<504x45xbf16>
    %c7_35 = arith.constant 7 : index
    %c0_36 = arith.constant 0 : index
    %c0_37 = arith.constant 0 : index
    %35 = vector.load %arg2[%c7_35, %c0_36, %c0_37] : memref<9x45x16xbf16, #tpu.memory_space<vmem>>, vector<1x45x16xbf16>
    %36 = vector.shape_cast %35 : vector<1x45x16xbf16> to vector<45x16xbf16>
    %cst_38 = arith.constant dense<0.000000e+00> : vector<504x16xf32>
    %37 = tpu.matmul %34, %36, %cst_38 {dimension_numbers = #tpu.dot_dimension_numbers<[1], [0], [0], [1], [0, 0, 1, 1], [], []>} : vector<504x45xbf16>, vector<45x16xbf16>, vector<504x16xf32> -> vector<504x16xf32>
    %38 = arith.addf %33, %37 : vector<504x16xf32>
    %c8 = arith.constant 8 : index
    %c0_39 = arith.constant 0 : index
    %39 = vector.load %arg1[%c8, %c0_39] : memref<512x45xbf16, #tpu.memory_space<vmem>>, vector<504x45xbf16>
    %c8_40 = arith.constant 8 : index
    %c0_41 = arith.constant 0 : index
    %c0_42 = arith.constant 0 : index
    %40 = vector.load %arg2[%c8_40, %c0_41, %c0_42] : memref<9x45x16xbf16, #tpu.memory_space<vmem>>, vector<1x45x16xbf16>
    %41 = vector.shape_cast %40 : vector<1x45x16xbf16> to vector<45x16xbf16>
    %cst_43 = arith.constant dense<0.000000e+00> : vector<504x16xf32>
    %42 = tpu.matmul %39, %41, %cst_43 {dimension_numbers = #tpu.dot_dimension_numbers<[1], [0], [0], [1], [0, 0, 1, 1], [], []>} : vector<504x45xbf16>, vector<45x16xbf16>, vector<504x16xf32> -> vector<504x16xf32>
    %43 = arith.addf %38, %42 : vector<504x16xf32>
    %c0_44 = arith.constant 0 : index
    %c0_45 = arith.constant 0 : index
    %44 = vector.load %arg3[%c0_44, %c0_45] : memref<1x16xf32, #tpu.memory_space<vmem>>, vector<1x16xf32>
    %45 = vector.broadcast %44 : vector<1x16xf32> to vector<504x16xf32>
    %46 = arith.addf %43, %45 : vector<504x16xf32>
    %cst_46 = arith.constant 0.000000e+00 : f32
    %47 = vector.broadcast %cst_46 : f32 to vector<504x16xf32>
    %48 = arith.maximumf %46, %47 : vector<504x16xf32>
    %c0_47 = arith.constant 0 : index
    %c0_48 = arith.constant 0 : index
    %49 = vector.load %arg7[%c0_47, %c0_48] : memref<512x16xf32, #tpu.memory_space<vmem>>, vector<504x16xf32>
    tpu.vector_store %arg7[%c0_47, %c0_48], %48 {strides = array<i32>} : memref<512x16xf32, #tpu.memory_space<vmem>>, vector<504x16xf32>,
    %cst_49 = arith.constant 0.000000e+00 : f32
    %50 = vector.broadcast %cst_49 : f32 to vector<8x16xf32>
    %c504 = arith.constant 504 : index
    %c0_50 = arith.constant 0 : index
    %51 = vector.load %arg7[%c504, %c0_50] : memref<512x16xf32, #tpu.memory_space<vmem>>, vector<8x16xf32>
    tpu.vector_store %arg7[%c504, %c0_50], %50 {strides = array<i32>} : memref<512x16xf32, #tpu.memory_space<vmem>>, vector<8x16xf32>,
    %c0_51 = arith.constant 0 : index
    %c0_52 = arith.constant 0 : index
    %52 = tpu.strided_load %arg7[%c0_51, %c0_52] {strides = array<i32: 2, 1>} : memref<512x16xf32, #tpu.memory_space<vmem>>, vector<256x16xf32>
    %c1_53 = arith.constant 1 : index
    %c0_54 = arith.constant 0 : index
    %53 = tpu.strided_load %arg7[%c1_53, %c0_54] {strides = array<i32: 2, 1>} : memref<512x16xf32, #tpu.memory_space<vmem>>, vector<256x16xf32>
    %54 = arith.maximumf %52, %53 : vector<256x16xf32>
    %c0_55 = arith.constant 0 : index
    %c0_56 = arith.constant 0 : index
    %55 = vector.load %arg8[%c0_55, %c0_56] : memref<256x16xf32, #tpu.memory_space<vmem>>, vector<256x16xf32>
    tpu.vector_store %arg8[%c0_55, %c0_56], %54 {strides = array<i32>} : memref<256x16xf32, #tpu.memory_space<vmem>>, vector<256x16xf32>,
    %c0_57 = arith.constant 0 : index
    %c0_58 = arith.constant 0 : index
    %56 = vector.load %arg8[%c0_57, %c0_58] : memref<256x16xf32, #tpu.memory_space<vmem>>, vector<248x16xf32>
    %c0_59 = arith.constant 0 : index
    %c0_60 = arith.constant 0 : index
    %c0_61 = arith.constant 0 : index
    %57 = vector.load %arg4[%c0_59, %c0_60, %c0_61] : memref<9x16x32xbf16, #tpu.memory_space<vmem>>, vector<1x16x32xbf16>
    %58 = vector.shape_cast %57 : vector<1x16x32xbf16> to vector<16x32xbf16>
    %cst_62 = arith.constant dense<0.000000e+00> : vector<248x32xf32>
    %59 = tpu.matmul %56, %58, %cst_62 {dimension_numbers = #tpu.dot_dimension_numbers<[1], [0], [0], [1], [0, 0, 1, 1], [], []>} : vector<248x16xf32>, vector<16x32xbf16>, vector<248x32xf32> -> vector<248x32xf32>
    %c1_63 = arith.constant 1 : index
    %c0_64 = arith.constant 0 : index
    %60 = vector.load %arg8[%c1_63, %c0_64] : memref<256x16xf32, #tpu.memory_space<vmem>>, vector<248x16xf32>
    %c1_65 = arith.constant 1 : index
    %c0_66 = arith.constant 0 : index
    %c0_67 = arith.constant 0 : index
    %61 = vector.load %arg4[%c1_65, %c0_66, %c0_67] : memref<9x16x32xbf16, #tpu.memory_space<vmem>>, vector<1x16x32xbf16>
    %62 = vector.shape_cast %61 : vector<1x16x32xbf16> to vector<16x32xbf16>
    %cst_68 = arith.constant dense<0.000000e+00> : vector<248x32xf32>
    %63 = tpu.matmul %60, %62, %cst_68 {dimension_numbers = #tpu.dot_dimension_numbers<[1], [0], [0], [1], [0, 0, 1, 1], [], []>} : vector<248x16xf32>, vector<16x32xbf16>, vector<248x32xf32> -> vector<248x32xf32>
    %64 = arith.addf %59, %63 : vector<248x32xf32>
    %c2_69 = arith.constant 2 : index
    %c0_70 = arith.constant 0 : index
    %65 = vector.load %arg8[%c2_69, %c0_70] : memref<256x16xf32, #tpu.memory_space<vmem>>, vector<248x16xf32>
    %c2_71 = arith.constant 2 : index
    %c0_72 = arith.constant 0 : index
    %c0_73 = arith.constant 0 : index
    %66 = vector.load %arg4[%c2_71, %c0_72, %c0_73] : memref<9x16x32xbf16, #tpu.memory_space<vmem>>, vector<1x16x32xbf16>
    %67 = vector.shape_cast %66 : vector<1x16x32xbf16> to vector<16x32xbf16>
    %cst_74 = arith.constant dense<0.000000e+00> : vector<248x32xf32>
    %68 = tpu.matmul %65, %67, %cst_74 {dimension_numbers = #tpu.dot_dimension_numbers<[1], [0], [0], [1], [0, 0, 1, 1], [], []>} : vector<248x16xf32>, vector<16x32xbf16>, vector<248x32xf32> -> vector<248x32xf32>
    %69 = arith.addf %64, %68 : vector<248x32xf32>
    %c3_75 = arith.constant 3 : index
    %c0_76 = arith.constant 0 : index
    %70 = vector.load %arg8[%c3_75, %c0_76] : memref<256x16xf32, #tpu.memory_space<vmem>>, vector<248x16xf32>
    %c3_77 = arith.constant 3 : index
    %c0_78 = arith.constant 0 : index
    %c0_79 = arith.constant 0 : index
    %71 = vector.load %arg4[%c3_77, %c0_78, %c0_79] : memref<9x16x32xbf16, #tpu.memory_space<vmem>>, vector<1x16x32xbf16>
    %72 = vector.shape_cast %71 : vector<1x16x32xbf16> to vector<16x32xbf16>
    %cst_80 = arith.constant dense<0.000000e+00> : vector<248x32xf32>
    %73 = tpu.matmul %70, %72, %cst_80 {dimension_numbers = #tpu.dot_dimension_numbers<[1], [0], [0], [1], [0, 0, 1, 1], [], []>} : vector<248x16xf32>, vector<16x32xbf16>, vector<248x32xf32> -> vector<248x32xf32>
    %74 = arith.addf %69, %73 : vector<248x32xf32>
    %c4_81 = arith.constant 4 : index
    %c0_82 = arith.constant 0 : index
    %75 = vector.load %arg8[%c4_81, %c0_82] : memref<256x16xf32, #tpu.memory_space<vmem>>, vector<248x16xf32>
    %c4_83 = arith.constant 4 : index
    %c0_84 = arith.constant 0 : index
    %c0_85 = arith.constant 0 : index
    %76 = vector.load %arg4[%c4_83, %c0_84, %c0_85] : memref<9x16x32xbf16, #tpu.memory_space<vmem>>, vector<1x16x32xbf16>
    %77 = vector.shape_cast %76 : vector<1x16x32xbf16> to vector<16x32xbf16>
    %cst_86 = arith.constant dense<0.000000e+00> : vector<248x32xf32>
    %78 = tpu.matmul %75, %77, %cst_86 {dimension_numbers = #tpu.dot_dimension_numbers<[1], [0], [0], [1], [0, 0, 1, 1], [], []>} : vector<248x16xf32>, vector<16x32xbf16>, vector<248x32xf32> -> vector<248x32xf32>
    %79 = arith.addf %74, %78 : vector<248x32xf32>
    %c5_87 = arith.constant 5 : index
    %c0_88 = arith.constant 0 : index
    %80 = vector.load %arg8[%c5_87, %c0_88] : memref<256x16xf32, #tpu.memory_space<vmem>>, vector<248x16xf32>
    %c5_89 = arith.constant 5 : index
    %c0_90 = arith.constant 0 : index
    %c0_91 = arith.constant 0 : index
    %81 = vector.load %arg4[%c5_89, %c0_90, %c0_91] : memref<9x16x32xbf16, #tpu.memory_space<vmem>>, vector<1x16x32xbf16>
    %82 = vector.shape_cast %81 : vector<1x16x32xbf16> to vector<16x32xbf16>
    %cst_92 = arith.constant dense<0.000000e+00> : vector<248x32xf32>
    %83 = tpu.matmul %80, %82, %cst_92 {dimension_numbers = #tpu.dot_dimension_numbers<[1], [0], [0], [1], [0, 0, 1, 1], [], []>} : vector<248x16xf32>, vector<16x32xbf16>, vector<248x32xf32> -> vector<248x32xf32>
    %84 = arith.addf %79, %83 : vector<248x32xf32>
    %c6_93 = arith.constant 6 : index
    %c0_94 = arith.constant 0 : index
    %85 = vector.load %arg8[%c6_93, %c0_94] : memref<256x16xf32, #tpu.memory_space<vmem>>, vector<248x16xf32>
    %c6_95 = arith.constant 6 : index
    %c0_96 = arith.constant 0 : index
    %c0_97 = arith.constant 0 : index
    %86 = vector.load %arg4[%c6_95, %c0_96, %c0_97] : memref<9x16x32xbf16, #tpu.memory_space<vmem>>, vector<1x16x32xbf16>
    %87 = vector.shape_cast %86 : vector<1x16x32xbf16> to vector<16x32xbf16>
    %cst_98 = arith.constant dense<0.000000e+00> : vector<248x32xf32>
    %88 = tpu.matmul %85, %87, %cst_98 {dimension_numbers = #tpu.dot_dimension_numbers<[1], [0], [0], [1], [0, 0, 1, 1], [], []>} : vector<248x16xf32>, vector<16x32xbf16>, vector<248x32xf32> -> vector<248x32xf32>
    %89 = arith.addf %84, %88 : vector<248x32xf32>
    %c7_99 = arith.constant 7 : index
    %c0_100 = arith.constant 0 : index
    %90 = vector.load %arg8[%c7_99, %c0_100] : memref<256x16xf32, #tpu.memory_space<vmem>>, vector<248x16xf32>
    %c7_101 = arith.constant 7 : index
    %c0_102 = arith.constant 0 : index
    %c0_103 = arith.constant 0 : index
    %91 = vector.load %arg4[%c7_101, %c0_102, %c0_103] : memref<9x16x32xbf16, #tpu.memory_space<vmem>>, vector<1x16x32xbf16>
    %92 = vector.shape_cast %91 : vector<1x16x32xbf16> to vector<16x32xbf16>
    %cst_104 = arith.constant dense<0.000000e+00> : vector<248x32xf32>
    %93 = tpu.matmul %90, %92, %cst_104 {dimension_numbers = #tpu.dot_dimension_numbers<[1], [0], [0], [1], [0, 0, 1, 1], [], []>} : vector<248x16xf32>, vector<16x32xbf16>, vector<248x32xf32> -> vector<248x32xf32>
    %94 = arith.addf %89, %93 : vector<248x32xf32>
    %c8_105 = arith.constant 8 : index
    %c0_106 = arith.constant 0 : index
    %95 = vector.load %arg8[%c8_105, %c0_106] : memref<256x16xf32, #tpu.memory_space<vmem>>, vector<248x16xf32>
    %c8_107 = arith.constant 8 : index
    %c0_108 = arith.constant 0 : index
    %c0_109 = arith.constant 0 : index
    %96 = vector.load %arg4[%c8_107, %c0_108, %c0_109] : memref<9x16x32xbf16, #tpu.memory_space<vmem>>, vector<1x16x32xbf16>
    %97 = vector.shape_cast %96 : vector<1x16x32xbf16> to vector<16x32xbf16>
    %cst_110 = arith.constant dense<0.000000e+00> : vector<248x32xf32>
    %98 = tpu.matmul %95, %97, %cst_110 {dimension_numbers = #tpu.dot_dimension_numbers<[1], [0], [0], [1], [0, 0, 1, 1], [], []>} : vector<248x16xf32>, vector<16x32xbf16>, vector<248x32xf32> -> vector<248x32xf32>
    %99 = arith.addf %94, %98 : vector<248x32xf32>
    %c0_111 = arith.constant 0 : index
    %c0_112 = arith.constant 0 : index
    %100 = vector.load %arg5[%c0_111, %c0_112] : memref<1x32xf32, #tpu.memory_space<vmem>>, vector<1x32xf32>
    %101 = vector.broadcast %100 : vector<1x32xf32> to vector<248x32xf32>
    %102 = arith.addf %99, %101 : vector<248x32xf32>
    %cst_113 = arith.constant 0.000000e+00 : f32
    %103 = vector.broadcast %cst_113 : f32 to vector<248x32xf32>
    %104 = arith.maximumf %102, %103 : vector<248x32xf32>
    %c0_114 = arith.constant 0 : index
    %c0_115 = arith.constant 0 : index
    %105 = vector.load %arg9[%c0_114, %c0_115] : memref<256x32xf32, #tpu.memory_space<vmem>>, vector<248x32xf32>
    tpu.vector_store %arg9[%c0_114, %c0_115], %104 {strides = array<i32>} : memref<256x32xf32, #tpu.memory_space<vmem>>, vector<248x32xf32>,
    %cst_116 = arith.constant 0.000000e+00 : f32
    %106 = vector.broadcast %cst_116 : f32 to vector<8x32xf32>
    %c248 = arith.constant 248 : index
    %c0_117 = arith.constant 0 : index
    %107 = vector.load %arg9[%c248, %c0_117] : memref<256x32xf32, #tpu.memory_space<vmem>>, vector<8x32xf32>
    tpu.vector_store %arg9[%c248, %c0_117], %106 {strides = array<i32>} : memref<256x32xf32, #tpu.memory_space<vmem>>, vector<8x32xf32>,
    %c0_118 = arith.constant 0 : index
    %c0_119 = arith.constant 0 : index
    %108 = tpu.strided_load %arg9[%c0_118, %c0_119] {strides = array<i32: 2, 1>} : memref<256x32xf32, #tpu.memory_space<vmem>>, vector<128x32xf32>
    %c1_120 = arith.constant 1 : index
    %c0_121 = arith.constant 0 : index
    %109 = tpu.strided_load %arg9[%c1_120, %c0_121] {strides = array<i32: 2, 1>} : memref<256x32xf32, #tpu.memory_space<vmem>>, vector<128x32xf32>
    %110 = arith.maximumf %108, %109 : vector<128x32xf32>
    %c0_122 = arith.constant 0 : index
    %c0_123 = arith.constant 0 : index
    %111 = vector.load %arg6[%c0_122, %c0_123] : memref<128x32xf32, #tpu.memory_space<vmem>>, vector<128x32xf32>
    tpu.vector_store %arg6[%c0_122, %c0_123], %110 {strides = array<i32>} : memref<128x32xf32, #tpu.memory_space<vmem>>, vector<128x32xf32>,
    return
  }
  func.func @transform_0(%arg0: i32) -> (i32, i32) {
    %c0_i32 = arith.constant 0 : i32
    %c0_i32_0 = arith.constant 0 : i32
    return %arg0, %c0_i32 : i32, i32
  }
  func.func @transform_1(%arg0: i32) -> (i32, i32, i32) {
    %c0_i32 = arith.constant 0 : i32
    %c0_i32_0 = arith.constant 0 : i32
    %c0_i32_1 = arith.constant 0 : i32
    %c0_i32_2 = arith.constant 0 : i32
    return %c0_i32, %c0_i32_0, %c0_i32_1 : i32, i32, i32
  }
  func.func @transform_2(%arg0: i32) -> (i32, i32) {
    %c0_i32 = arith.constant 0 : i32
    %c0_i32_0 = arith.constant 0 : i32
    %c0_i32_1 = arith.constant 0 : i32
    return %c0_i32, %c0_i32_0 : i32, i32
  }
  func.func @transform_3(%arg0: i32) -> (i32, i32, i32) {
    %c0_i32 = arith.constant 0 : i32
    %c0_i32_0 = arith.constant 0 : i32
    %c0_i32_1 = arith.constant 0 : i32
    %c0_i32_2 = arith.constant 0 : i32
    return %c0_i32, %c0_i32_0, %c0_i32_1 : i32, i32, i32
  }
  func.func @transform_4(%arg0: i32) -> (i32, i32) {
    %c0_i32 = arith.constant 0 : i32
    %c0_i32_0 = arith.constant 0 : i32
    %c0_i32_1 = arith.constant 0 : i32
    return %c0_i32, %c0_i32_0 : i32, i32
  }
  func.func @transform_5(%arg0: i32) -> (i32, i32) {
    %c0_i32 = arith.constant 0 : i32
    %c0_i32_0 = arith.constant 0 : i32
    return %arg0, %c0_i32 : i32, i32
  }
}

</mosaic_0001>

<bundles_post_ra>
// kernel: tpu_custom_call.1
= control target key start
LH: loop header
LB: loop body
LE: loop exit
PB: predicated region body
PF: predicated region fallthrough
CT: control target
= control target key end

     0   :  { %s12779_s18 = smov 0   ;;  %s16177_s0 = inlined_call_operand.vmem [shape: bf16[1024,45], index: 0, kind: input, shape index: {}]   ;;  %s16178_s1 = inlined_call_operand.vmem [shape: bf16[9,45,16], index: 1, kind: input, shape index: {}]   ;;  %s16179_s2 = inlined_call_operand.vmem [shape: f32[1,16], index: 2, kind: input, shape index: {}]   ;;  %s16180_s3 = inlined_call_operand.vmem [shape: bf16[9,16,32], index: 3, kind: input, shape index: {}]   ;;  %s16181_s4 = inlined_call_operand.vmem [shape: f32[1,32], index: 4, kind: input, shape index: {}]   ;;  %s16182_s5 = inlined_call_operand.vmem [shape: f32[256,32], index: 5, kind: output, shape index: {}]  }
   0x1 LB: > { %s9232_s19 = sadd.s32 4294967295, %s12744_s18   ;;  %p9236_p0 = scmp.ge.s32.totalorder %s12744_s18, 1  ;;  %s12744_s18 = sphi %s12779_s18, %s15_s18  }
   0x2   : > { %p188_p1 = scmp.lt.s32.totalorder %s12744_s18, 3 }
   0x4   : > { %p189_p2 = pnand %p9236_p0, %p188_p1 }
   0x6   : > { %192 = sbr.rel (%p189_p2) target bundleno = 2623 (0xa3f), region = 40 }
   0xd   : > { %v12568_v0 = vld [vmem:[%s16178_s1 + $0x18] sm:$0xff]   ;;  %vm836_vm0 = vcmask 1045504   ;;  %v12569_v1 = vld [vmem:[%s16178_s1 + $0x20] sm:$0xff]   ;;  %vm837_vm1 = vcmask 1046528   ;;  %v12570_v2 = vld [vmem:[%s16178_s1 + $0x28] sm:$0x7f]  }
   0xe   : > { %10586 = vmatprep.subr.bf16.mxu0 %v12568_v0  ;;  %12071 = vmatprep.subr.bf16.mxu1 %v12568_v0  ;;  %s9237_s26 = sshll.u32 %s9232_s19, 6  ;;  %v12746_v3 = vmov 65535   ;;  %v12573_v7 = vld [vmem:[%s16178_s1] sm:$0xff]   ;;  %vm466_vm2 = vsmask.f32 7424  ;;  %vm739_vm3 = vcmask 367616  }
   0xf   : > { %10587 = vmatpush3.bf16.msra.mxu0 %v12568_v0  ;;  %12074 = vmatpush3.bf16.msra.mxu1 %v12568_v0  ;;  %v838_v4 = vsel %vm836_vm0, 4294967295, %v12746_v3  ;;  %p217_p3 = scmp.lt.s32.totalorder %s9237_s26, 127  ;;  %v12583_v47 = vld [vmem:[%s16178_s1 + $0x8] sm:$0xff]   ;;  %v12594_v48 = vld [vmem:[%s16178_s1 + $0x10] sm:$0x7f]   ;;  %vm3832_vm6 = vcmask 1044480  }
  0x10   : > { %10588 = vmatprep.subr.bf16.mxu0 %v12569_v1  ;;  %12072 = vmatprep.subr.bf16.mxu1 %v12569_v1  ;;  %v12800_v5 = vsel %vm837_vm1, %v838_v4, 0  ;;  %v12916_v4 = vld [vmem:[%s16178_s1 + $0x30] sm:$0xff]   ;;  %vm2058_vm4 = vsmask.f32 6400  ;;  %vm3216_vm5 = vsmask.f32 5376 }
  0x11   : > { %v841_v6 = vand.u32 %v12570_v2, %v12800_v5  ;;  %s16509_s26 = smov (!%p217_p3, %s9237_s26), 127  ;;  %v1215_v59 = vand.u32 %v12594_v48, %v12800_v5  ;;  %vm4374_vm7 = vsmask.f32 4352  ;;  %vm5618_vm8 = vcmask 130048   ;;  %s9239_s9 = sshll.u32 %s9232_s19, 4 }
  0x12   : > { %s9238_s27 = sshll.u32 %s16509_s26, 2  ;;  %vm12748_vm9 = vmmov 0   ;;  %vm9048_vm10 = vcmask 261120   ;;  %p223_p4 = scmp.lt.s32.totalorder %s9239_s9, 31 }
  0x13   : > { %10589 = vmatpush3.bf16.msra.mxu0 %v12569_v1  ;;  %12075 = vmatpush3.bf16.msra.mxu1 %v12569_v1  ;;  %s12809_s7 = scalar_lea.vmem %s16177_s0, %s9238_s27 }
  0x14   : > { %10590 = vmatprep.subr.bf16.mxu0 %v841_v6  ;;  %12073 = vmatprep.subr.bf16.mxu1 %v841_v6  ;;  %v229_v8 = vld [vmem:[%s12809_s7] sm:$0xf]  ;;  %v12813_v9 = vld [vmem:[%s12809_s7 + $0x4] sm:$0xf]  ;;  %v231_v10 = vld [vmem:[%s12809_s7 + $0x8] sm:$0xf] }
  0x15   : > { %v232_v11 = vld [vmem:[%s12809_s7 + $0xc] sm:$0xf]  ;;  %v12818_v12 = vcombine.low %v229_v8, %v12813_v9  ;;  %v233_v13 = vld [vmem:[%s12809_s7 + $0x10] sm:$0xf]  ;;  %v234_v14 = vld [vmem:[%s12809_s7 + $0x14] sm:$0xf] }
  0x16   : > { %v12822_v15 = vcombine.low %v231_v10, %v232_v11  ;;  %v12824_v16 = vcombine.low %v233_v13, %v234_v14  ;;  %v235_v17 = vld [vmem:[%s12809_s7 + $0x18] sm:$0xf]  ;;  %v236_v18 = vld [vmem:[%s12809_s7 + $0x1c] sm:$0xf]  ;;  %v237_v19 = vld [vmem:[%s12809_s7 + $0x20] sm:$0xf] }
  0x17   : > { %10591 = vmatpush3.bf16.msra.mxu0 %v841_v6  ;;  %12076 = vmatpush3.bf16.msra.mxu1 %v841_v6  ;;  %v468_v20 = vshrl.u32 %v12818_v12, 16  ;;  %v470_v21 = vshll.u32 %v12818_v12, 16  ;;  %v12831_v22 = vcombine.low %v235_v17, %v236_v18  ;;  %v238_v23 = vld [vmem:[%s12809_s7 + $0x24] sm:$0xf]  ;;  %v239_v24 = vld [vmem:[%s12809_s7 + $0x28] sm:$0xf] }
  0x18   : > { %10656 = vmatprep.subr.bf16.mxu0 %v12573_v7  ;;  %v12836_v25 = vshll.u32 %v12822_v15, 16  ;;  %v12839_v26 = vshrl.u32 %v12822_v15, 16  ;;  %v12842_v27 = vshll.u32 %v12824_v16, 16  ;;  %v12845_v28 = vshrl.u32 %v12824_v16, 16  ;;  %v240_v29 = vld [vmem:[%s12809_s7 + $0x2c] sm:$0xf] }
  0x19   : > { %v472_v30 = vrot.slane %v470_v21, 1  ;;  %v12849_v31 = vshll.u32 %v12831_v22, 16  ;;  %v12851_v32 = vcombine.low %v237_v19, %v238_v23  ;;  %v12855_v35 = vcombine.low %v239_v24, %v240_v29  ;;  %v241_v42 = vld [vmem:[%s12809_s7 + $0x30] sm:$0xf]  ;;  %v242_v43 = vld [vmem:[%s12809_s7 + $0x34] sm:$0xf] }
  0x1a   : > { %16297 = vst [vmem:[#allocation5_spill] sm:$0xff] %v12842_v27  ;;  %16298 = vst [vmem:[#allocation6_spill] sm:$0xff] %v12845_v28  ;;  %v477_v33 = vrot.slane %v12836_v25, 1  ;;  %v485_v34 = vrot.slane %v12842_v27, 1  ;;  %v12864_v41 = vshrl.u32 %v12831_v22, 16  ;;  %v12888_v54 = vcombine.low %v241_v42, %v242_v43  ;;  %s16511_s9 = smov (!%p223_p4, %s9239_s9), 31 }
  0x1b   : > { %16299 = vst [vmem:[#allocation7_spill] sm:$0xff] %v12849_v31  ;;  %v473_v36 = vor.u32 %v472_v30, %v468_v20  ;;  %v493_v37 = vrot.slane %v12849_v31, 1  ;;  %v12859_v38 = vshll.u32 %v12851_v32, 16  ;;  %v12870_v45 = vshrl.u32 %v12851_v32, 16  ;;  %v243_v51 = vld [vmem:[%s12809_s7 + $0x38] sm:$0xf] }
  0x1c   : > { %v481_v39 = vor.u32 %v12839_v26, %v477_v33  ;;  %v489_v40 = vor.u32 %v12845_v28, %v485_v34  ;;  %16301 = vst [vmem:[#allocation9_spill] sm:$0xff] %v12864_v41  ;;  %v12873_v46 = vshll.u32 %v12855_v35, 16  ;;  %v244_v52 = vld [vmem:[%s12809_s7 + $0x3c] sm:$0xf]  ;;  %v12898_v60 = vshll.u32 %v12888_v54, 16  ;;  %s9240_s19 = sshll.u32 %s16511_s9, 3 }
  0x1d   : > { %16300 = vst [vmem:[#allocation8_spill] sm:$0xff] %v12859_v38  ;;  %v478_v44 = vsel %vm466_vm2, %v473_v36, %v477_v33  ;;  %16302 = vst [vmem:[#allocation10_spill] sm:$0xff] %v12870_v45  ;;  %v501_v53 = vrot.slane %v12859_v38, 1  ;;  %v497_v55 = vor.u32 %v12864_v41, %v493_v37  ;;  %v12894_v58 = vcombine.low %v243_v51, %v244_v52  ;;  %v245_v63 = vld [vmem:[%s12809_s7 + $0x40] sm:$0xf] }
  0x1e   : > { %16303 = vst [vmem:[#allocation11_spill] sm:$0xff] %v12873_v46  ;;  %10592 = vmatprep.mubr.msk.bf16.mxu0 %vm739_vm3, %v478_v44  ;;  %v486_v49 = vsel %vm466_vm2, %v481_v39, %v485_v34  ;;  %v494_v50 = vsel %vm466_vm2, %v489_v40, %v493_v37  ;;  %v509_v57 = vrot.slane %v12873_v46, 1  ;;  %16304 = vst [vmem:[#allocation12_spill] sm:$0xff] %v12898_v60  ;;  %v12902_v62 = vshrl.u32 %v12855_v35, 16  ;;  %v246_v0 = vld [vmem:[%s12809_s7 + $0x44] sm:$0xf] }
  0x1f   : > { %10593 = vmatmul.mubr.msk.bf16.vlgmr.msra.gmra.mrb[0].mxu0 %vm739_vm3, %v486_v49  ;;  %v505_v56 = vor.u32 %v12870_v45, %v501_v53  ;;  %v502_v61 = vsel %vm466_vm2, %v497_v55, %v501_v53  ;;  %v12908_v2 = vshrl.u32 %v12888_v54, 16  ;;  %v12911_v3 = vshll.u32 %v12894_v58, 16  ;;  %v247_v6 = vld [vmem:[%s12809_s7 + $0x48] sm:$0xf]  ;;  %v249_v21 = vld [vmem:[%s12809_s7 + $0x50] sm:$0xf] }
  0x20   : > { %10657 = vmatpush3.bf16.msra.mxu0 %v12573_v7  ;;  %10596 = vmatprep.mubr.msk.bf16.mxu0 %vm739_vm3, %v494_v50  ;;  %16305 = vst [vmem:[#allocation13_spill] sm:$0xff] %v12902_v62  ;;  %v248_v7 = vld [vmem:[%s12809_s7 + $0x4c] sm:$0xf]  ;;  %v517_v8 = vrot.slane %v12898_v60, 1  ;;  %v12922_v10 = vcombine.low %v245_v63, %v246_v0  ;;  %v513_v11 = vor.u32 %v12902_v62, %v509_v57  ;;  %v12936_v20 = vshrl.u32 %v12894_v58, 16 }
  0x21   : > { %10658 = vmatprep.subr.bf16.mxu0 %v12583_v47  ;;  %v510_v1 = vsel %vm466_vm2, %v505_v56, %v509_v57  ;;  %16306 = vst [vmem:[#allocation14_spill] sm:$0xff] %v12908_v2  ;;  %16307 = vst [vmem:[#allocation15_spill] sm:$0xff] %v12911_v3  ;;  %v525_v14 = vrot.slane %v12911_v3, 1  ;;  %v12928_v17 = vcombine.low %v247_v6, %v248_v7  ;;  %v250_v23 = vld [vmem:[%s12809_s7 + $0x54] sm:$0xf] }
  0x22   : > { %v521_v13 = vor.u32 %v12908_v2, %v517_v8  ;;  %v12932_v18 = vshll.u32 %v12922_v10, 16  ;;  %v518_v19 = vsel %vm466_vm2, %v513_v11, %v517_v8  ;;  %16309 = vst [vmem:[#allocation17_spill] sm:$0xff] %v12936_v20  ;;  %v12942_v29 = vshrl.u32 %v12922_v10, 16  ;;  %v251_v33 = vld [vmem:[%s12809_s7 + $0x58] sm:$0xf] }
  0x23   : > { %v12945_v30 = vshll.u32 %v12928_v17, 16  ;;  %v252_v34 = vld [vmem:[%s12809_s7 + $0x5c] sm:$0xf]  ;;  %v12951_v37 = vcombine.low %v249_v21, %v250_v23  ;;  %v529_v39 = vor.u32 %v12936_v20, %v525_v14  ;;  %v253_v44 = vld [vmem:[%s12809_s7 + $0x60] sm:$0xf]  ;;  %v12962_v48 = vshrl.u32 %v12928_v17, 16 }
  0x24   : > { %10659 = vmatpush3.bf16.msra.mxu0 %v12583_v47  ;;  %16308 = vst [vmem:[#allocation16_spill] sm:$0xff] %v12932_v18  ;;  %v526_v24 = vsel %vm466_vm2, %v521_v13, %v525_v14  ;;  %16310 = vst [vmem:[#allocation18_spill] sm:$0xff] %v12942_v29  ;;  %v533_v36 = vrot.slane %v12932_v18, 1  ;;  %v12957_v43 = vcombine.low %v251_v33, %v252_v34  ;;  %v254_v47 = vld [vmem:[%s12809_s7 + $0x64] sm:$0xf] }
  0x25   : > { %10660 = vmatprep.subr.bf16.mxu0 %v1215_v59  ;;  %16311 = vst [vmem:[#allocation19_spill] sm:$0xff] %v12945_v30  ;;  %v541_v42 = vrot.slane %v12945_v30, 1  ;;  %16312 = vst [vmem:[#allocation20_spill] sm:$0xff] %v12962_v48  ;;  %v12965_v49 = vshll.u32 %v12951_v37, 16  ;;  %v255_v50 = vld [vmem:[%s12809_s7 + $0x68] sm:$0xf] }
  0x26   : > { %v537_v40 = vor.u32 %v12942_v29, %v533_v36  ;;  %v256_v51 = vld [vmem:[%s12809_s7 + $0x6c] sm:$0xf]  ;;  %v534_v52 = vsel %vm466_vm2, %v529_v39, %v533_v36  ;;  %v257_v53 = vld [vmem:[%s12809_s7 + $0x70] sm:$0xf]  ;;  %v258_v55 = vld [vmem:[%s12809_s7 + $0x74] sm:$0xf] }
  0x27   : > { %10597 = vmatmul.mubr.msk.bf16.gmra.mrb[4].mxu0 %vm739_vm3, %v502_v61  ;;  %16313 = vst [vmem:[#allocation21_spill] sm:$0xff] %v12965_v49  ;;  %v259_v56 = vld [vmem:[%s12809_s7 + $0x78] sm:$0xf]  ;;  %v12978_v61 = vshll.u32 %v12957_v43, 16  ;;  %v260_v63 = vld [vmem:[%s12809_s7 + $0x7c] sm:$0xf]  ;;  %v545_v6 = vor.u32 %v12962_v48, %v541_v42  ;;  %v12987_v7 = vcombine.low %v255_v50, %v256_v51  ;;  %v12991_v13 = vcombine.low %v257_v53, %v258_v55 }
  0x28   : > { %10600 = vmatprep.mubr.msk.bf16.mxu0 %vm739_vm3, %v510_v1  ;;  %10661 = vmatpush3.bf16.msra.mxu0 %v1215_v59  ;;  %v542_v57 = vsel %vm466_vm2, %v537_v40, %v541_v42  ;;  %v12975_v59 = vshrl.u32 %v12951_v37, 16  ;;  %v549_v0 = vrot.slane %v12965_v49, 1  ;;  %v12983_v1 = vcombine.low %v253_v44, %v254_v47  ;;  %v261_v55 = vld [vmem:[%s12809_s7 + $0x80] sm:$0xf] }
  0x29   : > { %10726 = vmatprep.subr.bf16.mxu0 %v12916_v4  ;;  %16315 = vst [vmem:[#allocation23_spill] sm:$0xff] %v12978_v61  ;;  %v557_v11 = vrot.slane %v12978_v61, 1  ;;  %v12993_v14 = vcombine.low %v259_v56, %v260_v63  ;;  %v13006_v33 = vshll.u32 %v12987_v7, 16  ;;  %v13010_v36 = vshll.u32 %v12991_v13, 16  ;;  %v262_v56 = vld [vmem:[%s12809_s7 + $0x84] sm:$0xf] }
  0x2a   : > { %16314 = vst [vmem:[#allocation22_spill] sm:$0xff] %v12975_v59  ;;  %v553_v8 = vor.u32 %v12975_v59, %v549_v0  ;;  %v12999_v21 = vshll.u32 %v12983_v1, 16  ;;  %v550_v23 = vsel %vm466_vm2, %v545_v6, %v549_v0  ;;  %v13018_v42 = vshrl.u32 %v12987_v7, 16  ;;  %v263_v63 = vld [vmem:[%s12809_s7 + $0x88] sm:$0xf] }
  0x2b   : > { %16319 = vst [vmem:[#allocation27_spill] sm:$0xff] %v13006_v33  ;;  %16320 = vst [vmem:[#allocation28_spill] sm:$0xff] %v13010_v36  ;;  %v13013_v39 = vshll.u32 %v12993_v14, 16  ;;  %v573_v47 = vrot.slane %v13006_v33, 1  ;;  %v13024_v50 = vshrl.u32 %v12991_v13, 16 }
  0x2c   : > { %16317 = vst [vmem:[#allocation25_spill] sm:$0xff] %v12999_v21  ;;  %v558_v34 = vsel %vm466_vm2, %v553_v8, %v557_v11  ;;  %v565_v40 = vrot.slane %v12999_v21, 1  ;;  %16322 = vst [vmem:[#allocation30_spill] sm:$0xff] %v13018_v42  ;;  %v264_v0 = vld [vmem:[%s12809_s7 + $0x8c] sm:$0xf]  ;;  %v13036_v8 = vcombine.low %v261_v55, %v262_v56 }
  0x2d   : > { %16321 = vst [vmem:[#allocation29_spill] sm:$0xff] %v13013_v39  ;;  %16323 = vst [vmem:[#allocation31_spill] sm:$0xff] %v13024_v50  ;;  %v589_v53 = vrot.slane %v13013_v39, 1  ;;  %v265_v39 = vld [vmem:[%s12809_s7 + $0x90] sm:$0xf] }
  0x2e   : > { %v13054_v56 = vshrl.u32 %v13036_v8, 16  ;;  %v282_v59 = vld [vmem:[%s12809_s7 + $0xd4] sm:$0xf] }
  0x2f   : > { %10601 = vmatmul.mubr.msk.bf16.gmra.mrb[8].mxu0 %vm739_vm3, %v518_v19  ;;  %v12996_v19 = vshrl.u32 %v12957_v43, 16 }
  0x30   : > { %10604 = vmatprep.mubr.msk.bf16.mxu0 %vm739_vm3, %v526_v24  ;;  %v13003_v24 = vshrl.u32 %v12983_v1, 16  ;;  %16326 = vst [vmem:[#allocation34_spill] sm:$0xff] %v13054_v56 }
  0x31   : > { %16316 = vst [vmem:[#allocation24_spill] sm:$0xff] %v12996_v19  ;;  %v561_v44 = vor.u32 %v12996_v19, %v557_v11  ;;  %v577_v11 = vor.u32 %v13018_v42, %v573_v47 }
  0x32   : > { %16318 = vst [vmem:[#allocation26_spill] sm:$0xff] %v13003_v24  ;;  %v569_v51 = vor.u32 %v13003_v24, %v565_v40 }
  0x34   : > { %v574_v6 = vsel %vm466_vm2, %v569_v51, %v573_v47  ;;  %v13048_v51 = vshrl.u32 %v12993_v14, 16 }
  0x36   : > { %16325 = vst [vmem:[#allocation33_spill] sm:$0xff] %v13048_v51 }
  0x37   : > { %10605 = vmatmul.mubr.msk.bf16.gmra.mrb[12].mxu0 %vm739_vm3, %v534_v52  ;;  %v581_v52 = vrot.slane %v13010_v36, 1 }
  0x38   : > { %10608 = vmatprep.mubr.msk.bf16.mxu0 %vm739_vm3, %v542_v57  ;;  %v566_v57 = vsel %vm466_vm2, %v561_v44, %v565_v40  ;;  %v13044_v40 = vshll.u32 %v13036_v8, 16 }
  0x39   : > { %v582_v44 = vsel %vm466_vm2, %v577_v11, %v581_v52  ;;  %v593_v11 = vor.u32 %v13048_v51, %v589_v53 }
  0x3a   : > { %16324 = vst [vmem:[#allocation32_spill] sm:$0xff] %v13044_v40 }
  0x3f   : > { %10609 = vmatmul.mubr.msk.bf16.gmra.mrb[16].mxu0 %vm739_vm3, %v550_v23  ;;  %v585_v23 = vor.u32 %v13024_v50, %v581_v52  ;;  %v597_v52 = vrot.slane %v13044_v40, 1 }
  0x40   : > { %10612 = vmatprep.mubr.msk.bf16.mxu0 %vm739_vm3, %v558_v34  ;;  %v13041_v34 = vcombine.low %v263_v63, %v264_v0  ;;  %v267_v63 = vld [vmem:[%s12809_s7 + $0x98] sm:$0xf]  ;;  %v268_v0 = vld [vmem:[%s12809_s7 + $0x9c] sm:$0xf] }
  0x41   : > { %v590_v55 = vsel %vm466_vm2, %v585_v23, %v589_v53  ;;  %v601_v23 = vor.u32 %v13054_v56, %v597_v52  ;;  %v13069_v50 = vcombine.low %v267_v63, %v268_v0  ;;  %v271_v0 = vld [vmem:[%s12809_s7 + $0xa8] sm:$0xf] }
  0x42   : > { %v13057_v47 = vshll.u32 %v13041_v34, 16  ;;  %v13076_v40 = vshrl.u32 %v13041_v34, 16 }
  0x43   : > { %v13085_v63 = vshll.u32 %v13069_v50, 16 }
  0x44   : > { %16327 = vst [vmem:[#allocation35_spill] sm:$0xff] %v13057_v47  ;;  %v605_v36 = vrot.slane %v13057_v47, 1  ;;  %16329 = vst [vmem:[#allocation37_spill] sm:$0xff] %v13076_v40  ;;  %v272_v47 = vld [vmem:[%s12809_s7 + $0xac] sm:$0xf] }
  0x45   : > { %16331 = vst [vmem:[#allocation39_spill] sm:$0xff] %v13085_v63  ;;  %v621_v51 = vrot.slane %v13085_v63, 1  ;;  %v13097_v42 = vcombine.low %v271_v0, %v272_v47  ;;  %v275_v0 = vld [vmem:[%s12809_s7 + $0xb8] sm:$0xf]  ;;  %v276_v63 = vld [vmem:[%s12809_s7 + $0xbc] sm:$0xf] }
  0x46   : > { %v13125_v24 = vcombine.low %v275_v0, %v276_v63  ;;  %v279_v0 = vld [vmem:[%s12809_s7 + $0xc8] sm:$0xf] }
  0x47   : > { %10613 = vmatmul.mubr.msk.bf16.gmra.mrb[20].mxu0 %vm739_vm3, %v566_v57  ;;  %v266_v57 = vld [vmem:[%s12809_s7 + $0x94] sm:$0xf]  ;;  %v13113_v47 = vshll.u32 %v13097_v42, 16 }
  0x48   : > { %10616 = vmatprep.mubr.msk.bf16.mxu0 %vm739_vm3, %v574_v6  ;;  %v13063_v6 = vcombine.low %v265_v39, %v266_v57  ;;  %v269_v39 = vld [vmem:[%s12809_s7 + $0xa0] sm:$0xf]  ;;  %v270_v57 = vld [vmem:[%s12809_s7 + $0xa4] sm:$0xf]  ;;  %v13141_v63 = vshll.u32 %v13125_v24, 16 }
  0x49   : > { %16335 = vst [vmem:[#allocation43_spill] sm:$0xff] %v13113_v47 }
  0x4a   : > { %v13072_v33 = vshll.u32 %v13063_v6, 16  ;;  %v13082_v53 = vshrl.u32 %v13063_v6, 16  ;;  %16339 = vst [vmem:[#allocation47_spill] sm:$0xff] %v13141_v63 }
  0x4c   : > { %16328 = vst [vmem:[#allocation36_spill] sm:$0xff] %v13072_v33  ;;  %16330 = vst [vmem:[#allocation38_spill] sm:$0xff] %v13082_v53 }
  0x4f   : > { %10617 = vmatmul.mubr.msk.bf16.gmra.mrb[24].mxu0 %vm739_vm3, %v582_v44  ;;  %v598_v44 = vsel %vm466_vm2, %v593_v11, %v597_v52  ;;  %v613_v52 = vrot.slane %v13072_v33, 1  ;;  %v13091_v11 = vcombine.low %v269_v39, %v270_v57  ;;  %v13104_v33 = vshrl.u32 %v13069_v50, 16  ;;  %v273_v39 = vld [vmem:[%s12809_s7 + $0xb0] sm:$0xf]  ;;  %v274_v57 = vld [vmem:[%s12809_s7 + $0xb4] sm:$0xf] }
  0x50   : > { %10620 = vmatprep.mubr.msk.bf16.mxu0 %vm739_vm3, %v590_v55  ;;  %v606_v55 = vsel %vm466_vm2, %v601_v23, %v605_v36  ;;  %v609_v23 = vor.u32 %v13076_v40, %v605_v36  ;;  %v637_v40 = vrot.slane %v13113_v47, 1  ;;  %v280_v47 = vld [vmem:[%s12809_s7 + $0xcc] sm:$0xf] }
  0x51   : > { %v617_v56 = vor.u32 %v13082_v53, %v613_v52  ;;  %v13100_v21 = vshll.u32 %v13091_v11, 16  ;;  %16333 = vst [vmem:[#allocation41_spill] sm:$0xff] %v13104_v33  ;;  %v13110_v36 = vshrl.u32 %v13091_v11, 16  ;;  %v13153_v19 = vcombine.low %v279_v0, %v280_v47 }
  0x53   : > { %16332 = vst [vmem:[#allocation40_spill] sm:$0xff] %v13100_v21  ;;  %16334 = vst [vmem:[#allocation42_spill] sm:$0xff] %v13110_v36  ;;  %v13171_v47 = vshll.u32 %v13153_v19, 16 }
  0x55   : > { %16343 = vst [vmem:[#allocation51_spill] sm:$0xff] %v13171_v47  ;;  %v669_v48 = vrot.slane %v13171_v47, 1  ;;  %v288_v47 = vld [vmem:[%s12809_s7 + $0xec] sm:$0xf] }
  0x57   : > { %10621 = vmatmul.mubr.msk.bf16.gmra.mrb[28].mxu0 %vm739_vm3, %v598_v44  ;;  %v614_v44 = vsel %vm466_vm2, %v609_v23, %v613_v52  ;;  %v629_v52 = vrot.slane %v13100_v21, 1  ;;  %v13119_v23 = vcombine.low %v273_v39, %v274_v57  ;;  %v13132_v21 = vshrl.u32 %v13097_v42, 16  ;;  %v277_v39 = vld [vmem:[%s12809_s7 + $0xc0] sm:$0xf]  ;;  %v278_v57 = vld [vmem:[%s12809_s7 + $0xc4] sm:$0xf] }
  0x58   : > { %10624 = vmatprep.mubr.msk.bf16.mxu0 %vm739_vm3, %v606_v55  ;;  %v622_v55 = vsel %vm466_vm2, %v617_v56, %v621_v51  ;;  %v625_v56 = vor.u32 %v13104_v33, %v621_v51  ;;  %v653_v33 = vrot.slane %v13141_v63, 1  ;;  %v283_v63 = vld [vmem:[%s12809_s7 + $0xd8] sm:$0xf] }
  0x59   : > { %v633_v53 = vor.u32 %v13110_v36, %v629_v52  ;;  %v13128_v61 = vshll.u32 %v13119_v23, 16  ;;  %16337 = vst [vmem:[#allocation45_spill] sm:$0xff] %v13132_v21 }
  0x5b   : > { %16336 = vst [vmem:[#allocation44_spill] sm:$0xff] %v13128_v61  ;;  %v638_v51 = vsel %vm466_vm2, %v633_v53, %v637_v40  ;;  %v641_v53 = vor.u32 %v13132_v21, %v637_v40  ;;  %v284_v21 = vld [vmem:[%s12809_s7 + $0xdc] sm:$0xf] }
  0x5f   : > { %10625 = vmatmul.mubr.msk.bf16.gmra.mrb[32].mxu0 %vm739_vm3, %v614_v44  ;;  %v630_v44 = vsel %vm466_vm2, %v625_v56, %v629_v52  ;;  %v645_v52 = vrot.slane %v13128_v61, 1  ;;  %v13147_v56 = vcombine.low %v277_v39, %v278_v57  ;;  %v13162_v57 = vshrl.u32 %v13125_v24, 16  ;;  %v286_v61 = vld [vmem:[%s12809_s7 + $0xe4] sm:$0xf] }
  0x60   : > { %10628 = vmatprep.mubr.msk.bf16.mxu0 %vm739_vm3, %v622_v55  ;;  %v13138_v55 = vshrl.u32 %v13119_v23, 16 }
  0x61   : > { %v13156_v49 = vshll.u32 %v13147_v56, 16  ;;  %v646_v39 = vsel %vm466_vm2, %v641_v53, %v645_v52  ;;  %16341 = vst [vmem:[#allocation49_spill] sm:$0xff] %v13162_v57 }
  0x62   : > { %16338 = vst [vmem:[#allocation46_spill] sm:$0xff] %v13138_v55  ;;  %v649_v36 = vor.u32 %v13138_v55, %v645_v52  ;;  %v13168_v55 = vshrl.u32 %v13147_v56, 16 }
  0x63   : > { %16340 = vst [vmem:[#allocation48_spill] sm:$0xff] %v13156_v49  ;;  %v661_v52 = vrot.slane %v13156_v49, 1 }
  0x64   : > { %v654_v40 = vsel %vm466_vm2, %v649_v36, %v653_v33  ;;  %16342 = vst [vmem:[#allocation50_spill] sm:$0xff] %v13168_v55  ;;  %v657_v36 = vor.u32 %v13162_v57, %v653_v33  ;;  %v290_v57 = vld [vmem:[%s12809_s7 + $0xf4] sm:$0xf] }
  0x65   : > { %v665_v30 = vor.u32 %v13168_v55, %v661_v52 }
  0x67   : > { %10629 = vmatmul.mubr.msk.bf16.gmra.mrb[36].mxu0 %vm739_vm3, %v630_v44  ;;  %v281_v44 = vld [vmem:[%s12809_s7 + $0xd0] sm:$0xf]  ;;  %v670_v33 = vsel %vm466_vm2, %v665_v30, %v669_v48 }
  0x68   : > { %10632 = vmatprep.mubr.msk.bf16.mxu0 %vm739_vm3, %v638_v51  ;;  %v285_v51 = vld [vmem:[%s12809_s7 + $0xe0] sm:$0xf]  ;;  %v13173_v0 = vcombine.low %v281_v44, %v282_v59  ;;  %v13185_v59 = vcombine.low %v283_v63, %v284_v21  ;;  %v287_v63 = vld [vmem:[%s12809_s7 + $0xe8] sm:$0xf]  ;;  %v289_v30 = vld [vmem:[%s12809_s7 + $0xf0] sm:$0xf] }
  0x69   : > { %v13179_v53 = vcombine.low %v285_v51, %v286_v61  ;;  %v662_v61 = vsel %vm466_vm2, %v657_v36, %v661_v52  ;;  %v13195_v51 = vshrl.u32 %v13153_v19, 16  ;;  %v13207_v55 = vcombine.low %v287_v63, %v288_v47 }
  0x6a   : > { %v13188_v44 = vshll.u32 %v13173_v0, 16  ;;  %v13202_v21 = vshll.u32 %v13185_v59, 16 }
  0x6b   : > { %16344 = vst [vmem:[#allocation52_spill] sm:$0xff] %v13179_v53  ;;  %16347 = vst [vmem:[#allocation55_spill] sm:$0xff] %v13195_v51  ;;  %v13212_v36 = vshrl.u32 %v13179_v53, 16  ;;  %v673_v18 = vor.u32 %v13195_v51, %v669_v48  ;;  %v13219_v29 = vshll.u32 %v13207_v55, 16  ;;  %v13222_v47 = vshrl.u32 %v13207_v55, 16 }
  0x6c   : > { %16345 = vst [vmem:[#allocation53_spill] sm:$0xff] %v13188_v44  ;;  %16349 = vst [vmem:[#allocation57_spill] sm:$0xff] %v13202_v21  ;;  %v677_v49 = vrot.slane %v13188_v44, 1  ;;  %v13234_v51 = vshrl.u32 %v13185_v59, 16 }
  0x6d   : > { %16350 = vst [vmem:[#allocation58_spill] sm:$0xff] %v13207_v55  ;;  %16351 = vst [vmem:[#allocation59_spill] sm:$0xff] %v13212_v36 }
  0x6e   : > { %16352 = vst [vmem:[#allocation60_spill] sm:$0xff] %v13219_v29  ;;  %16354 = vst [vmem:[#allocation62_spill] sm:$0xff] %v13234_v51  ;;  %v678_v3 = vsel %vm466_vm2, %v673_v18, %v677_v49 }
  0x6f   : > { %10633 = vmatmul.mubr.msk.bf16.gmra.mrb[40].mxu0 %vm739_vm3, %v646_v39  ;;  %v13191_v39 = vshll.u32 %v13179_v53, 16 }
  0x70   : > { %10636 = vmatprep.mubr.msk.bf16.mxu0 %vm739_vm3, %v654_v40  ;;  %v13199_v40 = vshrl.u32 %v13173_v0, 16 }
  0x71   : > { %16346 = vst [vmem:[#allocation54_spill] sm:$0xff] %v13191_v39  ;;  %v693_v52 = vrot.slane %v13191_v39, 1  ;;  %v685_v39 = vrot.slane %v13202_v21, 1 }
  0x72   : > { %16348 = vst [vmem:[#allocation56_spill] sm:$0xff] %v13199_v40  ;;  %v681_v63 = vor.u32 %v13199_v40, %v677_v49  ;;  %v298_v40 = vld [vmem:[%s12809_s7 + $0xfc] sm:$0x1] }
  0x73   : > { %v697_v44 = vor.u32 %v13212_v36, %v693_v52  ;;  %v13244_v36 = vld [vmem:[%s12809_s7 + $0xf8] sm:$0xf] }
  0x74   : > { %v686_v21 = vsel %vm466_vm2, %v681_v63, %v685_v39  ;;  %v13250_v18 = vcombine.low %v13244_v36, %v298_v40 }
  0x76   : > { %v715_v63 = vshll.u32 %v13250_v18, 16 }
  0x77   : > { %10637 = vmatmul.mubr.msk.bf16.gmra.mrb[44].mxu0 %vm739_vm3, %v662_v61  ;;  %v13224_v61 = vcombine.low %v289_v30, %v290_v57 }
  0x78   : > { %10640 = vmatprep.mubr.msk.bf16.mxu0 %vm739_vm3, %v670_v33  ;;  %v701_v33 = vrot.slane %v13219_v29, 1 }
  0x79   : > { %16353 = vst [vmem:[#allocation61_spill] sm:$0xff] %v13224_v61  ;;  %v13231_v48 = vshll.u32 %v13224_v61, 16  ;;  %v13253_v49 = vshrl.u32 %v13224_v61, 16 }
  0x7a   : > { %v702_v20 = vsel %vm466_vm2, %v697_v44, %v701_v33  ;;  %v705_v57 = vor.u32 %v13222_v47, %v701_v33  ;;  %v689_v44 = vor.u32 %v13234_v51, %v685_v39  ;;  %v719_v33 = vshrl.u32 %v13250_v18, 16  ;;  %v12604_v39 = vld [vmem:[%s16178_s1 + $0x38] sm:$0xff]  }
  0x7b   : > { %v709_v30 = vrot.slane %v13231_v48, 1  ;;  %10648 = vmatprep.mubr.msk.bf16.mxu1 %vm739_vm3, %v702_v20 }
  0x7d   : > { %v710_v29 = vsel %vm466_vm2, %v705_v57, %v709_v30  ;;  %v713_v20 = vor.u32 %v13253_v49, %v709_v30  ;;  %v717_v57 = vrot.slane %v715_v63, 1  ;;  %v9314_v63 = vcombine.low %v13244_v36, %v13244_v36 }
  0x7e   : > { %10649 = vmatmul.mubr.msk.bf16.vlgmr.msra.gmra.mrb[0].mxu1 %vm739_vm3, %v710_v29 }
  0x7f   : > { %10641 = vmatmul.mubr.msk.bf16.gmra.mrb[48].mxu0 %vm739_vm3, %v678_v3  ;;  %v694_v3 = vsel %vm466_vm2, %v689_v44, %v693_v52  ;;  %v718_v29 = vsel %vm466_vm2, %v713_v20, %v717_v57  ;;  %v721_v40 = vor.u32 %v719_v33, %v717_v57  ;;  %v1518_v20 = vrot.slane %v12822_v15, 1 }
  0x80   : > { %10644 = vmatprep.mubr.msk.bf16.mxu0 %vm739_vm3, %v686_v21  ;;  %10652 = vmatprep.mubr.msk.bf16.mxu1 %vm739_vm3, %v718_v29  ;;  %v12605_v21 = vld [vmem:[%s16178_s1 + $0x40] sm:$0x7f]   ;;  %v1522_v57 = vrot.slane %v12831_v22, 1 }
  0x81   : > { %v1694_v52 = vand.u32 %v12605_v21, %v12800_v5  ;;  %v1524_v21 = vrot.slane %v12851_v32, 1 }
  0x86   : > { %10653 = vmatmul.mubr.msk.bf16.gmra.mrb[4].mxu1 %vm739_vm3, %v721_v40  ;;  %v12612_v40 = vld [vmem:[%s16178_s1 + $0x50] sm:$0xff]  }
  0x87   : > { %10645 = vmatmul.mubr.msk.bf16.gmra.mrb[52].mxu0 %vm739_vm3, %v694_v3 }
  0x88   : > { %10662 = vmatprep.mubr.msk.bf16.mxu0 %vm739_vm3, %v12818_v12  ;;  %v12611_v12 = vld [vmem:[%s16178_s1 + $0x48] sm:$0xff]  }
  0x8f   : > { %10663 = vmatmul.mubr.msk.bf16.vlgmr.msra.gmra.mrb[0].mxu0 %vm739_vm3, %v12822_v15 }
  0x90   : > { %10727 = vmatpush3.bf16.msra.mxu0 %v12916_v4  ;;  %10666 = vmatprep.mubr.msk.bf16.mxu0 %vm739_vm3, %v12824_v16  ;;  %v1505_v4 = vld [vmem:[%s12809_s7] sm:$0xe] }
  0x91   : > { %10728 = vmatprep.subr.bf16.mxu0 %v12604_v39  ;;  %v13336_v30 = vcombine.low %v1505_v4, %v12813_v9  ;;  %v1520_v9 = vrot.slane %v12824_v16, 1 }
  0x93   : > { %v1517_v44 = vrot.slane %v13336_v30, 1  ;;  %v1521_v3 = vsel %vm837_vm1, %v1518_v20, %v1520_v9  ;;  %v1523_v29 = vsel %vm837_vm1, %v1520_v9, %v1522_v57 }
  0x94   : > { %10729 = vmatpush3.bf16.msra.mxu0 %v12604_v39  ;;  %v12613_v39 = vld [vmem:[%s16178_s1 + $0x58] sm:$0x7f]  }
  0x95   : > { %10730 = vmatprep.subr.bf16.mxu0 %v1694_v52  ;;  %v1519_v33 = vsel %vm837_vm1, %v1517_v44, %v1518_v20  ;;  %v2310_v4 = vand.u32 %v12613_v39, %v12800_v5  ;;  %v1525_v44 = vsel %vm837_vm1, %v1522_v57, %v1524_v21 }
  0x97   : > { %10667 = vmatmul.mubr.msk.bf16.gmra.mrb[4].mxu0 %vm739_vm3, %v12831_v22 }
  0x98   : > { %10670 = vmatprep.mubr.msk.bf16.mxu0 %vm739_vm3, %v12851_v32  ;;  %10731 = vmatpush3.bf16.msra.mxu0 %v1694_v52  ;;  %v1526_v52 = vrot.slane %v12855_v35, 1 }
  0x99   : > { %10796 = vmatprep.subr.bf16.mxu0 %v12611_v12 }
  0x9a   : > { %v1527_v20 = vsel %vm837_vm1, %v1524_v21, %v1526_v52  ;;  %v1536_v21 = vrot.slane %v12951_v37, 1 }
  0x9f   : > { %10671 = vmatmul.mubr.msk.bf16.gmra.mrb[8].mxu0 %vm739_vm3, %v12855_v35 }
  0xa0   : > { %10674 = vmatprep.mubr.msk.bf16.mxu0 %vm739_vm3, %v12888_v54 }
  0xa7   : > { %10675 = vmatmul.mubr.msk.bf16.gmra.mrb[12].mxu0 %vm739_vm3, %v12894_v58 }
  0xa8   : > { %10678 = vmatprep.mubr.msk.bf16.mxu0 %vm739_vm3, %v12922_v10 }
  0xaf   : > { %10679 = vmatmul.mubr.msk.bf16.gmra.mrb[16].mxu0 %vm739_vm3, %v12928_v17 }
  0xb0   : > { %10682 = vmatprep.mubr.msk.bf16.mxu0 %vm739_vm3, %v12951_v37 }
  0xb7   : > { %10683 = vmatmul.mubr.msk.bf16.gmra.mrb[20].mxu0 %vm739_vm3, %v12957_v43 }
  0xb8   : > { %10686 = vmatprep.mubr.msk.bf16.mxu0 %vm739_vm3, %v12983_v1 }
  0xbf   : > { %10687 = vmatmul.mubr.msk.bf16.gmra.mrb[24].mxu0 %vm739_vm3, %v12987_v7 }
  0xc0   : > { %10690 = vmatprep.mubr.msk.bf16.mxu0 %vm739_vm3, %v12991_v13 }
  0xc7   : > { %10691 = vmatmul.mubr.msk.bf16.gmra.mrb[28].mxu0 %vm739_vm3, %v12993_v14 }
  0xc8   : > { %10694 = vmatprep.mubr.msk.bf16.mxu0 %vm739_vm3, %v13036_v8 }
  0xcf   : > { %10695 = vmatmul.mubr.msk.bf16.gmra.mrb[32].mxu0 %vm739_vm3, %v13041_v34 }
  0xd0   : > { %10698 = vmatprep.mubr.msk.bf16.mxu0 %vm739_vm3, %v13063_v6 }
  0xd7   : > { %10699 = vmatmul.mubr.msk.bf16.gmra.mrb[36].mxu0 %vm739_vm3, %v13069_v50 }
  0xd8   : > { %10702 = vmatprep.mubr.msk.bf16.mxu0 %vm739_vm3, %v13091_v11 }
  0xdf   : > { %10703 = vmatmul.mubr.msk.bf16.gmra.mrb[40].mxu0 %vm739_vm3, %v13097_v42 }
  0xe0   : > { %10706 = vmatprep.mubr.msk.bf16.mxu0 %vm739_vm3, %v13119_v23 }
  0xe7   : > { %10707 = vmatmul.mubr.msk.bf16.gmra.mrb[44].mxu0 %vm739_vm3, %v13125_v24 }
  0xe8   : > { %10710 = vmatprep.mubr.msk.bf16.mxu0 %vm739_vm3, %v13147_v56 }
  0xef   : > { %10711 = vmatmul.mubr.msk.bf16.gmra.mrb[48].mxu0 %vm739_vm3, %v13153_v19 }
  0xf0   : > { %10714 = vmatprep.mubr.msk.bf16.mxu0 %vm739_vm3, %v13173_v0 }
  0xf7   : > { %10715 = vmatmul.mubr.msk.bf16.gmra.mrb[52].mxu0 %vm739_vm3, %v13185_v59 }
  0xf8   : > { %10718 = vmatprep.mubr.msk.bf16.mxu0 %vm739_vm3, %v13179_v53 }
  0xff   : > { %10719 = vmatmul.mubr.msk.bf16.gmra.mrb[56].mxu0 %vm739_vm3, %v13207_v55 }
 0x100   : > { %10722 = vmatprep.mubr.msk.bf16.mxu0 %vm739_vm3, %v13224_v61 }
 0x107   : > { %10723 = vmatmul.mubr.msk.bf16.gmra.mrb[60].mxu0 %vm739_vm3, %v9314_v63  ;;  %v13369_v63 = vld [vmem:[%s16178_s1 + $0x60] sm:$0xff]  }
 0x108   : > { %10732 = vmatprep.mubr.msk.bf16.mxu0 %vm739_vm3, %v1519_v33  ;;  %v1530_v33 = vrot.slane %v12894_v58, 1 }
 0x10f   : > { %10733 = vmatmul.mubr.msk.bf16.vlgmr.msra.gmra.mrb[0].mxu0 %vm739_vm3, %v1521_v3  ;;  %v1532_v3 = vrot.slane %v12922_v10, 1 }
 0x110   : > { %10797 = vmatpush3.bf16.msra.mxu0 %v12611_v12  ;;  %10736 = vmatprep.mubr.msk.bf16.mxu0 %vm739_vm3, %v1523_v29  ;;  %v1528_v12 = vrot.slane %v12888_v54, 1  ;;  %v1534_v29 = vrot.slane %v12928_v17, 1 }
 0x111   : > { %10798 = vmatprep.subr.bf16.mxu0 %v12612_v40 }
 0x112   : > { %v1529_v9 = vsel %vm837_vm1, %v1526_v52, %v1528_v12  ;;  %v1531_v57 = vsel %vm837_vm1, %v1528_v12, %v1530_v33  ;;  %v1535_v39 = vsel %vm837_vm1, %v1532_v3, %v1534_v29  ;;  %v1538_v52 = vrot.slane %v12957_v43, 1 }
 0x113   : > { %v1542_v12 = vrot.slane %v12987_v7, 1 }
 0x114   : > { %10799 = vmatpush3.bf16.msra.mxu0 %v12612_v40  ;;  %v1533_v40 = vsel %vm837_vm1, %v1530_v33, %v1532_v3  ;;  %v1546_v3 = vrot.slane %v12993_v14, 1 }
 0x115   : > { %10800 = vmatprep.subr.bf16.mxu0 %v2310_v4 }
 0x117   : > { %10737 = vmatmul.mubr.msk.bf16.gmra.mrb[4].mxu0 %vm739_vm3, %v1525_v44  ;;  %v1539_v44 = vsel %vm837_vm1, %v1536_v21, %v1538_v52 }
 0x118   : > { %10740 = vmatprep.mubr.msk.bf16.mxu0 %vm739_vm3, %v1527_v20  ;;  %10801 = vmatpush3.bf16.msra.mxu0 %v2310_v4  ;;  %v1537_v4 = vsel %vm837_vm1, %v1534_v29, %v1536_v21  ;;  %v1540_v20 = vrot.slane %v12983_v1, 1  ;;  %v1550_v21 = vrot.slane %v13041_v34, 1 }
 0x119   : > { %10866 = vmatprep.subr.bf16.mxu0 %v13369_v63 }
 0x11a   : > { %v1541_v33 = vsel %vm837_vm1, %v1538_v52, %v1540_v20 }
 0x11f   : > { %10741 = vmatmul.mubr.msk.bf16.gmra.mrb[8].mxu0 %vm739_vm3, %v1529_v9  ;;  %v1543_v9 = vsel %vm837_vm1, %v1540_v20, %v1542_v12  ;;  %v1554_v20 = vrot.slane %v13069_v50, 1 }
 0x120   : > { %10744 = vmatprep.mubr.msk.bf16.mxu0 %vm739_vm3, %v1531_v57  ;;  %v1544_v57 = vrot.slane %v12991_v13, 1 }
 0x122   : > { %v1545_v29 = vsel %vm837_vm1, %v1542_v12, %v1544_v57 }
 0x127   : > { %10745 = vmatmul.mubr.msk.bf16.gmra.mrb[12].mxu0 %vm739_vm3, %v1533_v40  ;;  %v1547_v40 = vsel %vm837_vm1, %v1544_v57, %v1546_v3  ;;  %v1558_v57 = vrot.slane %v13097_v42, 1 }
 0x128   : > { %10748 = vmatprep.mubr.msk.bf16.mxu0 %vm739_vm3, %v1535_v39  ;;  %v1548_v39 = vrot.slane %v13036_v8, 1 }
 0x12a   : > { %v1549_v52 = vsel %vm837_vm1, %v1546_v3, %v1548_v39 }
 0x12f   : > { %10749 = vmatmul.mubr.msk.bf16.gmra.mrb[16].mxu0 %vm739_vm3, %v1537_v4  ;;  %v1551_v4 = vsel %vm837_vm1, %v1548_v39, %v1550_v21 }
 0x130   : > { %10752 = vmatprep.mubr.msk.bf16.mxu0 %vm739_vm3, %v1539_v44  ;;  %v1552_v44 = vrot.slane %v13063_v6, 1 }
 0x132   : > { %v1553_v12 = vsel %vm837_vm1, %v1550_v21, %v1552_v44 }
 0x137   : > { %10753 = vmatmul.mubr.msk.bf16.gmra.mrb[20].mxu0 %vm739_vm3, %v1541_v33  ;;  %v1555_v33 = vsel %vm837_vm1, %v1552_v44, %v1554_v20  ;;  %v1562_v44 = vrot.slane %v13125_v24, 1 }
 0x138   : > { %10756 = vmatprep.mubr.msk.bf16.mxu0 %vm739_vm3, %v1543_v9  ;;  %v1556_v9 = vrot.slane %v13091_v11, 1 }
 0x13a   : > { %v1559_v39 = vsel %vm837_vm1, %v1556_v9, %v1558_v57 }
 0x13f   : > { %10757 = vmatmul.mubr.msk.bf16.gmra.mrb[24].mxu0 %vm739_vm3, %v1545_v29 }
 0x140   : > { %10760 = vmatprep.mubr.msk.bf16.mxu0 %vm739_vm3, %v1547_v40  ;;  %v1557_v40 = vsel %vm837_vm1, %v1554_v20, %v1556_v9 }
 0x147   : > { %10761 = vmatmul.mubr.msk.bf16.gmra.mrb[28].mxu0 %vm739_vm3, %v1549_v52  ;;  %v1560_v52 = vrot.slane %v13119_v23, 1 }
 0x148   : > { %10764 = vmatprep.mubr.msk.bf16.mxu0 %vm739_vm3, %v1551_v4 }
 0x149   : > { %v1561_v20 = vsel %vm837_vm1, %v1558_v57, %v1560_v52  ;;  %v1563_v9 = vsel %vm837_vm1, %v1560_v52, %v1562_v44  ;;  %v1568_v57 = vrot.slane %v13173_v0, 1 }
 0x14f   : > { %10765 = vmatmul.mubr.msk.bf16.gmra.mrb[32].mxu0 %vm739_vm3, %v1553_v12 }
 0x150   : > { %10768 = vmatprep.mubr.msk.bf16.mxu0 %vm739_vm3, %v1555_v33 }
 0x151   : > { %v13418_v3 = vpop.f32.mrb[0].mxu1 }
 0x152   : > { %16355 = vst [vmem:[#allocation63_spill] sm:$0xff] %v13418_v3  ;;  %v13420_v29 = vpop.f32.mrb[1].mxu1 }
 0x153   : > { %16356 = vst [vmem:[#allocation64_spill] sm:$0xff] %v13420_v29  ;;  %v13425_v21 = vpop.f32.mrb[2].mxu1 }
 0x154   : > { %16357 = vst [vmem:[#allocation65_spill] sm:$0xff] %v13425_v21  ;;  %v13429_v4 = vpop.f32.mrb[3].mxu1 }
 0x155   : > { %16358 = vst [vmem:[#allocation66_spill] sm:$0xff] %v13429_v4  ;;  %v1566_v4 = vrot.slane %v13153_v19, 1 }
 0x157   : > { %10769 = vmatmul.mubr.msk.bf16.gmra.mrb[36].mxu0 %vm739_vm3, %v1557_v40  ;;  %v1569_v52 = vsel %vm837_vm1, %v1566_v4, %v1568_v57 }
 0x158   : > { %10772 = vmatprep.mubr.msk.bf16.mxu0 %vm739_vm3, %v1559_v39  ;;  %v1564_v39 = vrot.slane %v13147_v56, 1 }
 0x159   : > { %v13432_v12 = vpop.f32.mrb[4].mxu1 }
 0x15a   : > { %v13434_v33 = vpop.f32.mrb[5].mxu1  ;;  %v1565_v21 = vsel %vm837_vm1, %v1562_v44, %v1564_v39  ;;  %v1567_v3 = vsel %vm837_vm1, %v1564_v39, %v1566_v4  ;;  %v1572_v44 = vrot.slane %v13179_v53, 1  ;;  %v1576_v4 = vrot.slane %v13224_v61, 1 }
 0x15b   : > { %v10655_v29 = vpop.f32.mrb[6].mxu1  ;;  %v1578_v39 = vrot.slane %v13250_v18, 1  ;;  %v2071_v61 = vrot.slane %v12845_v28, 1 }
 0x15c   : > { %v13438_v40 = vpop.f32.mrb[7].mxu1  ;;  %v1570_v29 = vrot.slane %v13185_v59, 1 }
 0x15f   : > { %10773 = vmatmul.mubr.msk.bf16.gmra.mrb[40].mxu0 %vm739_vm3, %v1561_v20  ;;  %v1571_v20 = vsel %vm837_vm1, %v1568_v57, %v1570_v29  ;;  %v2060_v57 = vshrl.u32 %v13336_v30, 16 }
 0x160   : > { %10776 = vmatprep.mubr.msk.bf16.mxu0 %vm739_vm3, %v1563_v9  ;;  %v1574_v9 = vrot.slane %v13207_v55, 1  ;;  %v1579_v55 = vsel %vm837_vm1, %v1576_v4, %v1578_v39 }
 0x161   : > { %v2062_v53 = vrot.slane %v2060_v57, 1  ;;  %v2076_v57 = vrot.slane %v12849_v31, 2 }
 0x167   : > { %10777 = vmatmul.mubr.msk.bf16.gmra.mrb[44].mxu0 %vm739_vm3, %v1565_v21  ;;  %v1573_v21 = vsel %vm837_vm1, %v1570_v29, %v1572_v44 }
 0x168   : > { %10780 = vmatprep.mubr.msk.bf16.mxu0 %vm739_vm3, %v1567_v3  ;;  %v1575_v3 = vsel %vm837_vm1, %v1572_v44, %v1574_v9  ;;  %v2067_v44 = vrot.slane %v12839_v26, 1 }
 0x16f   : > { %10781 = vmatmul.mubr.msk.bf16.gmra.mrb[48].mxu0 %vm739_vm3, %v1569_v52  ;;  %v2063_v52 = vshll.u32 %v13336_v30, 16  ;;  %v2072_v30 = vrot.slane %v12842_v27, 2 }
 0x170   : > { %10784 = vmatprep.mubr.msk.bf16.mxu0 %vm739_vm3, %v1571_v20  ;;  %v1577_v20 = vsel %vm837_vm1, %v1574_v9, %v1576_v4  ;;  %v2075_v4 = vrot.slane %v12864_v41, 1 }
 0x171   : > { %v2065_v29 = vrot.slane %v2063_v52, 2  ;;  %v2073_v52 = vor.u32 %v2072_v30, %v2071_v61  ;;  %v12616_v61 = vld [vmem:[%s16178_s1 + $0x70] sm:$0x7f]  }
 0x177   : > { %10785 = vmatmul.mubr.msk.bf16.gmra.mrb[52].mxu0 %vm739_vm3, %v1573_v21  ;;  %v2068_v21 = vrot.slane %v12836_v25, 2 }
 0x178   : > { %10788 = vmatprep.mubr.msk.bf16.mxu0 %vm739_vm3, %v1575_v3  ;;  %v2066_v3 = vor.u32 %v2065_v29, %v2062_v53  ;;  %v2079_v53 = vrot.slane %v12870_v45, 1  ;;  %v2080_v29 = vrot.slane %v12859_v38, 2  ;;  %v16360_v38 = vld [vmem:[#allocation15_spill] sm:$0xff] }
 0x179   : > { %v2069_v18 = vor.u32 %v2068_v21, %v2067_v44  ;;  %v2083_v21 = vrot.slane %v12902_v62, 1  ;;  %v16359_v62 = vld [vmem:[#allocation17_spill] sm:$0xff] }
 0x17b   : > { %v2070_v9 = vsel %vm2058_vm4, %v2066_v3, %v2069_v18  ;;  %v2084_v3 = vrot.slane %v12873_v46, 2 }
 0x17d   : > { %v2085_v30 = vor.u32 %v2084_v3, %v2083_v21  ;;  %v16361_v21 = vld [vmem:[#allocation18_spill] sm:$0xff] }
 0x17e   : > { %v2095_v3 = vrot.slane %v16361_v21, 1  ;;  %v16368_v21 = vld [vmem:[#allocation23_spill] sm:$0xff] }
 0x17f   : > { %10789 = vmatmul.mubr.msk.bf16.gmra.mrb[56].mxu0 %vm739_vm3, %v1577_v20  ;;  %v2077_v20 = vor.u32 %v2076_v57, %v2075_v4  ;;  %v2087_v57 = vrot.slane %v12908_v2, 1 }
 0x180   : > { %10792 = vmatprep.mubr.msk.bf16.mxu0 %vm739_vm3, %v1579_v55  ;;  %v2074_v55 = vsel %vm2058_vm4, %v2069_v18, %v2073_v52  ;;  %v2081_v18 = vor.u32 %v2080_v29, %v2079_v53  ;;  %v13502_v53 = vld [vmem:[%s16178_s1 + $0x78] sm:$0xff]  }
 0x181   : > { %v2078_v44 = vsel %vm2058_vm4, %v2073_v52, %v2077_v20  ;;  %v2088_v52 = vrot.slane %v12898_v60, 2  ;;  %v16364_v60 = vld [vmem:[#allocation19_spill] sm:$0xff] }
 0x182   : > { %v2082_v4 = vsel %vm2058_vm4, %v2077_v20, %v2081_v18  ;;  %v2086_v46 = vsel %vm2058_vm4, %v2081_v18, %v2085_v30  ;;  %v2100_v2 = vrot.slane %v16364_v60, 2  ;;  %v16372_v60 = vld [vmem:[#allocation27_spill] sm:$0xff] }
 0x183   : > { %v2089_v20 = vor.u32 %v2088_v52, %v2087_v57  ;;  %v16365_v57 = vld [vmem:[#allocation22_spill] sm:$0xff]  ;;  %v16366_v52 = vld [vmem:[#allocation21_spill] sm:$0xff] }
 0x187   : > { %10793 = vmatmul.mubr.msk.bf16.gmra.mrb[64].mxu0 %vm739_vm3, %v1578_v39  ;;  %v12615_v39 = vld [vmem:[%s16178_s1 + $0x68] sm:$0xff]  }
 0x188   : > { %10802 = vmatprep.mubr.msk.bf16.mxu0 %vm739_vm3, %v2070_v9  ;;  %v2852_v9 = vand.u32 %v12616_v61, %v12800_v5 }
 0x18f   : > { %10803 = vmatmul.mubr.msk.bf16.vlgmr.msra.gmra.mrb[0].mxu0 %vm739_vm3, %v2074_v55  ;;  %v2091_v55 = vrot.slane %v16359_v62, 1 }
 0x190   : > { %10867 = vmatpush3.bf16.msra.mxu0 %v13369_v63  ;;  %10806 = vmatprep.mubr.msk.bf16.mxu0 %vm739_vm3, %v2078_v44  ;;  %v2092_v63 = vrot.slane %v16360_v38, 2  ;;  %v2090_v44 = vsel %vm2058_vm4, %v2085_v30, %v2089_v20  ;;  %v16363_v38 = vld [vmem:[#allocation20_spill] sm:$0xff]  ;;  %v2103_v30 = vrot.slane %v16365_v57, 1  ;;  %v16371_v57 = vld [vmem:[#allocation30_spill] sm:$0xff] }
 0x191   : > { %10868 = vmatprep.subr.bf16.mxu0 %v12615_v39  ;;  %v2099_v62 = vrot.slane %v16363_v38, 1  ;;  %v2108_v38 = vrot.slane %v16368_v21, 2  ;;  %v16376_v21 = vld [vmem:[#allocation29_spill] sm:$0xff] }
 0x192   : > { %v2093_v29 = vor.u32 %v2092_v63, %v2091_v55  ;;  %v2104_v55 = vrot.slane %v16366_v52, 2 }
 0x194   : > { %10869 = vmatpush3.bf16.msra.mxu0 %v12615_v39  ;;  %v16362_v39 = vld [vmem:[#allocation16_spill] sm:$0xff]  ;;  %v2094_v18 = vsel %vm2058_vm4, %v2089_v20, %v2093_v29 }
 0x195   : > { %10870 = vmatprep.subr.bf16.mxu0 %v2852_v9  ;;  %v2096_v61 = vrot.slane %v16362_v39, 2  ;;  %v16367_v39 = vld [vmem:[#allocation24_spill] sm:$0xff] }
 0x196   : > { %v2107_v20 = vrot.slane %v16367_v39, 1  ;;  %v2116_v39 = vrot.slane %v16372_v60, 2  ;;  %v16380_v60 = vld [vmem:[#allocation35_spill] sm:$0xff] }
 0x197   : > { %10807 = vmatmul.mubr.msk.bf16.gmra.mrb[4].mxu0 %vm739_vm3, %v2082_v4 }
 0x198   : > { %10810 = vmatprep.mubr.msk.bf16.mxu0 %vm739_vm3, %v2086_v46  ;;  %10871 = vmatpush3.bf16.msra.mxu0 %v2852_v9  ;;  %v2097_v46 = vor.u32 %v2096_v61, %v2095_v3  ;;  %v2101_v9 = vor.u32 %v2100_v2, %v2099_v62  ;;  %v16369_v2 = vld [vmem:[#allocation26_spill] sm:$0xff]  ;;  %v16370_v3 = vld [vmem:[#allocation25_spill] sm:$0xff] }
 0x199   : > { %10936 = vmatprep.subr.bf16.mxu0 %v13502_v53  ;;  %v2112_v61 = vrot.slane %v16370_v3, 2 }
 0x19a   : > { %v2098_v4 = vsel %vm2058_vm4, %v2093_v29, %v2097_v46  ;;  %v2102_v63 = vsel %vm2058_vm4, %v2097_v46, %v2101_v9  ;;  %v2111_v29 = vrot.slane %v16369_v2, 1  ;;  %v2115_v46 = vrot.slane %v16371_v57, 1  ;;  %v16375_v2 = vld [vmem:[#allocation33_spill] sm:$0xff] }
 0x19b   : > { %v2124_v57 = vrot.slane %v16376_v21, 2  ;;  %v16384_v21 = vld [vmem:[#allocation39_spill] sm:$0xff] }
 0x19f   : > { %10811 = vmatmul.mubr.msk.bf16.gmra.mrb[8].mxu0 %vm739_vm3, %v2090_v44  ;;  %v2105_v44 = vor.u32 %v2104_v55, %v2103_v30  ;;  %v16373_v30 = vld [vmem:[#allocation31_spill] sm:$0xff]  ;;  %v16374_v55 = vld [vmem:[#allocation28_spill] sm:$0xff] }
 0x1a0   : > { %10814 = vmatprep.mubr.msk.bf16.mxu0 %vm739_vm3, %v2094_v18  ;;  %v2109_v18 = vor.u32 %v2108_v38, %v2107_v20  ;;  %v2120_v20 = vrot.slane %v16374_v55, 2 }
 0x1a1   : > { %v2106_v62 = vsel %vm2058_vm4, %v2101_v9, %v2105_v44  ;;  %v2119_v9 = vrot.slane %v16373_v30, 1  ;;  %v16379_v30 = vld [vmem:[#allocation37_spill] sm:$0xff] }
 0x1a2   : > { %v2110_v52 = vsel %vm2058_vm4, %v2105_v44, %v2109_v18  ;;  %v2123_v44 = vrot.slane %v16375_v2, 1  ;;  %v2132_v2 = vrot.slane %v16380_v60, 2  ;;  %v16388_v60 = vld [vmem:[#allocation43_spill] sm:$0xff] }
 0x1a7   : > { %10815 = vmatmul.mubr.msk.bf16.gmra.mrb[12].mxu0 %vm739_vm3, %v2098_v4  ;;  %v2113_v4 = vor.u32 %v2112_v61, %v2111_v29  ;;  %v16377_v29 = vld [vmem:[#allocation34_spill] sm:$0xff]  ;;  %v16378_v61 = vld [vmem:[#allocation32_spill] sm:$0xff] }
 0x1a8   : > { %10818 = vmatprep.mubr.msk.bf16.mxu0 %vm739_vm3, %v2102_v63  ;;  %v2117_v63 = vor.u32 %v2116_v39, %v2115_v46  ;;  %v2128_v46 = vrot.slane %v16378_v61, 2 }
 0x1a9   : > { %v2114_v38 = vsel %vm2058_vm4, %v2109_v18, %v2113_v4  ;;  %v2127_v18 = vrot.slane %v16377_v29, 1  ;;  %v16383_v29 = vld [vmem:[#allocation41_spill] sm:$0xff] }
 0x1aa   : > { %v2118_v3 = vsel %vm2058_vm4, %v2113_v4, %v2117_v63  ;;  %v2131_v4 = vrot.slane %v16379_v30, 1  ;;  %v2140_v30 = vrot.slane %v16384_v21, 2  ;;  %v16392_v21 = vld [vmem:[#allocation47_spill] sm:$0xff] }
 0x1af   : > { %10819 = vmatmul.mubr.msk.bf16.gmra.mrb[16].mxu0 %vm739_vm3, %v2106_v62  ;;  %v2121_v62 = vor.u32 %v2120_v20, %v2119_v9  ;;  %v16381_v9 = vld [vmem:[#allocation38_spill] sm:$0xff]  ;;  %v16382_v20 = vld [vmem:[#allocation36_spill] sm:$0xff] }
 0x1b0   : > { %10822 = vmatprep.mubr.msk.bf16.mxu0 %vm739_vm3, %v2110_v52  ;;  %v2125_v52 = vor.u32 %v2124_v57, %v2123_v44  ;;  %v2136_v44 = vrot.slane %v16382_v20, 2 }
 0x1b1   : > { %v2122_v39 = vsel %vm2058_vm4, %v2117_v63, %v2121_v62  ;;  %v2135_v63 = vrot.slane %v16381_v9, 1  ;;  %v16387_v9 = vld [vmem:[#allocation45_spill] sm:$0xff] }
 0x1b2   : > { %v2126_v55 = vsel %vm2058_vm4, %v2121_v62, %v2125_v52  ;;  %v2139_v62 = vrot.slane %v16383_v29, 1  ;;  %v2148_v29 = vrot.slane %v16388_v60, 2 }
 0x1b7   : > { %10823 = vmatmul.mubr.msk.bf16.gmra.mrb[20].mxu0 %vm739_vm3, %v2114_v38  ;;  %v2129_v38 = vor.u32 %v2128_v46, %v2127_v18  ;;  %v16385_v18 = vld [vmem:[#allocation42_spill] sm:$0xff]  ;;  %v16386_v46 = vld [vmem:[#allocation40_spill] sm:$0xff] }
 0x1b8   : > { %10826 = vmatprep.mubr.msk.bf16.mxu0 %vm739_vm3, %v2118_v3  ;;  %v2133_v3 = vor.u32 %v2132_v2, %v2131_v4  ;;  %v2144_v4 = vrot.slane %v16386_v46, 2 }
 0x1b9   : > { %v2130_v57 = vsel %vm2058_vm4, %v2125_v52, %v2129_v38  ;;  %v2143_v52 = vrot.slane %v16385_v18, 1  ;;  %v16391_v18 = vld [vmem:[#allocation49_spill] sm:$0xff] }
 0x1ba   : > { %v2134_v61 = vsel %vm2058_vm4, %v2129_v38, %v2133_v3  ;;  %v2147_v38 = vrot.slane %v16387_v9, 1  ;;  %v2156_v9 = vrot.slane %v16392_v21, 2  ;;  %v16394_v21 = vld [vmem:[#allocation48_spill] sm:$0xff] }
 0x1bf   : > { %10827 = vmatmul.mubr.msk.bf16.gmra.mrb[24].mxu0 %vm739_vm3, %v2122_v39  ;;  %v2137_v39 = vor.u32 %v2136_v44, %v2135_v63  ;;  %v16389_v63 = vld [vmem:[#allocation46_spill] sm:$0xff]  ;;  %v16390_v44 = vld [vmem:[#allocation44_spill] sm:$0xff] }
 0x1c0   : > { %10830 = vmatprep.mubr.msk.bf16.mxu0 %vm739_vm3, %v2126_v55  ;;  %v2141_v55 = vor.u32 %v2140_v30, %v2139_v62  ;;  %v2152_v62 = vrot.slane %v16390_v44, 2 }
 0x1c1   : > { %v2138_v2 = vsel %vm2058_vm4, %v2133_v3, %v2137_v39  ;;  %v2151_v3 = vrot.slane %v16389_v63, 1  ;;  %v2160_v63 = vrot.slane %v16394_v21, 2  ;;  %v16398_v21 = vld [vmem:[#allocation53_spill] sm:$0xff] }
 0x1c2   : > { %v2142_v20 = vsel %vm2058_vm4, %v2137_v39, %v2141_v55  ;;  %v2155_v39 = vrot.slane %v16391_v18, 1  ;;  %v16393_v18 = vld [vmem:[#allocation50_spill] sm:$0xff] }
 0x1c3   : > { %v2159_v44 = vrot.slane %v16393_v18, 1  ;;  %v16399_v18 = vld [vmem:[#allocation57_spill] sm:$0xff] }
 0x1c4   : > { %v2172_v60 = vrot.slane %v16399_v18, 2 }
 0x1c7   : > { %10831 = vmatmul.mubr.msk.bf16.gmra.mrb[28].mxu0 %vm739_vm3, %v2130_v57  ;;  %v2145_v57 = vor.u32 %v2144_v4, %v2143_v52 }
 0x1c8   : > { %10834 = vmatprep.mubr.msk.bf16.mxu0 %vm739_vm3, %v2134_v61  ;;  %v2149_v61 = vor.u32 %v2148_v29, %v2147_v38 }
 0x1c9   : > { %v2146_v30 = vsel %vm2058_vm4, %v2141_v55, %v2145_v57 }
 0x1ca   : > { %v2150_v46 = vsel %vm2058_vm4, %v2145_v57, %v2149_v61 }
 0x1cf   : > { %10835 = vmatmul.mubr.msk.bf16.gmra.mrb[32].mxu0 %vm739_vm3, %v2138_v2  ;;  %v2153_v2 = vor.u32 %v2152_v62, %v2151_v3  ;;  %v16395_v3 = vld [vmem:[#allocation55_spill] sm:$0xff] }
 0x1d0   : > { %10838 = vmatprep.mubr.msk.bf16.mxu0 %vm739_vm3, %v2142_v20  ;;  %v2157_v20 = vor.u32 %v2156_v9, %v2155_v39  ;;  %v2163_v9 = vrot.slane %v16395_v3, 1  ;;  %v16396_v62 = vld [vmem:[#allocation51_spill] sm:$0xff] }
 0x1d1   : > { %v2154_v57 = vsel %vm2058_vm4, %v2149_v61, %v2153_v2  ;;  %v2164_v39 = vrot.slane %v16396_v62, 2  ;;  %v2171_v62 = vrot.slane %v13234_v51, 1  ;;  %v16402_v51 = vld [vmem:[#allocation60_spill] sm:$0xff] }
 0x1d3   : > { %v2165_v61 = vor.u32 %v2164_v39, %v2163_v9 }
 0x1d7   : > { %10839 = vmatmul.mubr.msk.bf16.gmra.mrb[36].mxu0 %vm739_vm3, %v2146_v30 }
 0x1d8   : > { %10842 = vmatprep.mubr.msk.bf16.mxu0 %vm739_vm3, %v2150_v46  ;;  %v2158_v46 = vsel %vm2058_vm4, %v2153_v2, %v2157_v20  ;;  %v2168_v2 = vrot.slane %v16398_v21, 2  ;;  %v2180_v21 = vrot.slane %v16402_v51, 2 }
 0x1da   : > { %v10724_v52 = vpop.f32.mrb[60].mxu0 }
 0x1db   : > { %v13572_v29 = vadd.f32 %v10724_v52, %v13432_v12  ;;  %v1491_v55 = vpop.f32.mrb[61].mxu0 }
 0x1dc   : > { %v13575_v4 = vadd.f32 %v1491_v55, %v13434_v33  ;;  %v10725_v38 = vpop.f32.mrb[62].mxu0  ;;  %v2161_v33 = vor.u32 %v2160_v63, %v2159_v44  ;;  %v16397_v55 = vld [vmem:[#allocation56_spill] sm:$0xff] }
 0x1dd   : > { %v1494_v30 = vpop.f32.mrb[63].mxu0  ;;  %v2167_v38 = vrot.slane %v16397_v55, 1  ;;  %v2047_v63 = vld [vmem:[%s12809_s7 + $0xfc] sm:$0x3] }
 0x1de   : > { %v13584_v12 = vadd.f32 %v1494_v30, %v13438_v40  ;;  %v2162_v52 = vsel %vm2058_vm4, %v2157_v20, %v2161_v33  ;;  %v2166_v3 = vsel %vm2058_vm4, %v2161_v33, %v2165_v61  ;;  %v16400_v20 = vld [vmem:[#allocation59_spill] sm:$0xff]  ;;  %v2179_v33 = vrot.slane %v13222_v47, 1 }
 0x1df   : > { %10843 = vmatmul.mubr.msk.bf16.gmra.mrb[40].mxu0 %vm739_vm3, %v2154_v57  ;;  %v2169_v40 = vor.u32 %v2168_v2, %v2167_v38  ;;  %v2173_v57 = vor.u32 %v2172_v60, %v2171_v62  ;;  %v2175_v30 = vrot.slane %v16400_v20, 1  ;;  %v13604_v18 = vcombine.low %v13244_v36, %v2047_v63 }
 0x1e0   : > { %10846 = vmatprep.mubr.msk.bf16.mxu0 %vm739_vm3, %v2158_v46  ;;  %v16401_v46 = vld [vmem:[#allocation54_spill] sm:$0xff]  ;;  %v2183_v38 = vrot.slane %v13253_v49, 1  ;;  %v2184_v2 = vrot.slane %v13231_v48, 2 }
 0x1e1   : > { %v2170_v44 = vsel %vm2058_vm4, %v2165_v61, %v2169_v40  ;;  %v2176_v9 = vrot.slane %v16401_v46, 2  ;;  %v2174_v39 = vsel %vm2058_vm4, %v2169_v40, %v2173_v57  ;;  %v2188_v62 = vshrl.u32 %v13604_v18, 16 }
 0x1e2   : > { %v2191_v61 = vshll.u32 %v13604_v18, 16 }
 0x1e3   : > { %v2177_v60 = vor.u32 %v2176_v9, %v2175_v30  ;;  %v2190_v40 = vrot.slane %v2188_v62, 1  ;;  %v2663_v30 = vld [vmem:[%s12809_s7] sm:$0xc]  ;;  %v2676_v62 = vrot.slane %v12822_v15, 2 }
 0x1e4   : > { %v2193_v63 = vrot.slane %v2191_v61, 2 }
 0x1e7   : > { %10847 = vmatmul.mubr.msk.bf16.gmra.mrb[44].mxu0 %vm739_vm3, %v2162_v52  ;;  %v2178_v52 = vsel %vm2058_vm4, %v2173_v57, %v2177_v60  ;;  %v13620_v57 = vld [vmem:[%s12809_s7 + $0x4] sm:$0xf] }
 0x1e8   : > { %10850 = vmatprep.mubr.msk.bf16.mxu0 %vm739_vm3, %v2166_v3  ;;  %v2181_v3 = vor.u32 %v2180_v21, %v2179_v33  ;;  %v2185_v21 = vor.u32 %v2184_v2, %v2183_v38  ;;  %v13623_v33 = vcombine.low %v2663_v30, %v13620_v57 }
 0x1ea   : > { %v2182_v36 = vsel %vm2058_vm4, %v2177_v60, %v2181_v3  ;;  %v2186_v9 = vsel %vm2058_vm4, %v2181_v3, %v2185_v21  ;;  %v2675_v60 = vrot.slane %v13623_v33, 2  ;;  %v2678_v3 = vrot.slane %v12824_v16, 2 }
 0x1ec   : > { %v2677_v61 = vsel %vm836_vm0, %v2675_v60, %v2676_v62  ;;  %v2679_v38 = vsel %vm836_vm0, %v2676_v62, %v2678_v3  ;;  %v2688_v60 = vrot.slane %v12894_v58, 2 }
 0x1ef   : > { %10851 = vmatmul.mubr.msk.bf16.gmra.mrb[48].mxu0 %vm739_vm3, %v2170_v44  ;;  %v2194_v44 = vor.u32 %v2193_v63, %v2190_v40  ;;  %v12621_v40 = vld [vmem:[%s16178_s1 + $0x88] sm:$0x7f]   ;;  %v2682_v63 = vrot.slane %v12851_v32, 2 }
 0x1f0   : > { %10854 = vmatprep.mubr.msk.bf16.mxu0 %vm739_vm3, %v2174_v39 }
 0x1f1   : > { %v2195_v39 = vsel %vm2058_vm4, %v2185_v21, %v2194_v44  ;;  %v2684_v21 = vrot.slane %v12855_v35, 2 }
 0x1f7   : > { %10855 = vmatmul.mubr.msk.bf16.gmra.mrb[52].mxu0 %vm739_vm3, %v2178_v52  ;;  %v2680_v52 = vrot.slane %v12831_v22, 2 }
 0x1f8   : > { %10858 = vmatprep.mubr.msk.bf16.mxu0 %vm739_vm3, %v2182_v36  ;;  %v12620_v36 = vld [vmem:[%s16178_s1 + $0x80] sm:$0xff]  }
 0x1f9   : > { %v2681_v2 = vsel %vm836_vm0, %v2678_v3, %v2680_v52  ;;  %v2683_v30 = vsel %vm836_vm0, %v2680_v52, %v2682_v63  ;;  %v2690_v3 = vrot.slane %v12922_v10, 2  ;;  %v2692_v52 = vrot.slane %v12928_v17, 2 }
 0x1ff   : > { %10859 = vmatmul.mubr.msk.bf16.gmra.mrb[56].mxu0 %vm739_vm3, %v2186_v9  ;;  %v2685_v9 = vsel %vm836_vm0, %v2682_v63, %v2684_v21 }
 0x200   : > { %10862 = vmatprep.mubr.msk.bf16.mxu0 %vm739_vm3, %v2195_v39  ;;  %v13653_v39 = vld [vmem:[%s16178_s1 + $0x90] sm:$0xff]  }
 0x207   : > { %10863 = vmatmul.mubr.msk.bf16.gmra.mrb[68].mxu0 %vm739_vm3, %v2194_v44  ;;  %v3468_v44 = vand.u32 %v12621_v40, %v12800_v5  ;;  %v2696_v40 = vrot.slane %v12957_v43, 2 }
 0x208   : > { %10872 = vmatprep.mubr.msk.bf16.mxu0 %vm739_vm3, %v2677_v61 }
 0x20f   : > { %10873 = vmatmul.mubr.msk.bf16.vlgmr.msra.gmra.mrb[0].mxu0 %vm739_vm3, %v2679_v38  ;;  %v2691_v38 = vsel %vm836_vm0, %v2688_v60, %v2690_v3 }
 0x210   : > { %10937 = vmatpush3.bf16.msra.mxu0 %v13502_v53  ;;  %10876 = vmatprep.mubr.msk.bf16.mxu0 %vm739_vm3, %v2681_v2  ;;  %v2686_v53 = vrot.slane %v12888_v54, 2  ;;  %v2693_v2 = vsel %vm836_vm0, %v2690_v3, %v2692_v52 }
 0x211   : > { %10938 = vmatprep.subr.bf16.mxu0 %v12620_v36 }
 0x212   : > { %v2687_v62 = vsel %vm836_vm0, %v2684_v21, %v2686_v53  ;;  %v2689_v61 = vsel %vm836_vm0, %v2686_v53, %v2688_v60  ;;  %v2702_v60 = vrot.slane %v12991_v13, 2 }
 0x214   : > { %10939 = vmatpush3.bf16.msra.mxu0 %v12620_v36  ;;  %v2694_v36 = vrot.slane %v12951_v37, 2 }
 0x215   : > { %10940 = vmatprep.subr.bf16.mxu0 %v3468_v44 }
 0x216   : > { %v2695_v63 = vsel %vm836_vm0, %v2692_v52, %v2694_v36  ;;  %v2697_v21 = vsel %vm836_vm0, %v2694_v36, %v2696_v40  ;;  %v2706_v52 = vrot.slane %v13036_v8, 2 }
 0x217   : > { %10877 = vmatmul.mubr.msk.bf16.gmra.mrb[4].mxu0 %vm739_vm3, %v2683_v30  ;;  %v2700_v30 = vrot.slane %v12987_v7, 2 }
 0x218   : > { %10880 = vmatprep.mubr.msk.bf16.mxu0 %vm739_vm3, %v2685_v9  ;;  %10941 = vmatpush3.bf16.msra.mxu0 %v3468_v44  ;;  %v2698_v44 = vrot.slane %v12983_v1, 2 }
 0x219   : > { %11006 = vmatprep.subr.bf16.mxu0 %v13653_v39 }
 0x21a   : > { %v2699_v9 = vsel %vm836_vm0, %v2696_v40, %v2698_v44  ;;  %v2701_v53 = vsel %vm836_vm0, %v2698_v44, %v2700_v30  ;;  %v2710_v40 = vrot.slane %v13063_v6, 2 }
 0x21f   : > { %10881 = vmatmul.mubr.msk.bf16.gmra.mrb[8].mxu0 %vm739_vm3, %v2687_v62  ;;  %v2704_v62 = vrot.slane %v12993_v14, 2 }
 0x220   : > { %10884 = vmatprep.mubr.msk.bf16.mxu0 %vm739_vm3, %v2689_v61  ;;  %v2703_v61 = vsel %vm836_vm0, %v2700_v30, %v2702_v60  ;;  %v2714_v30 = vrot.slane %v13091_v11, 2 }
 0x221   : > { %v2705_v3 = vsel %vm836_vm0, %v2702_v60, %v2704_v62 }
 0x227   : > { %10885 = vmatmul.mubr.msk.bf16.gmra.mrb[12].mxu0 %vm739_vm3, %v2691_v38  ;;  %v2708_v38 = vrot.slane %v13041_v34, 2 }
 0x228   : > { %10888 = vmatprep.mubr.msk.bf16.mxu0 %vm739_vm3, %v2693_v2  ;;  %v2707_v2 = vsel %vm836_vm0, %v2704_v62, %v2706_v52  ;;  %v2718_v62 = vrot.slane %v13119_v23, 2 }
 0x229   : > { %v2709_v36 = vsel %vm836_vm0, %v2706_v52, %v2708_v38 }
 0x22f   : > { %10889 = vmatmul.mubr.msk.bf16.gmra.mrb[16].mxu0 %vm739_vm3, %v2695_v63  ;;  %v2712_v63 = vrot.slane %v13069_v50, 2 }
 0x230   : > { %10892 = vmatprep.mubr.msk.bf16.mxu0 %vm739_vm3, %v2697_v21  ;;  %v2711_v21 = vsel %vm836_vm0, %v2708_v38, %v2710_v40 }
 0x231   : > { %v2713_v44 = vsel %vm836_vm0, %v2710_v40, %v2712_v63 }
 0x237   : > { %10893 = vmatmul.mubr.msk.bf16.gmra.mrb[20].mxu0 %vm739_vm3, %v2699_v9  ;;  %v2716_v9 = vrot.slane %v13097_v42, 2 }
 0x238   : > { %10896 = vmatprep.mubr.msk.bf16.mxu0 %vm739_vm3, %v2701_v53  ;;  %v2715_v53 = vsel %vm836_vm0, %v2712_v63, %v2714_v30 }
 0x239   : > { %v2717_v60 = vsel %vm836_vm0, %v2714_v30, %v2716_v9  ;;  %v2719_v40 = vsel %vm836_vm0, %v2716_v9, %v2718_v62  ;;  %v2724_v30 = vrot.slane %v13153_v19, 2  ;;  %v2726_v9 = vrot.slane %v13173_v0, 2 }
 0x23f   : > { %10897 = vmatmul.mubr.msk.bf16.gmra.mrb[24].mxu0 %vm739_vm3, %v2703_v61  ;;  %v2720_v61 = vrot.slane %v13125_v24, 2 }
 0x240   : > { %10900 = vmatprep.mubr.msk.bf16.mxu0 %vm739_vm3, %v2705_v3 }
 0x247   : > { %10901 = vmatmul.mubr.msk.bf16.gmra.mrb[28].mxu0 %vm739_vm3, %v2707_v2 }
 0x248   : > { %10904 = vmatprep.mubr.msk.bf16.mxu0 %vm739_vm3, %v2709_v36 }
 0x24f   : > { %10905 = vmatmul.mubr.msk.bf16.gmra.mrb[32].mxu0 %vm739_vm3, %v2711_v21  ;;  %v2721_v21 = vsel %vm836_vm0, %v2718_v62, %v2720_v61 }
 0x250   : > { %10908 = vmatprep.mubr.msk.bf16.mxu0 %vm739_vm3, %v2713_v44 }
 0x257   : > { %10909 = vmatmul.mubr.msk.bf16.gmra.mrb[36].mxu0 %vm739_vm3, %v2715_v53 }
 0x258   : > { %10912 = vmatprep.mubr.msk.bf16.mxu0 %vm739_vm3, %v2717_v60  ;;  %v2727_v60 = vsel %vm836_vm0, %v2724_v30, %v2726_v9 }
 0x25a   : > { %v10794_v3 = vpop.f32.mrb[64].mxu0 }
 0x25b   : > { %v13709_v52 = vadd.f32 %v10794_v3, %v13572_v29  ;;  %v1970_v38 = vpop.f32.mrb[65].mxu0  ;;  %v2722_v29 = vrot.slane %v13147_v56, 2  ;;  %v16403_v3 = vld [vmem:[#allocation52_spill] sm:$0xff] }
 0x25c   : > { %v13712_v2 = vadd.f32 %v1970_v38, %v13575_v4  ;;  %v10795_v36 = vpop.f32.mrb[66].mxu0  ;;  %v16404_v38 = vld [vmem:[#allocation58_spill] sm:$0xff] }
 0x25d   : > { %v1973_v63 = vpop.f32.mrb[67].mxu0  ;;  %v2723_v4 = vsel %vm836_vm0, %v2720_v61, %v2722_v29  ;;  %v2725_v53 = vsel %vm836_vm0, %v2722_v29, %v2724_v30  ;;  %v2730_v61 = vrot.slane %v16403_v3, 2  ;;  %v2732_v36 = vrot.slane %v16404_v38, 2 }
 0x25e   : > { %v13717_v44 = vadd.f32 %v1973_v63, %v13584_v12  ;;  %v2728_v12 = vrot.slane %v13185_v59, 2  ;;  %v2736_v30 = vrot.slane %v13604_v18, 2 }
 0x25f   : > { %10913 = vmatmul.mubr.msk.bf16.gmra.mrb[40].mxu0 %vm739_vm3, %v2719_v40  ;;  %v2733_v63 = vsel %vm836_vm0, %v2730_v61, %v2732_v36 }
 0x260   : > { %10916 = vmatprep.mubr.msk.bf16.mxu0 %vm739_vm3, %v2721_v21  ;;  %v2729_v62 = vsel %vm836_vm0, %v2726_v9, %v2728_v12  ;;  %v2731_v40 = vsel %vm836_vm0, %v2728_v12, %v2730_v61  ;;  %v16405_v21 = vld [vmem:[#allocation61_spill] sm:$0xff]  ;;  %v3225_v61 = vrot.slane %v12839_v26, 2 }
 0x261   : > { %v2734_v29 = vrot.slane %v16405_v21, 2  ;;  %v3229_v21 = vrot.slane %v12845_v28, 2  ;;  %v16408_v28 = vld [vmem:[#allocation11_spill] sm:$0xff] }
 0x263   : > { %v2735_v9 = vsel %vm836_vm0, %v2732_v36, %v2734_v29 }
 0x267   : > { %10917 = vmatmul.mubr.msk.bf16.gmra.mrb[44].mxu0 %vm739_vm3, %v2723_v4  ;;  %v3218_v4 = vshrl.u32 %v13623_v33, 16 }
 0x268   : > { %10920 = vmatprep.mubr.msk.bf16.mxu0 %vm739_vm3, %v2725_v53  ;;  %v3221_v53 = vshll.u32 %v13623_v33, 16  ;;  %v3230_v33 = vrot.slane %v12842_v27, 3  ;;  %v16407_v27 = vld [vmem:[#allocation13_spill] sm:$0xff] }
 0x26a   : > { %v3223_v12 = vrot.slane %v3221_v53, 3  ;;  %v3231_v53 = vor.u32 %v3230_v33, %v3229_v21  ;;  %v12624_v21 = vld [vmem:[%s16178_s1 + $0xa0] sm:$0x7f]  }
 0x26f   : > { %10921 = vmatmul.mubr.msk.bf16.gmra.mrb[48].mxu0 %vm739_vm3, %v2727_v60  ;;  %v2737_v60 = vsel %vm836_vm0, %v2734_v29, %v2736_v30  ;;  %v3233_v29 = vrot.slane %v12864_v41, 2  ;;  %v3242_v41 = vrot.slane %v16408_v28, 3  ;;  %v16410_v28 = vld [vmem:[#allocation12_spill] sm:$0xff] }
 0x270   : > { %10924 = vmatprep.mubr.msk.bf16.mxu0 %vm739_vm3, %v2729_v62  ;;  %v3220_v62 = vrot.slane %v3218_v4, 2  ;;  %v3234_v4 = vrot.slane %v12849_v31, 3  ;;  %v16412_v31 = vld [vmem:[#allocation15_spill] sm:$0xff] }
 0x277   : > { %10925 = vmatmul.mubr.msk.bf16.gmra.mrb[52].mxu0 %vm739_vm3, %v2731_v40  ;;  %v3226_v40 = vrot.slane %v12836_v25, 3 }
 0x278   : > { %10928 = vmatprep.mubr.msk.bf16.mxu0 %vm739_vm3, %v2733_v63  ;;  %v3224_v63 = vor.u32 %v3223_v12, %v3220_v62  ;;  %v3237_v62 = vrot.slane %v12870_v45, 2  ;;  %v16406_v12 = vld [vmem:[#allocation8_spill] sm:$0xff]  ;;  %v16411_v45 = vld [vmem:[#allocation17_spill] sm:$0xff] }
 0x279   : > { %v3227_v18 = vor.u32 %v3226_v40, %v3225_v61  ;;  %v3238_v61 = vrot.slane %v16406_v12, 3 }
 0x27b   : > { %v3228_v36 = vsel %vm3216_vm5, %v3224_v63, %v3227_v18  ;;  %v3241_v63 = vrot.slane %v16407_v27, 2  ;;  %v3246_v27 = vrot.slane %v16410_v28, 3  ;;  %v16416_v28 = vld [vmem:[#allocation19_spill] sm:$0xff] }
 0x27d   : > { %v3243_v33 = vor.u32 %v3242_v41, %v3241_v63  ;;  %v13781_v41 = vld [vmem:[%s16178_s1 + $0xa8] sm:$0xff]  }
 0x27f   : > { %10929 = vmatmul.mubr.msk.bf16.gmra.mrb[56].mxu0 %vm739_vm3, %v2735_v9  ;;  %v3235_v9 = vor.u32 %v3234_v4, %v3233_v29  ;;  %v16409_v4 = vld [vmem:[#allocation14_spill] sm:$0xff] }
 0x280   : > { %10932 = vmatprep.mubr.msk.bf16.mxu0 %vm739_vm3, %v2737_v60  ;;  %v3232_v60 = vsel %vm3216_vm5, %v3227_v18, %v3231_v53  ;;  %v3239_v18 = vor.u32 %v3238_v61, %v3237_v62 }
 0x281   : > { %v3236_v40 = vsel %vm3216_vm5, %v3231_v53, %v3235_v9  ;;  %v3245_v53 = vrot.slane %v16409_v4, 2  ;;  %v3258_v4 = vrot.slane %v16416_v28, 3  ;;  %v16424_v28 = vld [vmem:[#allocation27_spill] sm:$0xff] }
 0x282   : > { %v3240_v29 = vsel %vm3216_vm5, %v3235_v9, %v3239_v18  ;;  %v3244_v12 = vsel %vm3216_vm5, %v3239_v18, %v3243_v33 }
 0x283   : > { %v3247_v9 = vor.u32 %v3246_v27, %v3245_v53  ;;  %v16418_v53 = vld [vmem:[#allocation21_spill] sm:$0xff] }
 0x285   : > { %v3248_v61 = vsel %vm3216_vm5, %v3243_v33, %v3247_v9 }
 0x287   : > { %10933 = vmatmul.mubr.msk.bf16.gmra.mrb[72].mxu0 %vm739_vm3, %v2736_v30  ;;  %v12623_v30 = vld [vmem:[%s16178_s1 + $0x98] sm:$0xff]  }
 0x288   : > { %10942 = vmatprep.mubr.msk.bf16.mxu0 %vm739_vm3, %v3228_v36  ;;  %v4010_v36 = vand.u32 %v12624_v21, %v12800_v5 }
 0x28f   : > { %10943 = vmatmul.mubr.msk.bf16.vlgmr.msra.gmra.mrb[0].mxu0 %vm739_vm3, %v3232_v60  ;;  %v3249_v60 = vrot.slane %v16411_v45, 2 }
 0x290   : > { %11007 = vmatpush3.bf16.msra.mxu0 %v13653_v39  ;;  %10946 = vmatprep.mubr.msk.bf16.mxu0 %vm739_vm3, %v3236_v40  ;;  %v3250_v39 = vrot.slane %v16412_v31, 3  ;;  %v16413_v40 = vld [vmem:[#allocation18_spill] sm:$0xff]  ;;  %v16415_v31 = vld [vmem:[#allocation20_spill] sm:$0xff] }
 0x291   : > { %11008 = vmatprep.subr.bf16.mxu0 %v12623_v30  ;;  %v3253_v63 = vrot.slane %v16413_v40, 2  ;;  %v3257_v45 = vrot.slane %v16415_v31, 2  ;;  %v16420_v40 = vld [vmem:[#allocation23_spill] sm:$0xff] }
 0x292   : > { %v3251_v62 = vor.u32 %v3250_v39, %v3249_v60  ;;  %v3262_v60 = vrot.slane %v16418_v53, 3  ;;  %v3266_v31 = vrot.slane %v16420_v40, 3  ;;  %v16428_v40 = vld [vmem:[#allocation29_spill] sm:$0xff] }
 0x294   : > { %11009 = vmatpush3.bf16.msra.mxu0 %v12623_v30  ;;  %v16414_v30 = vld [vmem:[#allocation16_spill] sm:$0xff]  ;;  %v3252_v18 = vsel %vm3216_vm5, %v3247_v9, %v3251_v62 }
 0x295   : > { %11010 = vmatprep.subr.bf16.mxu0 %v4010_v36  ;;  %v3254_v21 = vrot.slane %v16414_v30, 3  ;;  %v16419_v30 = vld [vmem:[#allocation24_spill] sm:$0xff] }
 0x296   : > { %v3265_v9 = vrot.slane %v16419_v30, 2  ;;  %v3274_v30 = vrot.slane %v16424_v28, 3  ;;  %v16432_v28 = vld [vmem:[#allocation35_spill] sm:$0xff] }
 0x297   : > { %10947 = vmatmul.mubr.msk.bf16.gmra.mrb[4].mxu0 %vm739_vm3, %v3240_v29  ;;  %v3255_v27 = vor.u32 %v3254_v21, %v3253_v63  ;;  %v16417_v29 = vld [vmem:[#allocation22_spill] sm:$0xff]  ;;  %v16422_v63 = vld [vmem:[#allocation25_spill] sm:$0xff] }
 0x298   : > { %10950 = vmatprep.mubr.msk.bf16.mxu0 %vm739_vm3, %v3244_v12  ;;  %11011 = vmatpush3.bf16.msra.mxu0 %v4010_v36  ;;  %v3259_v12 = vor.u32 %v3258_v4, %v3257_v45  ;;  %v3261_v33 = vrot.slane %v16417_v29, 2  ;;  %v16421_v4 = vld [vmem:[#allocation26_spill] sm:$0xff]  ;;  %v3270_v21 = vrot.slane %v16422_v63, 3 }
 0x299   : > { %11076 = vmatprep.subr.bf16.mxu0 %v13781_v41  ;;  %v3256_v36 = vsel %vm3216_vm5, %v3251_v62, %v3255_v27  ;;  %v3269_v62 = vrot.slane %v16421_v4, 2  ;;  %v16423_v29 = vld [vmem:[#allocation30_spill] sm:$0xff]  ;;  %v16427_v4 = vld [vmem:[#allocation33_spill] sm:$0xff] }
 0x29a   : > { %v3260_v39 = vsel %vm3216_vm5, %v3255_v27, %v3259_v12  ;;  %v3273_v27 = vrot.slane %v16423_v29, 2  ;;  %v3282_v29 = vrot.slane %v16428_v40, 3  ;;  %v16436_v40 = vld [vmem:[#allocation39_spill] sm:$0xff] }
 0x29f   : > { %10951 = vmatmul.mubr.msk.bf16.gmra.mrb[8].mxu0 %vm739_vm3, %v3248_v61  ;;  %v3263_v61 = vor.u32 %v3262_v60, %v3261_v33  ;;  %v16425_v33 = vld [vmem:[#allocation31_spill] sm:$0xff]  ;;  %v16426_v60 = vld [vmem:[#allocation28_spill] sm:$0xff] }
 0x2a0   : > { %10954 = vmatprep.mubr.msk.bf16.mxu0 %vm739_vm3, %v3252_v18  ;;  %v3267_v18 = vor.u32 %v3266_v31, %v3265_v9  ;;  %v3278_v9 = vrot.slane %v16426_v60, 3 }
 0x2a1   : > { %v3264_v45 = vsel %vm3216_vm5, %v3259_v12, %v3263_v61  ;;  %v3277_v12 = vrot.slane %v16425_v33, 2  ;;  %v16431_v33 = vld [vmem:[#allocation37_spill] sm:$0xff] }
 0x2a2   : > { %v3268_v53 = vsel %vm3216_vm5, %v3263_v61, %v3267_v18  ;;  %v3281_v61 = vrot.slane %v16427_v4, 2  ;;  %v3290_v4 = vrot.slane %v16432_v28, 3  ;;  %v16440_v28 = vld [vmem:[#allocation43_spill] sm:$0xff] }
 0x2a7   : > { %10955 = vmatmul.mubr.msk.bf16.gmra.mrb[12].mxu0 %vm739_vm3, %v3256_v36  ;;  %v3271_v36 = vor.u32 %v3270_v21, %v3269_v62  ;;  %v16429_v62 = vld [vmem:[#allocation34_spill] sm:$0xff]  ;;  %v16430_v21 = vld [vmem:[#allocation32_spill] sm:$0xff] }
 0x2a8   : > { %10958 = vmatprep.mubr.msk.bf16.mxu0 %vm739_vm3, %v3260_v39  ;;  %v3275_v39 = vor.u32 %v3274_v30, %v3273_v27  ;;  %v3286_v27 = vrot.slane %v16430_v21, 3 }
 0x2a9   : > { %v3272_v31 = vsel %vm3216_vm5, %v3267_v18, %v3271_v36  ;;  %v3285_v18 = vrot.slane %v16429_v62, 2  ;;  %v16435_v62 = vld [vmem:[#allocation41_spill] sm:$0xff] }
 0x2aa   : > { %v3276_v63 = vsel %vm3216_vm5, %v3271_v36, %v3275_v39  ;;  %v3289_v36 = vrot.slane %v16431_v33, 2  ;;  %v3298_v33 = vrot.slane %v16436_v40, 3  ;;  %v16444_v40 = vld [vmem:[#allocation47_spill] sm:$0xff] }
 0x2af   : > { %10959 = vmatmul.mubr.msk.bf16.gmra.mrb[16].mxu0 %vm739_vm3, %v3264_v45  ;;  %v3279_v45 = vor.u32 %v3278_v9, %v3277_v12  ;;  %v16433_v12 = vld [vmem:[#allocation38_spill] sm:$0xff]  ;;  %v16434_v9 = vld [vmem:[#allocation36_spill] sm:$0xff] }
 0x2b0   : > { %10962 = vmatprep.mubr.msk.bf16.mxu0 %vm739_vm3, %v3268_v53  ;;  %v3283_v53 = vor.u32 %v3282_v29, %v3281_v61  ;;  %v3294_v61 = vrot.slane %v16434_v9, 3 }
 0x2b1   : > { %v3280_v30 = vsel %vm3216_vm5, %v3275_v39, %v3279_v45  ;;  %v3293_v39 = vrot.slane %v16433_v12, 2  ;;  %v16439_v12 = vld [vmem:[#allocation45_spill] sm:$0xff] }
 0x2b2   : > { %v3284_v60 = vsel %vm3216_vm5, %v3279_v45, %v3283_v53  ;;  %v3297_v45 = vrot.slane %v16435_v62, 2  ;;  %v3306_v62 = vrot.slane %v16440_v28, 3 }
 0x2b7   : > { %10963 = vmatmul.mubr.msk.bf16.gmra.mrb[20].mxu0 %vm739_vm3, %v3272_v31  ;;  %v3287_v31 = vor.u32 %v3286_v27, %v3285_v18  ;;  %v16437_v18 = vld [vmem:[#allocation42_spill] sm:$0xff]  ;;  %v16438_v27 = vld [vmem:[#allocation40_spill] sm:$0xff] }
 0x2b8   : > { %10966 = vmatprep.mubr.msk.bf16.mxu0 %vm739_vm3, %v3276_v63  ;;  %v3291_v63 = vor.u32 %v3290_v4, %v3289_v36  ;;  %v3302_v36 = vrot.slane %v16438_v27, 3 }
 0x2b9   : > { %v3288_v29 = vsel %vm3216_vm5, %v3283_v53, %v3287_v31  ;;  %v3301_v53 = vrot.slane %v16437_v18, 2  ;;  %v16443_v18 = vld [vmem:[#allocation49_spill] sm:$0xff] }
 0x2ba   : > { %v3292_v21 = vsel %vm3216_vm5, %v3287_v31, %v3291_v63  ;;  %v3305_v31 = vrot.slane %v16439_v12, 2  ;;  %v3314_v12 = vrot.slane %v16444_v40, 3  ;;  %v16446_v40 = vld [vmem:[#allocation48_spill] sm:$0xff] }
 0x2bf   : > { %10967 = vmatmul.mubr.msk.bf16.gmra.mrb[24].mxu0 %vm739_vm3, %v3280_v30  ;;  %v3295_v30 = vor.u32 %v3294_v61, %v3293_v39  ;;  %v16441_v39 = vld [vmem:[#allocation46_spill] sm:$0xff]  ;;  %v16442_v61 = vld [vmem:[#allocation44_spill] sm:$0xff] }
 0x2c0   : > { %10970 = vmatprep.mubr.msk.bf16.mxu0 %vm739_vm3, %v3284_v60  ;;  %v3299_v60 = vor.u32 %v3298_v33, %v3297_v45  ;;  %v3310_v45 = vrot.slane %v16442_v61, 3 }
 0x2c1   : > { %v3296_v4 = vsel %vm3216_vm5, %v3291_v63, %v3295_v30  ;;  %v3309_v63 = vrot.slane %v16441_v39, 2  ;;  %v3318_v39 = vrot.slane %v16446_v40, 3 }
 0x2c2   : > { %v3300_v9 = vsel %vm3216_vm5, %v3295_v30, %v3299_v60  ;;  %v3313_v30 = vrot.slane %v16443_v18, 2  ;;  %v16445_v18 = vld [vmem:[#allocation50_spill] sm:$0xff] }
 0x2c3   : > { %v3317_v61 = vrot.slane %v16445_v18, 2  ;;  %v16451_v18 = vld [vmem:[#allocation57_spill] sm:$0xff] }
 0x2c7   : > { %10971 = vmatmul.mubr.msk.bf16.gmra.mrb[28].mxu0 %vm739_vm3, %v3288_v29  ;;  %v3303_v29 = vor.u32 %v3302_v36, %v3301_v53 }
 0x2c8   : > { %10974 = vmatprep.mubr.msk.bf16.mxu0 %vm739_vm3, %v3292_v21  ;;  %v3307_v21 = vor.u32 %v3306_v62, %v3305_v31 }
 0x2c9   : > { %v3304_v33 = vsel %vm3216_vm5, %v3299_v60, %v3303_v29 }
 0x2ca   : > { %v3308_v27 = vsel %vm3216_vm5, %v3303_v29, %v3307_v21 }
 0x2cf   : > { %10975 = vmatmul.mubr.msk.bf16.gmra.mrb[32].mxu0 %vm739_vm3, %v3296_v4  ;;  %v3311_v4 = vor.u32 %v3310_v45, %v3309_v63  ;;  %v16447_v63 = vld [vmem:[#allocation55_spill] sm:$0xff] }
 0x2d0   : > { %10978 = vmatprep.mubr.msk.bf16.mxu0 %vm739_vm3, %v3300_v9  ;;  %v3315_v9 = vor.u32 %v3314_v12, %v3313_v30  ;;  %v3321_v12 = vrot.slane %v16447_v63, 2  ;;  %v16448_v45 = vld [vmem:[#allocation51_spill] sm:$0xff] }
 0x2d1   : > { %v3312_v29 = vsel %vm3216_vm5, %v3307_v21, %v3311_v4  ;;  %v3322_v30 = vrot.slane %v16448_v45, 3  ;;  %v16450_v45 = vld [vmem:[#allocation62_spill] sm:$0xff] }
 0x2d2   : > { %v3329_v40 = vrot.slane %v16450_v45, 2 }
 0x2d3   : > { %v3323_v21 = vor.u32 %v3322_v30, %v3321_v12  ;;  %v3337_v30 = vrot.slane %v13222_v47, 2 }
 0x2d7   : > { %10979 = vmatmul.mubr.msk.bf16.gmra.mrb[36].mxu0 %vm739_vm3, %v3304_v33 }
 0x2d8   : > { %10982 = vmatprep.mubr.msk.bf16.mxu0 %vm739_vm3, %v3308_v27  ;;  %v3316_v27 = vsel %vm3216_vm5, %v3311_v4, %v3315_v9 }
 0x2da   : > { %v10864_v53 = vpop.f32.mrb[68].mxu0 }
 0x2db   : > { %v13851_v62 = vadd.f32 %v10864_v53, %v13709_v52  ;;  %v2586_v60 = vpop.f32.mrb[69].mxu0 }
 0x2dc   : > { %v13854_v36 = vadd.f32 %v2586_v60, %v13712_v2  ;;  %v10865_v31 = vpop.f32.mrb[70].mxu0  ;;  %v3319_v2 = vor.u32 %v3318_v39, %v3317_v61  ;;  %v3325_v60 = vrot.slane %v16397_v55, 2  ;;  %v3205_v61 = vld [vmem:[%s12809_s7 + $0xfc] sm:$0x7] }
 0x2dd   : > { %v2589_v33 = vpop.f32.mrb[71].mxu0  ;;  %v16449_v31 = vld [vmem:[#allocation53_spill] sm:$0xff] }
 0x2de   : > { %v13863_v52 = vadd.f32 %v2589_v33, %v13717_v44  ;;  %v3320_v53 = vsel %vm3216_vm5, %v3315_v9, %v3319_v2  ;;  %v3326_v4 = vrot.slane %v16449_v31, 3  ;;  %v3324_v63 = vsel %vm3216_vm5, %v3319_v2, %v3323_v21 }
 0x2df   : > { %10983 = vmatmul.mubr.msk.bf16.gmra.mrb[40].mxu0 %vm739_vm3, %v3312_v29  ;;  %v3330_v44 = vrot.slane %v16451_v18, 3  ;;  %v3333_v33 = vrot.slane %v16400_v20, 2  ;;  %v3338_v2 = vrot.slane %v16402_v51, 3  ;;  %v13883_v18 = vld [vmem:[%s12809_s7 + $0xf8] sm:$0xf] }
 0x2e0   : > { %10986 = vmatprep.mubr.msk.bf16.mxu0 %vm739_vm3, %v3316_v27  ;;  %v3327_v29 = vor.u32 %v3326_v4, %v3325_v60  ;;  %v3334_v27 = vrot.slane %v16401_v46, 3  ;;  %16452 = vst [vmem:[#allocation56_spill] sm:$0xff] %v13883_v18 }
 0x2e1   : > { %v3331_v39 = vor.u32 %v3330_v44, %v3329_v40  ;;  %v3341_v44 = vrot.slane %v13253_v49, 2 }
 0x2e2   : > { %v3328_v9 = vsel %vm3216_vm5, %v3323_v21, %v3327_v29  ;;  %v3335_v40 = vor.u32 %v3334_v27, %v3333_v33  ;;  %v3821_v27 = vld [vmem:[%s12809_s7] sm:$0x8] }
 0x2e3   : > { %v3332_v12 = vsel %vm3216_vm5, %v3327_v29, %v3331_v39  ;;  %v3342_v29 = vrot.slane %v13231_v48, 3 }
 0x2e4   : > { %v3336_v4 = vsel %vm3216_vm5, %v3331_v39, %v3335_v40  ;;  %v13902_v39 = vcombine.low %v3821_v27, %v13620_v57  ;;  %v3838_v57 = vrot.slane %v12831_v22, 3  ;;  %v3842_v22 = vrot.slane %v12855_v35, 3 }
 0x2e5   : > { %v3846_v35 = vrot.slane %v12894_v58, 3  ;;  %v3850_v27 = vrot.slane %v12928_v17, 3  ;;  %v3852_v58 = vrot.slane %v12951_v37, 3  ;;  %v3858_v17 = vrot.slane %v12987_v7, 3 }
 0x2e6   : > { %v3860_v37 = vrot.slane %v12991_v13, 3  ;;  %v3866_v7 = vrot.slane %v13041_v34, 3  ;;  %v3868_v13 = vrot.slane %v13063_v6, 3  ;;  %v3874_v34 = vrot.slane %v13097_v42, 3 }
 0x2e7   : > { %10987 = vmatmul.mubr.msk.bf16.gmra.mrb[44].mxu0 %vm739_vm3, %v3320_v53  ;;  %v13886_v53 = vcombine.low %v13883_v18, %v3205_v61  ;;  %v3878_v6 = vrot.slane %v13125_v24, 3  ;;  %v3880_v24 = vrot.slane %v13147_v56, 3  ;;  %v3890_v56 = vrot.slane %v16404_v38, 3 }
 0x2e8   : > { %10990 = vmatprep.mubr.msk.bf16.mxu0 %vm739_vm3, %v3324_v63  ;;  %v3339_v63 = vor.u32 %v3338_v2, %v3337_v30  ;;  %v3833_v2 = vrot.slane %v13902_v39, 3 }
 0x2e9   : > { %v3346_v21 = vshrl.u32 %v13886_v53, 16  ;;  %v3349_v60 = vshll.u32 %v13886_v53, 16 }
 0x2ea   : > { %v3340_v61 = vsel %vm3216_vm5, %v3335_v40, %v3339_v63  ;;  %v3834_v40 = vrot.slane %v12822_v15, 3  ;;  %v12629_v15 = vld [vmem:[%s16178_s1 + $0xb8] sm:$0x7f]  }
 0x2eb   : > { %v3348_v18 = vrot.slane %v3346_v21, 2  ;;  %v3351_v51 = vrot.slane %v3349_v60, 3  ;;  %v12628_v60 = vld [vmem:[%s16178_s1 + $0xb0] sm:$0xff]  }
 0x2ec   : > { %v3835_v21 = vsel %vm3832_vm6, %v3833_v2, %v3834_v40  ;;  %v3853_v2 = vsel %vm3832_vm6, %v3850_v27, %v3852_v58 }
 0x2ed   : > { %v3352_v33 = vor.u32 %v3351_v51, %v3348_v18  ;;  %v3836_v51 = vrot.slane %v12824_v16, 3  ;;  %v3840_v16 = vrot.slane %v12851_v32, 3  ;;  %v3844_v32 = vrot.slane %v12888_v54, 3 }
 0x2ef   : > { %10991 = vmatmul.mubr.msk.bf16.gmra.mrb[48].mxu0 %vm739_vm3, %v3328_v9  ;;  %v3343_v9 = vor.u32 %v3342_v29, %v3341_v44  ;;  %v3837_v18 = vsel %vm3832_vm6, %v3834_v40, %v3836_v51  ;;  %v3841_v44 = vsel %vm3832_vm6, %v3838_v57, %v3840_v16  ;;  %v3843_v29 = vsel %vm3832_vm6, %v3840_v16, %v3842_v22 }
 0x2f0   : > { %10994 = vmatprep.mubr.msk.bf16.mxu0 %vm739_vm3, %v3332_v12 }
 0x2f1   : > { %v3344_v12 = vsel %vm3216_vm5, %v3339_v63, %v3343_v9  ;;  %v3353_v30 = vsel %vm3216_vm5, %v3343_v9, %v3352_v33  ;;  %v3839_v63 = vsel %vm3832_vm6, %v3836_v51, %v3838_v57  ;;  %v3847_v9 = vsel %vm3832_vm6, %v3844_v32, %v3846_v35 }
 0x2f2   : > { %v3861_v57 = vsel %vm3832_vm6, %v3858_v17, %v3860_v37 }
 0x2f7   : > { %10995 = vmatmul.mubr.msk.bf16.gmra.mrb[52].mxu0 %vm739_vm3, %v3336_v4  ;;  %v4626_v4 = vand.u32 %v12629_v15, %v12800_v5  ;;  %v3869_v15 = vsel %vm3832_vm6, %v3866_v7, %v3868_v13 }
 0x2f8   : > { %10998 = vmatprep.mubr.msk.bf16.mxu0 %vm739_vm3, %v3340_v61  ;;  %v13932_v61 = vld [vmem:[%s16178_s1 + $0xc0] sm:$0xff]  }
 0x2ff   : > { %10999 = vmatmul.mubr.msk.bf16.gmra.mrb[56].mxu0 %vm739_vm3, %v3344_v12 }
 0x300   : > { %11002 = vmatprep.mubr.msk.bf16.mxu0 %vm739_vm3, %v3353_v30  ;;  %v3854_v30 = vrot.slane %v12957_v43, 3  ;;  %v3862_v43 = vrot.slane %v12993_v14, 3  ;;  %v3870_v14 = vrot.slane %v13069_v50, 3  ;;  %v3876_v50 = vrot.slane %v13119_v23, 3 }
 0x301   : > { %v3882_v23 = vrot.slane %v13153_v19, 3  ;;  %v3888_v19 = vrot.slane %v16403_v3, 3 }
 0x302   : > { %v3855_v40 = vsel %vm3832_vm6, %v3852_v58, %v3854_v30  ;;  %v3871_v16 = vsel %vm3832_vm6, %v3868_v13, %v3870_v14  ;;  %v16457_v13 = vld [vmem:[#allocation7_spill] sm:$0xff] }
 0x307   : > { %11003 = vmatmul.mubr.msk.bf16.gmra.mrb[76].mxu0 %vm739_vm3, %v3352_v33  ;;  %v3848_v33 = vrot.slane %v12922_v10, 3  ;;  %v3856_v10 = vrot.slane %v12983_v1, 3  ;;  %v3864_v1 = vrot.slane %v13036_v8, 3  ;;  %v3872_v8 = vrot.slane %v13091_v11, 3 }
 0x308   : > { %11012 = vmatprep.mubr.msk.bf16.mxu0 %vm739_vm3, %v3835_v21 }
 0x309   : > { %v3849_v12 = vsel %vm3832_vm6, %v3846_v35, %v3848_v33  ;;  %v3851_v54 = vsel %vm3832_vm6, %v3848_v33, %v3850_v27  ;;  %v3857_v21 = vsel %vm3832_vm6, %v3854_v30, %v3856_v10  ;;  %v3859_v51 = vsel %vm3832_vm6, %v3856_v10, %v3858_v17 }
 0x30a   : > { %v3877_v35 = vsel %vm3832_vm6, %v3874_v34, %v3876_v50  ;;  %v3884_v27 = vrot.slane %v13173_v0, 3  ;;  %v3891_v30 = vsel %vm3832_vm6, %v3888_v19, %v3890_v56  ;;  %v16453_v0 = vld [vmem:[#allocation61_spill] sm:$0xff]  ;;  %v4379_v10 = vshll.u32 %v13902_v39, 16 }
 0x30f   : > { %11013 = vmatmul.mubr.msk.bf16.vlgmr.msra.gmra.mrb[0].mxu0 %vm739_vm3, %v3837_v18  ;;  %v3863_v18 = vsel %vm3832_vm6, %v3860_v37, %v3862_v43  ;;  %v4384_v37 = vrot.slane %v12836_v25, 4 }
 0x310   : > { %11077 = vmatpush3.bf16.msra.mxu0 %v13781_v41  ;;  %11016 = vmatprep.mubr.msk.bf16.mxu0 %vm739_vm3, %v3839_v63  ;;  %v3845_v41 = vsel %vm3832_vm6, %v3842_v22, %v3844_v32  ;;  %v3865_v63 = vsel %vm3832_vm6, %v3862_v43, %v3864_v1  ;;  %v3873_v22 = vsel %vm3832_vm6, %v3870_v14, %v3872_v8  ;;  %v4392_v14 = vrot.slane %v16457_v13, 4 }
 0x311   : > { %11078 = vmatprep.subr.bf16.mxu0 %v12628_v60 }
 0x314   : > { %11079 = vmatpush3.bf16.msra.mxu0 %v12628_v60  ;;  %v3867_v60 = vsel %vm3832_vm6, %v3864_v1, %v3866_v7 }
 0x315   : > { %11080 = vmatprep.subr.bf16.mxu0 %v4626_v4 }
 0x317   : > { %11017 = vmatmul.mubr.msk.bf16.gmra.mrb[4].mxu0 %vm739_vm3, %v3841_v44 }
 0x318   : > { %11020 = vmatprep.mubr.msk.bf16.mxu0 %vm739_vm3, %v3843_v29  ;;  %11081 = vmatpush3.bf16.msra.mxu0 %v4626_v4  ;;  %v3875_v4 = vsel %vm3832_vm6, %v3872_v8, %v3874_v34  ;;  %v16459_v34 = vld [vmem:[#allocation8_spill] sm:$0xff] }
 0x319   : > { %11146 = vmatprep.subr.bf16.mxu0 %v13932_v61 }
 0x31f   : > { %11021 = vmatmul.mubr.msk.bf16.gmra.mrb[8].mxu0 %vm739_vm3, %v3845_v41 }
 0x320   : > { %11024 = vmatprep.mubr.msk.bf16.mxu0 %vm739_vm3, %v3847_v9  ;;  %v3879_v9 = vsel %vm3832_vm6, %v3876_v50, %v3878_v6  ;;  %v16460_v50 = vld [vmem:[#allocation13_spill] sm:$0xff] }
 0x327   : > { %11025 = vmatmul.mubr.msk.bf16.gmra.mrb[12].mxu0 %vm739_vm3, %v3849_v12  ;;  %v3885_v12 = vsel %vm3832_vm6, %v3882_v23, %v3884_v27 }
 0x328   : > { %11028 = vmatprep.mubr.msk.bf16.mxu0 %vm739_vm3, %v3851_v54 }
 0x32f   : > { %11029 = vmatmul.mubr.msk.bf16.gmra.mrb[16].mxu0 %vm739_vm3, %v3853_v2  ;;  %v3894_v2 = vrot.slane %v13886_v53, 3 }
 0x330   : > { %11032 = vmatprep.mubr.msk.bf16.mxu0 %vm739_vm3, %v3855_v40  ;;  %v4376_v40 = vshrl.u32 %v13902_v39, 16  ;;  %v16455_v39 = vld [vmem:[#allocation5_spill] sm:$0xff] }
 0x331   : > { %v4388_v1 = vrot.slane %v16455_v39, 4 }
 0x332   : > { %v4378_v17 = vrot.slane %v4376_v40, 3 }
 0x337   : > { %11033 = vmatmul.mubr.msk.bf16.gmra.mrb[20].mxu0 %vm739_vm3, %v3857_v21  ;;  %v4381_v21 = vrot.slane %v4379_v10, 4 }
 0x338   : > { %11036 = vmatprep.mubr.msk.bf16.mxu0 %vm739_vm3, %v3859_v51  ;;  %v4383_v51 = vrot.slane %v12839_v26, 3 }
 0x339   : > { %v4382_v43 = vor.u32 %v4381_v21, %v4378_v17  ;;  %v16469_v17 = vld [vmem:[#allocation19_spill] sm:$0xff] }
 0x33a   : > { %v4385_v53 = vor.u32 %v4384_v37, %v4383_v51  ;;  %v4416_v21 = vrot.slane %v16469_v17, 4 }
 0x33c   : > { %v4386_v7 = vsel %vm4374_vm7, %v4382_v43, %v4385_v53 }
 0x33f   : > { %11037 = vmatmul.mubr.msk.bf16.gmra.mrb[24].mxu0 %vm739_vm3, %v3861_v57  ;;  %v16454_v57 = vld [vmem:[#allocation6_spill] sm:$0xff] }
 0x340   : > { %11040 = vmatprep.mubr.msk.bf16.mxu0 %vm739_vm3, %v3863_v18  ;;  %v4387_v18 = vrot.slane %v16454_v57, 3 }
 0x342   : > { %v4389_v25 = vor.u32 %v4388_v1, %v4387_v18  ;;  %v16471_v18 = vld [vmem:[#allocation21_spill] sm:$0xff] }
 0x343   : > { %v4420_v39 = vrot.slane %v16471_v18, 4 }
 0x347   : > { %11041 = vmatmul.mubr.msk.bf16.gmra.mrb[28].mxu0 %vm739_vm3, %v3865_v63  ;;  %v16456_v63 = vld [vmem:[#allocation9_spill] sm:$0xff] }
 0x348   : > { %11044 = vmatprep.mubr.msk.bf16.mxu0 %vm739_vm3, %v3867_v60  ;;  %v4391_v60 = vrot.slane %v16456_v63, 3 }
 0x34a   : > { %v4393_v26 = vor.u32 %v4392_v14, %v4391_v60  ;;  %v16473_v60 = vld [vmem:[#allocation23_spill] sm:$0xff] }
 0x34b   : > { %v4424_v13 = vrot.slane %v16473_v60, 4 }
 0x34f   : > { %11045 = vmatmul.mubr.msk.bf16.gmra.mrb[32].mxu0 %vm739_vm3, %v3869_v15  ;;  %v4390_v15 = vsel %vm4374_vm7, %v4385_v53, %v4389_v25  ;;  %v16470_v53 = vld [vmem:[#allocation22_spill] sm:$0xff] }
 0x350   : > { %11048 = vmatprep.mubr.msk.bf16.mxu0 %vm739_vm3, %v3871_v16  ;;  %v16458_v16 = vld [vmem:[#allocation10_spill] sm:$0xff]  ;;  %v4419_v57 = vrot.slane %v16470_v53, 3 }
 0x351   : > { %v4395_v8 = vrot.slane %v16458_v16, 3 }
 0x352   : > { %v4421_v14 = vor.u32 %v4420_v39, %v4419_v57  ;;  %v16488_v57 = vld [vmem:[#allocation41_spill] sm:$0xff]  ;;  %v16489_v39 = vld [vmem:[#allocation39_spill] sm:$0xff] }
 0x353   : > { %v4455_v18 = vrot.slane %v16488_v57, 3 }
 0x357   : > { %11049 = vmatmul.mubr.msk.bf16.gmra.mrb[36].mxu0 %vm739_vm3, %v3873_v22  ;;  %v4396_v22 = vrot.slane %v16459_v34, 4 }
 0x358   : > { %11052 = vmatprep.mubr.msk.bf16.mxu0 %vm739_vm3, %v3875_v4  ;;  %v4394_v4 = vsel %vm4374_vm7, %v4389_v25, %v4393_v26 }
 0x35a   : > { %v10934_v44 = vpop.f32.mrb[72].mxu0 }
 0x35b   : > { %v13988_v29 = vadd.f32 %v10934_v44, %v13851_v62  ;;  %v3128_v32 = vpop.f32.mrb[73].mxu0  ;;  %v3881_v62 = vsel %vm3832_vm6, %v3878_v6, %v3880_v24  ;;  %v4399_v6 = vrot.slane %v16460_v50, 3  ;;  %v16461_v44 = vld [vmem:[#allocation11_spill] sm:$0xff] }
 0x35c   : > { %v13991_v11 = vadd.f32 %v3128_v32, %v13854_v36  ;;  %v10935_v42 = vpop.f32.mrb[74].mxu0  ;;  %v3883_v36 = vsel %vm3832_vm6, %v3880_v24, %v3882_v23  ;;  %v4400_v32 = vrot.slane %v16461_v44, 4 }
 0x35d   : > { %v3131_v41 = vpop.f32.mrb[75].mxu0  ;;  %v12631_v42 = vld [vmem:[%s16178_s1 + $0xc8] sm:$0xff]  }
 0x35e   : > { %v13996_v33 = vadd.f32 %v3131_v41, %v13863_v52  ;;  %v3886_v52 = vrot.slane %v13185_v59, 3  ;;  %v3892_v59 = vrot.slane %v16453_v0, 3  ;;  %v4397_v41 = vor.u32 %v4396_v22, %v4395_v8  ;;  %v16466_v0 = vld [vmem:[#allocation18_spill] sm:$0xff]  ;;  %v16475_v8 = vld [vmem:[#allocation25_spill] sm:$0xff] }
 0x35f   : > { %11053 = vmatmul.mubr.msk.bf16.gmra.mrb[40].mxu0 %vm739_vm3, %v3877_v35  ;;  %v12632_v35 = vld [vmem:[%s16178_s1 + $0xd0] sm:$0x7f]   ;;  %v4428_v34 = vrot.slane %v16475_v8, 4 }
 0x360   : > { %11056 = vmatprep.mubr.msk.bf16.mxu0 %vm739_vm3, %v3879_v9  ;;  %v3887_v54 = vsel %vm3832_vm6, %v3884_v27, %v3886_v52  ;;  %v3889_v58 = vsel %vm3832_vm6, %v3886_v52, %v3888_v19  ;;  %v3893_v3 = vsel %vm3832_vm6, %v3890_v56, %v3892_v59  ;;  %v3895_v38 = vsel %vm3832_vm6, %v3892_v59, %v3894_v2  ;;  %v16463_v27 = vld [vmem:[#allocation12_spill] sm:$0xff]  ;;  %v16465_v56 = vld [vmem:[#allocation15_spill] sm:$0xff] }
 0x361   : > { %v4401_v9 = vor.u32 %v4400_v32, %v4399_v6  ;;  %v5132_v24 = vand.u32 %v12632_v35, %v12800_v5  ;;  %v4398_v23 = vsel %vm4374_vm7, %v4393_v26, %v4397_v41  ;;  %v4404_v52 = vrot.slane %v16463_v27, 4  ;;  %v16477_v6 = vld [vmem:[#allocation27_spill] sm:$0xff] }
 0x362   : > { %v4411_v59 = vrot.slane %v16466_v0, 3  ;;  %v4432_v44 = vrot.slane %v16477_v6, 4  ;;  %v16493_v6 = vld [vmem:[#allocation46_spill] sm:$0xff] }
 0x367   : > { %11057 = vmatmul.mubr.msk.bf16.gmra.mrb[44].mxu0 %vm739_vm3, %v3881_v62  ;;  %v16462_v62 = vld [vmem:[#allocation14_spill] sm:$0xff] }
 0x368   : > { %11060 = vmatprep.mubr.msk.bf16.mxu0 %vm739_vm3, %v3883_v36  ;;  %v4403_v36 = vrot.slane %v16462_v62, 3 }
 0x36f   : > { %11061 = vmatmul.mubr.msk.bf16.gmra.mrb[48].mxu0 %vm739_vm3, %v3885_v12  ;;  %v4402_v12 = vsel %vm4374_vm7, %v4397_v41, %v4401_v9  ;;  %v16478_v41 = vld [vmem:[#allocation31_spill] sm:$0xff] }
 0x370   : > { %11064 = vmatprep.mubr.msk.bf16.mxu0 %vm739_vm3, %v3887_v54  ;;  %v16464_v54 = vld [vmem:[#allocation17_spill] sm:$0xff] }
 0x371   : > { %v4407_v19 = vrot.slane %v16464_v54, 3 }
 0x377   : > { %11065 = vmatmul.mubr.msk.bf16.gmra.mrb[52].mxu0 %vm739_vm3, %v3889_v58  ;;  %v4405_v58 = vor.u32 %v4404_v52, %v4403_v36  ;;  %v16480_v36 = vld [vmem:[#allocation33_spill] sm:$0xff] }
 0x378   : > { %11068 = vmatprep.mubr.msk.bf16.mxu0 %vm739_vm3, %v3891_v30  ;;  %v4439_v27 = vrot.slane %v16480_v36, 3  ;;  %v16481_v52 = vld [vmem:[#allocation29_spill] sm:$0xff] }
 0x379   : > { %v4406_v30 = vsel %vm4374_vm7, %v4401_v9, %v4405_v58  ;;  %v4435_v9 = vrot.slane %v16478_v41, 3  ;;  %v16495_v41 = vld [vmem:[#allocation49_spill] sm:$0xff] }
 0x37f   : > { %11069 = vmatmul.mubr.msk.bf16.gmra.mrb[56].mxu0 %vm739_vm3, %v3893_v3  ;;  %v16468_v3 = vld [vmem:[#allocation20_spill] sm:$0xff] }
 0x380   : > { %11072 = vmatprep.mubr.msk.bf16.mxu0 %vm739_vm3, %v3895_v38  ;;  %v4415_v38 = vrot.slane %v16468_v3, 3 }
 0x382   : > { %v4417_v37 = vor.u32 %v4416_v21, %v4415_v38  ;;  %v16486_v21 = vld [vmem:[#allocation38_spill] sm:$0xff] }
 0x384   : > { %v4422_v26 = vsel %vm4374_vm7, %v4417_v37, %v4421_v14 }
 0x387   : > { %11073 = vmatmul.mubr.msk.bf16.gmra.mrb[80].mxu0 %vm739_vm3, %v3894_v2  ;;  %v16467_v2 = vld [vmem:[#allocation16_spill] sm:$0xff] }
 0x388   : > { %11082 = vmatprep.mubr.msk.bf16.mxu0 %vm739_vm3, %v4386_v7  ;;  %v4412_v40 = vrot.slane %v16467_v2, 4  ;;  %v16472_v7 = vld [vmem:[#allocation24_spill] sm:$0xff] }
 0x389   : > { %v4423_v63 = vrot.slane %v16472_v7, 3 }
 0x38a   : > { %v4413_v51 = vor.u32 %v4412_v40, %v4411_v59  ;;  %v16484_v59 = vld [vmem:[#allocation37_spill] sm:$0xff]  ;;  %v16485_v40 = vld [vmem:[#allocation35_spill] sm:$0xff] }
 0x38b   : > { %v4425_v25 = vor.u32 %v4424_v13, %v4423_v63  ;;  %v4447_v2 = vrot.slane %v16484_v59, 3  ;;  %v16490_v13 = vld [vmem:[#allocation42_spill] sm:$0xff]  ;;  %v16499_v59 = vld [vmem:[#allocation55_spill] sm:$0xff] }
 0x38c   : > { %v4418_v1 = vsel %vm4374_vm7, %v4413_v51, %v4417_v37  ;;  %v16487_v37 = vld [vmem:[#allocation36_spill] sm:$0xff] }
 0x38d   : > { %v4426_v22 = vsel %vm4374_vm7, %v4421_v14, %v4425_v25  ;;  %v4459_v14 = vrot.slane %v16490_v13, 3 }
 0x38f   : > { %11083 = vmatmul.mubr.msk.bf16.vlgmr.msra.gmra.mrb[0].mxu0 %vm739_vm3, %v4390_v15  ;;  %v16474_v15 = vld [vmem:[#allocation26_spill] sm:$0xff] }
 0x390   : > { %11147 = vmatpush3.bf16.msra.mxu0 %v13932_v61  ;;  %11086 = vmatprep.mubr.msk.bf16.mxu0 %vm739_vm3, %v4394_v4  ;;  %v4408_v61 = vrot.slane %v16465_v56, 4  ;;  %v4427_v16 = vrot.slane %v16474_v15, 3  ;;  %v16476_v4 = vld [vmem:[#allocation30_spill] sm:$0xff] }
 0x391   : > { %11148 = vmatprep.subr.bf16.mxu0 %v12631_v42  ;;  %v4431_v50 = vrot.slane %v16476_v4, 3 }
 0x392   : > { %v4409_v5 = vor.u32 %v4408_v61, %v4407_v19  ;;  %v4429_v32 = vor.u32 %v4428_v34, %v4427_v16  ;;  %v16482_v61 = vld [vmem:[#allocation34_spill] sm:$0xff]  ;;  %v16492_v16 = vld [vmem:[#allocation45_spill] sm:$0xff]  ;;  %v4464_v34 = vrot.slane %v16440_v28, 4 }
 0x393   : > { %v4463_v8 = vrot.slane %v16492_v16, 3 }
 0x394   : > { %11149 = vmatpush3.bf16.msra.mxu0 %v12631_v42  ;;  %v4410_v10 = vsel %vm4374_vm7, %v4405_v58, %v4409_v5  ;;  %v4414_v43 = vsel %vm4374_vm7, %v4409_v5, %v4413_v51  ;;  %v4433_v42 = vor.u32 %v4432_v44, %v4431_v50  ;;  %v4430_v35 = vsel %vm4374_vm7, %v4425_v25, %v4429_v32  ;;  %v16483_v5 = vld [vmem:[#allocation32_spill] sm:$0xff] }
 0x395   : > { %11150 = vmatprep.subr.bf16.mxu0 %v5132_v24  ;;  %v4443_v58 = vrot.slane %v16482_v61, 3  ;;  %v4451_v51 = vrot.slane %v16486_v21, 3  ;;  %v16491_v25 = vld [vmem:[#allocation40_spill] sm:$0xff]  ;;  %v4465_v4 = vor.u32 %v4464_v34, %v4463_v8  ;;  %v4467_v44 = vrot.slane %v16493_v6, 3  ;;  %v12678_v6 = vld [vmem:[%s12809_s7 + $0x8] sm:$0xf] }
 0x396   : > { %v4434_v62 = vsel %vm4374_vm7, %v4429_v32, %v4433_v42  ;;  %v16494_v32 = vld [vmem:[#allocation44_spill] sm:$0xff]  ;;  %v4484_v21 = vrot.slane %v16449_v31, 4  ;;  %v4492_v31 = vrot.slane %v16401_v46, 4 }
 0x397   : > { %11087 = vmatmul.mubr.msk.bf16.gmra.mrb[4].mxu0 %vm739_vm3, %v4398_v23 }
 0x398   : > { %11090 = vmatprep.mubr.msk.bf16.mxu0 %vm739_vm3, %v4402_v12  ;;  %11151 = vmatpush3.bf16.msra.mxu0 %v5132_v24  ;;  %v16479_v24 = vld [vmem:[#allocation28_spill] sm:$0xff]  ;;  %v4440_v12 = vrot.slane %v16481_v52, 4 }
 0x399   : > { %v4436_v23 = vrot.slane %v16479_v24, 4  ;;  %v16496_v24 = vld [vmem:[#allocation47_spill] sm:$0xff] }
 0x39a   : > { %v4441_v19 = vor.u32 %v4440_v12, %v4439_v27 }
 0x39b   : > { %v4437_v54 = vor.u32 %v4436_v23, %v4435_v9  ;;  %v4471_v9 = vrot.slane %v16495_v41, 3  ;;  %v4472_v23 = vrot.slane %v16496_v24, 4  ;;  %v12681_v41 = vld [vmem:[%s12809_s7 + $0x14] sm:$0xf] }
 0x39d   : > { %v4438_v56 = vsel %vm4374_vm7, %v4433_v42, %v4437_v54  ;;  %v4442_v0 = vsel %vm4374_vm7, %v4437_v54, %v4441_v19  ;;  %v4468_v42 = vrot.slane %v16494_v32, 4  ;;  %v12679_v32 = vld [vmem:[%s12809_s7 + $0xc] sm:$0xf] }
 0x39f   : > { %11091 = vmatmul.mubr.msk.bf16.gmra.mrb[8].mxu0 %vm739_vm3, %v4406_v30  ;;  %v4444_v30 = vrot.slane %v16483_v5, 4  ;;  %v4469_v28 = vor.u32 %v4468_v42, %v4467_v44  ;;  %v12680_v42 = vld [vmem:[%s12809_s7 + $0x10] sm:$0xf] }
 0x3a0   : > { %11094 = vmatprep.mubr.msk.bf16.mxu0 %vm739_vm3, %v4410_v10  ;;  %v4448_v10 = vrot.slane %v16485_v40, 4  ;;  %v16500_v40 = vld [vmem:[#allocation51_spill] sm:$0xff] }
 0x3a1   : > { %v4445_v3 = vor.u32 %v4444_v30, %v4443_v58  ;;  %v16498_v58 = vld [vmem:[#allocation48_spill] sm:$0xff] }
 0x3a2   : > { %v4449_v38 = vor.u32 %v4448_v10, %v4447_v2  ;;  %v4476_v5 = vrot.slane %v16498_v58, 4  ;;  %v4479_v2 = vrot.slane %v16499_v59, 3  ;;  %v4480_v10 = vrot.slane %v16500_v40, 4  ;;  %v12689_v58 = vld [vmem:[%s12809_s7 + $0x34] sm:$0xf] }
 0x3a3   : > { %v4446_v17 = vsel %vm4374_vm7, %v4441_v19, %v4445_v3  ;;  %v4470_v19 = vsel %vm4374_vm7, %v4465_v4, %v4469_v28  ;;  %v12692_v59 = vld [vmem:[%s12809_s7 + $0x40] sm:$0xf]  ;;  %v12693_v40 = vld [vmem:[%s12809_s7 + $0x44] sm:$0xf] }
 0x3a4   : > { %v4450_v53 = vsel %vm4374_vm7, %v4445_v3, %v4449_v38  ;;  %v4481_v3 = vor.u32 %v4480_v10, %v4479_v2  ;;  %v12694_v10 = vld [vmem:[%s12809_s7 + $0x48] sm:$0xf] }
 0x3a7   : > { %11095 = vmatmul.mubr.msk.bf16.gmra.mrb[12].mxu0 %vm739_vm3, %v4414_v43  ;;  %v4452_v43 = vrot.slane %v16487_v37, 4  ;;  %v4487_v37 = vrot.slane %v16450_v45, 3  ;;  %v4495_v45 = vrot.slane %v13222_v47, 3  ;;  %v4500_v47 = vrot.slane %v13231_v48, 4  ;;  %v12677_v48 = vld [vmem:[%s12809_s7 + $0x4] sm:$0xf] }
 0x3a8   : > { %11098 = vmatprep.mubr.msk.bf16.mxu0 %vm739_vm3, %v4418_v1  ;;  %v4456_v1 = vrot.slane %v16489_v39, 4  ;;  %v9608_v44 = vcombine.low %v12677_v48, %v12678_v6  ;;  %v12717_v6 = vld [vmem:[%s12809_s7 + $0xa4] sm:$0xf] }
 0x3a9   : > { %v4453_v7 = vor.u32 %v4452_v43, %v4451_v51  ;;  %v16501_v43 = vld [vmem:[#allocation57_spill] sm:$0xff] }
 0x3aa   : > { %v4457_v63 = vor.u32 %v4456_v1, %v4455_v18  ;;  %v14149_v18 = vld [vmem:[%s12809_s7 + $0xfc] sm:$0xf] }
 0x3ab   : > { %v4454_v60 = vsel %vm4374_vm7, %v4449_v38, %v4453_v7 }
 0x3ac   : > { %v4458_v15 = vsel %vm4374_vm7, %v4453_v7, %v4457_v63  ;;  %v16502_v7 = vld [vmem:[#allocation60_spill] sm:$0xff] }
 0x3af   : > { %11099 = vmatmul.mubr.msk.bf16.gmra.mrb[16].mxu0 %vm739_vm3, %v4422_v26  ;;  %v4460_v26 = vrot.slane %v16491_v25, 4 }
 0x3b0   : > { %11102 = vmatprep.mubr.msk.bf16.mxu0 %vm739_vm3, %v4426_v22 }
 0x3b1   : > { %v4461_v22 = vor.u32 %v4460_v26, %v4459_v14 }
 0x3b3   : > { %v4462_v50 = vsel %vm4374_vm7, %v4457_v63, %v4461_v22  ;;  %v4496_v63 = vrot.slane %v16502_v7, 4  ;;  %v12705_v7 = vld [vmem:[%s12809_s7 + $0x74] sm:$0xf] }
 0x3b5   : > { %v4497_v25 = vor.u32 %v4496_v63, %v4495_v45  ;;  %v12706_v63 = vld [vmem:[%s12809_s7 + $0x78] sm:$0xf] }
 0x3b7   : > { %11103 = vmatmul.mubr.msk.bf16.gmra.mrb[20].mxu0 %vm739_vm3, %v4430_v35  ;;  %v4466_v35 = vsel %vm4374_vm7, %v4461_v22, %v4465_v4 }
 0x3b8   : > { %11106 = vmatprep.mubr.msk.bf16.mxu0 %vm739_vm3, %v4434_v62  ;;  %v4473_v62 = vor.u32 %v4472_v23, %v4471_v9  ;;  %v12682_v9 = vld [vmem:[%s12809_s7 + $0x18] sm:$0xf]  ;;  %v12683_v23 = vld [vmem:[%s12809_s7 + $0x1c] sm:$0xf] }
 0x3b9   : > { %v9610_v24 = vcombine.low %v12681_v41, %v12682_v9  ;;  %v12719_v9 = vld [vmem:[%s12809_s7 + $0xac] sm:$0xf] }
 0x3bf   : > { %11107 = vmatmul.mubr.msk.bf16.gmra.mrb[24].mxu0 %vm739_vm3, %v4438_v56  ;;  %v16497_v56 = vld [vmem:[#allocation50_spill] sm:$0xff] }
 0x3c0   : > { %11110 = vmatprep.mubr.msk.bf16.mxu0 %vm739_vm3, %v4442_v0  ;;  %v4475_v61 = vrot.slane %v16497_v56, 3  ;;  %v4474_v0 = vsel %vm4374_vm7, %v4469_v28, %v4473_v62  ;;  %v12684_v28 = vld [vmem:[%s12809_s7 + $0x20] sm:$0xf]  ;;  %v12688_v56 = vld [vmem:[%s12809_s7 + $0x30] sm:$0xf] }
 0x3c7   : > { %11111 = vmatmul.mubr.msk.bf16.gmra.mrb[28].mxu0 %vm739_vm3, %v4446_v17  ;;  %v4483_v17 = vrot.slane %v16397_v55, 3  ;;  %v4491_v55 = vrot.slane %v16400_v20, 3 }
 0x3c8   : > { %11114 = vmatprep.mubr.msk.bf16.mxu0 %vm739_vm3, %v4450_v53  ;;  %v4488_v53 = vrot.slane %v16501_v43, 4  ;;  %v12699_v43 = vld [vmem:[%s12809_s7 + $0x5c] sm:$0xf] }
 0x3c9   : > { %v4493_v14 = vor.u32 %v4492_v31, %v4491_v55  ;;  %v12703_v31 = vld [vmem:[%s12809_s7 + $0x6c] sm:$0xf] }
 0x3ca   : > { %v4489_v57 = vor.u32 %v4488_v53, %v4487_v37  ;;  %v12700_v53 = vld [vmem:[%s12809_s7 + $0x60] sm:$0xf] }
 0x3cb   : > { %v4498_v16 = vsel %vm4374_vm7, %v4493_v14, %v4497_v25 }
 0x3cc   : > { %v4494_v46 = vsel %vm4374_vm7, %v4489_v57, %v4493_v14  ;;  %v12707_v14 = vld [vmem:[%s12809_s7 + $0x7c] sm:$0xf] }
 0x3cf   : > { %11115 = vmatmul.mubr.msk.bf16.gmra.mrb[32].mxu0 %vm739_vm3, %v4454_v60  ;;  %v16503_v60 = vld [vmem:[#allocation56_spill] sm:$0xff] }
 0x3d0   : > { %11118 = vmatprep.mubr.msk.bf16.mxu0 %vm739_vm3, %v4458_v15  ;;  %v9566_v13 = vcombine.low %v16503_v60, %v14149_v18  ;;  %v4499_v15 = vrot.slane %v13253_v49, 3 }
 0x3d2   : > { %v4504_v26 = vshrl.u32 %v9566_v13, 16  ;;  %v4507_v20 = vshll.u32 %v9566_v13, 16  ;;  %v4501_v22 = vor.u32 %v4500_v47, %v4499_v15  ;;  %v9622_v13 = vcombine.low %v12705_v7, %v12706_v63  ;;  %v12711_v47 = vld [vmem:[%s12809_s7 + $0x8c] sm:$0xf] }
 0x3d4   : > { %v4506_v8 = vrot.slane %v4504_v26, 3  ;;  %v4509_v34 = vrot.slane %v4507_v20, 4  ;;  %v12709_v20 = vld [vmem:[%s12809_s7 + $0x84] sm:$0xf] }
 0x3d6   : > { %v4510_v4 = vor.u32 %v4509_v34, %v4506_v8  ;;  %v12713_v34 = vld [vmem:[%s12809_s7 + $0x94] sm:$0xf] }
 0x3d7   : > { %11119 = vmatmul.mubr.msk.bf16.gmra.mrb[36].mxu0 %vm739_vm3, %v4462_v50  ;;  %v4502_v50 = vsel %vm4374_vm7, %v4497_v25, %v4501_v22  ;;  %v12708_v25 = vld [vmem:[%s12809_s7 + $0x80] sm:$0xf] }
 0x3d8   : > { %11122 = vmatprep.mubr.msk.bf16.mxu0 %vm739_vm3, %v4466_v35  ;;  %v4511_v49 = vsel %vm4374_vm7, %v4501_v22, %v4510_v4  ;;  %v9609_v35 = vcombine.low %v12679_v32, %v12680_v42  ;;  %v9623_v26 = vcombine.low %v12707_v14, %v12708_v25  ;;  %v12714_v22 = vld [vmem:[%s12809_s7 + $0x98] sm:$0xf] }
 0x3da   : > { %v11004_v36 = vpop.f32.mrb[76].mxu0 }
 0x3db   : > { %v14124_v27 = vadd.f32 %v11004_v36, %v13988_v29  ;;  %v3744_v52 = vpop.f32.mrb[77].mxu0  ;;  %v12685_v36 = vld [vmem:[%s12809_s7 + $0x24] sm:$0xf] }
 0x3dc   : > { %v14127_v12 = vadd.f32 %v3744_v52, %v13991_v11  ;;  %v11005_v54 = vpop.f32.mrb[78].mxu0  ;;  %v4477_v11 = vor.u32 %v4476_v5, %v4475_v61  ;;  %v12686_v52 = vld [vmem:[%s12809_s7 + $0x28] sm:$0xf]  ;;  %v12690_v5 = vld [vmem:[%s12809_s7 + $0x38] sm:$0xf] }
 0x3dd   : > { %v3747_v30 = vpop.f32.mrb[79].mxu0  ;;  %v9612_v54 = vcombine.low %v12685_v36, %v12686_v52  ;;  %v12721_v36 = vld [vmem:[%s12809_s7 + $0xb4] sm:$0xf]  ;;  %v12722_v52 = vld [vmem:[%s12809_s7 + $0xb8] sm:$0xf] }
 0x3de   : > { %v14136_v29 = vadd.f32 %v3747_v30, %v13996_v33  ;;  %v4478_v38 = vsel %vm4374_vm7, %v4473_v62, %v4477_v11  ;;  %v4482_v51 = vsel %vm4374_vm7, %v4477_v11, %v4481_v3  ;;  %v4485_v33 = vor.u32 %v4484_v21, %v4483_v17  ;;  %v12697_v21 = vld [vmem:[%s12809_s7 + $0x54] sm:$0xf] }
 0x3df   : > { %11123 = vmatmul.mubr.msk.bf16.gmra.mrb[40].mxu0 %vm739_vm3, %v4470_v19  ;;  %v9611_v62 = vcombine.low %v12683_v23, %v12684_v28  ;;  %v12687_v19 = vld [vmem:[%s12809_s7 + $0x2c] sm:$0xf]  ;;  %v9614_v30 = vcombine.low %v12689_v58, %v12690_v5  ;;  %v9616_v11 = vcombine.low %v12693_v40, %v12694_v10  ;;  %v12725_v58 = vld [vmem:[%s12809_s7 + $0xc4] sm:$0xf]  ;;  %v12726_v5 = vld [vmem:[%s12809_s7 + $0xc8] sm:$0xf] }
 0x3e0   : > { %11126 = vmatprep.mubr.msk.bf16.mxu0 %vm739_vm3, %v4474_v0  ;;  %v4486_v39 = vsel %vm4374_vm7, %v4481_v3, %v4485_v33  ;;  %v4490_v1 = vsel %vm4374_vm7, %v4485_v33, %v4489_v57  ;;  %v9613_v61 = vcombine.low %v12687_v19, %v12688_v56  ;;  %v12691_v0 = vld [vmem:[%s12809_s7 + $0x3c] sm:$0xf]  ;;  %v12695_v3 = vld [vmem:[%s12809_s7 + $0x4c] sm:$0xf]  ;;  %v9619_v33 = vcombine.low %v12699_v43, %v12700_v53  ;;  %v12701_v57 = vld [vmem:[%s12809_s7 + $0x64] sm:$0xf] }
 0x3e1   : > { %v9615_v2 = vcombine.low %v12691_v0, %v12692_v59  ;;  %v12727_v0 = vld [vmem:[%s12809_s7 + $0xcc] sm:$0xf]  ;;  %v12730_v40 = vld [vmem:[%s12809_s7 + $0xd8] sm:$0xf]  ;;  %v12747_v43 = vmov 0.0  }
 0x3e2   : > { %11216 = vmatprep.subr.bf16.mxu1 %v12747_v43  ;;  %5682 = vst.msk [vmem:[#allocation2 + $0x1f8] sm:$0xff] %vm5618_vm8, %v12747_v43  ;;  %v12735_v53 = vld [vmem:[%s12809_s7 + $0xec] sm:$0xf]  ;;  %11218 = vmatprep.mubr.msk.f32.mxu1 %vm12748_vm9, %v12747_v43 }
 0x3e3   : > { %9080 = vst.msk [vmem:[#allocation4 + $0xf8] sm:$0xff] %vm9048_vm10, %v12747_v43 }
 0x3e7   : > { %11127 = vmatmul.mubr.msk.bf16.gmra.mrb[44].mxu0 %vm739_vm3, %v4478_v38  ;;  %v12696_v38 = vld [vmem:[%s12809_s7 + $0x50] sm:$0xf] }
 0x3e8   : > { %11130 = vmatprep.mubr.msk.bf16.mxu0 %vm739_vm3, %v4482_v51  ;;  %v9617_v17 = vcombine.low %v12695_v3, %v12696_v38  ;;  %v12698_v51 = vld [vmem:[%s12809_s7 + $0x58] sm:$0xf]  ;;  %v12732_v3 = vld [vmem:[%s12809_s7 + $0xdc] sm:$0xf] }
 0x3e9   : > { %v9618_v37 = vcombine.low %v12697_v21, %v12698_v51  ;;  %v12734_v21 = vld [vmem:[%s12809_s7 + $0xe8] sm:$0xf] }
 0x3ef   : > { %11131 = vmatmul.mubr.msk.bf16.gmra.mrb[48].mxu0 %vm739_vm3, %v4486_v39  ;;  %v12702_v39 = vld [vmem:[%s12809_s7 + $0x68] sm:$0xf] }
 0x3f0   : > { %11134 = vmatprep.mubr.msk.bf16.mxu0 %vm739_vm3, %v4490_v1  ;;  %v9620_v55 = vcombine.low %v12701_v57, %v12702_v39  ;;  %v12704_v1 = vld [vmem:[%s12809_s7 + $0x70] sm:$0xf]  ;;  %v12737_v39 = vld [vmem:[%s12809_s7 + $0xf4] sm:$0xf] }
 0x3f1   : > { %v9621_v45 = vcombine.low %v12703_v31, %v12704_v1  ;;  %v9639_v31 = vcombine.low %v14149_v18, %v14149_v18 }
 0x3f7   : > { %11135 = vmatmul.mubr.msk.bf16.gmra.mrb[52].mxu0 %vm739_vm3, %v4494_v46  ;;  %v12710_v46 = vld [vmem:[%s12809_s7 + $0x88] sm:$0xf] }
 0x3f8   : > { %11138 = vmatprep.mubr.msk.bf16.mxu0 %vm739_vm3, %v4498_v16  ;;  %v9624_v15 = vcombine.low %v12709_v20, %v12710_v46  ;;  %v12712_v16 = vld [vmem:[%s12809_s7 + $0x90] sm:$0xf] }
 0x3f9   : > { %v9625_v8 = vcombine.low %v12711_v47, %v12712_v16 }
 0x3ff   : > { %11139 = vmatmul.mubr.msk.bf16.gmra.mrb[56].mxu0 %vm739_vm3, %v4502_v50  ;;  %v12715_v50 = vld [vmem:[%s12809_s7 + $0x9c] sm:$0xf] }
 0x400   : > { %11142 = vmatprep.mubr.msk.bf16.mxu0 %vm739_vm3, %v4511_v49  ;;  %v12716_v49 = vld [vmem:[%s12809_s7 + $0xa0] sm:$0xf] }
 0x401   : > { %v9627_v48 = vcombine.low %v12715_v50, %v12716_v49 }
 0x407   : > { %11143 = vmatmul.mubr.msk.bf16.gmra.mrb[84].mxu0 %vm739_vm3, %v4510_v4  ;;  %v9626_v4 = vcombine.low %v12713_v34, %v12714_v22 }
 0x408   : > { %11152 = vmatprep.mubr.msk.bf16.mxu0 %vm739_vm3, %v9608_v44  ;;  %v12718_v44 = vld [vmem:[%s12809_s7 + $0xa8] sm:$0xf] }
 0x409   : > { %v9628_v32 = vcombine.low %v12717_v6, %v12718_v44 }
 0x40f   : > { %11153 = vmatmul.mubr.msk.bf16.vlgmr.msra.gmra.mrb[0].mxu0 %vm739_vm3, %v9609_v35 }
 0x410   : > { %11156 = vmatprep.mubr.msk.bf16.mxu0 %vm739_vm3, %v9610_v24  ;;  %v12720_v24 = vld [vmem:[%s12809_s7 + $0xb0] sm:$0xf] }
 0x411   : > { %v9629_v23 = vcombine.low %v12719_v9, %v12720_v24 }
 0x417   : > { %11157 = vmatmul.mubr.msk.bf16.gmra.mrb[4].mxu0 %vm739_vm3, %v9611_v62 }
 0x418   : > { %11160 = vmatprep.mubr.msk.bf16.mxu0 %vm739_vm3, %v9612_v54  ;;  %v9630_v54 = vcombine.low %v12721_v36, %v12722_v52 }
 0x41f   : > { %11161 = vmatmul.mubr.msk.bf16.gmra.mrb[8].mxu0 %vm739_vm3, %v9613_v61  ;;  %v12724_v61 = vld [vmem:[%s12809_s7 + $0xc0] sm:$0xf] }
 0x420   : > { %11164 = vmatprep.mubr.msk.bf16.mxu0 %vm739_vm3, %v9614_v30  ;;  %v9632_v30 = vcombine.low %v12725_v58, %v12726_v5 }
 0x427   : > { %11165 = vmatmul.mubr.msk.bf16.gmra.mrb[12].mxu0 %vm739_vm3, %v9615_v2  ;;  %v12729_v2 = vld [vmem:[%s12809_s7 + $0xd4] sm:$0xf] }
 0x428   : > { %11168 = vmatprep.mubr.msk.bf16.mxu0 %vm739_vm3, %v9616_v11  ;;  %v9634_v10 = vcombine.low %v12729_v2, %v12730_v40  ;;  %v12731_v11 = vld [vmem:[%s12809_s7 + $0xe0] sm:$0xf] }
 0x429   : > { %v9635_v38 = vcombine.low %v12732_v3, %v12731_v11 }
 0x42f   : > { %11169 = vmatmul.mubr.msk.bf16.gmra.mrb[16].mxu0 %vm739_vm3, %v9617_v17  ;;  %v12733_v17 = vld [vmem:[%s12809_s7 + $0xe4] sm:$0xf] }
 0x430   : > { %11172 = vmatprep.mubr.msk.bf16.mxu0 %vm739_vm3, %v9618_v37  ;;  %v9636_v51 = vcombine.low %v12733_v17, %v12734_v21  ;;  %v12666_v37 = vld [vmem:[%s16180_s3 + $0x8] sm:$0xff]  }
 0x431   : > { %11217 = vmatpush3.bf16.msra.mxu1 %v12666_v37 }
 0x432   : > { %11311 = vmatprep.subr.bf16.mxu1 %v12747_v43 }
 0x437   : > { %11173 = vmatmul.mubr.msk.bf16.gmra.mrb[20].mxu0 %vm739_vm3, %v9619_v33  ;;  %v12736_v33 = vld [vmem:[%s12809_s7 + $0xf0] sm:$0xf] }
 0x438   : > { %11176 = vmatprep.mubr.msk.bf16.mxu0 %vm739_vm3, %v9620_v55  ;;  %v9637_v57 = vcombine.low %v12735_v53, %v12736_v33  ;;  %v9638_v55 = vcombine.low %v12737_v39, %v16503_v60  ;;  %v14289_v60 = vld [vmem:[%s16179_s2] ss:$0 sm:$0xff] }
 0x43f   : > { %11177 = vmatmul.mubr.msk.bf16.gmra.mrb[24].mxu0 %vm739_vm3, %v9621_v45 }
 0x440   : > { %11180 = vmatprep.mubr.msk.bf16.mxu0 %vm739_vm3, %v9622_v13 }
 0x447   : > { %11181 = vmatmul.mubr.msk.bf16.gmra.mrb[28].mxu0 %vm739_vm3, %v9623_v26 }
 0x448   : > { %11184 = vmatprep.mubr.msk.bf16.mxu0 %vm739_vm3, %v9624_v15 }
 0x44f   : > { %11185 = vmatmul.mubr.msk.bf16.gmra.mrb[32].mxu0 %vm739_vm3, %v9625_v8 }
 0x450   : > { %11188 = vmatprep.mubr.msk.bf16.mxu0 %vm739_vm3, %v9626_v4 }
 0x457   : > { %11189 = vmatmul.mubr.msk.bf16.gmra.mrb[36].mxu0 %vm739_vm3, %v9627_v48 }
 0x458   : > { %11192 = vmatprep.mubr.msk.bf16.mxu0 %vm739_vm3, %v9628_v32 }
 0x45a   : > { %v11074_v42 = vpop.f32.mrb[80].mxu0 }
 0x45b   : > { %v4362_v35 = vadd.f32 %v11074_v42, %v14124_v27  ;;  %v4286_v41 = vpop.f32.mrb[81].mxu0  ;;  %v12723_v27 = vld [vmem:[%s12809_s7 + $0xbc] sm:$0xf] }
 0x45c   : > { %v4360_v28 = vadd.f32 %v4286_v41, %v14127_v12  ;;  %v11075_v62 = vpop.f32.mrb[82].mxu0  ;;  %v9631_v12 = vcombine.low %v12723_v27, %v12724_v61 }
 0x45d   : > { %v4289_v19 = vpop.f32.mrb[83].mxu0 }
 0x45e   : > { %v4361_v56 = vadd.f32 %v4289_v19, %v14136_v29  ;;  %v12728_v29 = vld [vmem:[%s12809_s7 + $0xd0] sm:$0xf]  ;;  %s16059_s7 = scalar_lea.vmem %s16182_s5, %s9240_s19 }
 0x45f   : > { %11193 = vmatmul.mubr.msk.bf16.gmra.mrb[40].mxu0 %vm739_vm3, %v9629_v23  ;;  %v9633_v59 = vcombine.low %v12727_v0, %v12728_v29 }
 0x460   : > { %11196 = vmatprep.mubr.msk.bf16.mxu0 %vm739_vm3, %v9630_v54 }
 0x467   : > { %11197 = vmatmul.mubr.msk.bf16.gmra.mrb[44].mxu0 %vm739_vm3, %v9631_v12 }
 0x468   : > { %11200 = vmatprep.mubr.msk.bf16.mxu0 %vm739_vm3, %v9632_v30 }
 0x46f   : > { %11201 = vmatmul.mubr.msk.bf16.gmra.mrb[48].mxu0 %vm739_vm3, %v9633_v59 }
 0x470   : > { %11204 = vmatprep.mubr.msk.bf16.mxu0 %vm739_vm3, %v9634_v10 }
 0x477   : > { %11205 = vmatmul.mubr.msk.bf16.gmra.mrb[52].mxu0 %vm739_vm3, %v9635_v38 }
 0x478   : > { %11208 = vmatprep.mubr.msk.bf16.mxu0 %vm739_vm3, %v9636_v51  ;;  %v12667_v51 = vld [vmem:[%s16180_s3] sm:$0xff]  }
 0x47f   : > { %11209 = vmatmul.mubr.msk.bf16.gmra.mrb[56].mxu0 %vm739_vm3, %v9637_v57 }
 0x480   : > { %11212 = vmatprep.mubr.msk.bf16.mxu0 %vm739_vm3, %v9638_v55 }
 0x487   : > { %11213 = vmatmul.mubr.msk.bf16.gmra.mrb[88].mxu0 %vm739_vm3, %v9639_v31 }
 0x4da   : > { %v11144_v1 = vpop.f32.mrb[84].mxu0 }
 0x4db   : > { %v14280_v45 = vadd.f32 %v11144_v1, %v4362_v35  ;;  %v4902_v7 = vpop.f32.mrb[85].mxu0 }
 0x4dc   : > { %v14282_v63 = vadd.f32 %v4902_v7, %v4360_v28  ;;  %v11145_v13 = vpop.f32.mrb[86].mxu0 }
 0x4dd   : > { %v4905_v14 = vpop.f32.mrb[87].mxu0 }
 0x4de   : > { %v14284_v25 = vadd.f32 %v4905_v14, %v4361_v56 }
 0x4e2   : > { %v11154_v26 = vpop.f32.mrb[0].mxu0 }
 0x4e3   : > { %v5494_v18 = vadd.f32 %v11154_v26, %v14289_v60  ;;  %v5168_v20 = vpop.f32.mrb[1].mxu0 }
 0x4e4   : > { %v5492_v46 = vadd.f32 %v14289_v60, %v5168_v20  ;;  %v11155_v15 = vpop.f32.mrb[2].mxu0 }
 0x4e5   : > { %v5557_v47 = vmax.f32 %v5494_v18, 0.0  ;;  %v5495_v16 = vadd.f32 %v11155_v15, %v14289_v60  ;;  %v5171_v8 = vpop.f32.mrb[3].mxu0 }
 0x4e6   : > { %v5555_v34 = vmax.f32 %v5492_v46, 0.0  ;;  %v5493_v22 = vadd.f32 %v14289_v60, %v5171_v8 }
 0x4e7   : > { %5621 = vst.msk [vmem:[#allocation2 + $0x10] sm:$0xff] %vm5618_vm8, %v5557_v47  ;;  %v5558_v4 = vmax.f32 %v5495_v16, 0.0 }
 0x4e8   : > { %5619 = vst.msk [vmem:[#allocation2] sm:$0xff] %vm5618_vm8, %v5555_v34  ;;  %v5556_v50 = vmax.f32 %v5493_v22, 0.0 }
 0x4e9   : > { %5622 = vst.msk [vmem:[#allocation2 + $0x18] sm:$0xff] %vm5618_vm8, %v5558_v4 }
 0x4ea   : > { %5620 = vst.msk [vmem:[#allocation2 + $0x8] sm:$0xff] %vm5618_vm8, %v5556_v50  ;;  %v11158_v49 = vpop.f32.mrb[4].mxu0 }
 0x4eb   : > { %v5498_v48 = vadd.f32 %v11158_v49, %v14289_v60  ;;  %v5184_v6 = vpop.f32.mrb[5].mxu0 }
 0x4ec   : > { %v5496_v44 = vadd.f32 %v14289_v60, %v5184_v6  ;;  %v11159_v32 = vpop.f32.mrb[6].mxu0 }
 0x4ed   : > { %v5561_v42 = vmax.f32 %v5498_v48, 0.0  ;;  %v5499_v35 = vadd.f32 %v11159_v32, %v14289_v60  ;;  %v5187_v41 = vpop.f32.mrb[7].mxu0 }
 0x4ee   : > { %v5559_v9 = vmax.f32 %v5496_v44, 0.0  ;;  %v5497_v24 = vadd.f32 %v14289_v60, %v5187_v41 }
 0x4ef   : > { %5625 = vst.msk [vmem:[#allocation2 + $0x30] sm:$0xff] %vm5618_vm8, %v5561_v42  ;;  %v5562_v23 = vmax.f32 %v5499_v35, 0.0 }
 0x4f0   : > { %v5685_v28 = vld [vmem:[#allocation2 + $0x10] ss:$2 sm:$0xff]  ;;  %v5749_v62 = vld [vmem:[#allocation2 + $0x11] ss:$2 sm:$0xff]  ;;  %5623 = vst.msk [vmem:[#allocation2 + $0x20] sm:$0xff] %vm5618_vm8, %v5559_v9  ;;  %v5560_v36 = vmax.f32 %v5497_v24, 0.0 }
 0x4f1   : > { %v5811_v52 = vmax.f32 %v5685_v28, %v5749_v62  ;;  %v5683_v54 = vld [vmem:[#allocation2] ss:$2 sm:$0xff]  ;;  %v5747_v19 = vld [vmem:[#allocation2 + $0x1] ss:$2 sm:$0xff]  ;;  %5626 = vst.msk [vmem:[#allocation2 + $0x38] sm:$0xff] %vm5618_vm8, %v5562_v23 }
 0x4f2   : > { %v5810_v56 = vmax.f32 %v5683_v54, %v5747_v19  ;;  %5624 = vst.msk [vmem:[#allocation2 + $0x28] sm:$0xff] %vm5618_vm8, %v5560_v36  ;;  %v11162_v27 = vpop.f32.mrb[8].mxu0 }
 0x4f3   : > { %5843 = vst.msk [vmem:[#allocation3 + $0x8] sm:$0xff] %vm5618_vm8, %v5811_v52  ;;  %v5502_v61 = vadd.f32 %v11162_v27, %v14289_v60  ;;  %v5200_v12 = vpop.f32.mrb[9].mxu0 }
 0x4f4   : > { %5842 = vst.msk [vmem:[#allocation3] sm:$0xff] %vm5618_vm8, %v5810_v56  ;;  %v5500_v58 = vadd.f32 %v14289_v60, %v5200_v12  ;;  %v11163_v5 = vpop.f32.mrb[10].mxu0 }
 0x4f5   : > { %v5565_v30 = vmax.f32 %v5502_v61, 0.0  ;;  %v5503_v0 = vadd.f32 %v11163_v5, %v14289_v60  ;;  %v5203_v29 = vpop.f32.mrb[11].mxu0 }
 0x4f6   : > { %v5563_v59 = vmax.f32 %v5500_v58, 0.0  ;;  %v5501_v2 = vadd.f32 %v14289_v60, %v5203_v29 }
 0x4f7   : > { %5629 = vst.msk [vmem:[#allocation2 + $0x50] sm:$0xff] %vm5618_vm8, %v5565_v30  ;;  %v5566_v40 = vmax.f32 %v5503_v0, 0.0 }
 0x4f8   : > { %v5689_v10 = vld [vmem:[#allocation2 + $0x30] ss:$2 sm:$0xff]  ;;  %v5753_v11 = vld [vmem:[#allocation2 + $0x31] ss:$2 sm:$0xff]  ;;  %5627 = vst.msk [vmem:[#allocation2 + $0x40] sm:$0xff] %vm5618_vm8, %v5563_v59  ;;  %v5564_v3 = vmax.f32 %v5501_v2, 0.0 }
 0x4f9   : > { %v5813_v38 = vmax.f32 %v5689_v10, %v5753_v11  ;;  %v5687_v17 = vld [vmem:[#allocation2 + $0x20] ss:$2 sm:$0xff]  ;;  %v5751_v21 = vld [vmem:[#allocation2 + $0x21] ss:$2 sm:$0xff]  ;;  %5630 = vst.msk [vmem:[#allocation2 + $0x58] sm:$0xff] %vm5618_vm8, %v5566_v40 }
 0x4fa   : > { %v5812_v37 = vmax.f32 %v5687_v17, %v5751_v21  ;;  %5628 = vst.msk [vmem:[#allocation2 + $0x48] sm:$0xff] %vm5618_vm8, %v5564_v3  ;;  %v11166_v53 = vpop.f32.mrb[12].mxu0 }
 0x4fb   : > { %5845 = vst.msk [vmem:[#allocation3 + $0x18] sm:$0xff] %vm5618_vm8, %v5813_v38  ;;  %v5506_v33 = vadd.f32 %v11166_v53, %v14289_v60  ;;  %v5216_v57 = vpop.f32.mrb[13].mxu0  ;;  %v5907_v39 = vld [vmem:[#allocation3 + $0x1] sm:$0xff] }
 0x4fc   : > { %5844 = vst.msk [vmem:[#allocation3 + $0x10] sm:$0xff] %vm5618_vm8, %v5812_v37  ;;  %v5504_v55 = vadd.f32 %v14289_v60, %v5216_v57  ;;  %v11167_v31 = vpop.f32.mrb[14].mxu0  ;;  %11219 = vmatmul.mubr.msk.f32.vlgmr.msra.gmra.mrb[8].mxu1 %vm5618_vm8, %v5907_v39 }
 0x4fd   : > { %v5569_v1 = vmax.f32 %v5506_v33, 0.0  ;;  %v5507_v7 = vadd.f32 %v11167_v31, %v14289_v60  ;;  %v5219_v13 = vpop.f32.mrb[15].mxu0  ;;  %11312 = vmatpush3.bf16.msra.mxu1 %v12667_v51  ;;  %11221 = vmatprep.mubr.msk.f32.mxu1 %vm12748_vm9, %v12747_v43 }
 0x4fe   : > { %v5567_v14 = vmax.f32 %v5504_v55, 0.0  ;;  %v5505_v26 = vadd.f32 %v14289_v60, %v5219_v13  ;;  %11406 = vmatprep.subr.bf16.mxu1 %v12747_v43 }
 0x4ff   : > { %5633 = vst.msk [vmem:[#allocation2 + $0x70] sm:$0xff] %vm5618_vm8, %v5569_v1  ;;  %v5570_v18 = vmax.f32 %v5507_v7, 0.0 }
 0x500   : > { %v5693_v20 = vld [vmem:[#allocation2 + $0x50] ss:$2 sm:$0xff]  ;;  %v5757_v46 = vld [vmem:[#allocation2 + $0x51] ss:$2 sm:$0xff]  ;;  %5631 = vst.msk [vmem:[#allocation2 + $0x60] sm:$0xff] %vm5618_vm8, %v5567_v14  ;;  %v5568_v15 = vmax.f32 %v5505_v26, 0.0 }
 0x501   : > { %v5815_v47 = vmax.f32 %v5693_v20, %v5757_v46  ;;  %v5691_v16 = vld [vmem:[#allocation2 + $0x40] ss:$2 sm:$0xff]  ;;  %v5755_v8 = vld [vmem:[#allocation2 + $0x41] ss:$2 sm:$0xff]  ;;  %5634 = vst.msk [vmem:[#allocation2 + $0x78] sm:$0xff] %vm5618_vm8, %v5570_v18 }
 0x502   : > { %v5814_v34 = vmax.f32 %v5691_v16, %v5755_v8  ;;  %5632 = vst.msk [vmem:[#allocation2 + $0x68] sm:$0xff] %vm5618_vm8, %v5568_v15  ;;  %v11170_v22 = vpop.f32.mrb[16].mxu0 }
 0x503   : > { %5847 = vst.msk [vmem:[#allocation3 + $0x28] sm:$0xff] %vm5618_vm8, %v5815_v47  ;;  %v5510_v4 = vadd.f32 %v11170_v22, %v14289_v60  ;;  %v5232_v50 = vpop.f32.mrb[17].mxu0  ;;  %v5908_v49 = vld [vmem:[#allocation3 + $0x9] sm:$0xff]  ;;  %v5909_v24 = vld [vmem:[#allocation3 + $0x11] sm:$0xff] }
 0x504   : > { %5846 = vst.msk [vmem:[#allocation3 + $0x20] sm:$0xff] %vm5618_vm8, %v5814_v34  ;;  %v5508_v48 = vadd.f32 %v14289_v60, %v5232_v50  ;;  %v11171_v6 = vpop.f32.mrb[18].mxu0  ;;  %11222 = vmatmul.mubr.msk.f32.gmra.mrb[10].mxu1 %vm5618_vm8, %v5908_v49 }
 0x505   : > { %v5573_v44 = vmax.f32 %v5510_v4, 0.0  ;;  %v5511_v32 = vadd.f32 %v11171_v6, %v14289_v60  ;;  %v5235_v42 = vpop.f32.mrb[19].mxu0  ;;  %11224 = vmatprep.mubr.msk.f32.mxu1 %vm12748_vm9, %v12747_v43 }
 0x506   : > { %v5571_v35 = vmax.f32 %v5508_v48, 0.0  ;;  %v5509_v41 = vadd.f32 %v14289_v60, %v5235_v42 }
 0x507   : > { %5637 = vst.msk [vmem:[#allocation2 + $0x90] sm:$0xff] %vm5618_vm8, %v5573_v44  ;;  %v5574_v9 = vmax.f32 %v5511_v32, 0.0 }
 0x508   : > { %v5697_v23 = vld [vmem:[#allocation2 + $0x70] ss:$2 sm:$0xff]  ;;  %v5761_v28 = vld [vmem:[#allocation2 + $0x71] ss:$2 sm:$0xff]  ;;  %5635 = vst.msk [vmem:[#allocation2 + $0x80] sm:$0xff] %vm5618_vm8, %v5571_v35  ;;  %v5572_v62 = vmax.f32 %v5509_v41, 0.0  ;;  %11225 = vmatmul.mubr.msk.f32.gmra.mrb[12].mxu1 %vm5618_vm8, %v5909_v24 }
 0x509   : > { %v5817_v36 = vmax.f32 %v5697_v23, %v5761_v28  ;;  %v5695_v52 = vld [vmem:[#allocation2 + $0x60] ss:$2 sm:$0xff]  ;;  %v5759_v54 = vld [vmem:[#allocation2 + $0x61] ss:$2 sm:$0xff]  ;;  %5638 = vst.msk [vmem:[#allocation2 + $0x98] sm:$0xff] %vm5618_vm8, %v5574_v9  ;;  %11227 = vmatprep.mubr.msk.f32.mxu1 %vm12748_vm9, %v12747_v43 }
 0x50a   : > { %v5816_v19 = vmax.f32 %v5695_v52, %v5759_v54  ;;  %5636 = vst.msk [vmem:[#allocation2 + $0x88] sm:$0xff] %vm5618_vm8, %v5572_v62  ;;  %v11174_v56 = vpop.f32.mrb[20].mxu0 }
 0x50b   : > { %5849 = vst.msk [vmem:[#allocation3 + $0x38] sm:$0xff] %vm5618_vm8, %v5817_v36  ;;  %v5514_v27 = vadd.f32 %v11174_v56, %v14289_v60  ;;  %v5248_v61 = vpop.f32.mrb[21].mxu0  ;;  %v5910_v12 = vld [vmem:[#allocation3 + $0x19] sm:$0xff]  ;;  %v5911_v10 = vld [vmem:[#allocation3 + $0x21] sm:$0xff] }
 0x50c   : > { %5848 = vst.msk [vmem:[#allocation3 + $0x30] sm:$0xff] %vm5618_vm8, %v5816_v19  ;;  %v5512_v58 = vadd.f32 %v14289_v60, %v5248_v61  ;;  %v11175_v5 = vpop.f32.mrb[22].mxu0  ;;  %11228 = vmatmul.mubr.msk.f32.gmra.mrb[14].mxu1 %vm5618_vm8, %v5910_v12 }
 0x50d   : > { %v5577_v30 = vmax.f32 %v5514_v27, 0.0  ;;  %v5515_v0 = vadd.f32 %v11175_v5, %v14289_v60  ;;  %v5251_v29 = vpop.f32.mrb[23].mxu0  ;;  %11230 = vmatprep.mubr.msk.f32.mxu1 %vm12748_vm9, %v12747_v43 }
 0x50e   : > { %v5575_v59 = vmax.f32 %v5512_v58, 0.0  ;;  %v5513_v2 = vadd.f32 %v14289_v60, %v5251_v29 }
 0x50f   : > { %5641 = vst.msk [vmem:[#allocation2 + $0xb0] sm:$0xff] %vm5618_vm8, %v5577_v30  ;;  %v5578_v40 = vmax.f32 %v5515_v0, 0.0 }
 0x510   : > { %v5701_v11 = vld [vmem:[#allocation2 + $0x90] ss:$2 sm:$0xff]  ;;  %v5765_v3 = vld [vmem:[#allocation2 + $0x91] ss:$2 sm:$0xff]  ;;  %5639 = vst.msk [vmem:[#allocation2 + $0xa0] sm:$0xff] %vm5618_vm8, %v5575_v59  ;;  %v5576_v38 = vmax.f32 %v5513_v2, 0.0  ;;  %11231 = vmatmul.mubr.msk.f32.gmra.mrb[16].mxu1 %vm5618_vm8, %v5911_v10 }
 0x511   : > { %v5819_v17 = vmax.f32 %v5701_v11, %v5765_v3  ;;  %v5699_v21 = vld [vmem:[#allocation2 + $0x80] ss:$2 sm:$0xff]  ;;  %v5763_v51 = vld [vmem:[#allocation2 + $0x81] ss:$2 sm:$0xff]  ;;  %5642 = vst.msk [vmem:[#allocation2 + $0xb8] sm:$0xff] %vm5618_vm8, %v5578_v40  ;;  %11233 = vmatprep.mubr.msk.f32.mxu1 %vm12748_vm9, %v12747_v43 }
 0x512   : > { %v5818_v37 = vmax.f32 %v5699_v21, %v5763_v51  ;;  %5640 = vst.msk [vmem:[#allocation2 + $0xa8] sm:$0xff] %vm5618_vm8, %v5576_v38  ;;  %v11178_v53 = vpop.f32.mrb[24].mxu0 }
 0x513   : > { %5851 = vst.msk [vmem:[#allocation3 + $0x48] sm:$0xff] %vm5618_vm8, %v5819_v17  ;;  %v5518_v33 = vadd.f32 %v11178_v53, %v14289_v60  ;;  %v5264_v57 = vpop.f32.mrb[25].mxu0  ;;  %v5912_v39 = vld [vmem:[#allocation3 + $0x29] sm:$0xff]  ;;  %v5913_v20 = vld [vmem:[#allocation3 + $0x31] sm:$0xff] }
 0x514   : > { %5850 = vst.msk [vmem:[#allocation3 + $0x40] sm:$0xff] %vm5618_vm8, %v5818_v37  ;;  %v5516_v55 = vadd.f32 %v14289_v60, %v5264_v57  ;;  %v11179_v31 = vpop.f32.mrb[26].mxu0  ;;  %11234 = vmatmul.mubr.msk.f32.gmra.mrb[18].mxu1 %vm5618_vm8, %v5912_v39 }
 0x515   : > { %v5581_v1 = vmax.f32 %v5518_v33, 0.0  ;;  %v5519_v7 = vadd.f32 %v11179_v31, %v14289_v60  ;;  %v5267_v13 = vpop.f32.mrb[27].mxu0  ;;  %11236 = vmatprep.mubr.msk.f32.mxu1 %vm12748_vm9, %v12747_v43 }
 0x516   : > { %v5579_v14 = vmax.f32 %v5516_v55, 0.0  ;;  %v5517_v26 = vadd.f32 %v14289_v60, %v5267_v13 }
 0x517   : > { %5645 = vst.msk [vmem:[#allocation2 + $0xd0] sm:$0xff] %vm5618_vm8, %v5581_v1  ;;  %v5582_v18 = vmax.f32 %v5519_v7, 0.0 }
 0x518   : > { %v5705_v46 = vld [vmem:[#allocation2 + $0xb0] ss:$2 sm:$0xff]  ;;  %v5769_v15 = vld [vmem:[#allocation2 + $0xb1] ss:$2 sm:$0xff]  ;;  %5643 = vst.msk [vmem:[#allocation2 + $0xc0] sm:$0xff] %vm5618_vm8, %v5579_v14  ;;  %v5580_v47 = vmax.f32 %v5517_v26, 0.0  ;;  %11237 = vmatmul.mubr.msk.f32.gmra.mrb[20].mxu1 %vm5618_vm8, %v5913_v20 }
 0x519   : > { %v5821_v16 = vmax.f32 %v5705_v46, %v5769_v15  ;;  %v5703_v8 = vld [vmem:[#allocation2 + $0xa0] ss:$2 sm:$0xff]  ;;  %v5767_v34 = vld [vmem:[#allocation2 + $0xa1] ss:$2 sm:$0xff]  ;;  %5646 = vst.msk [vmem:[#allocation2 + $0xd8] sm:$0xff] %vm5618_vm8, %v5582_v18  ;;  %11239 = vmatprep.mubr.msk.f32.mxu1 %vm12748_vm9, %v12747_v43 }
 0x51a   : > { %v5820_v22 = vmax.f32 %v5703_v8, %v5767_v34  ;;  %5644 = vst.msk [vmem:[#allocation2 + $0xc8] sm:$0xff] %vm5618_vm8, %v5580_v47  ;;  %v11182_v4 = vpop.f32.mrb[28].mxu0 }
 0x51b   : > { %5853 = vst.msk [vmem:[#allocation3 + $0x58] sm:$0xff] %vm5618_vm8, %v5821_v16  ;;  %v5522_v50 = vadd.f32 %v11182_v4, %v14289_v60  ;;  %v5280_v49 = vpop.f32.mrb[29].mxu0  ;;  %v5914_v48 = vld [vmem:[#allocation3 + $0x39] sm:$0xff]  ;;  %v5915_v23 = vld [vmem:[#allocation3 + $0x41] sm:$0xff] }
 0x51c   : > { %5852 = vst.msk [vmem:[#allocation3 + $0x50] sm:$0xff] %vm5618_vm8, %v5820_v22  ;;  %v5520_v6 = vadd.f32 %v14289_v60, %v5280_v49  ;;  %v11183_v44 = vpop.f32.mrb[30].mxu0  ;;  %11240 = vmatmul.mubr.msk.f32.gmra.mrb[22].mxu1 %vm5618_vm8, %v5914_v48 }
 0x51d   : > { %v5585_v32 = vmax.f32 %v5522_v50, 0.0  ;;  %v5523_v42 = vadd.f32 %v11183_v44, %v14289_v60  ;;  %v5283_v35 = vpop.f32.mrb[31].mxu0  ;;  %11242 = vmatprep.mubr.msk.f32.mxu1 %vm12748_vm9, %v12747_v43 }
 0x51e   : > { %v5583_v41 = vmax.f32 %v5520_v6, 0.0  ;;  %v5521_v9 = vadd.f32 %v14289_v60, %v5283_v35 }
 0x51f   : > { %5649 = vst.msk [vmem:[#allocation2 + $0xf0] sm:$0xff] %vm5618_vm8, %v5585_v32  ;;  %v5586_v24 = vmax.f32 %v5523_v42, 0.0 }
 0x520   : > { %v5709_v28 = vld [vmem:[#allocation2 + $0xd0] ss:$2 sm:$0xff]  ;;  %v5773_v62 = vld [vmem:[#allocation2 + $0xd1] ss:$2 sm:$0xff]  ;;  %5647 = vst.msk [vmem:[#allocation2 + $0xe0] sm:$0xff] %vm5618_vm8, %v5583_v41  ;;  %v5584_v36 = vmax.f32 %v5521_v9, 0.0  ;;  %11243 = vmatmul.mubr.msk.f32.gmra.mrb[24].mxu1 %vm5618_vm8, %v5915_v23 }
 0x521   : > { %v5823_v52 = vmax.f32 %v5709_v28, %v5773_v62  ;;  %v5707_v54 = vld [vmem:[#allocation2 + $0xc0] ss:$2 sm:$0xff]  ;;  %v5771_v19 = vld [vmem:[#allocation2 + $0xc1] ss:$2 sm:$0xff]  ;;  %5650 = vst.msk [vmem:[#allocation2 + $0xf8] sm:$0xff] %vm5618_vm8, %v5586_v24  ;;  %11245 = vmatprep.mubr.msk.f32.mxu1 %vm12748_vm9, %v12747_v43 }
 0x522   : > { %v5822_v56 = vmax.f32 %v5707_v54, %v5771_v19  ;;  %5648 = vst.msk [vmem:[#allocation2 + $0xe8] sm:$0xff] %vm5618_vm8, %v5584_v36  ;;  %v11186_v27 = vpop.f32.mrb[32].mxu0 }
 0x523   : > { %5855 = vst.msk [vmem:[#allocation3 + $0x68] sm:$0xff] %vm5618_vm8, %v5823_v52  ;;  %v5526_v61 = vadd.f32 %v11186_v27, %v14289_v60  ;;  %v5296_v12 = vpop.f32.mrb[33].mxu0  ;;  %v5916_v58 = vld [vmem:[#allocation3 + $0x49] sm:$0xff]  ;;  %v5917_v11 = vld [vmem:[#allocation3 + $0x51] sm:$0xff] }
 0x524   : > { %5854 = vst.msk [vmem:[#allocation3 + $0x60] sm:$0xff] %vm5618_vm8, %v5822_v56  ;;  %v5524_v5 = vadd.f32 %v14289_v60, %v5296_v12  ;;  %v11187_v30 = vpop.f32.mrb[34].mxu0  ;;  %11246 = vmatmul.mubr.msk.f32.gmra.mrb[26].mxu1 %vm5618_vm8, %v5916_v58 }
 0x525   : > { %v5589_v0 = vmax.f32 %v5526_v61, 0.0  ;;  %v5527_v29 = vadd.f32 %v11187_v30, %v14289_v60  ;;  %v5299_v59 = vpop.f32.mrb[35].mxu0  ;;  %11248 = vmatprep.mubr.msk.f32.mxu1 %vm12748_vm9, %v12747_v43 }
 0x526   : > { %v5587_v2 = vmax.f32 %v5524_v5, 0.0  ;;  %v5525_v40 = vadd.f32 %v14289_v60, %v5299_v59 }
 0x527   : > { %5653 = vst.msk [vmem:[#allocation2 + $0x110] sm:$0xff] %vm5618_vm8, %v5589_v0  ;;  %v5590_v10 = vmax.f32 %v5527_v29, 0.0 }
 0x528   : > { %v5713_v3 = vld [vmem:[#allocation2 + $0xf0] ss:$2 sm:$0xff]  ;;  %v5777_v38 = vld [vmem:[#allocation2 + $0xf1] ss:$2 sm:$0xff]  ;;  %5651 = vst.msk [vmem:[#allocation2 + $0x100] sm:$0xff] %vm5618_vm8, %v5587_v2  ;;  %v5588_v17 = vmax.f32 %v5525_v40, 0.0  ;;  %11249 = vmatmul.mubr.msk.f32.gmra.mrb[28].mxu1 %vm5618_vm8, %v5917_v11 }
 0x529   : > { %v5825_v21 = vmax.f32 %v5713_v3, %v5777_v38  ;;  %v5711_v51 = vld [vmem:[#allocation2 + $0xe0] ss:$2 sm:$0xff]  ;;  %v5775_v37 = vld [vmem:[#allocation2 + $0xe1] ss:$2 sm:$0xff]  ;;  %5654 = vst.msk [vmem:[#allocation2 + $0x118] sm:$0xff] %vm5618_vm8, %v5590_v10  ;;  %11251 = vmatprep.mubr.msk.f32.mxu1 %vm12748_vm9, %v12747_v43 }
 0x52a   : > { %v5824_v53 = vmax.f32 %v5711_v51, %v5775_v37  ;;  %5652 = vst.msk [vmem:[#allocation2 + $0x108] sm:$0xff] %vm5618_vm8, %v5588_v17  ;;  %v11190_v33 = vpop.f32.mrb[36].mxu0 }
 0x52b   : > { %5857 = vst.msk [vmem:[#allocation3 + $0x78] sm:$0xff] %vm5618_vm8, %v5825_v21  ;;  %v5530_v57 = vadd.f32 %v11190_v33, %v14289_v60  ;;  %v5312_v39 = vpop.f32.mrb[37].mxu0  ;;  %v5918_v55 = vld [vmem:[#allocation3 + $0x59] sm:$0xff]  ;;  %v5919_v46 = vld [vmem:[#allocation3 + $0x61] sm:$0xff] }
 0x52c   : > { %5856 = vst.msk [vmem:[#allocation3 + $0x70] sm:$0xff] %vm5618_vm8, %v5824_v53  ;;  %v5528_v31 = vadd.f32 %v14289_v60, %v5312_v39  ;;  %v11191_v1 = vpop.f32.mrb[38].mxu0  ;;  %11252 = vmatmul.mubr.msk.f32.gmra.mrb[30].mxu1 %vm5618_vm8, %v5918_v55 }
 0x52d   : > { %v5593_v7 = vmax.f32 %v5530_v57, 0.0  ;;  %v5531_v13 = vadd.f32 %v11191_v1, %v14289_v60  ;;  %v5315_v14 = vpop.f32.mrb[39].mxu0  ;;  %11254 = vmatprep.mubr.msk.f32.mxu1 %vm12748_vm9, %v12747_v43 }
 0x52e   : > { %v5591_v26 = vmax.f32 %v5528_v31, 0.0  ;;  %v5529_v18 = vadd.f32 %v14289_v60, %v5315_v14 }
 0x52f   : > { %5657 = vst.msk [vmem:[#allocation2 + $0x130] sm:$0xff] %vm5618_vm8, %v5593_v7  ;;  %v5594_v20 = vmax.f32 %v5531_v13, 0.0 }
 0x530   : > { %v5717_v15 = vld [vmem:[#allocation2 + $0x110] ss:$2 sm:$0xff]  ;;  %v5781_v47 = vld [vmem:[#allocation2 + $0x111] ss:$2 sm:$0xff]  ;;  %5655 = vst.msk [vmem:[#allocation2 + $0x120] sm:$0xff] %vm5618_vm8, %v5591_v26  ;;  %v5592_v16 = vmax.f32 %v5529_v18, 0.0  ;;  %11255 = vmatmul.mubr.msk.f32.gmra.mrb[32].mxu1 %vm5618_vm8, %v5919_v46 }
 0x531   : > { %v5827_v8 = vmax.f32 %v5717_v15, %v5781_v47  ;;  %v5715_v34 = vld [vmem:[#allocation2 + $0x100] ss:$2 sm:$0xff]  ;;  %v5779_v22 = vld [vmem:[#allocation2 + $0x101] ss:$2 sm:$0xff]  ;;  %5658 = vst.msk [vmem:[#allocation2 + $0x138] sm:$0xff] %vm5618_vm8, %v5594_v20  ;;  %11257 = vmatprep.mubr.msk.f32.mxu1 %vm12748_vm9, %v12747_v43 }
 0x532   : > { %v5826_v4 = vmax.f32 %v5715_v34, %v5779_v22  ;;  %5656 = vst.msk [vmem:[#allocation2 + $0x128] sm:$0xff] %vm5618_vm8, %v5592_v16  ;;  %v11194_v50 = vpop.f32.mrb[40].mxu0 }
 0x533   : > { %5859 = vst.msk [vmem:[#allocation3 + $0x88] sm:$0xff] %vm5618_vm8, %v5827_v8  ;;  %v5534_v49 = vadd.f32 %v11194_v50, %v14289_v60  ;;  %v5328_v48 = vpop.f32.mrb[41].mxu0  ;;  %v5920_v6 = vld [vmem:[#allocation3 + $0x69] sm:$0xff]  ;;  %v5921_v28 = vld [vmem:[#allocation3 + $0x71] sm:$0xff] }
 0x534   : > { %5858 = vst.msk [vmem:[#allocation3 + $0x80] sm:$0xff] %vm5618_vm8, %v5826_v4  ;;  %v5532_v44 = vadd.f32 %v14289_v60, %v5328_v48  ;;  %v11195_v32 = vpop.f32.mrb[42].mxu0  ;;  %11258 = vmatmul.mubr.msk.f32.gmra.mrb[34].mxu1 %vm5618_vm8, %v5920_v6 }
 0x535   : > { %v5597_v42 = vmax.f32 %v5534_v49, 0.0  ;;  %v5535_v35 = vadd.f32 %v11195_v32, %v14289_v60  ;;  %v5331_v41 = vpop.f32.mrb[43].mxu0  ;;  %11260 = vmatprep.mubr.msk.f32.mxu1 %vm12748_vm9, %v12747_v43 }
 0x536   : > { %v5595_v9 = vmax.f32 %v5532_v44, 0.0  ;;  %v5533_v24 = vadd.f32 %v14289_v60, %v5331_v41 }
 0x537   : > { %5661 = vst.msk [vmem:[#allocation2 + $0x150] sm:$0xff] %vm5618_vm8, %v5597_v42  ;;  %v5598_v23 = vmax.f32 %v5535_v35, 0.0 }
 0x538   : > { %v5721_v62 = vld [vmem:[#allocation2 + $0x130] ss:$2 sm:$0xff]  ;;  %v5785_v36 = vld [vmem:[#allocation2 + $0x131] ss:$2 sm:$0xff]  ;;  %5659 = vst.msk [vmem:[#allocation2 + $0x140] sm:$0xff] %vm5618_vm8, %v5595_v9  ;;  %v5596_v52 = vmax.f32 %v5533_v24, 0.0  ;;  %11261 = vmatmul.mubr.msk.f32.gmra.mrb[36].mxu1 %vm5618_vm8, %v5921_v28 }
 0x539   : > { %v5829_v54 = vmax.f32 %v5721_v62, %v5785_v36  ;;  %v5719_v19 = vld [vmem:[#allocation2 + $0x120] ss:$2 sm:$0xff]  ;;  %v5783_v56 = vld [vmem:[#allocation2 + $0x121] ss:$2 sm:$0xff]  ;;  %5662 = vst.msk [vmem:[#allocation2 + $0x158] sm:$0xff] %vm5618_vm8, %v5598_v23  ;;  %11263 = vmatprep.mubr.msk.f32.mxu1 %vm12748_vm9, %v12747_v43 }
 0x53a   : > { %v5828_v27 = vmax.f32 %v5719_v19, %v5783_v56  ;;  %5660 = vst.msk [vmem:[#allocation2 + $0x148] sm:$0xff] %vm5618_vm8, %v5596_v52  ;;  %v11198_v61 = vpop.f32.mrb[44].mxu0 }
 0x53b   : > { %5861 = vst.msk [vmem:[#allocation3 + $0x98] sm:$0xff] %vm5618_vm8, %v5829_v54  ;;  %v5538_v12 = vadd.f32 %v11198_v61, %v14289_v60  ;;  %v5344_v58 = vpop.f32.mrb[45].mxu0  ;;  %v5922_v5 = vld [vmem:[#allocation3 + $0x79] sm:$0xff]  ;;  %v5923_v3 = vld [vmem:[#allocation3 + $0x81] sm:$0xff] }
 0x53c   : > { %5860 = vst.msk [vmem:[#allocation3 + $0x90] sm:$0xff] %vm5618_vm8, %v5828_v27  ;;  %v5536_v30 = vadd.f32 %v14289_v60, %v5344_v58  ;;  %v11199_v0 = vpop.f32.mrb[46].mxu0  ;;  %11264 = vmatmul.mubr.msk.f32.gmra.mrb[38].mxu1 %vm5618_vm8, %v5922_v5  ;;  %v16504_v58 = vld [vmem:[#allocation63_spill] sm:$0xff] }
 0x53d   : > { %v5601_v29 = vmax.f32 %v5538_v12, 0.0  ;;  %v5539_v59 = vadd.f32 %v11199_v0, %v14289_v60  ;;  %v5347_v2 = vpop.f32.mrb[47].mxu0  ;;  %11266 = vmatprep.mubr.msk.f32.mxu1 %vm12748_vm9, %v12747_v43 }
 0x53e   : > { %v5599_v40 = vmax.f32 %v5536_v30, 0.0  ;;  %v5537_v10 = vadd.f32 %v14289_v60, %v5347_v2 }
 0x53f   : > { %5665 = vst.msk [vmem:[#allocation2 + $0x170] sm:$0xff] %vm5618_vm8, %v5601_v29  ;;  %v5602_v11 = vmax.f32 %v5539_v59, 0.0  ;;  %v16505_v29 = vld [vmem:[#allocation64_spill] sm:$0xff] }
 0x540   : > { %v5725_v38 = vld [vmem:[#allocation2 + $0x150] ss:$2 sm:$0xff]  ;;  %v5789_v17 = vld [vmem:[#allocation2 + $0x151] ss:$2 sm:$0xff]  ;;  %5663 = vst.msk [vmem:[#allocation2 + $0x160] sm:$0xff] %vm5618_vm8, %v5599_v40  ;;  %v5600_v21 = vmax.f32 %v5537_v10, 0.0  ;;  %11267 = vmatmul.mubr.msk.f32.gmra.mrb[40].mxu1 %vm5618_vm8, %v5923_v3 }
 0x541   : > { %v5831_v51 = vmax.f32 %v5725_v38, %v5789_v17  ;;  %v5723_v37 = vld [vmem:[#allocation2 + $0x140] ss:$2 sm:$0xff]  ;;  %v5787_v53 = vld [vmem:[#allocation2 + $0x141] ss:$2 sm:$0xff]  ;;  %5666 = vst.msk [vmem:[#allocation2 + $0x178] sm:$0xff] %vm5618_vm8, %v5602_v11  ;;  %11269 = vmatprep.mubr.msk.f32.mxu1 %vm12748_vm9, %v12747_v43 }
 0x542   : > { %v5830_v33 = vmax.f32 %v5723_v37, %v5787_v53  ;;  %5664 = vst.msk [vmem:[#allocation2 + $0x168] sm:$0xff] %vm5618_vm8, %v5600_v21  ;;  %v11202_v57 = vpop.f32.mrb[48].mxu0  ;;  %v16506_v10 = vld [vmem:[#allocation65_spill] sm:$0xff]  ;;  %v16507_v17 = vld [vmem:[#allocation66_spill] sm:$0xff] }
 0x543   : > { %5863 = vst.msk [vmem:[#allocation3 + $0xa8] sm:$0xff] %vm5618_vm8, %v5831_v51  ;;  %v5542_v39 = vadd.f32 %v11202_v57, %v14289_v60  ;;  %v5360_v55 = vpop.f32.mrb[49].mxu0  ;;  %v5924_v31 = vld [vmem:[#allocation3 + $0x89] sm:$0xff]  ;;  %v5925_v15 = vld [vmem:[#allocation3 + $0x91] sm:$0xff] }
 0x544   : > { %5862 = vst.msk [vmem:[#allocation3 + $0xa0] sm:$0xff] %vm5618_vm8, %v5830_v33  ;;  %v5540_v1 = vadd.f32 %v14289_v60, %v5360_v55  ;;  %v11203_v7 = vpop.f32.mrb[50].mxu0  ;;  %11270 = vmatmul.mubr.msk.f32.gmra.mrb[42].mxu1 %vm5618_vm8, %v5924_v31 }
 0x545   : > { %v5605_v13 = vmax.f32 %v5542_v39, 0.0  ;;  %v5543_v14 = vadd.f32 %v11203_v7, %v14289_v60  ;;  %v5363_v26 = vpop.f32.mrb[51].mxu0  ;;  %11272 = vmatprep.mubr.msk.f32.mxu1 %vm12748_vm9, %v12747_v43 }
 0x546   : > { %v5603_v18 = vmax.f32 %v5540_v1, 0.0  ;;  %v5541_v20 = vadd.f32 %v14289_v60, %v5363_v26 }
 0x547   : > { %5669 = vst.msk [vmem:[#allocation2 + $0x190] sm:$0xff] %vm5618_vm8, %v5605_v13  ;;  %v5606_v46 = vmax.f32 %v5543_v14, 0.0 }
 0x548   : > { %v5729_v47 = vld [vmem:[#allocation2 + $0x170] ss:$2 sm:$0xff]  ;;  %v5793_v16 = vld [vmem:[#allocation2 + $0x171] ss:$2 sm:$0xff]  ;;  %5667 = vst.msk [vmem:[#allocation2 + $0x180] sm:$0xff] %vm5618_vm8, %v5603_v18  ;;  %v5604_v8 = vmax.f32 %v5541_v20, 0.0  ;;  %11273 = vmatmul.mubr.msk.f32.gmra.mrb[44].mxu1 %vm5618_vm8, %v5925_v15 }
 0x549   : > { %v5833_v34 = vmax.f32 %v5729_v47, %v5793_v16  ;;  %v5727_v22 = vld [vmem:[#allocation2 + $0x160] ss:$2 sm:$0xff]  ;;  %v5791_v4 = vld [vmem:[#allocation2 + $0x161] ss:$2 sm:$0xff]  ;;  %5670 = vst.msk [vmem:[#allocation2 + $0x198] sm:$0xff] %vm5618_vm8, %v5606_v46  ;;  %11275 = vmatprep.mubr.msk.f32.mxu1 %vm12748_vm9, %v12747_v43 }
 0x54a   : > { %v5832_v50 = vmax.f32 %v5727_v22, %v5791_v4  ;;  %5668 = vst.msk [vmem:[#allocation2 + $0x188] sm:$0xff] %vm5618_vm8, %v5604_v8  ;;  %v11206_v49 = vpop.f32.mrb[52].mxu0 }
 0x54b   : > { %5865 = vst.msk [vmem:[#allocation3 + $0xb8] sm:$0xff] %vm5618_vm8, %v5833_v34  ;;  %v5546_v48 = vadd.f32 %v11206_v49, %v14289_v60  ;;  %v5376_v6 = vpop.f32.mrb[53].mxu0  ;;  %v5926_v44 = vld [vmem:[#allocation3 + $0x99] sm:$0xff]  ;;  %v5927_v62 = vld [vmem:[#allocation3 + $0xa1] sm:$0xff] }
 0x54c   : > { %5864 = vst.msk [vmem:[#allocation3 + $0xb0] sm:$0xff] %vm5618_vm8, %v5832_v50  ;;  %v5544_v32 = vadd.f32 %v14289_v60, %v5376_v6  ;;  %v11207_v42 = vpop.f32.mrb[54].mxu0  ;;  %11276 = vmatmul.mubr.msk.f32.gmra.mrb[46].mxu1 %vm5618_vm8, %v5926_v44 }
 0x54d   : > { %v5609_v35 = vmax.f32 %v5546_v48, 0.0  ;;  %v5547_v41 = vadd.f32 %v11207_v42, %v14289_v60  ;;  %v5379_v9 = vpop.f32.mrb[55].mxu0  ;;  %11278 = vmatprep.mubr.msk.f32.mxu1 %vm12748_vm9, %v12747_v43 }
 0x54e   : > { %v5607_v24 = vmax.f32 %v5544_v32, 0.0  ;;  %v5545_v23 = vadd.f32 %v14289_v60, %v5379_v9 }
 0x54f   : > { %5673 = vst.msk [vmem:[#allocation2 + $0x1b0] sm:$0xff] %vm5618_vm8, %v5609_v35  ;;  %v5610_v28 = vmax.f32 %v5547_v41, 0.0 }
 0x550   : > { %v5733_v36 = vld [vmem:[#allocation2 + $0x190] ss:$2 sm:$0xff]  ;;  %v5797_v52 = vld [vmem:[#allocation2 + $0x191] ss:$2 sm:$0xff]  ;;  %5671 = vst.msk [vmem:[#allocation2 + $0x1a0] sm:$0xff] %vm5618_vm8, %v5607_v24  ;;  %v5608_v54 = vmax.f32 %v5545_v23, 0.0  ;;  %11279 = vmatmul.mubr.msk.f32.gmra.mrb[48].mxu1 %vm5618_vm8, %v5927_v62 }
 0x551   : > { %v5835_v19 = vmax.f32 %v5733_v36, %v5797_v52  ;;  %v5731_v56 = vld [vmem:[#allocation2 + $0x180] ss:$2 sm:$0xff]  ;;  %v5795_v27 = vld [vmem:[#allocation2 + $0x181] ss:$2 sm:$0xff]  ;;  %5674 = vst.msk [vmem:[#allocation2 + $0x1b8] sm:$0xff] %vm5618_vm8, %v5610_v28  ;;  %11281 = vmatprep.mubr.msk.f32.mxu1 %vm12748_vm9, %v12747_v43 }
 0x552   : > { %v5834_v61 = vmax.f32 %v5731_v56, %v5795_v27  ;;  %5672 = vst.msk [vmem:[#allocation2 + $0x1a8] sm:$0xff] %vm5618_vm8, %v5608_v54  ;;  %v11210_v12 = vpop.f32.mrb[56].mxu0  ;;  %v12668_v27 = vld [vmem:[%s16180_s3 + $0x10] sm:$0xff]  }
 0x553   : > { %5867 = vst.msk [vmem:[#allocation3 + $0xc8] sm:$0xff] %vm5618_vm8, %v5835_v19  ;;  %v12077_v5 = vadd.f32 %v11210_v12, %v16504_v58  ;;  %v5392_v30 = vpop.f32.mrb[57].mxu0  ;;  %v5928_v0 = vld [vmem:[#allocation3 + $0xa9] sm:$0xff]  ;;  %v5929_v53 = vld [vmem:[#allocation3 + $0xb1] sm:$0xff] }
 0x554   : > { %5866 = vst.msk [vmem:[#allocation3 + $0xc0] sm:$0xff] %vm5618_vm8, %v5834_v61  ;;  %v12078_v59 = vadd.f32 %v5392_v30, %v16505_v29  ;;  %v11211_v2 = vpop.f32.mrb[58].mxu0  ;;  %11282 = vmatmul.mubr.msk.f32.gmra.mrb[50].mxu1 %vm5618_vm8, %v5928_v0  ;;  %v5874_v61 = vld [vmem:[#allocation3] sm:$0xff]  ;;  %v5875_v12 = vld [vmem:[#allocation3 + $0x8] sm:$0xff]  ;;  %v5876_v58 = vld [vmem:[#allocation3 + $0x10] sm:$0xff] }
 0x555   : > { %v5550_v40 = vadd.f32 %v12077_v5, %v14289_v60  ;;  %v12079_v11 = vadd.f32 %v11211_v2, %v16506_v10  ;;  %v5395_v3 = vpop.f32.mrb[59].mxu0  ;;  %11284 = vmatprep.mubr.msk.f32.mxu1 %vm12748_vm9, %v12747_v43  ;;  %v5877_v5 = vld [vmem:[#allocation3 + $0x18] sm:$0xff]  ;;  %v5878_v30 = vld [vmem:[#allocation3 + $0x20] sm:$0xff]  ;;  %v5879_v0 = vld [vmem:[#allocation3 + $0x28] sm:$0xff] }
 0x556   : > { %v5548_v38 = vadd.f32 %v12078_v59, %v14289_v60  ;;  %v12080_v21 = vadd.f32 %v5395_v3, %v16507_v17  ;;  %v5880_v29 = vld [vmem:[#allocation3 + $0x30] sm:$0xff]  ;;  %v5881_v59 = vld [vmem:[#allocation3 + $0x38] sm:$0xff]  ;;  %v5882_v2 = vld [vmem:[#allocation3 + $0x40] sm:$0xff] }
 0x557   : > { %v5613_v51 = vmax.f32 %v5550_v40, 0.0  ;;  %v5551_v37 = vadd.f32 %v12079_v11, %v14289_v60  ;;  %v5883_v40 = vld [vmem:[#allocation3 + $0x48] sm:$0xff]  ;;  %v5884_v10 = vld [vmem:[#allocation3 + $0x50] sm:$0xff]  ;;  %v5885_v11 = vld [vmem:[#allocation3 + $0x58] sm:$0xff] }
 0x558   : > { %v5737_v33 = vld [vmem:[#allocation2 + $0x1b0] ss:$2 sm:$0xff]  ;;  %v5801_v57 = vld [vmem:[#allocation2 + $0x1b1] ss:$2 sm:$0xff]  ;;  %v5611_v39 = vmax.f32 %v5548_v38, 0.0  ;;  %v5549_v55 = vadd.f32 %v12080_v21, %v14289_v60  ;;  %11285 = vmatmul.mubr.msk.f32.gmra.mrb[52].mxu1 %vm5618_vm8, %v5929_v53  ;;  %v5886_v3 = vld [vmem:[#allocation3 + $0x60] sm:$0xff] }
 0x559   : > { %v5837_v31 = vmax.f32 %v5737_v33, %v5801_v57  ;;  %v5735_v1 = vld [vmem:[#allocation2 + $0x1a0] ss:$2 sm:$0xff]  ;;  %v5799_v7 = vld [vmem:[#allocation2 + $0x1a1] ss:$2 sm:$0xff]  ;;  %5677 = vst.msk [vmem:[#allocation2 + $0x1d0] sm:$0xff] %vm5618_vm8, %v5613_v51  ;;  %v5614_v13 = vmax.f32 %v5551_v37, 0.0  ;;  %11287 = vmatprep.mubr.msk.f32.mxu1 %vm12748_vm9, %v12747_v43 }
 0x55a   : > { %v5836_v14 = vmax.f32 %v5735_v1, %v5799_v7  ;;  %5675 = vst.msk [vmem:[#allocation2 + $0x1c0] sm:$0xff] %vm5618_vm8, %v5611_v39  ;;  %v5612_v26 = vmax.f32 %v5549_v55, 0.0  ;;  %v11214_v18 = vpop.f32.mrb[88].mxu0  ;;  %v5887_v38 = vld [vmem:[#allocation3 + $0x68] sm:$0xff]  ;;  %v5888_v17 = vld [vmem:[#allocation3 + $0x70] sm:$0xff]  ;;  %v5889_v21 = vld [vmem:[#allocation3 + $0x78] sm:$0xff] }
 0x55b   : > { %5869 = vst.msk [vmem:[#allocation3 + $0xd8] sm:$0xff] %vm5618_vm8, %v5837_v31  ;;  %5678 = vst.msk [vmem:[#allocation2 + $0x1d8] sm:$0xff] %vm5618_vm8, %v5614_v13  ;;  %v5484_v20 = vadd.f32 %v11214_v18, %v14280_v45  ;;  %v5408_v46 = vpop.f32.mrb[89].mxu0  ;;  %v5930_v15 = vld [vmem:[#allocation3 + $0xb9] sm:$0xff]  ;;  %v5931_v50 = vld [vmem:[#allocation3 + $0xc1] sm:$0xff] }
 0x55c   : > { %5868 = vst.msk [vmem:[#allocation3 + $0xd0] sm:$0xff] %vm5618_vm8, %v5836_v14  ;;  %5676 = vst.msk [vmem:[#allocation2 + $0x1c8] sm:$0xff] %vm5618_vm8, %v5612_v26  ;;  %v5482_v47 = vadd.f32 %v5408_v46, %v14282_v63  ;;  %v11215_v16 = vpop.f32.mrb[90].mxu0  ;;  %11288 = vmatmul.mubr.msk.f32.gmra.mrb[54].mxu1 %vm5618_vm8, %v5930_v15  ;;  %v5890_v51 = vld [vmem:[#allocation3 + $0x80] sm:$0xff]  ;;  %v5891_v37 = vld [vmem:[#allocation3 + $0x88] sm:$0xff] }
 0x55d   : > { %v5554_v8 = vadd.f32 %v14289_v60, %v5484_v20  ;;  %v5411_v34 = vpop.f32.mrb[91].mxu0  ;;  %11290 = vmatprep.mubr.msk.f32.mxu1 %vm12748_vm9, %v12747_v43  ;;  %v5892_v53 = vld [vmem:[#allocation3 + $0x90] sm:$0xff]  ;;  %v5893_v33 = vld [vmem:[#allocation3 + $0x98] sm:$0xff]  ;;  %v5894_v57 = vld [vmem:[#allocation3 + $0xa0] sm:$0xff] }
 0x55e   : > { %v5552_v22 = vadd.f32 %v14289_v60, %v5482_v47  ;;  %v5483_v45 = vadd.f32 %v5411_v34, %v14284_v25  ;;  %v5895_v31 = vld [vmem:[#allocation3 + $0xa8] sm:$0xff]  ;;  %v5896_v1 = vld [vmem:[#allocation3 + $0xb0] sm:$0xff]  ;;  %v5897_v14 = vld [vmem:[#allocation3 + $0xb8] sm:$0xff] }
 0x55f   : > { %v5617_v4 = vmax.f32 %v5554_v8, 0.0  ;;  %v5898_v20 = vld [vmem:[#allocation3 + $0xc0] sm:$0xff]  ;;  %v5899_v47 = vld [vmem:[#allocation3 + $0xc8] sm:$0xff] }
 0x560   : > { %v5615_v49 = vmax.f32 %v5552_v22, 0.0  ;;  %v5553_v48 = vadd.f32 %v14289_v60, %v5483_v45  ;;  %11291 = vmatmul.mubr.msk.f32.gmra.mrb[56].mxu1 %vm5618_vm8, %v5931_v50 }
 0x561   : > { %5681 = vst.msk [vmem:[#allocation2 + $0x1f0] sm:$0xff] %vm5618_vm8, %v5617_v4  ;;  %11293 = vmatprep.mubr.msk.f32.mxu1 %vm12748_vm9, %v12747_v43 }
 0x562   : > { %v5741_v63 = vld [vmem:[#allocation2 + $0x1d0] ss:$2 sm:$0xff]  ;;  %v5805_v6 = vld [vmem:[#allocation2 + $0x1d1] ss:$2 sm:$0xff]  ;;  %5679 = vst.msk [vmem:[#allocation2 + $0x1e0] sm:$0xff] %vm5618_vm8, %v5615_v49  ;;  %v5616_v44 = vmax.f32 %v5553_v48, 0.0 }
 0x563   : > { %v5739_v32 = vld [vmem:[#allocation2 + $0x1c0] ss:$2 sm:$0xff]  ;;  %v5803_v42 = vld [vmem:[#allocation2 + $0x1c1] ss:$2 sm:$0xff]  ;;  %v5839_v35 = vmax.f32 %v5741_v63, %v5805_v6  ;;  %v5933_v41 = vld [vmem:[#allocation3 + $0xd1] sm:$0xff] }
 0x564   : > { %v5932_v25 = vld [vmem:[#allocation3 + $0xc9] sm:$0xff]  ;;  %5680 = vst.msk [vmem:[#allocation2 + $0x1e8] sm:$0xff] %vm5618_vm8, %v5616_v44  ;;  %v5838_v60 = vmax.f32 %v5739_v32, %v5803_v42  ;;  %v5901_v4 = vld [vmem:[#allocation3 + $0xd8] sm:$0xff] }
 0x565   : > { %11294 = vmatmul.mubr.msk.f32.gmra.mrb[58].mxu1 %vm5618_vm8, %v5932_v25  ;;  %5871 = vst.msk [vmem:[#allocation3 + $0xe8] sm:$0xff] %vm5618_vm8, %v5839_v35  ;;  %v5900_v34 = vld [vmem:[#allocation3 + $0xd0] sm:$0xff] }
 0x566   : > { %11296 = vmatprep.mubr.msk.f32.mxu1 %vm12748_vm9, %v12747_v43  ;;  %5870 = vst.msk [vmem:[#allocation3 + $0xe0] sm:$0xff] %vm5618_vm8, %v5838_v60  ;;  %v12669_v60 = vld [vmem:[%s16180_s3 + $0x18] sm:$0xff]  }
 0x568   : > { %v5745_v9 = vld [vmem:[#allocation2 + $0x1f0] ss:$2 sm:$0xff]  ;;  %v5809_v24 = vld [vmem:[#allocation2 + $0x1f1] ss:$2 sm:$0xff] }
 0x569   : > { %11297 = vmatmul.mubr.msk.f32.gmra.mrb[60].mxu1 %vm5618_vm8, %v5933_v41  ;;  %v5841_v23 = vmax.f32 %v5745_v9, %v5809_v24  ;;  %v6515_v9 = vld [vmem:[#allocation3 + $0x2] sm:$0xff] }
 0x56a   : > { %11299 = vmatprep.mubr.msk.f32.mxu1 %vm12748_vm9, %v12747_v43 }
 0x56b   : > { %v5743_v28 = vld [vmem:[#allocation2 + $0x1e0] ss:$2 sm:$0xff]  ;;  %v5807_v62 = vld [vmem:[#allocation2 + $0x1e1] ss:$2 sm:$0xff]  ;;  %5873 = vst.msk [vmem:[#allocation3 + $0xf8] sm:$0xff] %vm5618_vm8, %v5841_v23 }
 0x56c   : > { %v5840_v36 = vmax.f32 %v5743_v28, %v5807_v62  ;;  %v5903_v44 = vld [vmem:[#allocation3 + $0xe8] sm:$0xff] }
 0x56d   : > { %v5934_v52 = vld [vmem:[#allocation3 + $0xd9] sm:$0xff]  ;;  %v5935_v54 = vld [vmem:[#allocation3 + $0xe1] sm:$0xff]  ;;  %v6516_v28 = vld [vmem:[#allocation3 + $0xa] sm:$0xff] }
 0x56e   : > { %11300 = vmatmul.mubr.msk.f32.gmra.mrb[62].mxu1 %vm5618_vm8, %v5934_v52  ;;  %5872 = vst.msk [vmem:[#allocation3 + $0xf0] sm:$0xff] %vm5618_vm8, %v5840_v36  ;;  %v5902_v48 = vld [vmem:[#allocation3 + $0xe0] sm:$0xff]  ;;  %v6517_v52 = vld [vmem:[#allocation3 + $0x12] sm:$0xff] }
 0x56f   : > { %11302 = vmatprep.mubr.msk.f32.mxu1 %vm12748_vm9, %v12747_v43 }
 0x572   : > { %11303 = vmatmul.mubr.msk.f32.gmra.mrb[64].mxu1 %vm5618_vm8, %v5935_v54 }
 0x573   : > { %11305 = vmatprep.mubr.msk.f32.mxu1 %vm12748_vm9, %v12747_v43 }
 0x575   : > { %v5936_v19 = vld [vmem:[#allocation3 + $0xe9] sm:$0xff]  ;;  %v5937_v56 = vld [vmem:[#allocation3 + $0xf1] sm:$0xff] }
 0x576   : > { %11306 = vmatmul.mubr.msk.f32.gmra.mrb[66].mxu1 %vm5618_vm8, %v5936_v19  ;;  %v5904_v25 = vld [vmem:[#allocation3 + $0xf0] sm:$0xff] }
 0x577   : > { %11308 = vmatprep.mubr.msk.f32.mxu1 %vm12748_vm9, %v12747_v43 }
 0x57a   : > { %11309 = vmatmul.mubr.msk.f32.gmra.mrb[68].mxu1 %vm5618_vm8, %v5937_v56  ;;  %v6518_v56 = vld [vmem:[#allocation3 + $0x1a] sm:$0xff] }
 0x57b   : > { %11313 = vmatprep.mubr.msk.f32.mxu1 %vm12748_vm9, %v12747_v43 }
 0x57e   : > { %11314 = vmatmul.mubr.msk.f32.vlgmr.msra.gmra.mrb[70].mxu1 %vm5618_vm8, %v5874_v61 }
 0x57f   : > { %11407 = vmatpush3.bf16.msra.mxu1 %v12668_v27  ;;  %11316 = vmatprep.mubr.msk.f32.mxu1 %vm12748_vm9, %v12747_v43 }
 0x580   : > { %11501 = vmatprep.subr.bf16.mxu1 %v12747_v43 }
 0x582   : > { %11317 = vmatmul.mubr.msk.f32.gmra.mrb[72].mxu1 %vm5618_vm8, %v5875_v12  ;;  %v6519_v12 = vld [vmem:[#allocation3 + $0x22] sm:$0xff] }
 0x583   : > { %11319 = vmatprep.mubr.msk.f32.mxu1 %vm12748_vm9, %v12747_v43 }
 0x586   : > { %11320 = vmatmul.mubr.msk.f32.gmra.mrb[74].mxu1 %vm5618_vm8, %v5876_v58 }
 0x587   : > { %11322 = vmatprep.mubr.msk.f32.mxu1 %vm12748_vm9, %v12747_v43 }
 0x58a   : > { %11323 = vmatmul.mubr.msk.f32.gmra.mrb[76].mxu1 %vm5618_vm8, %v5877_v5 }
 0x58b   : > { %11325 = vmatprep.mubr.msk.f32.mxu1 %vm12748_vm9, %v12747_v43 }
 0x58e   : > { %11326 = vmatmul.mubr.msk.f32.gmra.mrb[78].mxu1 %vm5618_vm8, %v5878_v30  ;;  %v6520_v30 = vld [vmem:[#allocation3 + $0x2a] sm:$0xff] }
 0x58f   : > { %11328 = vmatprep.mubr.msk.f32.mxu1 %vm12748_vm9, %v12747_v43 }
 0x592   : > { %11329 = vmatmul.mubr.msk.f32.gmra.mrb[80].mxu1 %vm5618_vm8, %v5879_v0 }
 0x593   : > { %11331 = vmatprep.mubr.msk.f32.mxu1 %vm12748_vm9, %v12747_v43 }
 0x596   : > { %11332 = vmatmul.mubr.msk.f32.gmra.mrb[82].mxu1 %vm5618_vm8, %v5880_v29 }
 0x597   : > { %11334 = vmatprep.mubr.msk.f32.mxu1 %vm12748_vm9, %v12747_v43 }
 0x59a   : > { %11335 = vmatmul.mubr.msk.f32.gmra.mrb[84].mxu1 %vm5618_vm8, %v5881_v59  ;;  %v6521_v59 = vld [vmem:[#allocation3 + $0x32] sm:$0xff] }
 0x59b   : > { %11337 = vmatprep.mubr.msk.f32.mxu1 %vm12748_vm9, %v12747_v43 }
 0x59e   : > { %11338 = vmatmul.mubr.msk.f32.gmra.mrb[86].mxu1 %vm5618_vm8, %v5882_v2 }
 0x59f   : > { %11340 = vmatprep.mubr.msk.f32.mxu1 %vm12748_vm9, %v12747_v43 }
 0x5a2   : > { %11341 = vmatmul.mubr.msk.f32.gmra.mrb[88].mxu1 %vm5618_vm8, %v5883_v40 }
 0x5a3   : > { %11343 = vmatprep.mubr.msk.f32.mxu1 %vm12748_vm9, %v12747_v43 }
 0x5a6   : > { %11344 = vmatmul.mubr.msk.f32.gmra.mrb[90].mxu1 %vm5618_vm8, %v5884_v10  ;;  %v6522_v10 = vld [vmem:[#allocation3 + $0x3a] sm:$0xff] }
 0x5a7   : > { %11346 = vmatprep.mubr.msk.f32.mxu1 %vm12748_vm9, %v12747_v43 }
 0x5aa   : > { %11347 = vmatmul.mubr.msk.f32.gmra.mrb[92].mxu1 %vm5618_vm8, %v5885_v11 }
 0x5ab   : > { %11349 = vmatprep.mubr.msk.f32.mxu1 %vm12748_vm9, %v12747_v43 }
 0x5ae   : > { %11350 = vmatmul.mubr.msk.f32.gmra.mrb[94].mxu1 %vm5618_vm8, %v5886_v3 }
 0x5af   : > { %11352 = vmatprep.mubr.msk.f32.mxu1 %vm12748_vm9, %v12747_v43 }
 0x5b2   : > { %11353 = vmatmul.mubr.msk.f32.gmra.mrb[96].mxu1 %vm5618_vm8, %v5887_v38  ;;  %v6523_v38 = vld [vmem:[#allocation3 + $0x42] sm:$0xff] }
 0x5b3   : > { %11355 = vmatprep.mubr.msk.f32.mxu1 %vm12748_vm9, %v12747_v43 }
 0x5b6   : > { %11356 = vmatmul.mubr.msk.f32.gmra.mrb[98].mxu1 %vm5618_vm8, %v5888_v17 }
 0x5b7   : > { %11358 = vmatprep.mubr.msk.f32.mxu1 %vm12748_vm9, %v12747_v43 }
 0x5ba   : > { %11359 = vmatmul.mubr.msk.f32.gmra.mrb[100].mxu1 %vm5618_vm8, %v5889_v21 }
 0x5bb   : > { %11361 = vmatprep.mubr.msk.f32.mxu1 %vm12748_vm9, %v12747_v43 }
 0x5be   : > { %11362 = vmatmul.mubr.msk.f32.gmra.mrb[102].mxu1 %vm5618_vm8, %v5890_v51  ;;  %v6524_v51 = vld [vmem:[#allocation3 + $0x4a] sm:$0xff] }
 0x5bf   : > { %11364 = vmatprep.mubr.msk.f32.mxu1 %vm12748_vm9, %v12747_v43 }
 0x5c2   : > { %11365 = vmatmul.mubr.msk.f32.gmra.mrb[104].mxu1 %vm5618_vm8, %v5891_v37 }
 0x5c3   : > { %11367 = vmatprep.mubr.msk.f32.mxu1 %vm12748_vm9, %v12747_v43 }
 0x5c6   : > { %11368 = vmatmul.mubr.msk.f32.gmra.mrb[106].mxu1 %vm5618_vm8, %v5892_v53 }
 0x5c7   : > { %11370 = vmatprep.mubr.msk.f32.mxu1 %vm12748_vm9, %v12747_v43 }
 0x5ca   : > { %11371 = vmatmul.mubr.msk.f32.gmra.mrb[108].mxu1 %vm5618_vm8, %v5893_v33  ;;  %v6525_v33 = vld [vmem:[#allocation3 + $0x52] sm:$0xff] }
 0x5cb   : > { %11373 = vmatprep.mubr.msk.f32.mxu1 %vm12748_vm9, %v12747_v43 }
 0x5ce   : > { %11374 = vmatmul.mubr.msk.f32.gmra.mrb[110].mxu1 %vm5618_vm8, %v5894_v57 }
 0x5cf   : > { %v14618_v39 = vpop.f32.mrb[8].mxu1  ;;  %11376 = vmatprep.mubr.msk.f32.mxu1 %vm12748_vm9, %v12747_v43 }
 0x5d0   : > { %v11220_v55 = vpop.f32.mrb[9].mxu1 }
 0x5d2   : > { %11377 = vmatmul.mubr.msk.f32.gmra.mrb[112].mxu1 %vm5618_vm8, %v5895_v31  ;;  %v6526_v31 = vld [vmem:[#allocation3 + $0x5a] sm:$0xff] }
 0x5d3   : > { %11379 = vmatprep.mubr.msk.f32.mxu1 %vm12748_vm9, %v12747_v43 }
 0x5d6   : > { %11380 = vmatmul.mubr.msk.f32.gmra.mrb[114].mxu1 %vm5618_vm8, %v5896_v1 }
 0x5d7   : > { %v14626_v7 = vpop.f32.mrb[10].mxu1  ;;  %11382 = vmatprep.mubr.msk.f32.mxu1 %vm12748_vm9, %v12747_v43 }
 0x5d8   : > { %v11223_v13 = vpop.f32.mrb[11].mxu1 }
 0x5da   : > { %11383 = vmatmul.mubr.msk.f32.gmra.mrb[116].mxu1 %vm5618_vm8, %v5897_v14  ;;  %v6527_v14 = vld [vmem:[#allocation3 + $0x62] sm:$0xff] }
 0x5db   : > { %v14631_v26 = vpop.f32.mrb[12].mxu1  ;;  %11385 = vmatprep.mubr.msk.f32.mxu1 %vm12748_vm9, %v12747_v43 }
 0x5dc   : > { %v11226_v18 = vpop.f32.mrb[13].mxu1 }
 0x5de   : > { %11386 = vmatmul.mubr.msk.f32.gmra.mrb[118].mxu1 %vm5618_vm8, %v5898_v20 }
 0x5df   : > { %v14636_v46 = vpop.f32.mrb[14].mxu1  ;;  %11388 = vmatprep.mubr.msk.f32.mxu1 %vm12748_vm9, %v12747_v43 }
 0x5e0   : > { %v11229_v15 = vpop.f32.mrb[15].mxu1 }
 0x5e1   : > { %v6528_v15 = vld [vmem:[#allocation3 + $0x6a] sm:$0xff] }
 0x5e2   : > { %11389 = vmatmul.mubr.msk.f32.gmra.mrb[120].mxu1 %vm5618_vm8, %v5899_v47 }
 0x5e3   : > { %v14641_v16 = vpop.f32.mrb[16].mxu1  ;;  %11391 = vmatprep.mubr.msk.f32.mxu1 %vm12748_vm9, %v12747_v43 }
 0x5e4   : > { %v11232_v8 = vpop.f32.mrb[17].mxu1 }
 0x5e6   : > { %11392 = vmatmul.mubr.msk.f32.gmra.mrb[122].mxu1 %vm5618_vm8, %v5900_v34  ;;  %v6529_v34 = vld [vmem:[#allocation3 + $0x72] sm:$0xff] }
 0x5e7   : > { %v14646_v22 = vpop.f32.mrb[18].mxu1  ;;  %11394 = vmatprep.mubr.msk.f32.mxu1 %vm12748_vm9, %v12747_v43 }
 0x5e8   : > { %v11235_v45 = vpop.f32.mrb[19].mxu1 }
 0x5ea   : > { %11395 = vmatmul.mubr.msk.f32.gmra.mrb[124].mxu1 %vm5618_vm8, %v5901_v4 }
 0x5eb   : > { %v14651_v50 = vpop.f32.mrb[20].mxu1  ;;  %11397 = vmatprep.mubr.msk.f32.mxu1 %vm12748_vm9, %v12747_v43 }
 0x5ec   : > { %v11238_v49 = vpop.f32.mrb[21].mxu1 }
 0x5ed   : > { %v6530_v49 = vld [vmem:[#allocation3 + $0x7a] sm:$0xff] }
 0x5ee   : > { %11398 = vmatmul.mubr.msk.f32.gmra.mrb[126].mxu1 %vm5618_vm8, %v5902_v48 }
 0x5ef   : > { %v14656_v63 = vpop.f32.mrb[22].mxu1  ;;  %11400 = vmatprep.mubr.msk.f32.mxu1 %vm12748_vm9, %v12747_v43 }
 0x5f0   : > { %v11241_v6 = vpop.f32.mrb[23].mxu1 }
 0x5f2   : > { %11401 = vmatmul.mubr.msk.f32.gmra.mrb[128].mxu1 %vm5618_vm8, %v5903_v44  ;;  %v6531_v44 = vld [vmem:[#allocation3 + $0x82] sm:$0xff] }
 0x5f3   : > { %v14661_v32 = vpop.f32.mrb[24].mxu1  ;;  %11403 = vmatprep.mubr.msk.f32.mxu1 %vm12748_vm9, %v12747_v43 }
 0x5f4   : > { %v11244_v42 = vpop.f32.mrb[25].mxu1 }
 0x5f6   : > { %11404 = vmatmul.mubr.msk.f32.gmra.mrb[130].mxu1 %vm5618_vm8, %v5904_v25 }
 0x5f7   : > { %v14666_v35 = vpop.f32.mrb[26].mxu1  ;;  %11408 = vmatprep.mubr.msk.f32.mxu1 %vm12748_vm9, %v12747_v43 }
 0x5f8   : > { %v11247_v41 = vpop.f32.mrb[27].mxu1 }
 0x5fa   : > { %11409 = vmatmul.mubr.msk.f32.vlgmr.msra.gmra.mrb[132].mxu1 %vm5618_vm8, %v6515_v9  ;;  %v6533_v9 = vld [vmem:[#allocation3 + $0x92] sm:$0xff] }
 0x5fb   : > { %11502 = vmatpush3.bf16.msra.mxu1 %v12669_v60  ;;  %v14674_v24 = vpop.f32.mrb[28].mxu1  ;;  %11411 = vmatprep.mubr.msk.f32.mxu1 %vm12748_vm9, %v12747_v43  ;;  %v6532_v60 = vld [vmem:[#allocation3 + $0x8a] sm:$0xff] }
 0x5fc   : > { %v11250_v23 = vpop.f32.mrb[29].mxu1  ;;  %11596 = vmatprep.subr.bf16.mxu1 %v12747_v43 }
 0x5fe   : > { %11412 = vmatmul.mubr.msk.f32.gmra.mrb[134].mxu1 %vm5618_vm8, %v6516_v28 }
 0x5ff   : > { %v14680_v62 = vpop.f32.mrb[30].mxu1  ;;  %11414 = vmatprep.mubr.msk.f32.mxu1 %vm12748_vm9, %v12747_v43 }
 0x600   : > { %v11253_v36 = vpop.f32.mrb[31].mxu1 }
 0x601   : > { %v6534_v36 = vld [vmem:[#allocation3 + $0x9a] sm:$0xff] }
 0x602   : > { %11415 = vmatmul.mubr.msk.f32.gmra.mrb[136].mxu1 %vm5618_vm8, %v6517_v52 }
 0x603   : > { %v14685_v54 = vpop.f32.mrb[32].mxu1  ;;  %11417 = vmatprep.mubr.msk.f32.mxu1 %vm12748_vm9, %v12747_v43 }
 0x604   : > { %v11256_v19 = vpop.f32.mrb[33].mxu1 }
 0x606   : > { %11418 = vmatmul.mubr.msk.f32.gmra.mrb[138].mxu1 %vm5618_vm8, %v6518_v56  ;;  %v6535_v56 = vld [vmem:[#allocation3 + $0xa2] sm:$0xff] }
 0x607   : > { %v14690_v27 = vpop.f32.mrb[34].mxu1  ;;  %11420 = vmatprep.mubr.msk.f32.mxu1 %vm12748_vm9, %v12747_v43 }
 0x608   : > { %v11259_v61 = vpop.f32.mrb[35].mxu1 }
 0x60a   : > { %11421 = vmatmul.mubr.msk.f32.gmra.mrb[140].mxu1 %vm5618_vm8, %v6519_v12 }
 0x60b   : > { %v14695_v58 = vpop.f32.mrb[36].mxu1  ;;  %11423 = vmatprep.mubr.msk.f32.mxu1 %vm12748_vm9, %v12747_v43 }
 0x60c   : > { %v11262_v5 = vpop.f32.mrb[37].mxu1 }
 0x60d   : > { %v6536_v5 = vld [vmem:[#allocation3 + $0xaa] sm:$0xff] }
 0x60e   : > { %11424 = vmatmul.mubr.msk.f32.gmra.mrb[142].mxu1 %vm5618_vm8, %v6520_v30 }
 0x60f   : > { %v14700_v0 = vpop.f32.mrb[38].mxu1  ;;  %11426 = vmatprep.mubr.msk.f32.mxu1 %vm12748_vm9, %v12747_v43 }
 0x610   : > { %v11265_v29 = vpop.f32.mrb[39].mxu1 }
 0x612   : > { %11427 = vmatmul.mubr.msk.f32.gmra.mrb[144].mxu1 %vm5618_vm8, %v6521_v59  ;;  %v6537_v59 = vld [vmem:[#allocation3 + $0xb2] sm:$0xff] }
 0x613   : > { %v14705_v2 = vpop.f32.mrb[40].mxu1  ;;  %11429 = vmatprep.mubr.msk.f32.mxu1 %vm12748_vm9, %v12747_v43 }
 0x614   : > { %v11268_v40 = vpop.f32.mrb[41].mxu1 }
 0x616   : > { %11430 = vmatmul.mubr.msk.f32.gmra.mrb[146].mxu1 %vm5618_vm8, %v6522_v10 }
 0x617   : > { %v14710_v11 = vpop.f32.mrb[42].mxu1  ;;  %11432 = vmatprep.mubr.msk.f32.mxu1 %vm12748_vm9, %v12747_v43 }
 0x618   : > { %v11271_v3 = vpop.f32.mrb[43].mxu1 }
 0x61a   : > { %11433 = vmatmul.mubr.msk.f32.gmra.mrb[148].mxu1 %vm5618_vm8, %v6523_v38  ;;  %v6538_v38 = vld [vmem:[#allocation3 + $0xba] sm:$0xff] }
 0x61b   : > { %v14715_v17 = vpop.f32.mrb[44].mxu1  ;;  %11435 = vmatprep.mubr.msk.f32.mxu1 %vm12748_vm9, %v12747_v43 }
 0x61c   : > { %v11274_v21 = vpop.f32.mrb[45].mxu1 }
 0x61e   : > { %11436 = vmatmul.mubr.msk.f32.gmra.mrb[150].mxu1 %vm5618_vm8, %v6524_v51 }
 0x61f   : > { %v14720_v37 = vpop.f32.mrb[46].mxu1  ;;  %11438 = vmatprep.mubr.msk.f32.mxu1 %vm12748_vm9, %v12747_v43 }
 0x620   : > { %v11277_v53 = vpop.f32.mrb[47].mxu1 }
 0x622   : > { %11439 = vmatmul.mubr.msk.f32.gmra.mrb[152].mxu1 %vm5618_vm8, %v6525_v33 }
 0x623   : > { %v14725_v57 = vpop.f32.mrb[48].mxu1  ;;  %11441 = vmatprep.mubr.msk.f32.mxu1 %vm12748_vm9, %v12747_v43 }
 0x624   : > { %v11280_v55 = vpop.f32.mrb[49].mxu1 }
 0x626   : > { %11442 = vmatmul.mubr.msk.f32.gmra.mrb[154].mxu1 %vm5618_vm8, %v6526_v31 }
 0x627   : > { %v14730_v1 = vpop.f32.mrb[50].mxu1  ;;  %11444 = vmatprep.mubr.msk.f32.mxu1 %vm12748_vm9, %v12747_v43 }
 0x628   : > { %v11283_v13 = vpop.f32.mrb[51].mxu1 }
 0x62a   : > { %11445 = vmatmul.mubr.msk.f32.gmra.mrb[156].mxu1 %vm5618_vm8, %v6527_v14 }
 0x62b   : > { %v14735_v18 = vpop.f32.mrb[52].mxu1  ;;  %11447 = vmatprep.mubr.msk.f32.mxu1 %vm12748_vm9, %v12747_v43 }
 0x62c   : > { %v11286_v20 = vpop.f32.mrb[53].mxu1 }
 0x62e   : > { %11448 = vmatmul.mubr.msk.f32.gmra.mrb[158].mxu1 %vm5618_vm8, %v6528_v15 }
 0x62f   : > { %v14740_v47 = vpop.f32.mrb[54].mxu1  ;;  %11450 = vmatprep.mubr.msk.f32.mxu1 %vm12748_vm9, %v12747_v43 }
 0x630   : > { %v11289_v8 = vpop.f32.mrb[55].mxu1 }
 0x632   : > { %11451 = vmatmul.mubr.msk.f32.gmra.mrb[160].mxu1 %vm5618_vm8, %v6529_v34 }
 0x633   : > { %v14745_v45 = vpop.f32.mrb[56].mxu1  ;;  %11453 = vmatprep.mubr.msk.f32.mxu1 %vm12748_vm9, %v12747_v43 }
 0x634   : > { %v11292_v4 = vpop.f32.mrb[57].mxu1 }
 0x636   : > { %11454 = vmatmul.mubr.msk.f32.gmra.mrb[162].mxu1 %vm5618_vm8, %v6530_v49 }
 0x637   : > { %11456 = vmatprep.mubr.msk.f32.mxu1 %vm12748_vm9, %v12747_v43 }
 0x638   : > { %v14750_v48 = vpop.f32.mrb[58].mxu1 }
 0x639   : > { %v11295_v6 = vpop.f32.mrb[59].mxu1 }
 0x63a   : > { %11457 = vmatmul.mubr.msk.f32.gmra.mrb[164].mxu1 %vm5618_vm8, %v6531_v44 }
 0x63b   : > { %11459 = vmatprep.mubr.msk.f32.mxu1 %vm12748_vm9, %v12747_v43 }
 0x63c   : > { %v14755_v42 = vpop.f32.mrb[60].mxu1 }
 0x63d   : > { %v11298_v25 = vpop.f32.mrb[61].mxu1 }
 0x63e   : > { %11460 = vmatmul.mubr.msk.f32.gmra.mrb[166].mxu1 %vm5618_vm8, %v6532_v60 }
 0x63f   : > { %11462 = vmatprep.mubr.msk.f32.mxu1 %vm12748_vm9, %v12747_v43 }
 0x641   : > { %v14762_v41 = vpop.f32.mrb[62].mxu1 }
 0x642   : > { %v11301_v23 = vpop.f32.mrb[63].mxu1  ;;  %11463 = vmatmul.mubr.msk.f32.gmra.mrb[168].mxu1 %vm5618_vm8, %v6533_v9 }
 0x643   : > { %11465 = vmatprep.mubr.msk.f32.mxu1 %vm12748_vm9, %v12747_v43 }
 0x645   : > { %v14767_v28 = vpop.f32.mrb[64].mxu1 }
 0x646   : > { %v11304_v52 = vpop.f32.mrb[65].mxu1  ;;  %11466 = vmatmul.mubr.msk.f32.gmra.mrb[170].mxu1 %vm5618_vm8, %v6534_v36 }
 0x647   : > { %11468 = vmatprep.mubr.msk.f32.mxu1 %vm12748_vm9, %v12747_v43 }
 0x649   : > { %v14772_v19 = vpop.f32.mrb[66].mxu1 }
 0x64a   : > { %v11307_v61 = vpop.f32.mrb[67].mxu1  ;;  %11469 = vmatmul.mubr.msk.f32.gmra.mrb[172].mxu1 %vm5618_vm8, %v6535_v56 }
 0x64b   : > { %11471 = vmatprep.mubr.msk.f32.mxu1 %vm12748_vm9, %v12747_v43 }
 0x64d   : > { %v14777_v12 = vpop.f32.mrb[68].mxu1 }
 0x64e   : > { %v11310_v30 = vpop.f32.mrb[69].mxu1  ;;  %11472 = vmatmul.mubr.msk.f32.gmra.mrb[174].mxu1 %vm5618_vm8, %v6536_v5  ;;  %v6867_v5 = vld [vmem:[#allocation3 + $0x3] sm:$0xff] }
 0x64f   : > { %11474 = vmatprep.mubr.msk.f32.mxu1 %vm12748_vm9, %v12747_v43 }
 0x651   : > { %v6361_v29 = vpop.f32.mrb[70].mxu1 }
 0x652   : > { %v14783_v40 = vadd.f32 %v6361_v29, %v14618_v39  ;;  %v11315_v10 = vpop.f32.mrb[71].mxu1  ;;  %11475 = vmatmul.mubr.msk.f32.gmra.mrb[176].mxu1 %vm5618_vm8, %v6537_v59  ;;  %v6539_v39 = vld [vmem:[#allocation3 + $0xc2] sm:$0xff]  ;;  %v6868_v59 = vld [vmem:[#allocation3 + $0xb] sm:$0xff] }
 0x653   : > { %11477 = vmatprep.mubr.msk.f32.mxu1 %vm12748_vm9, %v12747_v43 }
 0x655   : > { %v6366_v3 = vpop.f32.mrb[72].mxu1 }
 0x656   : > { %v14789_v21 = vadd.f32 %v6366_v3, %v14626_v7  ;;  %v11318_v51 = vpop.f32.mrb[73].mxu1  ;;  %11478 = vmatmul.mubr.msk.f32.gmra.mrb[178].mxu1 %vm5618_vm8, %v6538_v38  ;;  %v6540_v7 = vld [vmem:[#allocation3 + $0xca] sm:$0xff]  ;;  %v6869_v38 = vld [vmem:[#allocation3 + $0x13] sm:$0xff] }
 0x657   : > { %11480 = vmatprep.mubr.msk.f32.mxu1 %vm12748_vm9, %v12747_v43 }
 0x659   : > { %v6371_v53 = vpop.f32.mrb[74].mxu1 }
 0x65a   : > { %v14795_v33 = vadd.f32 %v6371_v53, %v14631_v26  ;;  %v11321_v55 = vpop.f32.mrb[75].mxu1  ;;  %11481 = vmatmul.mubr.msk.f32.gmra.mrb[180].mxu1 %vm5618_vm8, %v6539_v39  ;;  %v6541_v26 = vld [vmem:[#allocation3 + $0xd2] sm:$0xff] }
 0x65b   : > { %11483 = vmatprep.mubr.msk.f32.mxu1 %vm12748_vm9, %v12747_v43 }
 0x65d   : > { %v6376_v31 = vpop.f32.mrb[76].mxu1 }
 0x65e   : > { %v14801_v13 = vadd.f32 %v6376_v31, %v14636_v46  ;;  %v11324_v14 = vpop.f32.mrb[77].mxu1  ;;  %11484 = vmatmul.mubr.msk.f32.gmra.mrb[182].mxu1 %vm5618_vm8, %v6540_v7  ;;  %v6542_v46 = vld [vmem:[#allocation3 + $0xda] sm:$0xff] }
 0x65f   : > { %11486 = vmatprep.mubr.msk.f32.mxu1 %vm12748_vm9, %v12747_v43 }
 0x661   : > { %v6381_v20 = vpop.f32.mrb[78].mxu1 }
 0x662   : > { %v14807_v15 = vadd.f32 %v6381_v20, %v14641_v16  ;;  %v11327_v8 = vpop.f32.mrb[79].mxu1  ;;  %11487 = vmatmul.mubr.msk.f32.gmra.mrb[184].mxu1 %vm5618_vm8, %v6541_v26  ;;  %v6543_v16 = vld [vmem:[#allocation3 + $0xe2] sm:$0xff] }
 0x663   : > { %11489 = vmatprep.mubr.msk.f32.mxu1 %vm12748_vm9, %v12747_v43 }
 0x665   : > { %v6386_v34 = vpop.f32.mrb[80].mxu1 }
 0x666   : > { %v14813_v4 = vadd.f32 %v6386_v34, %v14646_v22  ;;  %v11330_v49 = vpop.f32.mrb[81].mxu1  ;;  %11490 = vmatmul.mubr.msk.f32.gmra.mrb[186].mxu1 %vm5618_vm8, %v6542_v46  ;;  %v6544_v22 = vld [vmem:[#allocation3 + $0xea] sm:$0xff] }
 0x667   : > { %11492 = vmatprep.mubr.msk.f32.mxu1 %vm12748_vm9, %v12747_v43 }
 0x669   : > { %v6391_v6 = vpop.f32.mrb[82].mxu1 }
 0x66a   : > { %v14819_v44 = vadd.f32 %v6391_v6, %v14651_v50  ;;  %v11333_v25 = vpop.f32.mrb[83].mxu1  ;;  %11493 = vmatmul.mubr.msk.f32.gmra.mrb[188].mxu1 %vm5618_vm8, %v6543_v16  ;;  %v6545_v50 = vld [vmem:[#allocation3 + $0xf2] sm:$0xff] }
 0x66b   : > { %11495 = vmatprep.mubr.msk.f32.mxu1 %vm12748_vm9, %v12747_v43 }
 0x66d   : > { %v6396_v60 = vpop.f32.mrb[84].mxu1 }
 0x66e   : > { %v14825_v9 = vadd.f32 %v6396_v60, %v14656_v63  ;;  %v11336_v23 = vpop.f32.mrb[85].mxu1  ;;  %11496 = vmatmul.mubr.msk.f32.gmra.mrb[190].mxu1 %vm5618_vm8, %v6544_v22  ;;  %v12670_v63 = vld [vmem:[%s16180_s3 + $0x20] sm:$0xff]  }
 0x66f   : > { %11498 = vmatprep.mubr.msk.f32.mxu1 %vm12748_vm9, %v12747_v43 }
 0x671   : > { %v6401_v36 = vpop.f32.mrb[86].mxu1 }
 0x672   : > { %v14831_v52 = vadd.f32 %v6401_v36, %v14661_v32  ;;  %v11339_v56 = vpop.f32.mrb[87].mxu1  ;;  %11499 = vmatmul.mubr.msk.f32.gmra.mrb[192].mxu1 %vm5618_vm8, %v6545_v50 }
 0x673   : > { %11503 = vmatprep.mubr.msk.f32.mxu1 %vm12748_vm9, %v12747_v43 }
 0x675   : > { %v6406_v61 = vpop.f32.mrb[88].mxu1 }
 0x676   : > { %v14840_v30 = vadd.f32 %v6406_v61, %v14666_v35  ;;  %v11342_v29 = vpop.f32.mrb[89].mxu1  ;;  %11504 = vmatmul.mubr.msk.f32.vlgmr.msra.gmra.mrb[194].mxu1 %vm5618_vm8, %v6867_v5 }
 0x677   : > { %11597 = vmatpush3.bf16.msra.mxu1 %v12670_v63  ;;  %11506 = vmatprep.mubr.msk.f32.mxu1 %vm12748_vm9, %v12747_v43 }
 0x678   : > { %11691 = vmatprep.subr.bf16.mxu1 %v12747_v43 }
 0x679   : > { %v6411_v32 = vpop.f32.mrb[90].mxu1 }
 0x67a   : > { %v14847_v10 = vadd.f32 %v6411_v32, %v14674_v24  ;;  %v11345_v3 = vpop.f32.mrb[91].mxu1  ;;  %11507 = vmatmul.mubr.msk.f32.gmra.mrb[196].mxu1 %vm5618_vm8, %v6868_v59  ;;  %v6870_v24 = vld [vmem:[#allocation3 + $0x1b] sm:$0xff] }
 0x67b   : > { %11509 = vmatprep.mubr.msk.f32.mxu1 %vm12748_vm9, %v12747_v43 }
 0x67d   : > { %v6416_v35 = vpop.f32.mrb[92].mxu1 }
 0x67e   : > { %v14853_v51 = vadd.f32 %v6416_v35, %v14680_v62  ;;  %v11348_v53 = vpop.f32.mrb[93].mxu1  ;;  %11510 = vmatmul.mubr.msk.f32.gmra.mrb[198].mxu1 %vm5618_vm8, %v6869_v38  ;;  %v6871_v62 = vld [vmem:[#allocation3 + $0x23] sm:$0xff] }
 0x67f   : > { %11512 = vmatprep.mubr.msk.f32.mxu1 %vm12748_vm9, %v12747_v43 }
 0x681   : > { %v6421_v39 = vpop.f32.mrb[94].mxu1 }
 0x682   : > { %v14859_v55 = vadd.f32 %v6421_v39, %v14685_v54  ;;  %v11351_v31 = vpop.f32.mrb[95].mxu1  ;;  %11513 = vmatmul.mubr.msk.f32.gmra.mrb[200].mxu1 %vm5618_vm8, %v6870_v24  ;;  %v6872_v54 = vld [vmem:[#allocation3 + $0x2b] sm:$0xff] }
 0x683   : > { %11515 = vmatprep.mubr.msk.f32.mxu1 %vm12748_vm9, %v12747_v43 }
 0x685   : > { %v6426_v7 = vpop.f32.mrb[96].mxu1 }
 0x686   : > { %v14865_v14 = vadd.f32 %v6426_v7, %v14690_v27  ;;  %v11354_v20 = vpop.f32.mrb[97].mxu1  ;;  %11516 = vmatmul.mubr.msk.f32.gmra.mrb[202].mxu1 %vm5618_vm8, %v6871_v62  ;;  %v6873_v27 = vld [vmem:[#allocation3 + $0x33] sm:$0xff] }
 0x687   : > { %11518 = vmatprep.mubr.msk.f32.mxu1 %vm12748_vm9, %v12747_v43 }
 0x689   : > { %v6431_v26 = vpop.f32.mrb[98].mxu1 }
 0x68a   : > { %v14871_v8 = vadd.f32 %v6431_v26, %v14695_v58  ;;  %v11357_v34 = vpop.f32.mrb[99].mxu1  ;;  %11519 = vmatmul.mubr.msk.f32.gmra.mrb[204].mxu1 %vm5618_vm8, %v6872_v54  ;;  %v6874_v58 = vld [vmem:[#allocation3 + $0x3b] sm:$0xff] }
 0x68b   : > { %11521 = vmatprep.mubr.msk.f32.mxu1 %vm12748_vm9, %v12747_v43 }
 0x68d   : > { %v6436_v46 = vpop.f32.mrb[100].mxu1 }
 0x68e   : > { %v14877_v49 = vadd.f32 %v6436_v46, %v14700_v0  ;;  %v11360_v6 = vpop.f32.mrb[101].mxu1  ;;  %11522 = vmatmul.mubr.msk.f32.gmra.mrb[206].mxu1 %vm5618_vm8, %v6873_v27  ;;  %v6875_v0 = vld [vmem:[#allocation3 + $0x43] sm:$0xff] }
 0x68f   : > { %11524 = vmatprep.mubr.msk.f32.mxu1 %vm12748_vm9, %v12747_v43 }
 0x691   : > { %v6441_v16 = vpop.f32.mrb[102].mxu1 }
 0x692   : > { %v14883_v25 = vadd.f32 %v6441_v16, %v14705_v2  ;;  %v11363_v60 = vpop.f32.mrb[103].mxu1  ;;  %11525 = vmatmul.mubr.msk.f32.gmra.mrb[208].mxu1 %vm5618_vm8, %v6874_v58  ;;  %v6876_v2 = vld [vmem:[#allocation3 + $0x4b] sm:$0xff] }
 0x693   : > { %11527 = vmatprep.mubr.msk.f32.mxu1 %vm12748_vm9, %v12747_v43 }
 0x695   : > { %v6446_v22 = vpop.f32.mrb[104].mxu1 }
 0x696   : > { %v14889_v23 = vadd.f32 %v6446_v22, %v14710_v11  ;;  %v11366_v36 = vpop.f32.mrb[105].mxu1  ;;  %11528 = vmatmul.mubr.msk.f32.gmra.mrb[210].mxu1 %vm5618_vm8, %v6875_v0  ;;  %v6877_v11 = vld [vmem:[#allocation3 + $0x53] sm:$0xff] }
 0x697   : > { %11530 = vmatprep.mubr.msk.f32.mxu1 %vm12748_vm9, %v12747_v43 }
 0x699   : > { %v6451_v50 = vpop.f32.mrb[106].mxu1 }
 0x69a   : > { %v14895_v56 = vadd.f32 %v6451_v50, %v14715_v17  ;;  %v11369_v63 = vpop.f32.mrb[107].mxu1  ;;  %11531 = vmatmul.mubr.msk.f32.gmra.mrb[212].mxu1 %vm5618_vm8, %v6876_v2  ;;  %v6878_v17 = vld [vmem:[#allocation3 + $0x5b] sm:$0xff] }
 0x69b   : > { %11533 = vmatprep.mubr.msk.f32.mxu1 %vm12748_vm9, %v12747_v43 }
 0x69d   : > { %v6456_v61 = vpop.f32.mrb[108].mxu1 }
 0x69e   : > { %v14901_v5 = vadd.f32 %v6456_v61, %v14720_v37  ;;  %v11372_v29 = vpop.f32.mrb[109].mxu1  ;;  %11534 = vmatmul.mubr.msk.f32.gmra.mrb[214].mxu1 %vm5618_vm8, %v6877_v11  ;;  %v6879_v37 = vld [vmem:[#allocation3 + $0x63] sm:$0xff] }
 0x69f   : > { %11536 = vmatprep.mubr.msk.f32.mxu1 %vm12748_vm9, %v12747_v43 }
 0x6a1   : > { %v6461_v32 = vpop.f32.mrb[110].mxu1 }
 0x6a2   : > { %v14907_v59 = vadd.f32 %v6461_v32, %v14725_v57  ;;  %v11375_v3 = vpop.f32.mrb[111].mxu1  ;;  %11537 = vmatmul.mubr.msk.f32.gmra.mrb[216].mxu1 %vm5618_vm8, %v6878_v17  ;;  %v6880_v57 = vld [vmem:[#allocation3 + $0x6b] sm:$0xff] }
 0x6a3   : > { %11539 = vmatprep.mubr.msk.f32.mxu1 %vm12748_vm9, %v12747_v43 }
 0x6a5   : > { %v6466_v35 = vpop.f32.mrb[112].mxu1 }
 0x6a6   : > { %v14913_v38 = vadd.f32 %v6466_v35, %v14730_v1  ;;  %v11378_v53 = vpop.f32.mrb[113].mxu1  ;;  %11540 = vmatmul.mubr.msk.f32.gmra.mrb[218].mxu1 %vm5618_vm8, %v6879_v37  ;;  %v6881_v1 = vld [vmem:[#allocation3 + $0x73] sm:$0xff] }
 0x6a7   : > { %11542 = vmatprep.mubr.msk.f32.mxu1 %vm12748_vm9, %v12747_v43 }
 0x6a9   : > { %v6471_v39 = vpop.f32.mrb[114].mxu1 }
 0x6aa   : > { %v14919_v24 = vadd.f32 %v6471_v39, %v14735_v18  ;;  %v11381_v31 = vpop.f32.mrb[115].mxu1  ;;  %11543 = vmatmul.mubr.msk.f32.gmra.mrb[220].mxu1 %vm5618_vm8, %v6880_v57  ;;  %v6882_v18 = vld [vmem:[#allocation3 + $0x7b] sm:$0xff] }
 0x6ab   : > { %11545 = vmatprep.mubr.msk.f32.mxu1 %vm12748_vm9, %v12747_v43 }
 0x6ad   : > { %v6476_v7 = vpop.f32.mrb[116].mxu1 }
 0x6ae   : > { %v14925_v62 = vadd.f32 %v6476_v7, %v14740_v47  ;;  %v11384_v20 = vpop.f32.mrb[117].mxu1  ;;  %11546 = vmatmul.mubr.msk.f32.gmra.mrb[222].mxu1 %vm5618_vm8, %v6881_v1  ;;  %v6883_v47 = vld [vmem:[#allocation3 + $0x83] sm:$0xff] }
 0x6af   : > { %11548 = vmatprep.mubr.msk.f32.mxu1 %vm12748_vm9, %v12747_v43 }
 0x6b1   : > { %v6481_v26 = vpop.f32.mrb[118].mxu1 }
 0x6b2   : > { %v14931_v54 = vadd.f32 %v6481_v26, %v14745_v45  ;;  %v11387_v34 = vpop.f32.mrb[119].mxu1  ;;  %11549 = vmatmul.mubr.msk.f32.gmra.mrb[224].mxu1 %vm5618_vm8, %v6882_v18  ;;  %v6884_v45 = vld [vmem:[#allocation3 + $0x8b] sm:$0xff] }
 0x6b3   : > { %11551 = vmatprep.mubr.msk.f32.mxu1 %vm12748_vm9, %v12747_v43 }
 0x6b5   : > { %v6486_v46 = vpop.f32.mrb[120].mxu1 }
 0x6b6   : > { %v14937_v27 = vadd.f32 %v6486_v46, %v14750_v48  ;;  %v11390_v6 = vpop.f32.mrb[121].mxu1  ;;  %11552 = vmatmul.mubr.msk.f32.gmra.mrb[226].mxu1 %vm5618_vm8, %v6883_v47  ;;  %v6885_v48 = vld [vmem:[#allocation3 + $0x93] sm:$0xff] }
 0x6b7   : > { %11554 = vmatprep.mubr.msk.f32.mxu1 %vm12748_vm9, %v12747_v43 }
 0x6b9   : > { %v6491_v16 = vpop.f32.mrb[122].mxu1 }
 0x6ba   : > { %v14943_v58 = vadd.f32 %v6491_v16, %v14755_v42  ;;  %v11393_v60 = vpop.f32.mrb[123].mxu1  ;;  %11555 = vmatmul.mubr.msk.f32.gmra.mrb[228].mxu1 %vm5618_vm8, %v6884_v45  ;;  %v6886_v42 = vld [vmem:[#allocation3 + $0x9b] sm:$0xff] }
 0x6bb   : > { %11557 = vmatprep.mubr.msk.f32.mxu1 %vm12748_vm9, %v12747_v43 }
 0x6bd   : > { %v6496_v22 = vpop.f32.mrb[124].mxu1 }
 0x6be   : > { %v14949_v0 = vadd.f32 %v6496_v22, %v14762_v41  ;;  %v11396_v36 = vpop.f32.mrb[125].mxu1  ;;  %11558 = vmatmul.mubr.msk.f32.gmra.mrb[230].mxu1 %vm5618_vm8, %v6885_v48  ;;  %v6887_v41 = vld [vmem:[#allocation3 + $0xa3] sm:$0xff] }
 0x6bf   : > { %11560 = vmatprep.mubr.msk.f32.mxu1 %vm12748_vm9, %v12747_v43 }
 0x6c1   : > { %v6501_v50 = vpop.f32.mrb[126].mxu1 }
 0x6c2   : > { %v14955_v2 = vadd.f32 %v6501_v50, %v14767_v28  ;;  %v11399_v63 = vpop.f32.mrb[127].mxu1  ;;  %11561 = vmatmul.mubr.msk.f32.gmra.mrb[232].mxu1 %vm5618_vm8, %v6886_v42  ;;  %v6888_v28 = vld [vmem:[#allocation3 + $0xab] sm:$0xff] }
 0x6c3   : > { %11563 = vmatprep.mubr.msk.f32.mxu1 %vm12748_vm9, %v12747_v43 }
 0x6c5   : > { %v6506_v61 = vpop.f32.mrb[128].mxu1 }
 0x6c6   : > { %v14961_v11 = vadd.f32 %v6506_v61, %v14772_v19  ;;  %v11402_v29 = vpop.f32.mrb[129].mxu1  ;;  %11564 = vmatmul.mubr.msk.f32.gmra.mrb[234].mxu1 %vm5618_vm8, %v6887_v41  ;;  %v6889_v19 = vld [vmem:[#allocation3 + $0xb3] sm:$0xff] }
 0x6c7   : > { %11566 = vmatprep.mubr.msk.f32.mxu1 %vm12748_vm9, %v12747_v43 }
 0x6c9   : > { %v6511_v32 = vpop.f32.mrb[130].mxu1 }
 0x6ca   : > { %v14967_v17 = vadd.f32 %v6511_v32, %v14777_v12  ;;  %v11405_v3 = vpop.f32.mrb[131].mxu1  ;;  %11567 = vmatmul.mubr.msk.f32.gmra.mrb[236].mxu1 %vm5618_vm8, %v6888_v28  ;;  %v6890_v12 = vld [vmem:[#allocation3 + $0xbb] sm:$0xff]  ;;  %v7219_v28 = vld [vmem:[#allocation3 + $0x4] sm:$0xff] }
 0x6cb   : > { %11569 = vmatprep.mubr.msk.f32.mxu1 %vm12748_vm9, %v12747_v43 }
 0x6cd   : > { %v6682_v35 = vpop.f32.mrb[132].mxu1 }
 0x6ce   : > { %v14973_v37 = vadd.f32 %v6682_v35, %v14783_v40  ;;  %v11410_v53 = vpop.f32.mrb[133].mxu1  ;;  %11570 = vmatmul.mubr.msk.f32.gmra.mrb[238].mxu1 %vm5618_vm8, %v6889_v19  ;;  %v6891_v40 = vld [vmem:[#allocation3 + $0xc3] sm:$0xff]  ;;  %v7220_v19 = vld [vmem:[#allocation3 + $0xc] sm:$0xff] }
 0x6cf   : > { %11572 = vmatprep.mubr.msk.f32.mxu1 %vm12748_vm9, %v12747_v43 }
 0x6d1   : > { %v6687_v39 = vpop.f32.mrb[134].mxu1 }
 0x6d2   : > { %v14979_v57 = vadd.f32 %v6687_v39, %v14789_v21  ;;  %v11413_v31 = vpop.f32.mrb[135].mxu1  ;;  %11573 = vmatmul.mubr.msk.f32.gmra.mrb[240].mxu1 %vm5618_vm8, %v6890_v12  ;;  %v6892_v21 = vld [vmem:[#allocation3 + $0xcb] sm:$0xff]  ;;  %v7221_v12 = vld [vmem:[#allocation3 + $0x14] sm:$0xff] }
 0x6d3   : > { %11575 = vmatprep.mubr.msk.f32.mxu1 %vm12748_vm9, %v12747_v43 }
 0x6d5   : > { %v6692_v7 = vpop.f32.mrb[136].mxu1 }
 0x6d6   : > { %v14985_v1 = vadd.f32 %v6692_v7, %v14795_v33  ;;  %v11416_v20 = vpop.f32.mrb[137].mxu1  ;;  %11576 = vmatmul.mubr.msk.f32.gmra.mrb[242].mxu1 %vm5618_vm8, %v6891_v40  ;;  %v6893_v33 = vld [vmem:[#allocation3 + $0xd3] sm:$0xff] }
 0x6d7   : > { %11578 = vmatprep.mubr.msk.f32.mxu1 %vm12748_vm9, %v12747_v43 }
 0x6d9   : > { %v6697_v26 = vpop.f32.mrb[138].mxu1 }
 0x6da   : > { %v14991_v18 = vadd.f32 %v6697_v26, %v14801_v13  ;;  %v11419_v34 = vpop.f32.mrb[139].mxu1  ;;  %11579 = vmatmul.mubr.msk.f32.gmra.mrb[244].mxu1 %vm5618_vm8, %v6892_v21  ;;  %v6894_v13 = vld [vmem:[#allocation3 + $0xdb] sm:$0xff] }
 0x6db   : > { %11581 = vmatprep.mubr.msk.f32.mxu1 %vm12748_vm9, %v12747_v43 }
 0x6dd   : > { %v6702_v46 = vpop.f32.mrb[140].mxu1 }
 0x6de   : > { %v14997_v47 = vadd.f32 %v6702_v46, %v14807_v15  ;;  %v11422_v6 = vpop.f32.mrb[141].mxu1  ;;  %11582 = vmatmul.mubr.msk.f32.gmra.mrb[246].mxu1 %vm5618_vm8, %v6893_v33  ;;  %v6895_v15 = vld [vmem:[#allocation3 + $0xe3] sm:$0xff] }
 0x6df   : > { %11584 = vmatprep.mubr.msk.f32.mxu1 %vm12748_vm9, %v12747_v43 }
 0x6e1   : > { %v6707_v16 = vpop.f32.mrb[142].mxu1 }
 0x6e2   : > { %v15003_v45 = vadd.f32 %v6707_v16, %v14813_v4  ;;  %v11425_v60 = vpop.f32.mrb[143].mxu1  ;;  %11585 = vmatmul.mubr.msk.f32.gmra.mrb[248].mxu1 %vm5618_vm8, %v6894_v13  ;;  %v6896_v4 = vld [vmem:[#allocation3 + $0xeb] sm:$0xff] }
 0x6e3   : > { %11587 = vmatprep.mubr.msk.f32.mxu1 %vm12748_vm9, %v12747_v43 }
 0x6e5   : > { %v6712_v22 = vpop.f32.mrb[144].mxu1 }
 0x6e6   : > { %v15009_v48 = vadd.f32 %v6712_v22, %v14819_v44  ;;  %v11428_v36 = vpop.f32.mrb[145].mxu1  ;;  %11588 = vmatmul.mubr.msk.f32.gmra.mrb[250].mxu1 %vm5618_vm8, %v6895_v15  ;;  %v6897_v44 = vld [vmem:[#allocation3 + $0xf3] sm:$0xff] }
 0x6e7   : > { %11590 = vmatprep.mubr.msk.f32.mxu1 %vm12748_vm9, %v12747_v43 }
 0x6e9   : > { %v6717_v50 = vpop.f32.mrb[146].mxu1 }
 0x6ea   : > { %v15015_v42 = vadd.f32 %v6717_v50, %v14825_v9  ;;  %v11431_v63 = vpop.f32.mrb[147].mxu1  ;;  %11591 = vmatmul.mubr.msk.f32.gmra.mrb[252].mxu1 %vm5618_vm8, %v6896_v4  ;;  %v12671_v9 = vld [vmem:[%s16180_s3 + $0x28] sm:$0xff]  }
 0x6eb   : > { %11593 = vmatprep.mubr.msk.f32.mxu1 %vm12748_vm9, %v12747_v43 }
 0x6ed   : > { %v6722_v61 = vpop.f32.mrb[148].mxu1 }
 0x6ee   : > { %v15021_v41 = vadd.f32 %v6722_v61, %v14831_v52  ;;  %v11434_v29 = vpop.f32.mrb[149].mxu1  ;;  %11594 = vmatmul.mubr.msk.f32.gmra.mrb[254].mxu1 %vm5618_vm8, %v6897_v44 }
 0x6ef   : > { %11598 = vmatprep.mubr.msk.f32.mxu1 %vm12748_vm9, %v12747_v43 }
 0x6f1   : > { %v6727_v32 = vpop.f32.mrb[150].mxu1 }
 0x6f2   : > { %v15030_v3 = vadd.f32 %v6727_v32, %v14840_v30  ;;  %v11437_v35 = vpop.f32.mrb[151].mxu1  ;;  %11599 = vmatmul.mubr.msk.f32.vlgmr.msra.gmra.mrb[4].mxu1 %vm5618_vm8, %v7219_v28 }
 0x6f3   : > { %11692 = vmatpush3.bf16.msra.mxu1 %v12671_v9  ;;  %11601 = vmatprep.mubr.msk.f32.mxu1 %vm12748_vm9, %v12747_v43 }
 0x6f4   : > { %11786 = vmatprep.subr.bf16.mxu1 %v12747_v43 }
 0x6f5   : > { %v6732_v52 = vpop.f32.mrb[152].mxu1 }
 0x6f6   : > { %v15037_v53 = vadd.f32 %v6732_v52, %v14847_v10  ;;  %v11440_v39 = vpop.f32.mrb[153].mxu1  ;;  %11602 = vmatmul.mubr.msk.f32.gmra.mrb[6].mxu1 %vm5618_vm8, %v7220_v19  ;;  %v7222_v10 = vld [vmem:[#allocation3 + $0x1c] sm:$0xff] }
 0x6f7   : > { %11604 = vmatprep.mubr.msk.f32.mxu1 %vm12748_vm9, %v12747_v43 }
 0x6f9   : > { %v6737_v30 = vpop.f32.mrb[154].mxu1 }
 0x6fa   : > { %v15043_v31 = vadd.f32 %v6737_v30, %v14853_v51  ;;  %v11443_v7 = vpop.f32.mrb[155].mxu1  ;;  %11605 = vmatmul.mubr.msk.f32.gmra.mrb[0].mxu1 %vm5618_vm8, %v7221_v12  ;;  %v7223_v51 = vld [vmem:[#allocation3 + $0x24] sm:$0xff] }
 0x6fb   : > { %11607 = vmatprep.mubr.msk.f32.mxu1 %vm12748_vm9, %v12747_v43 }
 0x6fd   : > { %v6742_v40 = vpop.f32.mrb[156].mxu1 }
 0x6fe   : > { %v15049_v20 = vadd.f32 %v6742_v40, %v14859_v55  ;;  %v11446_v26 = vpop.f32.mrb[157].mxu1  ;;  %11608 = vmatmul.mubr.msk.f32.gmra.mrb[2].mxu1 %vm5618_vm8, %v7222_v10  ;;  %v7224_v55 = vld [vmem:[#allocation3 + $0x2c] sm:$0xff] }
 0x6ff   : > { %11610 = vmatprep.mubr.msk.f32.mxu1 %vm12748_vm9, %v12747_v43 }
 0x701   : > { %v6747_v21 = vpop.f32.mrb[158].mxu1 }
 0x702   : > { %v15055_v34 = vadd.f32 %v6747_v21, %v14865_v14  ;;  %v11449_v46 = vpop.f32.mrb[159].mxu1  ;;  %11611 = vmatmul.mubr.msk.f32.gmra.mrb[8].mxu1 %vm5618_vm8, %v7223_v51  ;;  %v7225_v14 = vld [vmem:[#allocation3 + $0x34] sm:$0xff] }
 0x703   : > { %11613 = vmatprep.mubr.msk.f32.mxu1 %vm12748_vm9, %v12747_v43 }
 0x705   : > { %v6752_v33 = vpop.f32.mrb[160].mxu1 }
 0x706   : > { %v15061_v6 = vadd.f32 %v6752_v33, %v14871_v8  ;;  %v11452_v16 = vpop.f32.mrb[161].mxu1  ;;  %11614 = vmatmul.mubr.msk.f32.gmra.mrb[10].mxu1 %vm5618_vm8, %v7224_v55  ;;  %v7226_v8 = vld [vmem:[#allocation3 + $0x3c] sm:$0xff] }
 0x707   : > { %11616 = vmatprep.mubr.msk.f32.mxu1 %vm12748_vm9, %v12747_v43 }
 0x709   : > { %v6757_v13 = vpop.f32.mrb[162].mxu1 }
 0x70a   : > { %v15067_v60 = vadd.f32 %v6757_v13, %v14877_v49  ;;  %v11455_v22 = vpop.f32.mrb[163].mxu1  ;;  %11617 = vmatmul.mubr.msk.f32.gmra.mrb[12].mxu1 %vm5618_vm8, %v7225_v14  ;;  %v7227_v49 = vld [vmem:[#allocation3 + $0x44] sm:$0xff] }
 0x70b   : > { %11619 = vmatprep.mubr.msk.f32.mxu1 %vm12748_vm9, %v12747_v43 }
 0x70d   : > { %v6762_v15 = vpop.f32.mrb[164].mxu1 }
 0x70e   : > { %v15073_v36 = vadd.f32 %v6762_v15, %v14883_v25  ;;  %v11458_v50 = vpop.f32.mrb[165].mxu1  ;;  %11620 = vmatmul.mubr.msk.f32.gmra.mrb[14].mxu1 %vm5618_vm8, %v7226_v8  ;;  %v7228_v25 = vld [vmem:[#allocation3 + $0x4c] sm:$0xff] }
 0x70f   : > { %11622 = vmatprep.mubr.msk.f32.mxu1 %vm12748_vm9, %v12747_v43 }
 0x711   : > { %v6767_v4 = vpop.f32.mrb[166].mxu1 }
 0x712   : > { %v15079_v63 = vadd.f32 %v6767_v4, %v14889_v23  ;;  %v11461_v61 = vpop.f32.mrb[167].mxu1  ;;  %11623 = vmatmul.mubr.msk.f32.gmra.mrb[16].mxu1 %vm5618_vm8, %v7227_v49  ;;  %v7229_v23 = vld [vmem:[#allocation3 + $0x54] sm:$0xff] }
 0x713   : > { %11625 = vmatprep.mubr.msk.f32.mxu1 %vm12748_vm9, %v12747_v43 }
 0x715   : > { %v6772_v44 = vpop.f32.mrb[168].mxu1 }
 0x716   : > { %v15085_v29 = vadd.f32 %v6772_v44, %v14895_v56  ;;  %v11464_v9 = vpop.f32.mrb[169].mxu1  ;;  %11626 = vmatmul.mubr.msk.f32.gmra.mrb[18].mxu1 %vm5618_vm8, %v7228_v25  ;;  %v7230_v56 = vld [vmem:[#allocation3 + $0x5c] sm:$0xff] }
 0x717   : > { %11628 = vmatprep.mubr.msk.f32.mxu1 %vm12748_vm9, %v12747_v43 }
 0x719   : > { %v6777_v32 = vpop.f32.mrb[170].mxu1 }
 0x71a   : > { %v15091_v28 = vadd.f32 %v6777_v32, %v14901_v5  ;;  %v11467_v35 = vpop.f32.mrb[171].mxu1  ;;  %11629 = vmatmul.mubr.msk.f32.gmra.mrb[20].mxu1 %vm5618_vm8, %v7229_v23  ;;  %v7231_v5 = vld [vmem:[#allocation3 + $0x64] sm:$0xff] }
 0x71b   : > { %11631 = vmatprep.mubr.msk.f32.mxu1 %vm12748_vm9, %v12747_v43 }
 0x71d   : > { %v6782_v52 = vpop.f32.mrb[172].mxu1 }
 0x71e   : > { %v15097_v19 = vadd.f32 %v6782_v52, %v14907_v59  ;;  %v11470_v39 = vpop.f32.mrb[173].mxu1  ;;  %11632 = vmatmul.mubr.msk.f32.gmra.mrb[22].mxu1 %vm5618_vm8, %v7230_v56  ;;  %v7232_v59 = vld [vmem:[#allocation3 + $0x6c] sm:$0xff] }
 0x71f   : > { %11634 = vmatprep.mubr.msk.f32.mxu1 %vm12748_vm9, %v12747_v43 }
 0x721   : > { %v6787_v30 = vpop.f32.mrb[174].mxu1 }
 0x722   : > { %v15103_v12 = vadd.f32 %v6787_v30, %v14913_v38  ;;  %v11473_v7 = vpop.f32.mrb[175].mxu1  ;;  %11635 = vmatmul.mubr.msk.f32.gmra.mrb[24].mxu1 %vm5618_vm8, %v7231_v5  ;;  %v7233_v38 = vld [vmem:[#allocation3 + $0x74] sm:$0xff] }
 0x723   : > { %11637 = vmatprep.mubr.msk.f32.mxu1 %vm12748_vm9, %v12747_v43 }
 0x725   : > { %v6792_v40 = vpop.f32.mrb[176].mxu1 }
 0x726   : > { %v15109_v10 = vadd.f32 %v6792_v40, %v14919_v24  ;;  %v11476_v26 = vpop.f32.mrb[177].mxu1  ;;  %11638 = vmatmul.mubr.msk.f32.gmra.mrb[26].mxu1 %vm5618_vm8, %v7232_v59  ;;  %v7234_v24 = vld [vmem:[#allocation3 + $0x7c] sm:$0xff] }
 0x727   : > { %11640 = vmatprep.mubr.msk.f32.mxu1 %vm12748_vm9, %v12747_v43 }
 0x729   : > { %v6797_v21 = vpop.f32.mrb[178].mxu1 }
 0x72a   : > { %v15115_v51 = vadd.f32 %v6797_v21, %v14925_v62  ;;  %v11479_v46 = vpop.f32.mrb[179].mxu1  ;;  %11641 = vmatmul.mubr.msk.f32.gmra.mrb[28].mxu1 %vm5618_vm8, %v7233_v38  ;;  %v7235_v62 = vld [vmem:[#allocation3 + $0x84] sm:$0xff] }
 0x72b   : > { %11643 = vmatprep.mubr.msk.f32.mxu1 %vm12748_vm9, %v12747_v43 }
 0x72d   : > { %v6802_v33 = vpop.f32.mrb[180].mxu1 }
 0x72e   : > { %v15121_v55 = vadd.f32 %v6802_v33, %v14931_v54  ;;  %v11482_v16 = vpop.f32.mrb[181].mxu1  ;;  %11644 = vmatmul.mubr.msk.f32.gmra.mrb[30].mxu1 %vm5618_vm8, %v7234_v24  ;;  %v7236_v54 = vld [vmem:[#allocation3 + $0x8c] sm:$0xff] }
 0x72f   : > { %11646 = vmatprep.mubr.msk.f32.mxu1 %vm12748_vm9, %v12747_v43 }
 0x731   : > { %v6807_v13 = vpop.f32.mrb[182].mxu1 }
 0x732   : > { %v15127_v14 = vadd.f32 %v6807_v13, %v14937_v27  ;;  %v11485_v22 = vpop.f32.mrb[183].mxu1  ;;  %11647 = vmatmul.mubr.msk.f32.gmra.mrb[32].mxu1 %vm5618_vm8, %v7235_v62  ;;  %v7237_v27 = vld [vmem:[#allocation3 + $0x94] sm:$0xff] }
 0x733   : > { %11649 = vmatprep.mubr.msk.f32.mxu1 %vm12748_vm9, %v12747_v43 }
 0x735   : > { %v6812_v15 = vpop.f32.mrb[184].mxu1 }
 0x736   : > { %v15133_v8 = vadd.f32 %v6812_v15, %v14943_v58  ;;  %v11488_v50 = vpop.f32.mrb[185].mxu1  ;;  %11650 = vmatmul.mubr.msk.f32.gmra.mrb[34].mxu1 %vm5618_vm8, %v7236_v54  ;;  %v7238_v58 = vld [vmem:[#allocation3 + $0x9c] sm:$0xff] }
 0x737   : > { %11652 = vmatprep.mubr.msk.f32.mxu1 %vm12748_vm9, %v12747_v43 }
 0x739   : > { %v6817_v4 = vpop.f32.mrb[186].mxu1 }
 0x73a   : > { %v15139_v49 = vadd.f32 %v6817_v4, %v14949_v0  ;;  %v11491_v61 = vpop.f32.mrb[187].mxu1  ;;  %11653 = vmatmul.mubr.msk.f32.gmra.mrb[36].mxu1 %vm5618_vm8, %v7237_v27  ;;  %v7239_v0 = vld [vmem:[#allocation3 + $0xa4] sm:$0xff] }
 0x73b   : > { %11655 = vmatprep.mubr.msk.f32.mxu1 %vm12748_vm9, %v12747_v43 }
 0x73d   : > { %v6822_v44 = vpop.f32.mrb[188].mxu1 }
 0x73e   : > { %v15145_v25 = vadd.f32 %v6822_v44, %v14955_v2  ;;  %v11494_v9 = vpop.f32.mrb[189].mxu1  ;;  %11656 = vmatmul.mubr.msk.f32.gmra.mrb[38].mxu1 %vm5618_vm8, %v7238_v58  ;;  %v7240_v2 = vld [vmem:[#allocation3 + $0xac] sm:$0xff] }
 0x73f   : > { %11658 = vmatprep.mubr.msk.f32.mxu1 %vm12748_vm9, %v12747_v43 }
 0x741   : > { %v6827_v32 = vpop.f32.mrb[190].mxu1 }
 0x742   : > { %v15151_v23 = vadd.f32 %v6827_v32, %v14961_v11  ;;  %v11497_v35 = vpop.f32.mrb[191].mxu1  ;;  %11659 = vmatmul.mubr.msk.f32.gmra.mrb[40].mxu1 %vm5618_vm8, %v7239_v0  ;;  %v7241_v11 = vld [vmem:[#allocation3 + $0xb4] sm:$0xff] }
 0x743   : > { %11661 = vmatprep.mubr.msk.f32.mxu1 %vm12748_vm9, %v12747_v43 }
 0x745   : > { %v6832_v52 = vpop.f32.mrb[192].mxu1 }
 0x746   : > { %v15157_v56 = vadd.f32 %v6832_v52, %v14967_v17  ;;  %v11500_v39 = vpop.f32.mrb[193].mxu1  ;;  %11662 = vmatmul.mubr.msk.f32.gmra.mrb[42].mxu1 %vm5618_vm8, %v7240_v2  ;;  %v7242_v17 = vld [vmem:[#allocation3 + $0xbc] sm:$0xff]  ;;  %v7571_v2 = vld [vmem:[#allocation3 + $0x5] sm:$0xff] }
 0x747   : > { %11664 = vmatprep.mubr.msk.f32.mxu1 %vm12748_vm9, %v12747_v43 }
 0x749   : > { %v7034_v30 = vpop.f32.mrb[194].mxu1 }
 0x74a   : > { %v15163_v5 = vadd.f32 %v7034_v30, %v14973_v37  ;;  %v11505_v7 = vpop.f32.mrb[195].mxu1  ;;  %11665 = vmatmul.mubr.msk.f32.gmra.mrb[44].mxu1 %vm5618_vm8, %v7241_v11  ;;  %v7243_v37 = vld [vmem:[#allocation3 + $0xc4] sm:$0xff]  ;;  %v7572_v11 = vld [vmem:[#allocation3 + $0xd] sm:$0xff] }
 0x74b   : > { %11667 = vmatprep.mubr.msk.f32.mxu1 %vm12748_vm9, %v12747_v43 }
 0x74d   : > { %v7039_v40 = vpop.f32.mrb[196].mxu1 }
 0x74e   : > { %v15169_v59 = vadd.f32 %v7039_v40, %v14979_v57  ;;  %v11508_v26 = vpop.f32.mrb[197].mxu1  ;;  %11668 = vmatmul.mubr.msk.f32.gmra.mrb[46].mxu1 %vm5618_vm8, %v7242_v17  ;;  %v7244_v57 = vld [vmem:[#allocation3 + $0xcc] sm:$0xff]  ;;  %v7573_v17 = vld [vmem:[#allocation3 + $0x15] sm:$0xff] }
 0x74f   : > { %11670 = vmatprep.mubr.msk.f32.mxu1 %vm12748_vm9, %v12747_v43 }
 0x751   : > { %v7044_v21 = vpop.f32.mrb[198].mxu1 }
 0x752   : > { %v15175_v38 = vadd.f32 %v7044_v21, %v14985_v1  ;;  %v11511_v46 = vpop.f32.mrb[199].mxu1  ;;  %11671 = vmatmul.mubr.msk.f32.gmra.mrb[48].mxu1 %vm5618_vm8, %v7243_v37  ;;  %v7245_v1 = vld [vmem:[#allocation3 + $0xd4] sm:$0xff] }
 0x753   : > { %11673 = vmatprep.mubr.msk.f32.mxu1 %vm12748_vm9, %v12747_v43 }
 0x755   : > { %v7049_v33 = vpop.f32.mrb[200].mxu1 }
 0x756   : > { %v15181_v24 = vadd.f32 %v7049_v33, %v14991_v18  ;;  %v11514_v16 = vpop.f32.mrb[201].mxu1  ;;  %11674 = vmatmul.mubr.msk.f32.gmra.mrb[50].mxu1 %vm5618_vm8, %v7244_v57  ;;  %v7246_v18 = vld [vmem:[#allocation3 + $0xdc] sm:$0xff] }
 0x757   : > { %11676 = vmatprep.mubr.msk.f32.mxu1 %vm12748_vm9, %v12747_v43 }
 0x759   : > { %v7054_v13 = vpop.f32.mrb[202].mxu1 }
 0x75a   : > { %v15187_v62 = vadd.f32 %v7054_v13, %v14997_v47  ;;  %v11517_v22 = vpop.f32.mrb[203].mxu1  ;;  %11677 = vmatmul.mubr.msk.f32.gmra.mrb[52].mxu1 %vm5618_vm8, %v7245_v1  ;;  %v7247_v47 = vld [vmem:[#allocation3 + $0xe4] sm:$0xff] }
 0x75b   : > { %11679 = vmatprep.mubr.msk.f32.mxu1 %vm12748_vm9, %v12747_v43 }
 0x75d   : > { %v7059_v15 = vpop.f32.mrb[204].mxu1 }
 0x75e   : > { %v15193_v54 = vadd.f32 %v7059_v15, %v15003_v45  ;;  %v11520_v50 = vpop.f32.mrb[205].mxu1  ;;  %11680 = vmatmul.mubr.msk.f32.gmra.mrb[54].mxu1 %vm5618_vm8, %v7246_v18  ;;  %v7248_v45 = vld [vmem:[#allocation3 + $0xec] sm:$0xff] }
 0x75f   : > { %11682 = vmatprep.mubr.msk.f32.mxu1 %vm12748_vm9, %v12747_v43 }
 0x761   : > { %v7064_v4 = vpop.f32.mrb[206].mxu1 }
 0x762   : > { %v15199_v27 = vadd.f32 %v7064_v4, %v15009_v48  ;;  %v11523_v61 = vpop.f32.mrb[207].mxu1  ;;  %11683 = vmatmul.mubr.msk.f32.gmra.mrb[56].mxu1 %vm5618_vm8, %v7247_v47  ;;  %v7249_v48 = vld [vmem:[#allocation3 + $0xf4] sm:$0xff] }
 0x763   : > { %11685 = vmatprep.mubr.msk.f32.mxu1 %vm12748_vm9, %v12747_v43 }
 0x765   : > { %v7069_v44 = vpop.f32.mrb[208].mxu1 }
 0x766   : > { %v15205_v58 = vadd.f32 %v7069_v44, %v15015_v42  ;;  %v11526_v9 = vpop.f32.mrb[209].mxu1  ;;  %11686 = vmatmul.mubr.msk.f32.gmra.mrb[58].mxu1 %vm5618_vm8, %v7248_v45  ;;  %v12672_v42 = vld [vmem:[%s16180_s3 + $0x30] sm:$0xff]  }
 0x767   : > { %11688 = vmatprep.mubr.msk.f32.mxu1 %vm12748_vm9, %v12747_v43 }
 0x769   : > { %v7074_v32 = vpop.f32.mrb[210].mxu1 }
 0x76a   : > { %v15211_v0 = vadd.f32 %v7074_v32, %v15021_v41  ;;  %v11529_v35 = vpop.f32.mrb[211].mxu1  ;;  %11689 = vmatmul.mubr.msk.f32.gmra.mrb[60].mxu1 %vm5618_vm8, %v7249_v48 }
 0x76b   : > { %11693 = vmatprep.mubr.msk.f32.mxu1 %vm12748_vm9, %v12747_v43 }
 0x76d   : > { %v7079_v52 = vpop.f32.mrb[212].mxu1 }
 0x76e   : > { %v15220_v39 = vadd.f32 %v7079_v52, %v15030_v3  ;;  %v11532_v30 = vpop.f32.mrb[213].mxu1  ;;  %11694 = vmatmul.mubr.msk.f32.vlgmr.msra.gmra.mrb[62].mxu1 %vm5618_vm8, %v7571_v2 }
 0x76f   : > { %11787 = vmatpush3.bf16.msra.mxu1 %v12672_v42  ;;  %11696 = vmatprep.mubr.msk.f32.mxu1 %vm12748_vm9, %v12747_v43 }
 0x770   : > { %11881 = vmatprep.subr.bf16.mxu1 %v12747_v43 }
 0x771   : > { %v7084_v41 = vpop.f32.mrb[214].mxu1 }
 0x772   : > { %v15227_v7 = vadd.f32 %v7084_v41, %v15037_v53  ;;  %v11535_v40 = vpop.f32.mrb[215].mxu1  ;;  %11697 = vmatmul.mubr.msk.f32.gmra.mrb[64].mxu1 %vm5618_vm8, %v7572_v11  ;;  %v7574_v53 = vld [vmem:[#allocation3 + $0x1d] sm:$0xff] }
 0x773   : > { %11699 = vmatprep.mubr.msk.f32.mxu1 %vm12748_vm9, %v12747_v43 }
 0x775   : > { %v7089_v3 = vpop.f32.mrb[216].mxu1 }
 0x776   : > { %v15233_v26 = vadd.f32 %v7089_v3, %v15043_v31  ;;  %v11538_v21 = vpop.f32.mrb[217].mxu1  ;;  %11700 = vmatmul.mubr.msk.f32.gmra.mrb[66].mxu1 %vm5618_vm8, %v7573_v17  ;;  %v7575_v31 = vld [vmem:[#allocation3 + $0x25] sm:$0xff] }
 0x777   : > { %11702 = vmatprep.mubr.msk.f32.mxu1 %vm12748_vm9, %v12747_v43 }
 0x779   : > { %v7094_v37 = vpop.f32.mrb[218].mxu1 }
 0x77a   : > { %v15239_v46 = vadd.f32 %v7094_v37, %v15049_v20  ;;  %v11541_v33 = vpop.f32.mrb[219].mxu1  ;;  %11703 = vmatmul.mubr.msk.f32.gmra.mrb[68].mxu1 %vm5618_vm8, %v7574_v53  ;;  %v7576_v20 = vld [vmem:[#allocation3 + $0x2d] sm:$0xff] }
 0x77b   : > { %11705 = vmatprep.mubr.msk.f32.mxu1 %vm12748_vm9, %v12747_v43 }
 0x77d   : > { %v7099_v57 = vpop.f32.mrb[220].mxu1 }
 0x77e   : > { %v15245_v16 = vadd.f32 %v7099_v57, %v15055_v34  ;;  %v11544_v13 = vpop.f32.mrb[221].mxu1  ;;  %11706 = vmatmul.mubr.msk.f32.gmra.mrb[70].mxu1 %vm5618_vm8, %v7575_v31  ;;  %v7577_v34 = vld [vmem:[#allocation3 + $0x35] sm:$0xff] }
 0x77f   : > { %11708 = vmatprep.mubr.msk.f32.mxu1 %vm12748_vm9, %v12747_v43 }
 0x781   : > { %v7104_v1 = vpop.f32.mrb[222].mxu1 }
 0x782   : > { %v15251_v22 = vadd.f32 %v7104_v1, %v15061_v6  ;;  %v11547_v15 = vpop.f32.mrb[223].mxu1  ;;  %11709 = vmatmul.mubr.msk.f32.gmra.mrb[72].mxu1 %vm5618_vm8, %v7576_v20  ;;  %v7578_v6 = vld [vmem:[#allocation3 + $0x3d] sm:$0xff] }
 0x783   : > { %11711 = vmatprep.mubr.msk.f32.mxu1 %vm12748_vm9, %v12747_v43 }
 0x785   : > { %v7109_v18 = vpop.f32.mrb[224].mxu1 }
 0x786   : > { %v15257_v50 = vadd.f32 %v7109_v18, %v15067_v60  ;;  %v11550_v4 = vpop.f32.mrb[225].mxu1  ;;  %11712 = vmatmul.mubr.msk.f32.gmra.mrb[74].mxu1 %vm5618_vm8, %v7577_v34  ;;  %v7579_v60 = vld [vmem:[#allocation3 + $0x45] sm:$0xff] }
 0x787   : > { %11714 = vmatprep.mubr.msk.f32.mxu1 %vm12748_vm9, %v12747_v43 }
 0x789   : > { %v7114_v47 = vpop.f32.mrb[226].mxu1 }
 0x78a   : > { %v15263_v61 = vadd.f32 %v7114_v47, %v15073_v36  ;;  %v11553_v44 = vpop.f32.mrb[227].mxu1  ;;  %11715 = vmatmul.mubr.msk.f32.gmra.mrb[76].mxu1 %vm5618_vm8, %v7578_v6  ;;  %v7580_v36 = vld [vmem:[#allocation3 + $0x4d] sm:$0xff] }
 0x78b   : > { %11717 = vmatprep.mubr.msk.f32.mxu1 %vm12748_vm9, %v12747_v43 }
 0x78d   : > { %v7119_v45 = vpop.f32.mrb[228].mxu1 }
 0x78e   : > { %v15269_v9 = vadd.f32 %v7119_v45, %v15079_v63  ;;  %v11556_v32 = vpop.f32.mrb[229].mxu1  ;;  %11718 = vmatmul.mubr.msk.f32.gmra.mrb[78].mxu1 %vm5618_vm8, %v7579_v60  ;;  %v7581_v63 = vld [vmem:[#allocation3 + $0x55] sm:$0xff] }
 0x78f   : > { %11720 = vmatprep.mubr.msk.f32.mxu1 %vm12748_vm9, %v12747_v43 }
 0x791   : > { %v7124_v48 = vpop.f32.mrb[230].mxu1 }
 0x792   : > { %v15275_v35 = vadd.f32 %v7124_v48, %v15085_v29  ;;  %v11559_v42 = vpop.f32.mrb[231].mxu1  ;;  %11721 = vmatmul.mubr.msk.f32.gmra.mrb[80].mxu1 %vm5618_vm8, %v7580_v36  ;;  %v7582_v29 = vld [vmem:[#allocation3 + $0x5d] sm:$0xff] }
 0x793   : > { %11723 = vmatprep.mubr.msk.f32.mxu1 %vm12748_vm9, %v12747_v43 }
 0x795   : > { %v7129_v52 = vpop.f32.mrb[232].mxu1 }
 0x796   : > { %v15281_v2 = vadd.f32 %v7129_v52, %v15091_v28  ;;  %v11562_v30 = vpop.f32.mrb[233].mxu1  ;;  %11724 = vmatmul.mubr.msk.f32.gmra.mrb[82].mxu1 %vm5618_vm8, %v7581_v63  ;;  %v7583_v28 = vld [vmem:[#allocation3 + $0x65] sm:$0xff] }
 0x797   : > { %11726 = vmatprep.mubr.msk.f32.mxu1 %vm12748_vm9, %v12747_v43  ;;  %v7591_v63 = vld [vmem:[#allocation3 + $0xa5] sm:$0xff] }
 0x799   : > { %v7134_v41 = vpop.f32.mrb[234].mxu1 }
 0x79a   : > { %v15287_v11 = vadd.f32 %v7134_v41, %v15097_v19  ;;  %v11565_v40 = vpop.f32.mrb[235].mxu1  ;;  %11727 = vmatmul.mubr.msk.f32.gmra.mrb[84].mxu1 %vm5618_vm8, %v7582_v29  ;;  %v7584_v19 = vld [vmem:[#allocation3 + $0x6d] sm:$0xff] }
 0x79b   : > { %11729 = vmatprep.mubr.msk.f32.mxu1 %vm12748_vm9, %v12747_v43  ;;  %v7592_v29 = vld [vmem:[#allocation3 + $0xad] sm:$0xff] }
 0x79d   : > { %v7139_v3 = vpop.f32.mrb[236].mxu1 }
 0x79e   : > { %v15293_v17 = vadd.f32 %v7139_v3, %v15103_v12  ;;  %v11568_v21 = vpop.f32.mrb[237].mxu1  ;;  %11730 = vmatmul.mubr.msk.f32.gmra.mrb[86].mxu1 %vm5618_vm8, %v7583_v28  ;;  %v7585_v12 = vld [vmem:[#allocation3 + $0x75] sm:$0xff] }
 0x79f   : > { %11732 = vmatprep.mubr.msk.f32.mxu1 %vm12748_vm9, %v12747_v43  ;;  %v7593_v28 = vld [vmem:[#allocation3 + $0xb5] sm:$0xff] }
 0x7a1   : > { %v7144_v37 = vpop.f32.mrb[238].mxu1 }
 0x7a2   : > { %v15299_v53 = vadd.f32 %v7144_v37, %v15109_v10  ;;  %v11571_v33 = vpop.f32.mrb[239].mxu1  ;;  %11733 = vmatmul.mubr.msk.f32.gmra.mrb[88].mxu1 %vm5618_vm8, %v7584_v19  ;;  %v7586_v10 = vld [vmem:[#allocation3 + $0x7d] sm:$0xff] }
 0x7a3   : > { %11735 = vmatprep.mubr.msk.f32.mxu1 %vm12748_vm9, %v12747_v43  ;;  %v7594_v19 = vld [vmem:[#allocation3 + $0xbd] sm:$0xff] }
 0x7a5   : > { %v7149_v57 = vpop.f32.mrb[240].mxu1 }
 0x7a6   : > { %v15305_v31 = vadd.f32 %v7149_v57, %v15115_v51  ;;  %v11574_v13 = vpop.f32.mrb[241].mxu1  ;;  %11736 = vmatmul.mubr.msk.f32.gmra.mrb[90].mxu1 %vm5618_vm8, %v7585_v12  ;;  %v7587_v51 = vld [vmem:[#allocation3 + $0x85] sm:$0xff] }
 0x7a7   : > { %11738 = vmatprep.mubr.msk.f32.mxu1 %vm12748_vm9, %v12747_v43  ;;  %v7595_v12 = vld [vmem:[#allocation3 + $0xc5] sm:$0xff] }
 0x7a9   : > { %v7154_v1 = vpop.f32.mrb[242].mxu1 }
 0x7aa   : > { %v15311_v20 = vadd.f32 %v7154_v1, %v15121_v55  ;;  %v11577_v15 = vpop.f32.mrb[243].mxu1  ;;  %11739 = vmatmul.mubr.msk.f32.gmra.mrb[92].mxu1 %vm5618_vm8, %v7586_v10  ;;  %v7588_v55 = vld [vmem:[#allocation3 + $0x8d] sm:$0xff] }
 0x7ab   : > { %11741 = vmatprep.mubr.msk.f32.mxu1 %vm12748_vm9, %v12747_v43  ;;  %v7596_v10 = vld [vmem:[#allocation3 + $0xcd] sm:$0xff] }
 0x7ad   : > { %v7159_v18 = vpop.f32.mrb[244].mxu1 }
 0x7ae   : > { %v15317_v34 = vadd.f32 %v7159_v18, %v15127_v14  ;;  %v11580_v4 = vpop.f32.mrb[245].mxu1  ;;  %11742 = vmatmul.mubr.msk.f32.gmra.mrb[94].mxu1 %vm5618_vm8, %v7587_v51  ;;  %v7589_v14 = vld [vmem:[#allocation3 + $0x95] sm:$0xff] }
 0x7af   : > { %11744 = vmatprep.mubr.msk.f32.mxu1 %vm12748_vm9, %v12747_v43  ;;  %v7597_v51 = vld [vmem:[#allocation3 + $0xd5] sm:$0xff] }
 0x7b1   : > { %v7164_v47 = vpop.f32.mrb[246].mxu1 }
 0x7b2   : > { %v15323_v6 = vadd.f32 %v7164_v47, %v15133_v8  ;;  %v11583_v44 = vpop.f32.mrb[247].mxu1  ;;  %11745 = vmatmul.mubr.msk.f32.gmra.mrb[96].mxu1 %vm5618_vm8, %v7588_v55  ;;  %v7590_v8 = vld [vmem:[#allocation3 + $0x9d] sm:$0xff] }
 0x7b3   : > { %11747 = vmatprep.mubr.msk.f32.mxu1 %vm12748_vm9, %v12747_v43  ;;  %v7598_v55 = vld [vmem:[#allocation3 + $0xdd] sm:$0xff] }
 0x7b5   : > { %v7169_v45 = vpop.f32.mrb[248].mxu1 }
 0x7b6   : > { %v11586_v60 = vpop.f32.mrb[249].mxu1  ;;  %11748 = vmatmul.mubr.msk.f32.gmra.mrb[98].mxu1 %vm5618_vm8, %v7589_v14  ;;  %v15330_v32 = vadd.f32 %v7169_v45, %v15139_v49  ;;  %v7599_v14 = vld [vmem:[#allocation3 + $0xe5] sm:$0xff] }
 0x7b7   : > { %11750 = vmatprep.mubr.msk.f32.mxu1 %vm12748_vm9, %v12747_v43 }
 0x7b9   : > { %v7174_v48 = vpop.f32.mrb[250].mxu1 }
 0x7ba   : > { %v11589_v36 = vpop.f32.mrb[251].mxu1  ;;  %11751 = vmatmul.mubr.msk.f32.gmra.mrb[100].mxu1 %vm5618_vm8, %v7590_v8  ;;  %v15336_v42 = vadd.f32 %v7174_v48, %v15145_v25  ;;  %v7600_v8 = vld [vmem:[#allocation3 + $0xed] sm:$0xff] }
 0x7bb   : > { %11753 = vmatprep.mubr.msk.f32.mxu1 %vm12748_vm9, %v12747_v43 }
 0x7bd   : > { %v7179_v52 = vpop.f32.mrb[252].mxu1 }
 0x7be   : > { %v11592_v30 = vpop.f32.mrb[253].mxu1  ;;  %11754 = vmatmul.mubr.msk.f32.gmra.mrb[102].mxu1 %vm5618_vm8, %v7591_v63  ;;  %v15342_v49 = vadd.f32 %v7179_v52, %v15151_v23  ;;  %v7601_v63 = vld [vmem:[#allocation3 + $0xf5] sm:$0xff] }
 0x7bf   : > { %11756 = vmatprep.mubr.msk.f32.mxu1 %vm12748_vm9, %v12747_v43 }
 0x7c1   : > { %v7184_v41 = vpop.f32.mrb[254].mxu1 }
 0x7c2   : > { %v11595_v40 = vpop.f32.mrb[255].mxu1  ;;  %11757 = vmatmul.mubr.msk.f32.gmra.mrb[104].mxu1 %vm5618_vm8, %v7592_v29  ;;  %v15348_v25 = vadd.f32 %v7184_v41, %v15157_v56  ;;  %v12673_v41 = vld [vmem:[%s16180_s3 + $0x38] sm:$0xff]   ;;  %v7923_v29 = vld [vmem:[#allocation3 + $0x6] sm:$0xff] }
 0x7c3   : > { %11759 = vmatprep.mubr.msk.f32.mxu1 %vm12748_vm9, %v12747_v43 }
 0x7c5   : > { %v7386_v3 = vpop.f32.mrb[4].mxu1 }
 0x7c6   : > { %v11600_v21 = vpop.f32.mrb[5].mxu1  ;;  %11760 = vmatmul.mubr.msk.f32.gmra.mrb[106].mxu1 %vm5618_vm8, %v7593_v28  ;;  %v15354_v23 = vadd.f32 %v7386_v3, %v15163_v5  ;;  %v7924_v28 = vld [vmem:[#allocation3 + $0xe] sm:$0xff] }
 0x7c7   : > { %11762 = vmatprep.mubr.msk.f32.mxu1 %vm12748_vm9, %v12747_v43 }
 0x7c9   : > { %v7391_v37 = vpop.f32.mrb[6].mxu1 }
 0x7ca   : > { %v11603_v33 = vpop.f32.mrb[7].mxu1  ;;  %11763 = vmatmul.mubr.msk.f32.gmra.mrb[108].mxu1 %vm5618_vm8, %v7594_v19  ;;  %v15360_v56 = vadd.f32 %v7391_v37, %v15169_v59 }
 0x7cb   : > { %11765 = vmatprep.mubr.msk.f32.mxu1 %vm12748_vm9, %v12747_v43 }
 0x7cd   : > { %v7396_v57 = vpop.f32.mrb[0].mxu1 }
 0x7ce   : > { %v11606_v13 = vpop.f32.mrb[1].mxu1  ;;  %11766 = vmatmul.mubr.msk.f32.gmra.mrb[110].mxu1 %vm5618_vm8, %v7595_v12  ;;  %v15366_v5 = vadd.f32 %v7396_v57, %v15175_v38 }
 0x7cf   : > { %11768 = vmatprep.mubr.msk.f32.mxu1 %vm12748_vm9, %v12747_v43  ;;  %v7926_v13 = vld [vmem:[#allocation3 + $0x1e] sm:$0xff] }
 0x7d1   : > { %v7401_v1 = vpop.f32.mrb[2].mxu1 }
 0x7d2   : > { %v11609_v15 = vpop.f32.mrb[3].mxu1  ;;  %11769 = vmatmul.mubr.msk.f32.gmra.mrb[112].mxu1 %vm5618_vm8, %v7596_v10  ;;  %v15372_v59 = vadd.f32 %v7401_v1, %v15181_v24 }
 0x7d3   : > { %11771 = vmatprep.mubr.msk.f32.mxu1 %vm12748_vm9, %v12747_v43  ;;  %v7927_v15 = vld [vmem:[#allocation3 + $0x26] sm:$0xff] }
 0x7d5   : > { %v7406_v18 = vpop.f32.mrb[8].mxu1 }
 0x7d6   : > { %v11612_v4 = vpop.f32.mrb[9].mxu1  ;;  %11772 = vmatmul.mubr.msk.f32.gmra.mrb[114].mxu1 %vm5618_vm8, %v7597_v51  ;;  %v15378_v38 = vadd.f32 %v7406_v18, %v15187_v62 }
 0x7d7   : > { %11774 = vmatprep.mubr.msk.f32.mxu1 %vm12748_vm9, %v12747_v43  ;;  %v7928_v4 = vld [vmem:[#allocation3 + $0x2e] sm:$0xff] }
 0x7d9   : > { %v7411_v47 = vpop.f32.mrb[10].mxu1 }
 0x7da   : > { %v11615_v44 = vpop.f32.mrb[11].mxu1  ;;  %11775 = vmatmul.mubr.msk.f32.gmra.mrb[116].mxu1 %vm5618_vm8, %v7598_v55  ;;  %v15384_v24 = vadd.f32 %v7411_v47, %v15193_v54 }
 0x7db   : > { %11777 = vmatprep.mubr.msk.f32.mxu1 %vm12748_vm9, %v12747_v43  ;;  %v7929_v44 = vld [vmem:[#allocation3 + $0x36] sm:$0xff] }
 0x7dd   : > { %v7416_v45 = vpop.f32.mrb[12].mxu1 }
 0x7de   : > { %v11618_v60 = vpop.f32.mrb[13].mxu1  ;;  %11778 = vmatmul.mubr.msk.f32.gmra.mrb[118].mxu1 %vm5618_vm8, %v7599_v14  ;;  %v15390_v62 = vadd.f32 %v7416_v45, %v15199_v27 }
 0x7df   : > { %11780 = vmatprep.mubr.msk.f32.mxu1 %vm12748_vm9, %v12747_v43  ;;  %v7930_v60 = vld [vmem:[#allocation3 + $0x3e] sm:$0xff] }
 0x7e1   : > { %v7421_v48 = vpop.f32.mrb[14].mxu1 }
 0x7e2   : > { %v11621_v36 = vpop.f32.mrb[15].mxu1  ;;  %11781 = vmatmul.mubr.msk.f32.gmra.mrb[120].mxu1 %vm5618_vm8, %v7600_v8  ;;  %v15396_v54 = vadd.f32 %v7421_v48, %v15205_v58 }
 0x7e3   : > { %11783 = vmatprep.mubr.msk.f32.mxu1 %vm12748_vm9, %v12747_v43  ;;  %v7931_v36 = vld [vmem:[#allocation3 + $0x46] sm:$0xff] }
 0x7e5   : > { %v7426_v52 = vpop.f32.mrb[16].mxu1 }
 0x7e6   : > { %v11624_v30 = vpop.f32.mrb[17].mxu1  ;;  %11784 = vmatmul.mubr.msk.f32.gmra.mrb[122].mxu1 %vm5618_vm8, %v7601_v63  ;;  %v15402_v27 = vadd.f32 %v7426_v52, %v15211_v0 }
 0x7e7   : > { %11788 = vmatprep.mubr.msk.f32.mxu1 %vm12748_vm9, %v12747_v43  ;;  %v7932_v30 = vld [vmem:[#allocation3 + $0x4e] sm:$0xff] }
 0x7e9   : > { %v7431_v58 = vpop.f32.mrb[18].mxu1 }
 0x7ea   : > { %v11627_v40 = vpop.f32.mrb[19].mxu1  ;;  %11789 = vmatmul.mubr.msk.f32.vlgmr.msra.gmra.mrb[124].mxu1 %vm5618_vm8, %v7923_v29  ;;  %v15411_v3 = vadd.f32 %v7431_v58, %v15220_v39  ;;  %v7925_v39 = vld [vmem:[#allocation3 + $0x16] sm:$0xff] }
 0x7eb   : > { %11882 = vmatpush3.bf16.msra.mxu1 %v12673_v41  ;;  %11791 = vmatprep.mubr.msk.f32.mxu1 %vm12748_vm9, %v12747_v43  ;;  %v7933_v29 = vld [vmem:[#allocation3 + $0x56] sm:$0xff] }
 0x7ec   : > { %11976 = vmatprep.subr.bf16.mxu1 %v12747_v43 }
 0x7ed   : > { %v7436_v0 = vpop.f32.mrb[20].mxu1 }
 0x7ee   : > { %v11630_v21 = vpop.f32.mrb[21].mxu1  ;;  %11792 = vmatmul.mubr.msk.f32.gmra.mrb[126].mxu1 %vm5618_vm8, %v7924_v28  ;;  %v15418_v37 = vadd.f32 %v7436_v0, %v15227_v7  ;;  %v7934_v28 = vld [vmem:[#allocation3 + $0x5e] sm:$0xff] }
 0x7ef   : > { %11794 = vmatprep.mubr.msk.f32.mxu1 %vm12748_vm9, %v12747_v43 }
 0x7f1   : > { %v7441_v19 = vpop.f32.mrb[22].mxu1 }
 0x7f2   : > { %v11633_v33 = vpop.f32.mrb[23].mxu1  ;;  %11795 = vmatmul.mubr.msk.f32.gmra.mrb[128].mxu1 %vm5618_vm8, %v7925_v39  ;;  %v15424_v57 = vadd.f32 %v7441_v19, %v15233_v26  ;;  %v7935_v39 = vld [vmem:[#allocation3 + $0x66] sm:$0xff] }
 0x7f3   : > { %11797 = vmatprep.mubr.msk.f32.mxu1 %vm12748_vm9, %v12747_v43 }
 0x7f5   : > { %v7446_v12 = vpop.f32.mrb[24].mxu1 }
 0x7f6   : > { %v11636_v1 = vpop.f32.mrb[25].mxu1  ;;  %11798 = vmatmul.mubr.msk.f32.gmra.mrb[130].mxu1 %vm5618_vm8, %v7926_v13  ;;  %v15430_v7 = vadd.f32 %v7446_v12, %v15239_v46  ;;  %v7936_v13 = vld [vmem:[#allocation3 + $0x6e] sm:$0xff] }
 0x7f7   : > { %11800 = vmatprep.mubr.msk.f32.mxu1 %vm12748_vm9, %v12747_v43 }
 0x7f9   : > { %v7451_v10 = vpop.f32.mrb[26].mxu1 }
 0x7fa   : > { %v11639_v18 = vpop.f32.mrb[27].mxu1  ;;  %11801 = vmatmul.mubr.msk.f32.gmra.mrb[132].mxu1 %vm5618_vm8, %v7927_v15  ;;  %v15436_v26 = vadd.f32 %v7451_v10, %v15245_v16  ;;  %v7937_v15 = vld [vmem:[#allocation3 + $0x76] sm:$0xff] }
 0x7fb   : > { %11803 = vmatprep.mubr.msk.f32.mxu1 %vm12748_vm9, %v12747_v43 }
 0x7fd   : > { %v7456_v51 = vpop.f32.mrb[28].mxu1 }
 0x7fe   : > { %v11642_v47 = vpop.f32.mrb[29].mxu1  ;;  %11804 = vmatmul.mubr.msk.f32.gmra.mrb[134].mxu1 %vm5618_vm8, %v7928_v4  ;;  %v15442_v46 = vadd.f32 %v7456_v51, %v15251_v22  ;;  %v7938_v4 = vld [vmem:[#allocation3 + $0x7e] sm:$0xff] }
 0x7ff   : > { %11806 = vmatprep.mubr.msk.f32.mxu1 %vm12748_vm9, %v12747_v43 }
 0x801   : > { %v7461_v55 = vpop.f32.mrb[30].mxu1 }
 0x802   : > { %v11645_v45 = vpop.f32.mrb[31].mxu1  ;;  %11807 = vmatmul.mubr.msk.f32.gmra.mrb[136].mxu1 %vm5618_vm8, %v7929_v44  ;;  %v15448_v16 = vadd.f32 %v7461_v55, %v15257_v50  ;;  %v7939_v44 = vld [vmem:[#allocation3 + $0x86] sm:$0xff] }
 0x803   : > { %11809 = vmatprep.mubr.msk.f32.mxu1 %vm12748_vm9, %v12747_v43 }
 0x805   : > { %v7466_v14 = vpop.f32.mrb[32].mxu1 }
 0x806   : > { %v11648_v48 = vpop.f32.mrb[33].mxu1  ;;  %11810 = vmatmul.mubr.msk.f32.gmra.mrb[138].mxu1 %vm5618_vm8, %v7930_v60  ;;  %v15454_v22 = vadd.f32 %v7466_v14, %v15263_v61  ;;  %v7940_v60 = vld [vmem:[#allocation3 + $0x8e] sm:$0xff] }
 0x807   : > { %11812 = vmatprep.mubr.msk.f32.mxu1 %vm12748_vm9, %v12747_v43 }
 0x809   : > { %v7471_v8 = vpop.f32.mrb[34].mxu1 }
 0x80a   : > { %v11651_v52 = vpop.f32.mrb[35].mxu1  ;;  %11813 = vmatmul.mubr.msk.f32.gmra.mrb[140].mxu1 %vm5618_vm8, %v7931_v36  ;;  %v15460_v50 = vadd.f32 %v7471_v8, %v15269_v9  ;;  %v7941_v36 = vld [vmem:[#allocation3 + $0x96] sm:$0xff] }
 0x80b   : > { %11815 = vmatprep.mubr.msk.f32.mxu1 %vm12748_vm9, %v12747_v43 }
 0x80d   : > { %v7476_v63 = vpop.f32.mrb[36].mxu1 }
 0x80e   : > { %v11654_v41 = vpop.f32.mrb[37].mxu1  ;;  %11816 = vmatmul.mubr.msk.f32.gmra.mrb[142].mxu1 %vm5618_vm8, %v7932_v30  ;;  %v15466_v61 = vadd.f32 %v7476_v63, %v15275_v35  ;;  %v7942_v30 = vld [vmem:[#allocation3 + $0x9e] sm:$0xff] }
 0x80f   : > { %11818 = vmatprep.mubr.msk.f32.mxu1 %vm12748_vm9, %v12747_v43 }
 0x811   : > { %v7481_v58 = vpop.f32.mrb[38].mxu1 }
 0x812   : > { %v11657_v40 = vpop.f32.mrb[39].mxu1  ;;  %11819 = vmatmul.mubr.msk.f32.gmra.mrb[144].mxu1 %vm5618_vm8, %v7933_v29  ;;  %v15472_v9 = vadd.f32 %v7481_v58, %v15281_v2 }
 0x813   : > { %11821 = vmatprep.mubr.msk.f32.mxu1 %vm12748_vm9, %v12747_v43 }
 0x815   : > { %v7486_v0 = vpop.f32.mrb[40].mxu1 }
 0x816   : > { %v11660_v21 = vpop.f32.mrb[41].mxu1  ;;  %11822 = vmatmul.mubr.msk.f32.gmra.mrb[146].mxu1 %vm5618_vm8, %v7934_v28  ;;  %v15478_v35 = vadd.f32 %v7486_v0, %v15287_v11 }
 0x817   : > { %11824 = vmatprep.mubr.msk.f32.mxu1 %vm12748_vm9, %v12747_v43 }
 0x819   : > { %v7491_v19 = vpop.f32.mrb[42].mxu1 }
 0x81a   : > { %v11663_v33 = vpop.f32.mrb[43].mxu1  ;;  %11825 = vmatmul.mubr.msk.f32.gmra.mrb[148].mxu1 %vm5618_vm8, %v7935_v39  ;;  %v15484_v2 = vadd.f32 %v7491_v19, %v15293_v17 }
 0x81b   : > { %11827 = vmatprep.mubr.msk.f32.mxu1 %vm12748_vm9, %v12747_v43 }
 0x81d   : > { %v7496_v12 = vpop.f32.mrb[44].mxu1 }
 0x81e   : > { %v11666_v1 = vpop.f32.mrb[45].mxu1  ;;  %11828 = vmatmul.mubr.msk.f32.gmra.mrb[150].mxu1 %vm5618_vm8, %v7936_v13  ;;  %v15490_v11 = vadd.f32 %v7496_v12, %v15299_v53 }
 0x81f   : > { %11830 = vmatprep.mubr.msk.f32.mxu1 %vm12748_vm9, %v12747_v43 }
 0x821   : > { %v7501_v10 = vpop.f32.mrb[46].mxu1 }
 0x822   : > { %v11669_v18 = vpop.f32.mrb[47].mxu1  ;;  %11831 = vmatmul.mubr.msk.f32.gmra.mrb[152].mxu1 %vm5618_vm8, %v7937_v15  ;;  %v15496_v17 = vadd.f32 %v7501_v10, %v15305_v31 }
 0x823   : > { %11833 = vmatprep.mubr.msk.f32.mxu1 %vm12748_vm9, %v12747_v43 }
 0x825   : > { %v7506_v51 = vpop.f32.mrb[48].mxu1 }
 0x826   : > { %v11672_v47 = vpop.f32.mrb[49].mxu1  ;;  %11834 = vmatmul.mubr.msk.f32.gmra.mrb[154].mxu1 %vm5618_vm8, %v7938_v4  ;;  %v15502_v53 = vadd.f32 %v7506_v51, %v15311_v20 }
 0x827   : > { %11836 = vmatprep.mubr.msk.f32.mxu1 %vm12748_vm9, %v12747_v43 }
 0x829   : > { %v7511_v55 = vpop.f32.mrb[50].mxu1 }
 0x82a   : > { %v11675_v45 = vpop.f32.mrb[51].mxu1  ;;  %11837 = vmatmul.mubr.msk.f32.gmra.mrb[156].mxu1 %vm5618_vm8, %v7939_v44  ;;  %v15508_v31 = vadd.f32 %v7511_v55, %v15317_v34 }
 0x82b   : > { %11839 = vmatprep.mubr.msk.f32.mxu1 %vm12748_vm9, %v12747_v43 }
 0x82d   : > { %v7516_v14 = vpop.f32.mrb[52].mxu1 }
 0x82e   : > { %v11678_v48 = vpop.f32.mrb[53].mxu1  ;;  %11840 = vmatmul.mubr.msk.f32.gmra.mrb[158].mxu1 %vm5618_vm8, %v7940_v60  ;;  %v15514_v20 = vadd.f32 %v7516_v14, %v15323_v6 }
 0x82f   : > { %11842 = vmatprep.mubr.msk.f32.mxu1 %vm12748_vm9, %v12747_v43 }
 0x831   : > { %v7521_v8 = vpop.f32.mrb[54].mxu1 }
 0x832   : > { %v15519_v52 = vadd.f32 %v7521_v8, %v15330_v32  ;;  %v11681_v34 = vpop.f32.mrb[55].mxu1  ;;  %11843 = vmatmul.mubr.msk.f32.gmra.mrb[160].mxu1 %vm5618_vm8, %v7941_v36  ;;  %v7943_v32 = vld [vmem:[#allocation3 + $0xa6] sm:$0xff] }
 0x833   : > { %11845 = vmatprep.mubr.msk.f32.mxu1 %vm12748_vm9, %v12747_v43 }
 0x835   : > { %v7526_v63 = vpop.f32.mrb[56].mxu1 }
 0x836   : > { %v15525_v41 = vadd.f32 %v7526_v63, %v15336_v42  ;;  %v11684_v6 = vpop.f32.mrb[57].mxu1  ;;  %11846 = vmatmul.mubr.msk.f32.gmra.mrb[162].mxu1 %vm5618_vm8, %v7942_v30  ;;  %v7944_v42 = vld [vmem:[#allocation3 + $0xae] sm:$0xff] }
 0x837   : > { %11848 = vmatprep.mubr.msk.f32.mxu1 %vm12748_vm9, %v12747_v43 }
 0x839   : > { %v7531_v58 = vpop.f32.mrb[58].mxu1 }
 0x83a   : > { %v15531_v29 = vadd.f32 %v7531_v58, %v15342_v49  ;;  %v11687_v40 = vpop.f32.mrb[59].mxu1  ;;  %11849 = vmatmul.mubr.msk.f32.gmra.mrb[164].mxu1 %vm5618_vm8, %v7943_v32  ;;  %v7945_v49 = vld [vmem:[#allocation3 + $0xb6] sm:$0xff] }
 0x83b   : > { %11851 = vmatprep.mubr.msk.f32.mxu1 %vm12748_vm9, %v12747_v43 }
 0x83d   : > { %v7536_v0 = vpop.f32.mrb[60].mxu1 }
 0x83e   : > { %v15537_v28 = vadd.f32 %v7536_v0, %v15348_v25  ;;  %v11690_v21 = vpop.f32.mrb[61].mxu1  ;;  %11852 = vmatmul.mubr.msk.f32.gmra.mrb[166].mxu1 %vm5618_vm8, %v7944_v42  ;;  %v7946_v25 = vld [vmem:[#allocation3 + $0xbe] sm:$0xff]  ;;  %v8275_v42 = vld [vmem:[#allocation3 + $0x7] sm:$0xff] }
 0x83f   : > { %11854 = vmatprep.mubr.msk.f32.mxu1 %vm12748_vm9, %v12747_v43 }
 0x841   : > { %v7738_v19 = vpop.f32.mrb[62].mxu1 }
 0x842   : > { %v15543_v39 = vadd.f32 %v7738_v19, %v15354_v23  ;;  %v11695_v33 = vpop.f32.mrb[63].mxu1  ;;  %11855 = vmatmul.mubr.msk.f32.gmra.mrb[168].mxu1 %vm5618_vm8, %v7945_v49  ;;  %v7947_v23 = vld [vmem:[#allocation3 + $0xc6] sm:$0xff]  ;;  %v8276_v49 = vld [vmem:[#allocation3 + $0xf] sm:$0xff] }
 0x843   : > { %11857 = vmatprep.mubr.msk.f32.mxu1 %vm12748_vm9, %v12747_v43 }
 0x845   : > { %v7743_v12 = vpop.f32.mrb[64].mxu1 }
 0x846   : > { %v15549_v13 = vadd.f32 %v7743_v12, %v15360_v56  ;;  %v11698_v1 = vpop.f32.mrb[65].mxu1  ;;  %11858 = vmatmul.mubr.msk.f32.gmra.mrb[170].mxu1 %vm5618_vm8, %v7946_v25  ;;  %v7948_v56 = vld [vmem:[#allocation3 + $0xce] sm:$0xff]  ;;  %v8277_v25 = vld [vmem:[#allocation3 + $0x17] sm:$0xff] }
 0x847   : > { %11860 = vmatprep.mubr.msk.f32.mxu1 %vm12748_vm9, %v12747_v43 }
 0x849   : > { %v7748_v10 = vpop.f32.mrb[66].mxu1 }
 0x84a   : > { %v15555_v15 = vadd.f32 %v7748_v10, %v15366_v5  ;;  %v11701_v18 = vpop.f32.mrb[67].mxu1  ;;  %11861 = vmatmul.mubr.msk.f32.gmra.mrb[172].mxu1 %vm5618_vm8, %v7947_v23  ;;  %v7949_v5 = vld [vmem:[#allocation3 + $0xd6] sm:$0xff] }
 0x84b   : > { %11863 = vmatprep.mubr.msk.f32.mxu1 %vm12748_vm9, %v12747_v43 }
 0x84d   : > { %v7753_v51 = vpop.f32.mrb[68].mxu1 }
 0x84e   : > { %v15561_v4 = vadd.f32 %v7753_v51, %v15372_v59  ;;  %v11704_v47 = vpop.f32.mrb[69].mxu1  ;;  %11864 = vmatmul.mubr.msk.f32.gmra.mrb[174].mxu1 %vm5618_vm8, %v7948_v56  ;;  %v7950_v59 = vld [vmem:[#allocation3 + $0xde] sm:$0xff] }
 0x84f   : > { %11866 = vmatprep.mubr.msk.f32.mxu1 %vm12748_vm9, %v12747_v43 }
 0x851   : > { %v7758_v55 = vpop.f32.mrb[70].mxu1 }
 0x852   : > { %v15567_v44 = vadd.f32 %v7758_v55, %v15378_v38  ;;  %v11707_v45 = vpop.f32.mrb[71].mxu1  ;;  %11867 = vmatmul.mubr.msk.f32.gmra.mrb[176].mxu1 %vm5618_vm8, %v7949_v5  ;;  %v7951_v38 = vld [vmem:[#allocation3 + $0xe6] sm:$0xff] }
 0x853   : > { %11869 = vmatprep.mubr.msk.f32.mxu1 %vm12748_vm9, %v12747_v43 }
 0x855   : > { %v7763_v14 = vpop.f32.mrb[72].mxu1 }
 0x856   : > { %v15573_v60 = vadd.f32 %v7763_v14, %v15384_v24  ;;  %v11710_v48 = vpop.f32.mrb[73].mxu1  ;;  %11870 = vmatmul.mubr.msk.f32.gmra.mrb[178].mxu1 %vm5618_vm8, %v7950_v59  ;;  %v7952_v24 = vld [vmem:[#allocation3 + $0xee] sm:$0xff] }
 0x857   : > { %11872 = vmatprep.mubr.msk.f32.mxu1 %vm12748_vm9, %v12747_v43 }
 0x859   : > { %v7768_v8 = vpop.f32.mrb[74].mxu1 }
 0x85a   : > { %v15579_v36 = vadd.f32 %v7768_v8, %v15390_v62  ;;  %v11713_v34 = vpop.f32.mrb[75].mxu1  ;;  %11873 = vmatmul.mubr.msk.f32.gmra.mrb[180].mxu1 %vm5618_vm8, %v7951_v38  ;;  %v7953_v62 = vld [vmem:[#allocation3 + $0xf6] sm:$0xff] }
 0x85b   : > { %11875 = vmatprep.mubr.msk.f32.mxu1 %vm12748_vm9, %v12747_v43 }
 0x85d   : > { %v7773_v63 = vpop.f32.mrb[76].mxu1 }
 0x85e   : > { %v15585_v30 = vadd.f32 %v7773_v63, %v15396_v54  ;;  %v11716_v6 = vpop.f32.mrb[77].mxu1  ;;  %11876 = vmatmul.mubr.msk.f32.gmra.mrb[182].mxu1 %vm5618_vm8, %v7952_v24  ;;  %v12674_v54 = vld [vmem:[%s16180_s3 + $0x40] sm:$0xff]  }
 0x85f   : > { %11878 = vmatprep.mubr.msk.f32.mxu1 %vm12748_vm9, %v12747_v43 }
 0x861   : > { %v7778_v58 = vpop.f32.mrb[78].mxu1 }
 0x862   : > { %v15591_v32 = vadd.f32 %v7778_v58, %v15402_v27  ;;  %v11719_v40 = vpop.f32.mrb[79].mxu1  ;;  %11879 = vmatmul.mubr.msk.f32.gmra.mrb[184].mxu1 %vm5618_vm8, %v7953_v62 }
 0x863   : > { %11883 = vmatprep.mubr.msk.f32.mxu1 %vm12748_vm9, %v12747_v43 }
 0x865   : > { %v7783_v0 = vpop.f32.mrb[80].mxu1 }
 0x866   : > { %v15600_v21 = vadd.f32 %v7783_v0, %v15411_v3  ;;  %v11722_v19 = vpop.f32.mrb[81].mxu1  ;;  %11884 = vmatmul.mubr.msk.f32.vlgmr.msra.gmra.mrb[186].mxu1 %vm5618_vm8, %v8275_v42 }
 0x867   : > { %11977 = vmatpush3.bf16.msra.mxu1 %v12674_v54  ;;  %11886 = vmatprep.mubr.msk.f32.mxu1 %vm12748_vm9, %v12747_v43 }
 0x869   : > { %v7788_v27 = vpop.f32.mrb[82].mxu1 }
 0x86a   : > { %v15606_v33 = vadd.f32 %v7788_v27, %v15418_v37  ;;  %v11725_v12 = vpop.f32.mrb[83].mxu1  ;;  %11887 = vmatmul.mubr.msk.f32.gmra.mrb[188].mxu1 %vm5618_vm8, %v8276_v49  ;;  %v8278_v37 = vld [vmem:[#allocation3 + $0x1f] sm:$0xff] }
 0x86b   : > { %11889 = vmatprep.mubr.msk.f32.mxu1 %vm12748_vm9, %v12747_v43 }
 0x86d   : > { %v7793_v3 = vpop.f32.mrb[84].mxu1 }
 0x86e   : > { %v15612_v1 = vadd.f32 %v7793_v3, %v15424_v57  ;;  %v11728_v10 = vpop.f32.mrb[85].mxu1  ;;  %11890 = vmatmul.mubr.msk.f32.gmra.mrb[190].mxu1 %vm5618_vm8, %v8277_v25  ;;  %v8279_v57 = vld [vmem:[#allocation3 + $0x27] sm:$0xff] }
 0x86f   : > { %11892 = vmatprep.mubr.msk.f32.mxu1 %vm12748_vm9, %v12747_v43 }
 0x871   : > { %v7798_v23 = vpop.f32.mrb[86].mxu1 }
 0x872   : > { %v15618_v18 = vadd.f32 %v7798_v23, %v15430_v7  ;;  %v11731_v51 = vpop.f32.mrb[87].mxu1  ;;  %11893 = vmatmul.mubr.msk.f32.gmra.mrb[192].mxu1 %vm5618_vm8, %v8278_v37  ;;  %v8280_v7 = vld [vmem:[#allocation3 + $0x2f] sm:$0xff] }
 0x873   : > { %11895 = vmatprep.mubr.msk.f32.mxu1 %vm12748_vm9, %v12747_v43 }
 0x875   : > { %v7803_v56 = vpop.f32.mrb[88].mxu1 }
 0x876   : > { %v15624_v47 = vadd.f32 %v7803_v56, %v15436_v26  ;;  %v11734_v55 = vpop.f32.mrb[89].mxu1  ;;  %11896 = vmatmul.mubr.msk.f32.gmra.mrb[194].mxu1 %vm5618_vm8, %v8279_v57  ;;  %v8281_v26 = vld [vmem:[#allocation3 + $0x37] sm:$0xff] }
 0x877   : > { %11898 = vmatprep.mubr.msk.f32.mxu1 %vm12748_vm9, %v12747_v43 }
 0x879   : > { %v7808_v5 = vpop.f32.mrb[90].mxu1 }
 0x87a   : > { %v15630_v45 = vadd.f32 %v7808_v5, %v15442_v46  ;;  %v11737_v14 = vpop.f32.mrb[91].mxu1  ;;  %11899 = vmatmul.mubr.msk.f32.gmra.mrb[196].mxu1 %vm5618_vm8, %v8280_v7  ;;  %v8282_v46 = vld [vmem:[#allocation3 + $0x3f] sm:$0xff] }
 0x87b   : > { %11901 = vmatprep.mubr.msk.f32.mxu1 %vm12748_vm9, %v12747_v43 }
 0x87d   : > { %v7813_v59 = vpop.f32.mrb[92].mxu1 }
 0x87e   : > { %v15636_v48 = vadd.f32 %v7813_v59, %v15448_v16  ;;  %v11740_v8 = vpop.f32.mrb[93].mxu1  ;;  %11902 = vmatmul.mubr.msk.f32.gmra.mrb[198].mxu1 %vm5618_vm8, %v8281_v26  ;;  %v8283_v16 = vld [vmem:[#allocation3 + $0x47] sm:$0xff] }
 0x87f   : > { %11904 = vmatprep.mubr.msk.f32.mxu1 %vm12748_vm9, %v12747_v43 }
 0x881   : > { %v7818_v38 = vpop.f32.mrb[94].mxu1 }
 0x882   : > { %v15642_v34 = vadd.f32 %v7818_v38, %v15454_v22  ;;  %v11743_v63 = vpop.f32.mrb[95].mxu1  ;;  %11905 = vmatmul.mubr.msk.f32.gmra.mrb[200].mxu1 %vm5618_vm8, %v8282_v46  ;;  %v8284_v22 = vld [vmem:[#allocation3 + $0x4f] sm:$0xff] }
 0x883   : > { %11907 = vmatprep.mubr.msk.f32.mxu1 %vm12748_vm9, %v12747_v43 }
 0x885   : > { %v7823_v24 = vpop.f32.mrb[96].mxu1 }
 0x886   : > { %v15648_v6 = vadd.f32 %v7823_v24, %v15460_v50  ;;  %v11746_v58 = vpop.f32.mrb[97].mxu1  ;;  %11908 = vmatmul.mubr.msk.f32.gmra.mrb[202].mxu1 %vm5618_vm8, %v8283_v16  ;;  %v8285_v50 = vld [vmem:[#allocation3 + $0x57] sm:$0xff] }
 0x887   : > { %11910 = vmatprep.mubr.msk.f32.mxu1 %vm12748_vm9, %v12747_v43 }
 0x889   : > { %v7828_v62 = vpop.f32.mrb[98].mxu1 }
 0x88a   : > { %v15654_v40 = vadd.f32 %v7828_v62, %v15466_v61  ;;  %v11749_v54 = vpop.f32.mrb[99].mxu1  ;;  %11911 = vmatmul.mubr.msk.f32.gmra.mrb[204].mxu1 %vm5618_vm8, %v8284_v22  ;;  %v8286_v61 = vld [vmem:[#allocation3 + $0x5f] sm:$0xff] }
 0x88b   : > { %11913 = vmatprep.mubr.msk.f32.mxu1 %vm12748_vm9, %v12747_v43 }
 0x88d   : > { %v7833_v0 = vpop.f32.mrb[100].mxu1 }
 0x88e   : > { %v15660_v42 = vadd.f32 %v7833_v0, %v15472_v9  ;;  %v11752_v19 = vpop.f32.mrb[101].mxu1  ;;  %11914 = vmatmul.mubr.msk.f32.gmra.mrb[206].mxu1 %vm5618_vm8, %v8285_v50  ;;  %v8287_v9 = vld [vmem:[#allocation3 + $0x67] sm:$0xff] }
 0x88f   : > { %11916 = vmatprep.mubr.msk.f32.mxu1 %vm12748_vm9, %v12747_v43 }
 0x891   : > { %v7838_v27 = vpop.f32.mrb[102].mxu1 }
 0x892   : > { %v15666_v49 = vadd.f32 %v7838_v27, %v15478_v35  ;;  %v11755_v12 = vpop.f32.mrb[103].mxu1  ;;  %11917 = vmatmul.mubr.msk.f32.gmra.mrb[208].mxu1 %vm5618_vm8, %v8286_v61  ;;  %v8288_v35 = vld [vmem:[#allocation3 + $0x6f] sm:$0xff] }
 0x893   : > { %11919 = vmatprep.mubr.msk.f32.mxu1 %vm12748_vm9, %v12747_v43 }
 0x895   : > { %v7843_v3 = vpop.f32.mrb[104].mxu1 }
 0x896   : > { %v15672_v25 = vadd.f32 %v7843_v3, %v15484_v2  ;;  %v11758_v10 = vpop.f32.mrb[105].mxu1  ;;  %11920 = vmatmul.mubr.msk.f32.gmra.mrb[210].mxu1 %vm5618_vm8, %v8287_v9  ;;  %v8289_v2 = vld [vmem:[#allocation3 + $0x77] sm:$0xff] }
 0x897   : > { %11922 = vmatprep.mubr.msk.f32.mxu1 %vm12748_vm9, %v12747_v43 }
 0x899   : > { %v7848_v23 = vpop.f32.mrb[106].mxu1 }
 0x89a   : > { %v15678_v37 = vadd.f32 %v7848_v23, %v15490_v11  ;;  %v11761_v51 = vpop.f32.mrb[107].mxu1  ;;  %11923 = vmatmul.mubr.msk.f32.gmra.mrb[212].mxu1 %vm5618_vm8, %v8288_v35  ;;  %v8290_v11 = vld [vmem:[#allocation3 + $0x7f] sm:$0xff] }
 0x89b   : > { %11925 = vmatprep.mubr.msk.f32.mxu1 %vm12748_vm9, %v12747_v43 }
 0x89d   : > { %v7853_v56 = vpop.f32.mrb[108].mxu1 }
 0x89e   : > { %v15684_v57 = vadd.f32 %v7853_v56, %v15496_v17  ;;  %v11764_v55 = vpop.f32.mrb[109].mxu1  ;;  %11926 = vmatmul.mubr.msk.f32.gmra.mrb[214].mxu1 %vm5618_vm8, %v8289_v2  ;;  %v8291_v17 = vld [vmem:[#allocation3 + $0x87] sm:$0xff] }
 0x89f   : > { %11928 = vmatprep.mubr.msk.f32.mxu1 %vm12748_vm9, %v12747_v43 }
 0x8a1   : > { %v7858_v5 = vpop.f32.mrb[110].mxu1 }
 0x8a2   : > { %v15690_v7 = vadd.f32 %v7858_v5, %v15502_v53  ;;  %v11767_v14 = vpop.f32.mrb[111].mxu1  ;;  %11929 = vmatmul.mubr.msk.f32.gmra.mrb[216].mxu1 %vm5618_vm8, %v8290_v11  ;;  %v8292_v53 = vld [vmem:[#allocation3 + $0x8f] sm:$0xff] }
 0x8a3   : > { %11931 = vmatprep.mubr.msk.f32.mxu1 %vm12748_vm9, %v12747_v43 }
 0x8a5   : > { %v7863_v59 = vpop.f32.mrb[112].mxu1 }
 0x8a6   : > { %v15696_v26 = vadd.f32 %v7863_v59, %v15508_v31  ;;  %v11770_v8 = vpop.f32.mrb[113].mxu1  ;;  %11932 = vmatmul.mubr.msk.f32.gmra.mrb[218].mxu1 %vm5618_vm8, %v8291_v17  ;;  %v8293_v31 = vld [vmem:[#allocation3 + $0x97] sm:$0xff] }
 0x8a7   : > { %11934 = vmatprep.mubr.msk.f32.mxu1 %vm12748_vm9, %v12747_v43 }
 0x8a9   : > { %v7868_v38 = vpop.f32.mrb[114].mxu1 }
 0x8aa   : > { %v15702_v46 = vadd.f32 %v7868_v38, %v15514_v20  ;;  %v11773_v63 = vpop.f32.mrb[115].mxu1  ;;  %11935 = vmatmul.mubr.msk.f32.gmra.mrb[220].mxu1 %vm5618_vm8, %v8292_v53  ;;  %v8294_v20 = vld [vmem:[#allocation3 + $0x9f] sm:$0xff] }
 0x8ab   : > { %11937 = vmatprep.mubr.msk.f32.mxu1 %vm12748_vm9, %v12747_v43 }
 0x8ad   : > { %v7873_v24 = vpop.f32.mrb[116].mxu1 }
 0x8ae   : > { %v15708_v16 = vadd.f32 %v7873_v24, %v15519_v52  ;;  %v11776_v58 = vpop.f32.mrb[117].mxu1  ;;  %11938 = vmatmul.mubr.msk.f32.gmra.mrb[222].mxu1 %vm5618_vm8, %v8293_v31  ;;  %v8295_v52 = vld [vmem:[#allocation3 + $0xa7] sm:$0xff] }
 0x8af   : > { %11940 = vmatprep.mubr.msk.f32.mxu1 %vm12748_vm9, %v12747_v43 }
 0x8b1   : > { %v7878_v62 = vpop.f32.mrb[118].mxu1 }
 0x8b2   : > { %v15714_v22 = vadd.f32 %v7878_v62, %v15525_v41  ;;  %v11779_v54 = vpop.f32.mrb[119].mxu1  ;;  %11941 = vmatmul.mubr.msk.f32.gmra.mrb[224].mxu1 %vm5618_vm8, %v8294_v20  ;;  %v8296_v41 = vld [vmem:[#allocation3 + $0xaf] sm:$0xff] }
 0x8b3   : > { %11943 = vmatprep.mubr.msk.f32.mxu1 %vm12748_vm9, %v12747_v43 }
 0x8b5   : > { %v7883_v0 = vpop.f32.mrb[120].mxu1 }
 0x8b6   : > { %v15720_v50 = vadd.f32 %v7883_v0, %v15531_v29  ;;  %v11782_v19 = vpop.f32.mrb[121].mxu1  ;;  %11944 = vmatmul.mubr.msk.f32.gmra.mrb[226].mxu1 %vm5618_vm8, %v8295_v52  ;;  %v8297_v29 = vld [vmem:[#allocation3 + $0xb7] sm:$0xff] }
 0x8b7   : > { %11946 = vmatprep.mubr.msk.f32.mxu1 %vm12748_vm9, %v12747_v43 }
 0x8b9   : > { %v7888_v27 = vpop.f32.mrb[122].mxu1 }
 0x8ba   : > { %v15726_v61 = vadd.f32 %v7888_v27, %v15537_v28  ;;  %v11785_v12 = vpop.f32.mrb[123].mxu1  ;;  %11947 = vmatmul.mubr.msk.f32.gmra.mrb[228].mxu1 %vm5618_vm8, %v8296_v41  ;;  %v8298_v28 = vld [vmem:[#allocation3 + $0xbf] sm:$0xff] }
 0x8bb   : > { %11949 = vmatprep.mubr.msk.f32.mxu1 %vm12748_vm9, %v12747_v43 }
 0x8bd   : > { %v8090_v3 = vpop.f32.mrb[124].mxu1 }
 0x8be   : > { %v15732_v9 = vadd.f32 %v8090_v3, %v15543_v39  ;;  %v11790_v10 = vpop.f32.mrb[125].mxu1  ;;  %11950 = vmatmul.mubr.msk.f32.gmra.mrb[230].mxu1 %vm5618_vm8, %v8297_v29  ;;  %v8299_v39 = vld [vmem:[#allocation3 + $0xc7] sm:$0xff] }
 0x8bf   : > { %11952 = vmatprep.mubr.msk.f32.mxu1 %vm12748_vm9, %v12747_v43 }
 0x8c1   : > { %v8095_v23 = vpop.f32.mrb[126].mxu1 }
 0x8c2   : > { %v15738_v35 = vadd.f32 %v8095_v23, %v15549_v13  ;;  %v11793_v51 = vpop.f32.mrb[127].mxu1  ;;  %11953 = vmatmul.mubr.msk.f32.gmra.mrb[232].mxu1 %vm5618_vm8, %v8298_v28  ;;  %v8300_v13 = vld [vmem:[#allocation3 + $0xcf] sm:$0xff] }
 0x8c3   : > { %11955 = vmatprep.mubr.msk.f32.mxu1 %vm12748_vm9, %v12747_v43 }
 0x8c5   : > { %v8100_v56 = vpop.f32.mrb[128].mxu1 }
 0x8c6   : > { %v15744_v2 = vadd.f32 %v8100_v56, %v15555_v15  ;;  %v11796_v55 = vpop.f32.mrb[129].mxu1  ;;  %11956 = vmatmul.mubr.msk.f32.gmra.mrb[234].mxu1 %vm5618_vm8, %v8299_v39  ;;  %v8301_v15 = vld [vmem:[#allocation3 + $0xd7] sm:$0xff] }
 0x8c7   : > { %11958 = vmatprep.mubr.msk.f32.mxu1 %vm12748_vm9, %v12747_v43 }
 0x8c9   : > { %v8105_v5 = vpop.f32.mrb[130].mxu1 }
 0x8ca   : > { %v15750_v11 = vadd.f32 %v8105_v5, %v15561_v4  ;;  %v11799_v14 = vpop.f32.mrb[131].mxu1  ;;  %11959 = vmatmul.mubr.msk.f32.gmra.mrb[236].mxu1 %vm5618_vm8, %v8300_v13  ;;  %v8302_v4 = vld [vmem:[#allocation3 + $0xdf] sm:$0xff] }
 0x8cb   : > { %11961 = vmatprep.mubr.msk.f32.mxu1 %vm12748_vm9, %v12747_v43 }
 0x8cd   : > { %v8110_v59 = vpop.f32.mrb[132].mxu1 }
 0x8ce   : > { %v15756_v17 = vadd.f32 %v8110_v59, %v15567_v44  ;;  %v11802_v8 = vpop.f32.mrb[133].mxu1  ;;  %11962 = vmatmul.mubr.msk.f32.gmra.mrb[238].mxu1 %vm5618_vm8, %v8301_v15  ;;  %v8303_v44 = vld [vmem:[#allocation3 + $0xe7] sm:$0xff] }
 0x8cf   : > { %11964 = vmatprep.mubr.msk.f32.mxu1 %vm12748_vm9, %v12747_v43 }
 0x8d1   : > { %v8115_v38 = vpop.f32.mrb[134].mxu1 }
 0x8d2   : > { %v15762_v53 = vadd.f32 %v8115_v38, %v15573_v60  ;;  %v11805_v63 = vpop.f32.mrb[135].mxu1  ;;  %11965 = vmatmul.mubr.msk.f32.gmra.mrb[240].mxu1 %vm5618_vm8, %v8302_v4  ;;  %v8304_v60 = vld [vmem:[#allocation3 + $0xef] sm:$0xff] }
 0x8d3   : > { %11967 = vmatprep.mubr.msk.f32.mxu1 %vm12748_vm9, %v12747_v43 }
 0x8d5   : > { %v8120_v24 = vpop.f32.mrb[136].mxu1 }
 0x8d6   : > { %v15768_v31 = vadd.f32 %v8120_v24, %v15579_v36  ;;  %v11808_v58 = vpop.f32.mrb[137].mxu1  ;;  %11968 = vmatmul.mubr.msk.f32.gmra.mrb[242].mxu1 %vm5618_vm8, %v8303_v44  ;;  %v8305_v36 = vld [vmem:[#allocation3 + $0xf7] sm:$0xff] }
 0x8d7   : > { %11970 = vmatprep.mubr.msk.f32.mxu1 %vm12748_vm9, %v12747_v43 }
 0x8d9   : > { %v8125_v62 = vpop.f32.mrb[138].mxu1 }
 0x8da   : > { %v15774_v20 = vadd.f32 %v8125_v62, %v15585_v30  ;;  %v11811_v54 = vpop.f32.mrb[139].mxu1  ;;  %11971 = vmatmul.mubr.msk.f32.gmra.mrb[244].mxu1 %vm5618_vm8, %v8304_v60  ;;  %v8627_v30 = vld [vmem:[#allocation3 + $0x8] sm:$0xff] }
 0x8db   : > { %11973 = vmatprep.mubr.msk.f32.mxu1 %vm12748_vm9, %v12747_v43 }
 0x8dd   : > { %v8130_v0 = vpop.f32.mrb[140].mxu1 }
 0x8de   : > { %v15780_v52 = vadd.f32 %v8130_v0, %v15591_v32  ;;  %v11814_v19 = vpop.f32.mrb[141].mxu1  ;;  %11974 = vmatmul.mubr.msk.f32.gmra.mrb[246].mxu1 %vm5618_vm8, %v8305_v36  ;;  %v8628_v32 = vld [vmem:[#allocation3 + $0x10] sm:$0xff] }
 0x8df   : > { %11978 = vmatprep.mubr.msk.f32.mxu1 %vm12748_vm9, %v12747_v43 }
 0x8e1   : > { %v8135_v27 = vpop.f32.mrb[142].mxu1 }
 0x8e2   : > { %v15786_v41 = vadd.f32 %v8135_v27, %v15600_v21  ;;  %v11817_v12 = vpop.f32.mrb[143].mxu1  ;;  %11979 = vmatmul.mubr.msk.f32.vlgmr.msra.gmra.mrb[248].mxu1 %vm5618_vm8, %v8627_v30  ;;  %v8629_v21 = vld [vmem:[#allocation3 + $0x18] sm:$0xff] }
 0x8e3   : > { %11981 = vmatprep.mubr.msk.f32.mxu1 %vm12748_vm9, %v12747_v43 }
 0x8e5   : > { %v8140_v3 = vpop.f32.mrb[144].mxu1 }
 0x8e6   : > { %v15792_v29 = vadd.f32 %v8140_v3, %v15606_v33  ;;  %v11820_v10 = vpop.f32.mrb[145].mxu1  ;;  %11982 = vmatmul.mubr.msk.f32.gmra.mrb[250].mxu1 %vm5618_vm8, %v8628_v32  ;;  %v8630_v33 = vld [vmem:[#allocation3 + $0x20] sm:$0xff] }
 0x8e7   : > { %11984 = vmatprep.mubr.msk.f32.mxu1 %vm12748_vm9, %v12747_v43 }
 0x8e9   : > { %v8145_v23 = vpop.f32.mrb[146].mxu1 }
 0x8ea   : > { %v15798_v28 = vadd.f32 %v8145_v23, %v15612_v1  ;;  %v11823_v51 = vpop.f32.mrb[147].mxu1  ;;  %11985 = vmatmul.mubr.msk.f32.gmra.mrb[252].mxu1 %vm5618_vm8, %v8629_v21  ;;  %v8631_v1 = vld [vmem:[#allocation3 + $0x28] sm:$0xff] }
 0x8eb   : > { %11987 = vmatprep.mubr.msk.f32.mxu1 %vm12748_vm9, %v12747_v43 }
 0x8ed   : > { %v8150_v56 = vpop.f32.mrb[148].mxu1 }
 0x8ee   : > { %v15804_v39 = vadd.f32 %v8150_v56, %v15618_v18  ;;  %v11826_v55 = vpop.f32.mrb[149].mxu1  ;;  %11988 = vmatmul.mubr.msk.f32.gmra.mrb[254].mxu1 %vm5618_vm8, %v8630_v33  ;;  %v8632_v18 = vld [vmem:[#allocation3 + $0x30] sm:$0xff] }
 0x8ef   : > { %11990 = vmatprep.mubr.msk.f32.mxu1 %vm12748_vm9, %v12747_v43 }
 0x8f1   : > { %v8155_v5 = vpop.f32.mrb[150].mxu1 }
 0x8f2   : > { %v15810_v13 = vadd.f32 %v8155_v5, %v15624_v47  ;;  %v11829_v14 = vpop.f32.mrb[151].mxu1  ;;  %11991 = vmatmul.mubr.msk.f32.gmra.mrb[4].mxu1 %vm5618_vm8, %v8631_v1  ;;  %v8633_v47 = vld [vmem:[#allocation3 + $0x38] sm:$0xff] }
 0x8f3   : > { %11993 = vmatprep.mubr.msk.f32.mxu1 %vm12748_vm9, %v12747_v43 }
 0x8f5   : > { %v8160_v59 = vpop.f32.mrb[152].mxu1 }
 0x8f6   : > { %v15816_v15 = vadd.f32 %v8160_v59, %v15630_v45  ;;  %v11832_v8 = vpop.f32.mrb[153].mxu1  ;;  %11994 = vmatmul.mubr.msk.f32.gmra.mrb[6].mxu1 %vm5618_vm8, %v8632_v18  ;;  %v8634_v45 = vld [vmem:[#allocation3 + $0x40] sm:$0xff] }
 0x8f7   : > { %11996 = vmatprep.mubr.msk.f32.mxu1 %vm12748_vm9, %v12747_v43 }
 0x8f9   : > { %v8165_v38 = vpop.f32.mrb[154].mxu1 }
 0x8fa   : > { %v15822_v4 = vadd.f32 %v8165_v38, %v15636_v48  ;;  %v11835_v63 = vpop.f32.mrb[155].mxu1  ;;  %11997 = vmatmul.mubr.msk.f32.gmra.mrb[0].mxu1 %vm5618_vm8, %v8633_v47  ;;  %v8635_v48 = vld [vmem:[#allocation3 + $0x48] sm:$0xff] }
 0x8fb   : > { %11999 = vmatprep.mubr.msk.f32.mxu1 %vm12748_vm9, %v12747_v43 }
 0x8fd   : > { %v8170_v24 = vpop.f32.mrb[156].mxu1 }
 0x8fe   : > { %v15828_v44 = vadd.f32 %v8170_v24, %v15642_v34  ;;  %v11838_v58 = vpop.f32.mrb[157].mxu1  ;;  %12000 = vmatmul.mubr.msk.f32.gmra.mrb[2].mxu1 %vm5618_vm8, %v8634_v45  ;;  %v8636_v34 = vld [vmem:[#allocation3 + $0x50] sm:$0xff] }
 0x8ff   : > { %12002 = vmatprep.mubr.msk.f32.mxu1 %vm12748_vm9, %v12747_v43 }
 0x901   : > { %v8175_v62 = vpop.f32.mrb[158].mxu1 }
 0x902   : > { %v15834_v60 = vadd.f32 %v8175_v62, %v15648_v6  ;;  %v11841_v54 = vpop.f32.mrb[159].mxu1  ;;  %12003 = vmatmul.mubr.msk.f32.gmra.mrb[8].mxu1 %vm5618_vm8, %v8635_v48  ;;  %v8637_v6 = vld [vmem:[#allocation3 + $0x58] sm:$0xff] }
 0x903   : > { %12005 = vmatprep.mubr.msk.f32.mxu1 %vm12748_vm9, %v12747_v43 }
 0x905   : > { %v8180_v0 = vpop.f32.mrb[160].mxu1 }
 0x906   : > { %v15840_v36 = vadd.f32 %v8180_v0, %v15654_v40  ;;  %v11844_v19 = vpop.f32.mrb[161].mxu1  ;;  %12006 = vmatmul.mubr.msk.f32.gmra.mrb[10].mxu1 %vm5618_vm8, %v8636_v34  ;;  %v8638_v40 = vld [vmem:[#allocation3 + $0x60] sm:$0xff] }
 0x907   : > { %12008 = vmatprep.mubr.msk.f32.mxu1 %vm12748_vm9, %v12747_v43 }
 0x909   : > { %v8185_v27 = vpop.f32.mrb[162].mxu1 }
 0x90a   : > { %v15846_v30 = vadd.f32 %v8185_v27, %v15660_v42  ;;  %v11847_v12 = vpop.f32.mrb[163].mxu1  ;;  %12009 = vmatmul.mubr.msk.f32.gmra.mrb[12].mxu1 %vm5618_vm8, %v8637_v6  ;;  %v8639_v42 = vld [vmem:[#allocation3 + $0x68] sm:$0xff] }
 0x90b   : > { %12011 = vmatprep.mubr.msk.f32.mxu1 %vm12748_vm9, %v12747_v43 }
 0x90d   : > { %v8190_v3 = vpop.f32.mrb[164].mxu1 }
 0x90e   : > { %v15852_v32 = vadd.f32 %v8190_v3, %v15666_v49  ;;  %v11850_v10 = vpop.f32.mrb[165].mxu1  ;;  %12012 = vmatmul.mubr.msk.f32.gmra.mrb[14].mxu1 %vm5618_vm8, %v8638_v40  ;;  %v8640_v49 = vld [vmem:[#allocation3 + $0x70] sm:$0xff] }
 0x90f   : > { %12014 = vmatprep.mubr.msk.f32.mxu1 %vm12748_vm9, %v12747_v43 }
 0x911   : > { %v8195_v23 = vpop.f32.mrb[166].mxu1 }
 0x912   : > { %v15858_v21 = vadd.f32 %v8195_v23, %v15672_v25  ;;  %v11853_v51 = vpop.f32.mrb[167].mxu1  ;;  %12015 = vmatmul.mubr.msk.f32.gmra.mrb[16].mxu1 %vm5618_vm8, %v8639_v42  ;;  %v8641_v25 = vld [vmem:[#allocation3 + $0x78] sm:$0xff] }
 0x913   : > { %12017 = vmatprep.mubr.msk.f32.mxu1 %vm12748_vm9, %v12747_v43 }
 0x915   : > { %v8200_v56 = vpop.f32.mrb[168].mxu1 }
 0x916   : > { %v15864_v33 = vadd.f32 %v8200_v56, %v15678_v37  ;;  %v11856_v55 = vpop.f32.mrb[169].mxu1  ;;  %12018 = vmatmul.mubr.msk.f32.gmra.mrb[18].mxu1 %vm5618_vm8, %v8640_v49  ;;  %v8642_v37 = vld [vmem:[#allocation3 + $0x80] sm:$0xff] }
 0x917   : > { %12020 = vmatprep.mubr.msk.f32.mxu1 %vm12748_vm9, %v12747_v43  ;;  %v8650_v56 = vld [vmem:[#allocation3 + $0xc0] sm:$0xff] }
 0x919   : > { %v8205_v5 = vpop.f32.mrb[170].mxu1 }
 0x91a   : > { %v15870_v1 = vadd.f32 %v8205_v5, %v15684_v57  ;;  %v11859_v14 = vpop.f32.mrb[171].mxu1  ;;  %12021 = vmatmul.mubr.msk.f32.gmra.mrb[20].mxu1 %vm5618_vm8, %v8641_v25  ;;  %v8643_v57 = vld [vmem:[#allocation3 + $0x88] sm:$0xff] }
 0x91b   : > { %12023 = vmatprep.mubr.msk.f32.mxu1 %vm12748_vm9, %v12747_v43  ;;  %v8651_v5 = vld [vmem:[#allocation3 + $0xc8] sm:$0xff] }
 0x91d   : > { %v8210_v59 = vpop.f32.mrb[172].mxu1 }
 0x91e   : > { %v15876_v18 = vadd.f32 %v8210_v59, %v15690_v7  ;;  %v11862_v8 = vpop.f32.mrb[173].mxu1  ;;  %12024 = vmatmul.mubr.msk.f32.gmra.mrb[22].mxu1 %vm5618_vm8, %v8642_v37  ;;  %v8644_v7 = vld [vmem:[#allocation3 + $0x90] sm:$0xff] }
 0x91f   : > { %12026 = vmatprep.mubr.msk.f32.mxu1 %vm12748_vm9, %v12747_v43 }
 0x921   : > { %v8215_v38 = vpop.f32.mrb[174].mxu1 }
 0x922   : > { %v15882_v47 = vadd.f32 %v8215_v38, %v15696_v26  ;;  %v11865_v63 = vpop.f32.mrb[175].mxu1  ;;  %12027 = vmatmul.mubr.msk.f32.gmra.mrb[24].mxu1 %vm5618_vm8, %v8643_v57  ;;  %v8645_v26 = vld [vmem:[#allocation3 + $0x98] sm:$0xff] }
 0x923   : > { %12029 = vmatprep.mubr.msk.f32.mxu1 %vm12748_vm9, %v12747_v43 }
 0x925   : > { %v8220_v24 = vpop.f32.mrb[176].mxu1 }
 0x926   : > { %v15888_v45 = vadd.f32 %v8220_v24, %v15702_v46  ;;  %v11868_v58 = vpop.f32.mrb[177].mxu1  ;;  %12030 = vmatmul.mubr.msk.f32.gmra.mrb[26].mxu1 %vm5618_vm8, %v8644_v7  ;;  %v8646_v46 = vld [vmem:[#allocation3 + $0xa0] sm:$0xff] }
 0x927   : > { %12032 = vmatprep.mubr.msk.f32.mxu1 %vm12748_vm9, %v12747_v43 }
 0x929   : > { %v8225_v62 = vpop.f32.mrb[178].mxu1 }
 0x92a   : > { %v15894_v48 = vadd.f32 %v8225_v62, %v15708_v16  ;;  %v11871_v54 = vpop.f32.mrb[179].mxu1  ;;  %12033 = vmatmul.mubr.msk.f32.gmra.mrb[28].mxu1 %vm5618_vm8, %v8645_v26  ;;  %v8647_v16 = vld [vmem:[#allocation3 + $0xa8] sm:$0xff] }
 0x92b   : > { %12035 = vmatprep.mubr.msk.f32.mxu1 %vm12748_vm9, %v12747_v43 }
 0x92d   : > { %v8230_v0 = vpop.f32.mrb[180].mxu1 }
 0x92e   : > { %v15900_v34 = vadd.f32 %v8230_v0, %v15714_v22  ;;  %v11874_v19 = vpop.f32.mrb[181].mxu1  ;;  %12036 = vmatmul.mubr.msk.f32.gmra.mrb[30].mxu1 %vm5618_vm8, %v8646_v46  ;;  %v8648_v22 = vld [vmem:[#allocation3 + $0xb0] sm:$0xff] }
 0x92f   : > { %12038 = vmatprep.mubr.msk.f32.mxu1 %vm12748_vm9, %v12747_v43 }
 0x931   : > { %v8235_v27 = vpop.f32.mrb[182].mxu1 }
 0x932   : > { %v15906_v6 = vadd.f32 %v8235_v27, %v15720_v50  ;;  %v11877_v12 = vpop.f32.mrb[183].mxu1  ;;  %12039 = vmatmul.mubr.msk.f32.gmra.mrb[32].mxu1 %vm5618_vm8, %v8647_v16  ;;  %v8649_v50 = vld [vmem:[#allocation3 + $0xb8] sm:$0xff] }
 0x933   : > { %12041 = vmatprep.mubr.msk.f32.mxu1 %vm12748_vm9, %v12747_v43 }
 0x935   : > { %v8240_v3 = vpop.f32.mrb[184].mxu1 }
 0x936   : > { %v15912_v40 = vadd.f32 %v8240_v3, %v15726_v61  ;;  %v11880_v10 = vpop.f32.mrb[185].mxu1  ;;  %12042 = vmatmul.mubr.msk.f32.gmra.mrb[34].mxu1 %vm5618_vm8, %v8648_v22 }
 0x937   : > { %12044 = vmatprep.mubr.msk.f32.mxu1 %vm12748_vm9, %v12747_v43 }
 0x939   : > { %v8442_v23 = vpop.f32.mrb[186].mxu1 }
 0x93a   : > { %v15918_v42 = vadd.f32 %v8442_v23, %v15732_v9  ;;  %v11885_v51 = vpop.f32.mrb[187].mxu1  ;;  %12045 = vmatmul.mubr.msk.f32.gmra.mrb[36].mxu1 %vm5618_vm8, %v8649_v50 }
 0x93b   : > { %12047 = vmatprep.mubr.msk.f32.mxu1 %vm12748_vm9, %v12747_v43 }
 0x93d   : > { %v8447_v61 = vpop.f32.mrb[188].mxu1 }
 0x93e   : > { %v15926_v49 = vadd.f32 %v8447_v61, %v15738_v35  ;;  %v11888_v55 = vpop.f32.mrb[189].mxu1  ;;  %12048 = vmatmul.mubr.msk.f32.gmra.mrb[38].mxu1 %vm5618_vm8, %v8650_v56  ;;  %v8652_v35 = vld [vmem:[#allocation3 + $0xd0] sm:$0xff] }
 0x93f   : > { %12050 = vmatprep.mubr.msk.f32.mxu1 %vm12748_vm9, %v12747_v43 }
 0x941   : > { %v8452_v9 = vpop.f32.mrb[190].mxu1 }
 0x942   : > { %v15932_v25 = vadd.f32 %v8452_v9, %v15744_v2  ;;  %v11891_v14 = vpop.f32.mrb[191].mxu1  ;;  %12051 = vmatmul.mubr.msk.f32.gmra.mrb[40].mxu1 %vm5618_vm8, %v8651_v5  ;;  %v8653_v2 = vld [vmem:[#allocation3 + $0xd8] sm:$0xff] }
 0x943   : > { %12053 = vmatprep.mubr.msk.f32.mxu1 %vm12748_vm9, %v12747_v43 }
 0x945   : > { %v8457_v59 = vpop.f32.mrb[192].mxu1 }
 0x946   : > { %v15938_v37 = vadd.f32 %v8457_v59, %v15750_v11  ;;  %v11894_v8 = vpop.f32.mrb[193].mxu1  ;;  %12054 = vmatmul.mubr.msk.f32.gmra.mrb[42].mxu1 %vm5618_vm8, %v8652_v35  ;;  %v8654_v11 = vld [vmem:[#allocation3 + $0xe0] sm:$0xff] }
 0x947   : > { %12056 = vmatprep.mubr.msk.f32.mxu1 %vm12748_vm9, %v12747_v43 }
 0x949   : > { %v8462_v38 = vpop.f32.mrb[194].mxu1 }
 0x94a   : > { %v15944_v57 = vadd.f32 %v8462_v38, %v15756_v17  ;;  %v11897_v63 = vpop.f32.mrb[195].mxu1  ;;  %12057 = vmatmul.mubr.msk.f32.gmra.mrb[44].mxu1 %vm5618_vm8, %v8653_v2  ;;  %v8655_v17 = vld [vmem:[#allocation3 + $0xe8] sm:$0xff] }
 0x94b   : > { %12059 = vmatprep.mubr.msk.f32.mxu1 %vm12748_vm9, %v12747_v43 }
 0x94d   : > { %v8467_v24 = vpop.f32.mrb[196].mxu1 }
 0x94e   : > { %v15950_v7 = vadd.f32 %v8467_v24, %v15762_v53  ;;  %v11900_v58 = vpop.f32.mrb[197].mxu1  ;;  %12060 = vmatmul.mubr.msk.f32.gmra.mrb[46].mxu1 %vm5618_vm8, %v8654_v11  ;;  %v8656_v53 = vld [vmem:[#allocation3 + $0xf0] sm:$0xff] }
 0x94f   : > { %12062 = vmatprep.mubr.msk.f32.mxu1 %vm12748_vm9, %v12747_v43 }
 0x951   : > { %v8472_v62 = vpop.f32.mrb[198].mxu1 }
 0x952   : > { %v15956_v26 = vadd.f32 %v8472_v62, %v15768_v31  ;;  %v11903_v54 = vpop.f32.mrb[199].mxu1  ;;  %12063 = vmatmul.mubr.msk.f32.gmra.mrb[48].mxu1 %vm5618_vm8, %v8655_v17  ;;  %v8657_v31 = vld [vmem:[#allocation3 + $0xf8] sm:$0xff] }
 0x953   : > { %12065 = vmatprep.mubr.msk.f32.mxu1 %vm12748_vm9, %v12747_v43 }
 0x955   : > { %v8477_v0 = vpop.f32.mrb[200].mxu1 }
 0x956   : > { %v15962_v46 = vadd.f32 %v8477_v0, %v15774_v20  ;;  %v11906_v19 = vpop.f32.mrb[201].mxu1  ;;  %12066 = vmatmul.mubr.msk.f32.gmra.mrb[50].mxu1 %vm5618_vm8, %v8656_v53 }
 0x957   : > { %12068 = vmatprep.mubr.msk.f32.mxu1 %vm12748_vm9, %v12747_v43 }
 0x959   : > { %v8482_v27 = vpop.f32.mrb[202].mxu1 }
 0x95a   : > { %v15968_v16 = vadd.f32 %v8482_v27, %v15780_v52  ;;  %v11909_v12 = vpop.f32.mrb[203].mxu1  ;;  %12069 = vmatmul.mubr.msk.f32.gmra.mrb[52].mxu1 %vm5618_vm8, %v8657_v31 }
 0x95d   : > { %v8487_v3 = vpop.f32.mrb[204].mxu1 }
 0x95e   : > { %v15972_v22 = vadd.f32 %v8487_v3, %v15786_v41  ;;  %v11912_v20 = vpop.f32.mrb[205].mxu1 }
 0x961   : > { %v8492_v10 = vpop.f32.mrb[206].mxu1 }
 0x962   : > { %v15975_v23 = vadd.f32 %v8492_v10, %v15792_v29  ;;  %v11915_v50 = vpop.f32.mrb[207].mxu1 }
 0x965   : > { %v8497_v51 = vpop.f32.mrb[208].mxu1 }
 0x966   : > { %v15978_v43 = vadd.f32 %v8497_v51, %v15798_v28  ;;  %v11918_v61 = vpop.f32.mrb[209].mxu1 }
 0x969   : > { %v8502_v52 = vpop.f32.mrb[210].mxu1 }
 0x96a   : > { %v15981_v56 = vadd.f32 %v8502_v52, %v15804_v39  ;;  %v11921_v55 = vpop.f32.mrb[211].mxu1 }
 0x96d   : > { %v8507_v9 = vpop.f32.mrb[212].mxu1 }
 0x96e   : > { %v15984_v41 = vadd.f32 %v8507_v9, %v15810_v13  ;;  %v11924_v5 = vpop.f32.mrb[213].mxu1 }
 0x971   : > { %v8512_v14 = vpop.f32.mrb[214].mxu1 }
 0x972   : > { %v15987_v29 = vadd.f32 %v8512_v14, %v15816_v15  ;;  %v11927_v59 = vpop.f32.mrb[215].mxu1 }
 0x975   : > { %v8517_v35 = vpop.f32.mrb[216].mxu1 }
 0x976   : > { %v15990_v28 = vadd.f32 %v8517_v35, %v15822_v4  ;;  %v11930_v8 = vpop.f32.mrb[217].mxu1 }
 0x979   : > { %v8522_v38 = vpop.f32.mrb[218].mxu1 }
 0x97a   : > { %v15993_v39 = vadd.f32 %v8522_v38, %v15828_v44  ;;  %v11933_v2 = vpop.f32.mrb[219].mxu1 }
 0x97d   : > { %v8527_v63 = vpop.f32.mrb[220].mxu1 }
 0x97e   : > { %v15996_v13 = vadd.f32 %v8527_v63, %v15834_v60  ;;  %v11936_v24 = vpop.f32.mrb[221].mxu1 }
 0x981   : > { %v8532_v11 = vpop.f32.mrb[222].mxu1 }
 0x982   : > { %v15999_v15 = vadd.f32 %v8532_v11, %v15840_v36  ;;  %v11939_v58 = vpop.f32.mrb[223].mxu1 }
 0x985   : > { %v8537_v62 = vpop.f32.mrb[224].mxu1 }
 0x986   : > { %v16002_v4 = vadd.f32 %v8537_v62, %v15846_v30  ;;  %v11942_v17 = vpop.f32.mrb[225].mxu1 }
 0x989   : > { %v8542_v54 = vpop.f32.mrb[226].mxu1 }
 0x98a   : > { %v16005_v44 = vadd.f32 %v8542_v54, %v15852_v32  ;;  %v11945_v0 = vpop.f32.mrb[227].mxu1 }
 0x98d   : > { %v8547_v53 = vpop.f32.mrb[228].mxu1 }
 0x98e   : > { %v16008_v60 = vadd.f32 %v8547_v53, %v15858_v21  ;;  %v11948_v19 = vpop.f32.mrb[229].mxu1 }
 0x991   : > { %v8552_v27 = vpop.f32.mrb[230].mxu1 }
 0x992   : > { %v16011_v36 = vadd.f32 %v8552_v27, %v15864_v33  ;;  %v11951_v31 = vpop.f32.mrb[231].mxu1 }
 0x995   : > { %v8557_v12 = vpop.f32.mrb[232].mxu1 }
 0x996   : > { %v16014_v30 = vadd.f32 %v8557_v12, %v15870_v1  ;;  %v11954_v3 = vpop.f32.mrb[233].mxu1 }
 0x999   : > { %v8562_v20 = vpop.f32.mrb[234].mxu1 }
 0x99a   : > { %v16017_v32 = vadd.f32 %v8562_v20, %v15876_v18  ;;  %v11957_v10 = vpop.f32.mrb[235].mxu1 }
 0x99d   : > { %v8567_v50 = vpop.f32.mrb[236].mxu1 }
 0x99e   : > { %v16020_v21 = vadd.f32 %v8567_v50, %v15882_v47  ;;  %v11960_v51 = vpop.f32.mrb[237].mxu1 }
 0x9a1   : > { %v8572_v61 = vpop.f32.mrb[238].mxu1 }
 0x9a2   : > { %v16023_v33 = vadd.f32 %v8572_v61, %v15888_v45  ;;  %v11963_v52 = vpop.f32.mrb[239].mxu1 }
 0x9a5   : > { %v8577_v55 = vpop.f32.mrb[240].mxu1 }
 0x9a6   : > { %v16026_v1 = vadd.f32 %v8577_v55, %v15894_v48  ;;  %v11966_v9 = vpop.f32.mrb[241].mxu1  ;;  %v16040_v48 = vld [vmem:[%s16181_s4] ss:$0 sm:$0xff] }
 0x9a9   : > { %v8582_v5 = vpop.f32.mrb[242].mxu1 }
 0x9aa   : > { %v16029_v18 = vadd.f32 %v8582_v5, %v15900_v34  ;;  %v11969_v14 = vpop.f32.mrb[243].mxu1 }
 0x9ad   : > { %v8587_v59 = vpop.f32.mrb[244].mxu1 }
 0x9ae   : > { %v16032_v47 = vadd.f32 %v8587_v59, %v15906_v6  ;;  %v11972_v35 = vpop.f32.mrb[245].mxu1 }
 0x9b1   : > { %v8592_v8 = vpop.f32.mrb[246].mxu1 }
 0x9b2   : > { %v16035_v45 = vadd.f32 %v8592_v8, %v15912_v40  ;;  %v11975_v38 = vpop.f32.mrb[247].mxu1 }
 0x9b5   : > { %v8794_v2 = vpop.f32.mrb[248].mxu1 }
 0x9b6   : > { %v8948_v34 = vadd.f32 %v8794_v2, %v15918_v42  ;;  %v11980_v63 = vpop.f32.mrb[249].mxu1 }
 0x9b8   : > { %v8986_v24 = vadd.f32 %v16040_v48, %v8948_v34 }
 0x9b9   : > { %v8799_v6 = vpop.f32.mrb[250].mxu1 }
 0x9ba   : > { %v9017_v11 = vmax.f32 %v8986_v24, 0.0  ;;  %v8949_v58 = vadd.f32 %v8799_v6, %v15926_v49  ;;  %v11983_v40 = vpop.f32.mrb[251].mxu1 }
 0x9bc   : > { %9049 = vst.msk [vmem:[#allocation4] sm:$0xff] %vm9048_vm10, %v9017_v11  ;;  %v8987_v62 = vadd.f32 %v16040_v48, %v8949_v58 }
 0x9bd   : > { %v8804_v17 = vpop.f32.mrb[252].mxu1 }
 0x9be   : > { %v9018_v54 = vmax.f32 %v8987_v62, 0.0  ;;  %v8950_v0 = vadd.f32 %v8804_v17, %v15932_v25  ;;  %v11986_v42 = vpop.f32.mrb[253].mxu1 }
 0x9c0   : > { %9050 = vst.msk [vmem:[#allocation4 + $0x8] sm:$0xff] %vm9048_vm10, %v9018_v54  ;;  %v8988_v53 = vadd.f32 %v16040_v48, %v8950_v0 }
 0x9c1   : > { %v8809_v19 = vpop.f32.mrb[254].mxu1 }
 0x9c2   : > { %v9019_v27 = vmax.f32 %v8988_v53, 0.0  ;;  %v8951_v49 = vadd.f32 %v8809_v19, %v15938_v37  ;;  %v11989_v31 = vpop.f32.mrb[255].mxu1 }
 0x9c4   : > { %9051 = vst.msk [vmem:[#allocation4 + $0x10] sm:$0xff] %vm9048_vm10, %v9019_v27  ;;  %v8989_v12 = vadd.f32 %v16040_v48, %v8951_v49 }
 0x9c5   : > { %v8814_v3 = vpop.f32.mrb[4].mxu1 }
 0x9c6   : > { %v9020_v20 = vmax.f32 %v8989_v12, 0.0  ;;  %v8952_v25 = vadd.f32 %v8814_v3, %v15944_v57  ;;  %v11992_v10 = vpop.f32.mrb[5].mxu1 }
 0x9c7   : > { %v9081_v50 = vld [vmem:[#allocation4] ss:$2 sm:$0xff]  ;;  %v9113_v51 = vld [vmem:[#allocation4 + $0x1] ss:$2 sm:$0xff] }
 0x9c8   : > { %v9144_v37 = vmax.f32 %v9081_v50, %v9113_v51  ;;  %9052 = vst.msk [vmem:[#allocation4 + $0x18] sm:$0xff] %vm9048_vm10, %v9020_v20  ;;  %v8990_v61 = vadd.f32 %v16040_v48, %v8952_v25 }
 0x9c9   : > { %v8819_v52 = vpop.f32.mrb[6].mxu1 }
 0x9ca   : > { %9160 = vst.msk [vmem:[%s16059_s7] sm:$0xff] %vm9048_vm10, %v9144_v37  ;;  %v9021_v55 = vmax.f32 %v8990_v61, 0.0  ;;  %v8953_v57 = vadd.f32 %v8819_v52, %v15950_v7  ;;  %v11995_v9 = vpop.f32.mrb[7].mxu1 }
 0x9cc   : > { %9053 = vst.msk [vmem:[#allocation4 + $0x20] sm:$0xff] %vm9048_vm10, %v9021_v55  ;;  %v8991_v5 = vadd.f32 %v16040_v48, %v8953_v57 }
 0x9cd   : > { %v8824_v14 = vpop.f32.mrb[0].mxu1 }
 0x9ce   : > { %v9022_v59 = vmax.f32 %v8991_v5, 0.0  ;;  %v8954_v35 = vadd.f32 %v8824_v14, %v15956_v26  ;;  %v11998_v8 = vpop.f32.mrb[1].mxu1 }
 0x9cf   : > { %v9083_v38 = vld [vmem:[#allocation4 + $0x10] ss:$2 sm:$0xff]  ;;  %v9115_v2 = vld [vmem:[#allocation4 + $0x11] ss:$2 sm:$0xff] }
 0x9d0   : > { %v9145_v34 = vmax.f32 %v9083_v38, %v9115_v2  ;;  %9054 = vst.msk [vmem:[#allocation4 + $0x28] sm:$0xff] %vm9048_vm10, %v9022_v59  ;;  %v8992_v63 = vadd.f32 %v16040_v48, %v8954_v35 }
 0x9d1   : > { %v8829_v24 = vpop.f32.mrb[2].mxu1 }
 0x9d2   : > { %9161 = vst.msk [vmem:[%s16059_s7 + $0x8] sm:$0xff] %vm9048_vm10, %v9145_v34  ;;  %v9023_v7 = vmax.f32 %v8992_v63, 0.0  ;;  %v8955_v6 = vadd.f32 %v8829_v24, %v15962_v46  ;;  %v12001_v11 = vpop.f32.mrb[3].mxu1 }
 0x9d4   : > { %9055 = vst.msk [vmem:[#allocation4 + $0x30] sm:$0xff] %vm9048_vm10, %v9023_v7  ;;  %v8993_v26 = vadd.f32 %v16040_v48, %v8955_v6 }
 0x9d5   : > { %v8834_v58 = vpop.f32.mrb[8].mxu1 }
 0x9d6   : > { %v9024_v40 = vmax.f32 %v8993_v26, 0.0  ;;  %v8956_v62 = vadd.f32 %v8834_v58, %v15968_v16  ;;  %v12004_v17 = vpop.f32.mrb[9].mxu1 }
 0x9d7   : > { %v9085_v54 = vld [vmem:[#allocation4 + $0x20] ss:$2 sm:$0xff]  ;;  %v9117_v0 = vld [vmem:[#allocation4 + $0x21] ss:$2 sm:$0xff] }
 0x9d8   : > { %v9146_v42 = vmax.f32 %v9085_v54, %v9117_v0  ;;  %9056 = vst.msk [vmem:[#allocation4 + $0x38] sm:$0xff] %vm9048_vm10, %v9024_v40  ;;  %v8994_v53 = vadd.f32 %v16040_v48, %v8956_v62 }
 0x9d9   : > { %v8839_v19 = vpop.f32.mrb[10].mxu1 }
 0x9da   : > { %9162 = vst.msk [vmem:[%s16059_s7 + $0x10] sm:$0xff] %vm9048_vm10, %v9146_v42  ;;  %v9025_v46 = vmax.f32 %v8994_v53, 0.0  ;;  %v8957_v27 = vadd.f32 %v8839_v19, %v15972_v22  ;;  %v12007_v49 = vpop.f32.mrb[11].mxu1 }
 0x9dc   : > { %9057 = vst.msk [vmem:[#allocation4 + $0x40] sm:$0xff] %vm9048_vm10, %v9025_v46  ;;  %v8995_v16 = vadd.f32 %v16040_v48, %v8957_v27 }
 0x9dd   : > { %v8844_v31 = vpop.f32.mrb[12].mxu1 }
 0x9de   : > { %v9026_v12 = vmax.f32 %v8995_v16, 0.0  ;;  %v8958_v3 = vadd.f32 %v8844_v31, %v15975_v23  ;;  %v12010_v20 = vpop.f32.mrb[13].mxu1 }
 0x9df   : > { %v9087_v25 = vld [vmem:[#allocation4 + $0x30] ss:$2 sm:$0xff]  ;;  %v9119_v10 = vld [vmem:[#allocation4 + $0x31] ss:$2 sm:$0xff] }
 0x9e0   : > { %v9147_v50 = vmax.f32 %v9087_v25, %v9119_v10  ;;  %9058 = vst.msk [vmem:[#allocation4 + $0x48] sm:$0xff] %vm9048_vm10, %v9026_v12  ;;  %v8996_v51 = vadd.f32 %v16040_v48, %v8958_v3 }
 0x9e1   : > { %v8849_v37 = vpop.f32.mrb[14].mxu1 }
 0x9e2   : > { %9163 = vst.msk [vmem:[%s16059_s7 + $0x18] sm:$0xff] %vm9048_vm10, %v9147_v50  ;;  %v9027_v22 = vmax.f32 %v8996_v51, 0.0  ;;  %v8959_v61 = vadd.f32 %v8849_v37, %v15978_v43  ;;  %v12013_v52 = vpop.f32.mrb[15].mxu1 }
 0x9e4   : > { %9059 = vst.msk [vmem:[#allocation4 + $0x50] sm:$0xff] %vm9048_vm10, %v9027_v22  ;;  %v8997_v23 = vadd.f32 %v16040_v48, %v8959_v61 }
 0x9e5   : > { %v8854_v55 = vpop.f32.mrb[16].mxu1 }
 0x9e6   : > { %v9028_v57 = vmax.f32 %v8997_v23, 0.0  ;;  %v8960_v9 = vadd.f32 %v8854_v55, %v15981_v56  ;;  %v12016_v5 = vpop.f32.mrb[17].mxu1 }
 0x9e7   : > { %v9089_v14 = vld [vmem:[#allocation4 + $0x40] ss:$2 sm:$0xff]  ;;  %v9121_v59 = vld [vmem:[#allocation4 + $0x41] ss:$2 sm:$0xff] }
 0x9e8   : > { %v9148_v35 = vmax.f32 %v9089_v14, %v9121_v59  ;;  %9060 = vst.msk [vmem:[#allocation4 + $0x58] sm:$0xff] %vm9048_vm10, %v9028_v57  ;;  %v8998_v8 = vadd.f32 %v16040_v48, %v8960_v9 }
 0x9e9   : > { %v8859_v38 = vpop.f32.mrb[18].mxu1 }
 0x9ea   : > { %9164 = vst.msk [vmem:[%s16059_s7 + $0x20] sm:$0xff] %vm9048_vm10, %v9148_v35  ;;  %v9029_v43 = vmax.f32 %v8998_v8, 0.0  ;;  %v8961_v2 = vadd.f32 %v8859_v38, %v15984_v41  ;;  %v12019_v34 = vpop.f32.mrb[19].mxu1 }
 0x9ec   : > { %9061 = vst.msk [vmem:[#allocation4 + $0x60] sm:$0xff] %vm9048_vm10, %v9029_v43  ;;  %v8999_v56 = vadd.f32 %v16040_v48, %v8961_v2 }
 0x9ed   : > { %v8864_v63 = vpop.f32.mrb[20].mxu1 }
 0x9ee   : > { %v9030_v24 = vmax.f32 %v8999_v56, 0.0  ;;  %v8962_v7 = vadd.f32 %v8864_v63, %v15987_v29  ;;  %v12022_v6 = vpop.f32.mrb[21].mxu1 }
 0x9ef   : > { %v9091_v11 = vld [vmem:[#allocation4 + $0x50] ss:$2 sm:$0xff]  ;;  %v9123_v26 = vld [vmem:[#allocation4 + $0x51] ss:$2 sm:$0xff] }
 0x9f0   : > { %v9149_v58 = vmax.f32 %v9091_v11, %v9123_v26  ;;  %9062 = vst.msk [vmem:[#allocation4 + $0x68] sm:$0xff] %vm9048_vm10, %v9030_v24  ;;  %v9000_v40 = vadd.f32 %v16040_v48, %v8962_v7 }
 0x9f1   : > { %v8869_v62 = vpop.f32.mrb[22].mxu1 }
 0x9f2   : > { %9165 = vst.msk [vmem:[%s16059_s7 + $0x28] sm:$0xff] %vm9048_vm10, %v9149_v58  ;;  %v9031_v41 = vmax.f32 %v9000_v40, 0.0  ;;  %v8963_v17 = vadd.f32 %v8869_v62, %v15990_v28  ;;  %v12025_v54 = vpop.f32.mrb[23].mxu1 }
 0x9f4   : > { %9063 = vst.msk [vmem:[#allocation4 + $0x70] sm:$0xff] %vm9048_vm10, %v9031_v41  ;;  %v9001_v29 = vadd.f32 %v16040_v48, %v8963_v17 }
 0x9f5   : > { %v8874_v0 = vpop.f32.mrb[24].mxu1 }
 0x9f6   : > { %v9032_v42 = vmax.f32 %v9001_v29, 0.0  ;;  %v8964_v53 = vadd.f32 %v8874_v0, %v15993_v39  ;;  %v12028_v19 = vpop.f32.mrb[25].mxu1 }
 0x9f7   : > { %v9093_v46 = vld [vmem:[#allocation4 + $0x60] ss:$2 sm:$0xff]  ;;  %v9125_v27 = vld [vmem:[#allocation4 + $0x61] ss:$2 sm:$0xff] }
 0x9f8   : > { %v9150_v49 = vmax.f32 %v9093_v46, %v9125_v27  ;;  %9064 = vst.msk [vmem:[#allocation4 + $0x78] sm:$0xff] %vm9048_vm10, %v9032_v42  ;;  %v9002_v16 = vadd.f32 %v16040_v48, %v8964_v53 }
 0x9f9   : > { %v8879_v31 = vpop.f32.mrb[26].mxu1 }
 0x9fa   : > { %9166 = vst.msk [vmem:[%s16059_s7 + $0x30] sm:$0xff] %vm9048_vm10, %v9150_v49  ;;  %v9033_v28 = vmax.f32 %v9002_v16, 0.0  ;;  %v8965_v12 = vadd.f32 %v8879_v31, %v15996_v13  ;;  %v12031_v3 = vpop.f32.mrb[27].mxu1 }
 0x9fc   : > { %9065 = vst.msk [vmem:[#allocation4 + $0x80] sm:$0xff] %vm9048_vm10, %v9033_v28  ;;  %v9003_v39 = vadd.f32 %v16040_v48, %v8965_v12 }
 0x9fd   : > { %v8884_v20 = vpop.f32.mrb[28].mxu1 }
 0x9fe   : > { %v9034_v25 = vmax.f32 %v9003_v39, 0.0  ;;  %v8966_v10 = vadd.f32 %v8884_v20, %v15999_v15  ;;  %v12034_v50 = vpop.f32.mrb[29].mxu1 }
 0x9ff   : > { %v9095_v51 = vld [vmem:[#allocation4 + $0x70] ss:$2 sm:$0xff]  ;;  %v9127_v37 = vld [vmem:[#allocation4 + $0x71] ss:$2 sm:$0xff] }
 0xa00   : > { %v9151_v22 = vmax.f32 %v9095_v51, %v9127_v37  ;;  %9066 = vst.msk [vmem:[#allocation4 + $0x88] sm:$0xff] %vm9048_vm10, %v9034_v25  ;;  %v9004_v61 = vadd.f32 %v16040_v48, %v8966_v10 }
 0xa01   : > { %v8889_v52 = vpop.f32.mrb[30].mxu1 }
 0xa02   : > { %9167 = vst.msk [vmem:[%s16059_s7 + $0x38] sm:$0xff] %vm9048_vm10, %v9151_v22  ;;  %v9035_v13 = vmax.f32 %v9004_v61, 0.0  ;;  %v8967_v23 = vadd.f32 %v8889_v52, %v16002_v4  ;;  %v12037_v55 = vpop.f32.mrb[31].mxu1 }
 0xa04   : > { %9067 = vst.msk [vmem:[#allocation4 + $0x90] sm:$0xff] %vm9048_vm10, %v9035_v13  ;;  %v9005_v15 = vadd.f32 %v16040_v48, %v8967_v23 }
 0xa05   : > { %v8894_v57 = vpop.f32.mrb[32].mxu1 }
 0xa06   : > { %v9036_v9 = vmax.f32 %v9005_v15, 0.0  ;;  %v8968_v5 = vadd.f32 %v8894_v57, %v16005_v44  ;;  %v12040_v14 = vpop.f32.mrb[33].mxu1 }
 0xa07   : > { %v9097_v59 = vld [vmem:[#allocation4 + $0x80] ss:$2 sm:$0xff]  ;;  %v9129_v35 = vld [vmem:[#allocation4 + $0x81] ss:$2 sm:$0xff] }
 0xa08   : > { %v9152_v8 = vmax.f32 %v9097_v59, %v9129_v35  ;;  %9068 = vst.msk [vmem:[#allocation4 + $0x98] sm:$0xff] %vm9048_vm10, %v9036_v9  ;;  %v9006_v38 = vadd.f32 %v16040_v48, %v8968_v5 }
 0xa09   : > { %v8899_v43 = vpop.f32.mrb[34].mxu1 }
 0xa0a   : > { %9168 = vst.msk [vmem:[%s16059_s7 + $0x40] sm:$0xff] %vm9048_vm10, %v9152_v8  ;;  %v9037_v4 = vmax.f32 %v9006_v38, 0.0  ;;  %v8969_v2 = vadd.f32 %v8899_v43, %v16008_v60  ;;  %v12043_v34 = vpop.f32.mrb[35].mxu1 }
 0xa0c   : > { %9069 = vst.msk [vmem:[#allocation4 + $0xa0] sm:$0xff] %vm9048_vm10, %v9037_v4  ;;  %v9007_v44 = vadd.f32 %v16040_v48, %v8969_v2 }
 0xa0d   : > { %v8904_v56 = vpop.f32.mrb[36].mxu1 }
 0xa0e   : > { %v9038_v63 = vmax.f32 %v9007_v44, 0.0  ;;  %v8970_v24 = vadd.f32 %v8904_v56, %v16011_v36  ;;  %v12046_v7 = vpop.f32.mrb[37].mxu1 }
 0xa0f   : > { %v9099_v6 = vld [vmem:[#allocation4 + $0x90] ss:$2 sm:$0xff]  ;;  %v9131_v11 = vld [vmem:[#allocation4 + $0x91] ss:$2 sm:$0xff] }
 0xa10   : > { %v9153_v26 = vmax.f32 %v9099_v6, %v9131_v11  ;;  %9070 = vst.msk [vmem:[#allocation4 + $0xa8] sm:$0xff] %vm9048_vm10, %v9038_v63  ;;  %v9008_v58 = vadd.f32 %v16040_v48, %v8970_v24 }
 0xa11   : > { %v8909_v40 = vpop.f32.mrb[38].mxu1 }
 0xa12   : > { %9169 = vst.msk [vmem:[%s16059_s7 + $0x48] sm:$0xff] %vm9048_vm10, %v9153_v26  ;;  %v9039_v60 = vmax.f32 %v9008_v58, 0.0  ;;  %v8971_v62 = vadd.f32 %v8909_v40, %v16014_v30  ;;  %v12049_v41 = vpop.f32.mrb[39].mxu1 }
 0xa14   : > { %9071 = vst.msk [vmem:[#allocation4 + $0xb0] sm:$0xff] %vm9048_vm10, %v9039_v60  ;;  %v9009_v36 = vadd.f32 %v16040_v48, %v8971_v62 }
 0xa15   : > { %v8914_v17 = vpop.f32.mrb[40].mxu1 }
 0xa16   : > { %v9040_v54 = vmax.f32 %v9009_v36, 0.0  ;;  %v8972_v29 = vadd.f32 %v8914_v17, %v16017_v32  ;;  %v12052_v0 = vpop.f32.mrb[41].mxu1 }
 0xa17   : > { %v9101_v42 = vld [vmem:[#allocation4 + $0xa0] ss:$2 sm:$0xff]  ;;  %v9133_v53 = vld [vmem:[#allocation4 + $0xa1] ss:$2 sm:$0xff] }
 0xa18   : > { %v9154_v19 = vmax.f32 %v9101_v42, %v9133_v53  ;;  %9072 = vst.msk [vmem:[#allocation4 + $0xb8] sm:$0xff] %vm9048_vm10, %v9040_v54  ;;  %v9010_v46 = vadd.f32 %v16040_v48, %v8972_v29 }
 0xa19   : > { %v8919_v27 = vpop.f32.mrb[42].mxu1 }
 0xa1a   : > { %9170 = vst.msk [vmem:[%s16059_s7 + $0x50] sm:$0xff] %vm9048_vm10, %v9154_v19  ;;  %v9041_v30 = vmax.f32 %v9010_v46, 0.0  ;;  %v8973_v49 = vadd.f32 %v8919_v27, %v16020_v21  ;;  %v12055_v16 = vpop.f32.mrb[43].mxu1 }
 0xa1c   : > { %9073 = vst.msk [vmem:[#allocation4 + $0xc0] sm:$0xff] %vm9048_vm10, %v9041_v30  ;;  %v9011_v32 = vadd.f32 %v16040_v48, %v8973_v49 }
 0xa1d   : > { %v8924_v31 = vpop.f32.mrb[44].mxu1 }
 0xa1e   : > { %v9042_v28 = vmax.f32 %v9011_v32, 0.0  ;;  %v8974_v12 = vadd.f32 %v8924_v31, %v16023_v33  ;;  %v12058_v3 = vpop.f32.mrb[45].mxu1 }
 0xa1f   : > { %v9103_v39 = vld [vmem:[#allocation4 + $0xb0] ss:$2 sm:$0xff]  ;;  %v9135_v20 = vld [vmem:[#allocation4 + $0xb1] ss:$2 sm:$0xff] }
 0xa20   : > { %v9155_v25 = vmax.f32 %v9103_v39, %v9135_v20  ;;  %9074 = vst.msk [vmem:[#allocation4 + $0xc8] sm:$0xff] %vm9048_vm10, %v9042_v28  ;;  %v9012_v10 = vadd.f32 %v16040_v48, %v8974_v12 }
 0xa21   : > { %v8929_v50 = vpop.f32.mrb[46].mxu1 }
 0xa22   : > { %9171 = vst.msk [vmem:[%s16059_s7 + $0x58] sm:$0xff] %vm9048_vm10, %v9155_v25  ;;  %v9043_v21 = vmax.f32 %v9012_v10, 0.0  ;;  %v8975_v51 = vadd.f32 %v8929_v50, %v16026_v1  ;;  %v12061_v37 = vpop.f32.mrb[47].mxu1 }
 0xa24   : > { %9075 = vst.msk [vmem:[#allocation4 + $0xd0] sm:$0xff] %vm9048_vm10, %v9043_v21  ;;  %v9013_v33 = vadd.f32 %v16040_v48, %v8975_v51 }
 0xa25   : > { %v8934_v22 = vpop.f32.mrb[48].mxu1 }
 0xa26   : > { %v9044_v61 = vmax.f32 %v9013_v33, 0.0  ;;  %v8976_v52 = vadd.f32 %v8934_v22, %v16029_v18  ;;  %v12064_v13 = vpop.f32.mrb[49].mxu1 }
 0xa27   : > { %v9105_v23 = vld [vmem:[#allocation4 + $0xc0] ss:$2 sm:$0xff]  ;;  %v9137_v55 = vld [vmem:[#allocation4 + $0xc1] ss:$2 sm:$0xff] }
 0xa28   : > { %v9156_v15 = vmax.f32 %v9105_v23, %v9137_v55  ;;  %9076 = vst.msk [vmem:[#allocation4 + $0xd8] sm:$0xff] %vm9048_vm10, %v9044_v61  ;;  %v9014_v57 = vadd.f32 %v16040_v48, %v8976_v52 }
 0xa29   : > { %v8939_v9 = vpop.f32.mrb[50].mxu1 }
 0xa2a   : > { %9172 = vst.msk [vmem:[%s16059_s7 + $0x60] sm:$0xff] %vm9048_vm10, %v9156_v15  ;;  %v9045_v1 = vmax.f32 %v9014_v57, 0.0  ;;  %v8977_v5 = vadd.f32 %v8939_v9, %v16032_v47  ;;  %v12067_v14 = vpop.f32.mrb[51].mxu1 }
 0xa2c   : > { %9077 = vst.msk [vmem:[#allocation4 + $0xe0] sm:$0xff] %vm9048_vm10, %v9045_v1  ;;  %v9015_v18 = vadd.f32 %v16040_v48, %v8977_v5 }
 0xa2d   : > { %v8944_v59 = vpop.f32.mrb[52].mxu1 }
 0xa2e   : > { %v9046_v35 = vmax.f32 %v9015_v18, 0.0  ;;  %v8978_v8 = vadd.f32 %v8944_v59, %v16035_v45  ;;  %v12070_v38 = vpop.f32.mrb[53].mxu1 }
 0xa2f   : > { %v9107_v43 = vld [vmem:[#allocation4 + $0xd0] ss:$2 sm:$0xff]  ;;  %v9139_v4 = vld [vmem:[#allocation4 + $0xd1] ss:$2 sm:$0xff] }
 0xa30   : > { %v9157_v2 = vmax.f32 %v9107_v43, %v9139_v4  ;;  %9078 = vst.msk [vmem:[#allocation4 + $0xe8] sm:$0xff] %vm9048_vm10, %v9046_v35  ;;  %v9016_v34 = vadd.f32 %v16040_v48, %v8978_v8 }
 0xa32   : > { %9173 = vst.msk [vmem:[%s16059_s7 + $0x68] sm:$0xff] %vm9048_vm10, %v9157_v2  ;;  %v9047_v47 = vmax.f32 %v9016_v34, 0.0 }
 0xa34   : > { %9079 = vst.msk [vmem:[#allocation4 + $0xf0] sm:$0xff] %vm9048_vm10, %v9047_v47 }
 0xa37   : > { %v9109_v44 = vld [vmem:[#allocation4 + $0xe0] ss:$2 sm:$0xff]  ;;  %v9141_v56 = vld [vmem:[#allocation4 + $0xe1] ss:$2 sm:$0xff] }
 0xa38   : > { %v9158_v63 = vmax.f32 %v9109_v44, %v9141_v56 }
 0xa3a   : > { %9174 = vst.msk [vmem:[%s16059_s7 + $0x70] sm:$0xff] %vm9048_vm10, %v9158_v63 }
 0xa3b   : > { %v9111_v45 = vld [vmem:[#allocation4 + $0xf0] ss:$2 sm:$0xff]  ;;  %v9143_v24 = vld [vmem:[#allocation4 + $0xf1] ss:$2 sm:$0xff] }
 0xa3c   : > { %v9159_v7 = vmax.f32 %v9111_v45, %v9143_v24 }
 0xa3e   : > { %9175 = vst.msk [vmem:[%s16059_s7 + $0x78] sm:$0xff] %vm9048_vm10, %v9159_v7 }
 0xa3f PF: > { %s15_s18 = sadd.s32 1, %s12744_s18  }
 0xa40   : > { %p12_p5 = scmp.ge.s32.totalorder %s15_s18, 4  }
 0xa42   :  { %14 = sbr.rel (!%p12_p5) target bundleno = 1 (0x1), region = 180 }

</bundles_post_ra>
